<compile_context>
chip_gen: v7x
topology: tpu7x:2x2x1
jax: 0.10.0
libtpu: 0.0.40
codegen_flags: <defaults>
</compile_context>

<pallas_src>
import functools
import numpy as np
import jax
import jax.numpy as jnp
from jax.experimental import pallas as pl
from jax.experimental.pallas import tpu as pltpu

LANE = 128


def _round_up(x, m):
    return ((x + m - 1) // m) * m


# ----------------------------------------------------------------------------
# Pallas kernel: direct convolution as tap-wise matmuls, fused bias + ReLU
# ----------------------------------------------------------------------------
def _conv_taps_kernel(x_ref, w_ref, b_ref, o_ref, acc_ref, *, offsets, hout, wout, act):
    """Direct (sliding-window) conv expressed as tap-wise MXU matmuls.

    x_ref : (1, Hin, Win, Cin)   bf16, spatially padded input, one batch image
    w_ref : (P*T, Cin, tn)       bf16, phase/tap-major weight slices
    b_ref : (1, tn)              f32
    o_ref : (1, P*hout, wout, tn) f32  (phase-major output)
    acc_ref: VMEM (hout*wout, tn) f32 accumulator
    offsets: tuple over P phases, each a tuple of T (row_off, col_off) taps.
    """
    cin = x_ref.shape[-1]
    tn = o_ref.shape[-1]
    num_taps = len(offsets[0])
    for p, taps in enumerate(offsets):
        for t, (oy, ox) in enumerate(taps):
            xs = x_ref[0, oy:oy + hout, ox:ox + wout, :].reshape(hout * wout, cin)
            contrib = jnp.dot(xs, w_ref[p * num_taps + t],
                              preferred_element_type=jnp.float32)
            if t == 0:
                acc_ref[...] = contrib
            else:
                acc_ref[...] += contrib
        y = acc_ref[...] + b_ref[...]
        if act == "relu":
            y = jnp.maximum(y, 0.0)
        o_ref[0, p * hout:(p + 1) * hout] = y.reshape(hout, wout, tn)


def _conv_taps(xpad_bf16, w_taps, bias, *, offsets, hout, wout, act, tn=LANE):
    """xpad_bf16: (N, Hin, Win, Cin) bf16; w_taps: (P*T, Cin, Cout) f32;
    bias: (Cout,) f32.  Returns (N, P*hout, wout, Cout) f32 (phase-major)."""
    n, hin, win, cin = xpad_bf16.shape
    pt, _, cout = w_taps.shape
    p = len(offsets)
    coutp = _round_up(cout, tn)

    # Pad Cout to a lane-dense multiple of 128 and cast weights to bf16.
    w_p = jnp.zeros((pt, cin, coutp), jnp.bfloat16)
    w_p = w_p.at[:, :, :cout].set(w_taps.astype(jnp.bfloat16))
    b_p = jnp.zeros((1, coutp), jnp.float32)
    b_p = b_p.at[:, :cout].set(bias.astype(jnp.float32).reshape(1, cout))

    kernel = functools.partial(_conv_taps_kernel, offsets=offsets,
                               hout=hout, wout=wout, act=act)
    out = pl.pallas_call(
        kernel,
        out_shape=jax.ShapeDtypeStruct((n, p * hout, wout, coutp), jnp.float32),
        grid_spec=pltpu.PrefetchScalarGridSpec(
            num_scalar_prefetch=0,
            grid=(n, coutp // tn),
            in_specs=[
                pl.BlockSpec((1, hin, win, cin), lambda b, j: (b, 0, 0, 0)),
                pl.BlockSpec((pt, cin, tn), lambda b, j: (0, 0, j)),
                pl.BlockSpec((1, tn), lambda b, j: (0, j)),
            ],
            out_specs=pl.BlockSpec((1, p * hout, wout, tn),
                                   lambda b, j: (b, 0, 0, j)),
            scratch_shapes=[pltpu.VMEM((hout * wout, tn), jnp.float32)],
        ),
        compiler_params=pltpu.CompilerParams(
            dimension_semantics=("parallel", "parallel"),
            vmem_limit_bytes=32 * 1024 * 1024,
        ),
    )(xpad_bf16, w_p, b_p)
    return out[..., :cout]


# ----------------------------------------------------------------------------
# Conv3x3 (padding=1, stride=1) + ReLU
# ----------------------------------------------------------------------------
def conv3x3_relu(x_nhwc, w_oihw, bias):
    n, h, w, cin = x_nhwc.shape
    cout = w_oihw.shape[0]
    xpad = jnp.pad(x_nhwc, ((0, 0), (1, 1), (1, 1), (0, 0))).astype(jnp.bfloat16)
    # (Cout, Cin, ky, kx) -> (ky*3+kx, Cin, Cout)
    w_taps = jnp.transpose(w_oihw, (2, 3, 1, 0)).reshape(9, cin, cout)
    offsets = (tuple((ky, kx) for ky in range(3) for kx in range(3)),)
    y = _conv_taps(xpad, w_taps, bias, offsets=offsets, hout=h, wout=w, act="relu")
    return y  # (N, H, W, Cout)


# ----------------------------------------------------------------------------
# ConvTranspose2d(kernel=4, stride=2, padding=1) + ReLU via 2x2 phase decomposition
# ----------------------------------------------------------------------------
def deconv4x4s2_relu(x_nhwc, w_iohw, bias):
    """x: (N,H,W,Cin), w: (Cin, Cout, 4, 4) torch layout -> (N, 2H, 2W, Cout).

    Each output parity phase (py, px) is a 2x2 conv over the un-dilated input:
      y[2r+py, 2c+px] = sum_{dy,dx in {0,1}} xpad[r+py+dy, c+px+dx] *
                        w[:, :, 3-2*dy-py, 3-2*dx-px]
    (xpad zero-padded by 1 on all sides) — 4x fewer MACs than zero-dilation.
    """
    n, h, w, cin = x_nhwc.shape
    cout = w_iohw.shape[1]
    xpad = jnp.pad(x_nhwc, ((0, 0), (1, 1), (1, 1), (0, 0))).astype(jnp.bfloat16)

    taps = []
    offsets = []
    for py in range(2):
        for px in range(2):
            phase_offs = []
            for dy in range(2):
                for dx in range(2):
                    taps.append(w_iohw[:, :, 3 - 2 * dy - py, 3 - 2 * dx - px])
                    phase_offs.append((py + dy, px + dx))
            offsets.append(tuple(phase_offs))
    w_taps = jnp.stack(taps, axis=0)  # (16, Cin, Cout), phase/tap-major

    y = _conv_taps(xpad, w_taps, bias, offsets=tuple(offsets),
                   hout=h, wout=w, act="relu")        # (N, 4*H, W, Cout)
    # Interleave phases into even/odd output rows/cols.
    y = y.reshape(n, 2, 2, h, w, cout)                # (N, py, px, r, c, C)
    y = jnp.transpose(y, (0, 3, 1, 4, 2, 5)).reshape(n, 2 * h, 2 * w, cout)
    return y


# ----------------------------------------------------------------------------
# DecoderBlock forward (is_deconv=True path, matching the PyTorch default)
# ----------------------------------------------------------------------------
# TODO(synk): the is_deconv=False branch (bilinear Upsample + 2x ConvRelu) is not
# implemented; the module's default (is_deconv=True) path is what runs here.
def decoder_block_forward(params, x_nchw):
    x = jnp.transpose(x_nchw, (0, 2, 3, 1)).astype(jnp.float32)  # NCHW -> NHWC
    t = conv3x3_relu(x, params["conv"]["w"], params["conv"]["b"])
    y = deconv4x4s2_relu(t, params["deconv"]["w"], params["deconv"]["b"])
    return jnp.transpose(y, (0, 3, 1, 2))  # NHWC -> NCHW


# ----------------------------------------------------------------------------
# Deterministic PyTorch-default-style parameter init
# ----------------------------------------------------------------------------
def init_params(key, in_channels, middle_channels, out_channels):
    k1, k2, k3, k4 = jax.random.split(key, 4)
    cb = 1.0 / np.sqrt(in_channels * 3 * 3)
    db = 1.0 / np.sqrt(out_channels * 4 * 4)
    return {
        "conv": {
            "w": jax.random.uniform(k1, (middle_channels, in_channels, 3, 3),
                                    jnp.float32, -cb, cb),
            "b": jax.random.uniform(k2, (middle_channels,), jnp.float32, -cb, cb),
        },
        "deconv": {
            # torch ConvTranspose2d weight layout: (Cin, Cout, kH, kW)
            "w": jax.random.uniform(k3, (middle_channels, out_channels, 4, 4),
                                    jnp.float32, -db, db),
            "b": jax.random.uniform(k4, (out_channels,), jnp.float32, -db, db),
        },
    }


# ----------------------------------------------------------------------------
if __name__ == "__main__":
    key = jax.random.PRNGKey(0)
    pkey, xkey = jax.random.split(key)

    N, IN_CH, MID_CH, OUT_CH, H, W = 2, 32, 64, 32, 16, 16
    params = init_params(pkey, IN_CH, MID_CH, OUT_CH)
    x = jax.random.normal(xkey, (N, IN_CH, H, W), dtype=jnp.float32)

    fwd = jax.jit(decoder_block_forward)
    out = jax.block_until_ready(fwd(params, x))

    assert out.shape == (N, OUT_CH, 2 * H, 2 * W), out.shape
    assert out.dtype == jnp.float32
    assert bool(jnp.all(jnp.isfinite(out)))
    print("KERNEL_OK")
</pallas_src>

<mosaic_0001>
module attributes {stable_mosaic.version = 11 : i64} {
  func.func @_conv_taps_kernel(%arg0: i32, %arg1: i32, %arg2: memref<1x18x18x32xbf16, #tpu.memory_space<vmem>>, %arg3: memref<9x32x128xbf16, #tpu.memory_space<vmem>>, %arg4: memref<1x128xf32, #tpu.memory_space<vmem>>, %arg5: memref<1x16x16x128xf32, #tpu.memory_space<vmem>>, %arg6: memref<256x128xf32, #tpu.memory_space<vmem>>) attributes {dimension_semantics = [#tpu.dimension_semantics<parallel>, #tpu.dimension_semantics<parallel>], iteration_bounds = array<i64: 2, 1>, scalar_prefetch = 0 : i64, scratch_operands = 1 : i64, tpu.core_type = #tpu.core_type<tc>, window_params = [{transform_indices = @transform_0, window_bounds = array<i64: 1, 18, 18, 32>}, {transform_indices = @transform_1, window_bounds = array<i64: 9, 32, 128>}, {transform_indices = @transform_2, window_bounds = array<i64: 1, 128>}, {transform_indices = @transform_3, window_bounds = array<i64: 1, 16, 16, 128>}]} {
    %c0 = arith.constant 0 : index
    %c0_0 = arith.constant 0 : index
    %c0_1 = arith.constant 0 : index
    %c0_2 = arith.constant 0 : index
    %0 = vector.load %arg2[%c0, %c0_0, %c0_1, %c0_2] : memref<1x18x18x32xbf16, #tpu.memory_space<vmem>>, vector<1x16x16x32xbf16>
    %1 = vector.shape_cast %0 : vector<1x16x16x32xbf16> to vector<16x16x32xbf16>
    %2 = vector.shape_cast %1 : vector<16x16x32xbf16> to vector<256x32xbf16>
    %c0_3 = arith.constant 0 : index
    %c0_4 = arith.constant 0 : index
    %c0_5 = arith.constant 0 : index
    %3 = vector.load %arg3[%c0_3, %c0_4, %c0_5] : memref<9x32x128xbf16, #tpu.memory_space<vmem>>, vector<1x32x128xbf16>
    %4 = vector.shape_cast %3 : vector<1x32x128xbf16> to vector<32x128xbf16>
    %cst = arith.constant dense<0.000000e+00> : vector<256x128xf32>
    %5 = tpu.matmul %2, %4, %cst {dimension_numbers = #tpu.dot_dimension_numbers<[1], [0], [0], [1], [0, 0, 1, 1], [], []>} : vector<256x32xbf16>, vector<32x128xbf16>, vector<256x128xf32> -> vector<256x128xf32>
    %c0_6 = arith.constant 0 : index
    %c0_7 = arith.constant 0 : index
    %6 = vector.load %arg6[%c0_6, %c0_7] : memref<256x128xf32, #tpu.memory_space<vmem>>, vector<256x128xf32>
    tpu.vector_store %arg6[%c0_6, %c0_7], %5 {strides = array<i32>} : memref<256x128xf32, #tpu.memory_space<vmem>>, vector<256x128xf32>,
    %c0_8 = arith.constant 0 : index
    %c0_9 = arith.constant 0 : index
    %c1 = arith.constant 1 : index
    %c0_10 = arith.constant 0 : index
    %7 = vector.load %arg2[%c0_8, %c0_9, %c1, %c0_10] : memref<1x18x18x32xbf16, #tpu.memory_space<vmem>>, vector<1x16x16x32xbf16>
    %8 = vector.shape_cast %7 : vector<1x16x16x32xbf16> to vector<16x16x32xbf16>
    %9 = vector.shape_cast %8 : vector<16x16x32xbf16> to vector<256x32xbf16>
    %c1_11 = arith.constant 1 : index
    %c0_12 = arith.constant 0 : index
    %c0_13 = arith.constant 0 : index
    %10 = vector.load %arg3[%c1_11, %c0_12, %c0_13] : memref<9x32x128xbf16, #tpu.memory_space<vmem>>, vector<1x32x128xbf16>
    %11 = vector.shape_cast %10 : vector<1x32x128xbf16> to vector<32x128xbf16>
    %cst_14 = arith.constant dense<0.000000e+00> : vector<256x128xf32>
    %12 = tpu.matmul %9, %11, %cst_14 {dimension_numbers = #tpu.dot_dimension_numbers<[1], [0], [0], [1], [0, 0, 1, 1], [], []>} : vector<256x32xbf16>, vector<32x128xbf16>, vector<256x128xf32> -> vector<256x128xf32>
    %c0_15 = arith.constant 0 : index
    %c0_16 = arith.constant 0 : index
    %13 = vector.load %arg6[%c0_15, %c0_16] : memref<256x128xf32, #tpu.memory_space<vmem>>, vector<256x128xf32>
    %14 = arith.addf %13, %12 : vector<256x128xf32>
    %c0_17 = arith.constant 0 : index
    %c0_18 = arith.constant 0 : index
    %15 = vector.load %arg6[%c0_17, %c0_18] : memref<256x128xf32, #tpu.memory_space<vmem>>, vector<256x128xf32>
    tpu.vector_store %arg6[%c0_17, %c0_18], %14 {strides = array<i32>} : memref<256x128xf32, #tpu.memory_space<vmem>>, vector<256x128xf32>,
    %c0_19 = arith.constant 0 : index
    %c0_20 = arith.constant 0 : index
    %c2 = arith.constant 2 : index
    %c0_21 = arith.constant 0 : index
    %16 = vector.load %arg2[%c0_19, %c0_20, %c2, %c0_21] : memref<1x18x18x32xbf16, #tpu.memory_space<vmem>>, vector<1x16x16x32xbf16>
    %17 = vector.shape_cast %16 : vector<1x16x16x32xbf16> to vector<16x16x32xbf16>
    %18 = vector.shape_cast %17 : vector<16x16x32xbf16> to vector<256x32xbf16>
    %c2_22 = arith.constant 2 : index
    %c0_23 = arith.constant 0 : index
    %c0_24 = arith.constant 0 : index
    %19 = vector.load %arg3[%c2_22, %c0_23, %c0_24] : memref<9x32x128xbf16, #tpu.memory_space<vmem>>, vector<1x32x128xbf16>
    %20 = vector.shape_cast %19 : vector<1x32x128xbf16> to vector<32x128xbf16>
    %cst_25 = arith.constant dense<0.000000e+00> : vector<256x128xf32>
    %21 = tpu.matmul %18, %20, %cst_25 {dimension_numbers = #tpu.dot_dimension_numbers<[1], [0], [0], [1], [0, 0, 1, 1], [], []>} : vector<256x32xbf16>, vector<32x128xbf16>, vector<256x128xf32> -> vector<256x128xf32>
    %c0_26 = arith.constant 0 : index
    %c0_27 = arith.constant 0 : index
    %22 = vector.load %arg6[%c0_26, %c0_27] : memref<256x128xf32, #tpu.memory_space<vmem>>, vector<256x128xf32>
    %23 = arith.addf %22, %21 : vector<256x128xf32>
    %c0_28 = arith.constant 0 : index
    %c0_29 = arith.constant 0 : index
    %24 = vector.load %arg6[%c0_28, %c0_29] : memref<256x128xf32, #tpu.memory_space<vmem>>, vector<256x128xf32>
    tpu.vector_store %arg6[%c0_28, %c0_29], %23 {strides = array<i32>} : memref<256x128xf32, #tpu.memory_space<vmem>>, vector<256x128xf32>,
    %c0_30 = arith.constant 0 : index
    %c1_31 = arith.constant 1 : index
    %c0_32 = arith.constant 0 : index
    %c0_33 = arith.constant 0 : index
    %25 = vector.load %arg2[%c0_30, %c1_31, %c0_32, %c0_33] : memref<1x18x18x32xbf16, #tpu.memory_space<vmem>>, vector<1x16x16x32xbf16>
    %26 = vector.shape_cast %25 : vector<1x16x16x32xbf16> to vector<16x16x32xbf16>
    %27 = vector.shape_cast %26 : vector<16x16x32xbf16> to vector<256x32xbf16>
    %c3 = arith.constant 3 : index
    %c0_34 = arith.constant 0 : index
    %c0_35 = arith.constant 0 : index
    %28 = vector.load %arg3[%c3, %c0_34, %c0_35] : memref<9x32x128xbf16, #tpu.memory_space<vmem>>, vector<1x32x128xbf16>
    %29 = vector.shape_cast %28 : vector<1x32x128xbf16> to vector<32x128xbf16>
    %cst_36 = arith.constant dense<0.000000e+00> : vector<256x128xf32>
    %30 = tpu.matmul %27, %29, %cst_36 {dimension_numbers = #tpu.dot_dimension_numbers<[1], [0], [0], [1], [0, 0, 1, 1], [], []>} : vector<256x32xbf16>, vector<32x128xbf16>, vector<256x128xf32> -> vector<256x128xf32>
    %c0_37 = arith.constant 0 : index
    %c0_38 = arith.constant 0 : index
    %31 = vector.load %arg6[%c0_37, %c0_38] : memref<256x128xf32, #tpu.memory_space<vmem>>, vector<256x128xf32>
    %32 = arith.addf %31, %30 : vector<256x128xf32>
    %c0_39 = arith.constant 0 : index
    %c0_40 = arith.constant 0 : index
    %33 = vector.load %arg6[%c0_39, %c0_40] : memref<256x128xf32, #tpu.memory_space<vmem>>, vector<256x128xf32>
    tpu.vector_store %arg6[%c0_39, %c0_40], %32 {strides = array<i32>} : memref<256x128xf32, #tpu.memory_space<vmem>>, vector<256x128xf32>,
    %c0_41 = arith.constant 0 : index
    %c1_42 = arith.constant 1 : index
    %c1_43 = arith.constant 1 : index
    %c0_44 = arith.constant 0 : index
    %34 = vector.load %arg2[%c0_41, %c1_42, %c1_43, %c0_44] : memref<1x18x18x32xbf16, #tpu.memory_space<vmem>>, vector<1x16x16x32xbf16>
    %35 = vector.shape_cast %34 : vector<1x16x16x32xbf16> to vector<16x16x32xbf16>
    %36 = vector.shape_cast %35 : vector<16x16x32xbf16> to vector<256x32xbf16>
    %c4 = arith.constant 4 : index
    %c0_45 = arith.constant 0 : index
    %c0_46 = arith.constant 0 : index
    %37 = vector.load %arg3[%c4, %c0_45, %c0_46] : memref<9x32x128xbf16, #tpu.memory_space<vmem>>, vector<1x32x128xbf16>
    %38 = vector.shape_cast %37 : vector<1x32x128xbf16> to vector<32x128xbf16>
    %cst_47 = arith.constant dense<0.000000e+00> : vector<256x128xf32>
    %39 = tpu.matmul %36, %38, %cst_47 {dimension_numbers = #tpu.dot_dimension_numbers<[1], [0], [0], [1], [0, 0, 1, 1], [], []>} : vector<256x32xbf16>, vector<32x128xbf16>, vector<256x128xf32> -> vector<256x128xf32>
    %c0_48 = arith.constant 0 : index
    %c0_49 = arith.constant 0 : index
    %40 = vector.load %arg6[%c0_48, %c0_49] : memref<256x128xf32, #tpu.memory_space<vmem>>, vector<256x128xf32>
    %41 = arith.addf %40, %39 : vector<256x128xf32>
    %c0_50 = arith.constant 0 : index
    %c0_51 = arith.constant 0 : index
    %42 = vector.load %arg6[%c0_50, %c0_51] : memref<256x128xf32, #tpu.memory_space<vmem>>, vector<256x128xf32>
    tpu.vector_store %arg6[%c0_50, %c0_51], %41 {strides = array<i32>} : memref<256x128xf32, #tpu.memory_space<vmem>>, vector<256x128xf32>,
    %c0_52 = arith.constant 0 : index
    %c1_53 = arith.constant 1 : index
    %c2_54 = arith.constant 2 : index
    %c0_55 = arith.constant 0 : index
    %43 = vector.load %arg2[%c0_52, %c1_53, %c2_54, %c0_55] : memref<1x18x18x32xbf16, #tpu.memory_space<vmem>>, vector<1x16x16x32xbf16>
    %44 = vector.shape_cast %43 : vector<1x16x16x32xbf16> to vector<16x16x32xbf16>
    %45 = vector.shape_cast %44 : vector<16x16x32xbf16> to vector<256x32xbf16>
    %c5 = arith.constant 5 : index
    %c0_56 = arith.constant 0 : index
    %c0_57 = arith.constant 0 : index
    %46 = vector.load %arg3[%c5, %c0_56, %c0_57] : memref<9x32x128xbf16, #tpu.memory_space<vmem>>, vector<1x32x128xbf16>
    %47 = vector.shape_cast %46 : vector<1x32x128xbf16> to vector<32x128xbf16>
    %cst_58 = arith.constant dense<0.000000e+00> : vector<256x128xf32>
    %48 = tpu.matmul %45, %47, %cst_58 {dimension_numbers = #tpu.dot_dimension_numbers<[1], [0], [0], [1], [0, 0, 1, 1], [], []>} : vector<256x32xbf16>, vector<32x128xbf16>, vector<256x128xf32> -> vector<256x128xf32>
    %c0_59 = arith.constant 0 : index
    %c0_60 = arith.constant 0 : index
    %49 = vector.load %arg6[%c0_59, %c0_60] : memref<256x128xf32, #tpu.memory_space<vmem>>, vector<256x128xf32>
    %50 = arith.addf %49, %48 : vector<256x128xf32>
    %c0_61 = arith.constant 0 : index
    %c0_62 = arith.constant 0 : index
    %51 = vector.load %arg6[%c0_61, %c0_62] : memref<256x128xf32, #tpu.memory_space<vmem>>, vector<256x128xf32>
    tpu.vector_store %arg6[%c0_61, %c0_62], %50 {strides = array<i32>} : memref<256x128xf32, #tpu.memory_space<vmem>>, vector<256x128xf32>,
    %c0_63 = arith.constant 0 : index
    %c2_64 = arith.constant 2 : index
    %c0_65 = arith.constant 0 : index
    %c0_66 = arith.constant 0 : index
    %52 = vector.load %arg2[%c0_63, %c2_64, %c0_65, %c0_66] : memref<1x18x18x32xbf16, #tpu.memory_space<vmem>>, vector<1x16x16x32xbf16>
    %53 = vector.shape_cast %52 : vector<1x16x16x32xbf16> to vector<16x16x32xbf16>
    %54 = vector.shape_cast %53 : vector<16x16x32xbf16> to vector<256x32xbf16>
    %c6 = arith.constant 6 : index
    %c0_67 = arith.constant 0 : index
    %c0_68 = arith.constant 0 : index
    %55 = vector.load %arg3[%c6, %c0_67, %c0_68] : memref<9x32x128xbf16, #tpu.memory_space<vmem>>, vector<1x32x128xbf16>
    %56 = vector.shape_cast %55 : vector<1x32x128xbf16> to vector<32x128xbf16>
    %cst_69 = arith.constant dense<0.000000e+00> : vector<256x128xf32>
    %57 = tpu.matmul %54, %56, %cst_69 {dimension_numbers = #tpu.dot_dimension_numbers<[1], [0], [0], [1], [0, 0, 1, 1], [], []>} : vector<256x32xbf16>, vector<32x128xbf16>, vector<256x128xf32> -> vector<256x128xf32>
    %c0_70 = arith.constant 0 : index
    %c0_71 = arith.constant 0 : index
    %58 = vector.load %arg6[%c0_70, %c0_71] : memref<256x128xf32, #tpu.memory_space<vmem>>, vector<256x128xf32>
    %59 = arith.addf %58, %57 : vector<256x128xf32>
    %c0_72 = arith.constant 0 : index
    %c0_73 = arith.constant 0 : index
    %60 = vector.load %arg6[%c0_72, %c0_73] : memref<256x128xf32, #tpu.memory_space<vmem>>, vector<256x128xf32>
    tpu.vector_store %arg6[%c0_72, %c0_73], %59 {strides = array<i32>} : memref<256x128xf32, #tpu.memory_space<vmem>>, vector<256x128xf32>,
    %c0_74 = arith.constant 0 : index
    %c2_75 = arith.constant 2 : index
    %c1_76 = arith.constant 1 : index
    %c0_77 = arith.constant 0 : index
    %61 = vector.load %arg2[%c0_74, %c2_75, %c1_76, %c0_77] : memref<1x18x18x32xbf16, #tpu.memory_space<vmem>>, vector<1x16x16x32xbf16>
    %62 = vector.shape_cast %61 : vector<1x16x16x32xbf16> to vector<16x16x32xbf16>
    %63 = vector.shape_cast %62 : vector<16x16x32xbf16> to vector<256x32xbf16>
    %c7 = arith.constant 7 : index
    %c0_78 = arith.constant 0 : index
    %c0_79 = arith.constant 0 : index
    %64 = vector.load %arg3[%c7, %c0_78, %c0_79] : memref<9x32x128xbf16, #tpu.memory_space<vmem>>, vector<1x32x128xbf16>
    %65 = vector.shape_cast %64 : vector<1x32x128xbf16> to vector<32x128xbf16>
    %cst_80 = arith.constant dense<0.000000e+00> : vector<256x128xf32>
    %66 = tpu.matmul %63, %65, %cst_80 {dimension_numbers = #tpu.dot_dimension_numbers<[1], [0], [0], [1], [0, 0, 1, 1], [], []>} : vector<256x32xbf16>, vector<32x128xbf16>, vector<256x128xf32> -> vector<256x128xf32>
    %c0_81 = arith.constant 0 : index
    %c0_82 = arith.constant 0 : index
    %67 = vector.load %arg6[%c0_81, %c0_82] : memref<256x128xf32, #tpu.memory_space<vmem>>, vector<256x128xf32>
    %68 = arith.addf %67, %66 : vector<256x128xf32>
    %c0_83 = arith.constant 0 : index
    %c0_84 = arith.constant 0 : index
    %69 = vector.load %arg6[%c0_83, %c0_84] : memref<256x128xf32, #tpu.memory_space<vmem>>, vector<256x128xf32>
    tpu.vector_store %arg6[%c0_83, %c0_84], %68 {strides = array<i32>} : memref<256x128xf32, #tpu.memory_space<vmem>>, vector<256x128xf32>,
    %c0_85 = arith.constant 0 : index
    %c2_86 = arith.constant 2 : index
    %c2_87 = arith.constant 2 : index
    %c0_88 = arith.constant 0 : index
    %70 = vector.load %arg2[%c0_85, %c2_86, %c2_87, %c0_88] : memref<1x18x18x32xbf16, #tpu.memory_space<vmem>>, vector<1x16x16x32xbf16>
    %71 = vector.shape_cast %70 : vector<1x16x16x32xbf16> to vector<16x16x32xbf16>
    %72 = vector.shape_cast %71 : vector<16x16x32xbf16> to vector<256x32xbf16>
    %c8 = arith.constant 8 : index
    %c0_89 = arith.constant 0 : index
    %c0_90 = arith.constant 0 : index
    %73 = vector.load %arg3[%c8, %c0_89, %c0_90] : memref<9x32x128xbf16, #tpu.memory_space<vmem>>, vector<1x32x128xbf16>
    %74 = vector.shape_cast %73 : vector<1x32x128xbf16> to vector<32x128xbf16>
    %cst_91 = arith.constant dense<0.000000e+00> : vector<256x128xf32>
    %75 = tpu.matmul %72, %74, %cst_91 {dimension_numbers = #tpu.dot_dimension_numbers<[1], [0], [0], [1], [0, 0, 1, 1], [], []>} : vector<256x32xbf16>, vector<32x128xbf16>, vector<256x128xf32> -> vector<256x128xf32>
    %c0_92 = arith.constant 0 : index
    %c0_93 = arith.constant 0 : index
    %76 = vector.load %arg6[%c0_92, %c0_93] : memref<256x128xf32, #tpu.memory_space<vmem>>, vector<256x128xf32>
    %77 = arith.addf %76, %75 : vector<256x128xf32>
    %c0_94 = arith.constant 0 : index
    %c0_95 = arith.constant 0 : index
    %78 = vector.load %arg6[%c0_94, %c0_95] : memref<256x128xf32, #tpu.memory_space<vmem>>, vector<256x128xf32>
    tpu.vector_store %arg6[%c0_94, %c0_95], %77 {strides = array<i32>} : memref<256x128xf32, #tpu.memory_space<vmem>>, vector<256x128xf32>,
    %c0_96 = arith.constant 0 : index
    %c0_97 = arith.constant 0 : index
    %79 = vector.load %arg6[%c0_96, %c0_97] : memref<256x128xf32, #tpu.memory_space<vmem>>, vector<256x128xf32>
    %c0_98 = arith.constant 0 : index
    %c0_99 = arith.constant 0 : index
    %80 = vector.load %arg4[%c0_98, %c0_99] : memref<1x128xf32, #tpu.memory_space<vmem>>, vector<1x128xf32>
    %81 = vector.broadcast %80 : vector<1x128xf32> to vector<256x128xf32>
    %82 = arith.addf %79, %81 : vector<256x128xf32>
    %cst_100 = arith.constant 0.000000e+00 : f32
    %83 = vector.broadcast %cst_100 : f32 to vector<256x128xf32>
    %84 = arith.maximumf %82, %83 : vector<256x128xf32>
    %85 = vector.shape_cast %84 : vector<256x128xf32> to vector<16x16x128xf32>
    %c0_101 = arith.constant 0 : index
    %c0_102 = arith.constant 0 : index
    %c0_103 = arith.constant 0 : index
    %c0_104 = arith.constant 0 : index
    %86 = vector.load %arg5[%c0_101, %c0_102, %c0_103, %c0_104] : memref<1x16x16x128xf32, #tpu.memory_space<vmem>>, vector<1x16x16x128xf32>
    %87 = vector.shape_cast %86 : vector<1x16x16x128xf32> to vector<16x16x128xf32>
    %88 = vector.shape_cast %85 : vector<16x16x128xf32> to vector<1x16x16x128xf32>
    tpu.vector_store %arg5[%c0_101, %c0_102, %c0_103, %c0_104], %88 {strides = array<i32>} : memref<1x16x16x128xf32, #tpu.memory_space<vmem>>, vector<1x16x16x128xf32>,
    return
  }
  func.func @transform_0(%arg0: i32, %arg1: i32) -> (i32, i32, i32, i32) {
    %c0_i32 = arith.constant 0 : i32
    %c0_i32_0 = arith.constant 0 : i32
    %c0_i32_1 = arith.constant 0 : i32
    %c0_i32_2 = arith.constant 0 : i32
    return %arg0, %c0_i32, %c0_i32_0, %c0_i32_1 : i32, i32, i32, i32
  }
  func.func @transform_1(%arg0: i32, %arg1: i32) -> (i32, i32, i32) {
    %c0_i32 = arith.constant 0 : i32
    %c0_i32_0 = arith.constant 0 : i32
    %c0_i32_1 = arith.constant 0 : i32
    return %c0_i32, %c0_i32_0, %arg1 : i32, i32, i32
  }
  func.func @transform_2(%arg0: i32, %arg1: i32) -> (i32, i32) {
    %c0_i32 = arith.constant 0 : i32
    %c0_i32_0 = arith.constant 0 : i32
    return %c0_i32, %arg1 : i32, i32
  }
  func.func @transform_3(%arg0: i32, %arg1: i32) -> (i32, i32, i32, i32) {
    %c0_i32 = arith.constant 0 : i32
    %c0_i32_0 = arith.constant 0 : i32
    %c0_i32_1 = arith.constant 0 : i32
    return %arg0, %c0_i32, %c0_i32_0, %arg1 : i32, i32, i32, i32
  }
}

module attributes {stable_mosaic.version = 11 : i64} {
  func.func @_conv_taps_kernel(%arg0: i32, %arg1: i32, %arg2: memref<1x18x18x64xbf16, #tpu.memory_space<vmem>>, %arg3: memref<16x64x128xbf16, #tpu.memory_space<vmem>>, %arg4: memref<1x128xf32, #tpu.memory_space<vmem>>, %arg5: memref<1x64x16x128xf32, #tpu.memory_space<vmem>>, %arg6: memref<256x128xf32, #tpu.memory_space<vmem>>) attributes {dimension_semantics = [#tpu.dimension_semantics<parallel>, #tpu.dimension_semantics<parallel>], iteration_bounds = array<i64: 2, 1>, scalar_prefetch = 0 : i64, scratch_operands = 1 : i64, tpu.core_type = #tpu.core_type<tc>, window_params = [{transform_indices = @transform_0, window_bounds = array<i64: 1, 18, 18, 64>}, {transform_indices = @transform_1, window_bounds = array<i64: 16, 64, 128>}, {transform_indices = @transform_2, window_bounds = array<i64: 1, 128>}, {transform_indices = @transform_3, window_bounds = array<i64: 1, 64, 16, 128>}]} {
    %c0 = arith.constant 0 : index
    %c0_0 = arith.constant 0 : index
    %c0_1 = arith.constant 0 : index
    %c0_2 = arith.constant 0 : index
    %0 = vector.load %arg2[%c0, %c0_0, %c0_1, %c0_2] : memref<1x18x18x64xbf16, #tpu.memory_space<vmem>>, vector<1x16x16x64xbf16>
    %1 = vector.shape_cast %0 : vector<1x16x16x64xbf16> to vector<16x16x64xbf16>
    %2 = vector.shape_cast %1 : vector<16x16x64xbf16> to vector<256x64xbf16>
    %c0_3 = arith.constant 0 : index
    %c0_4 = arith.constant 0 : index
    %c0_5 = arith.constant 0 : index
    %3 = vector.load %arg3[%c0_3, %c0_4, %c0_5] : memref<16x64x128xbf16, #tpu.memory_space<vmem>>, vector<1x64x128xbf16>
    %4 = vector.shape_cast %3 : vector<1x64x128xbf16> to vector<64x128xbf16>
    %cst = arith.constant dense<0.000000e+00> : vector<256x128xf32>
    %5 = tpu.matmul %2, %4, %cst {dimension_numbers = #tpu.dot_dimension_numbers<[1], [0], [0], [1], [0, 0, 1, 1], [], []>} : vector<256x64xbf16>, vector<64x128xbf16>, vector<256x128xf32> -> vector<256x128xf32>
    %c0_6 = arith.constant 0 : index
    %c0_7 = arith.constant 0 : index
    %6 = vector.load %arg6[%c0_6, %c0_7] : memref<256x128xf32, #tpu.memory_space<vmem>>, vector<256x128xf32>
    tpu.vector_store %arg6[%c0_6, %c0_7], %5 {strides = array<i32>} : memref<256x128xf32, #tpu.memory_space<vmem>>, vector<256x128xf32>,
    %c0_8 = arith.constant 0 : index
    %c0_9 = arith.constant 0 : index
    %c1 = arith.constant 1 : index
    %c0_10 = arith.constant 0 : index
    %7 = vector.load %arg2[%c0_8, %c0_9, %c1, %c0_10] : memref<1x18x18x64xbf16, #tpu.memory_space<vmem>>, vector<1x16x16x64xbf16>
    %8 = vector.shape_cast %7 : vector<1x16x16x64xbf16> to vector<16x16x64xbf16>
    %9 = vector.shape_cast %8 : vector<16x16x64xbf16> to vector<256x64xbf16>
    %c1_11 = arith.constant 1 : index
    %c0_12 = arith.constant 0 : index
    %c0_13 = arith.constant 0 : index
    %10 = vector.load %arg3[%c1_11, %c0_12, %c0_13] : memref<16x64x128xbf16, #tpu.memory_space<vmem>>, vector<1x64x128xbf16>
    %11 = vector.shape_cast %10 : vector<1x64x128xbf16> to vector<64x128xbf16>
    %cst_14 = arith.constant dense<0.000000e+00> : vector<256x128xf32>
    %12 = tpu.matmul %9, %11, %cst_14 {dimension_numbers = #tpu.dot_dimension_numbers<[1], [0], [0], [1], [0, 0, 1, 1], [], []>} : vector<256x64xbf16>, vector<64x128xbf16>, vector<256x128xf32> -> vector<256x128xf32>
    %c0_15 = arith.constant 0 : index
    %c0_16 = arith.constant 0 : index
    %13 = vector.load %arg6[%c0_15, %c0_16] : memref<256x128xf32, #tpu.memory_space<vmem>>, vector<256x128xf32>
    %14 = arith.addf %13, %12 : vector<256x128xf32>
    %c0_17 = arith.constant 0 : index
    %c0_18 = arith.constant 0 : index
    %15 = vector.load %arg6[%c0_17, %c0_18] : memref<256x128xf32, #tpu.memory_space<vmem>>, vector<256x128xf32>
    tpu.vector_store %arg6[%c0_17, %c0_18], %14 {strides = array<i32>} : memref<256x128xf32, #tpu.memory_space<vmem>>, vector<256x128xf32>,
    %c0_19 = arith.constant 0 : index
    %c1_20 = arith.constant 1 : index
    %c0_21 = arith.constant 0 : index
    %c0_22 = arith.constant 0 : index
    %16 = vector.load %arg2[%c0_19, %c1_20, %c0_21, %c0_22] : memref<1x18x18x64xbf16, #tpu.memory_space<vmem>>, vector<1x16x16x64xbf16>
    %17 = vector.shape_cast %16 : vector<1x16x16x64xbf16> to vector<16x16x64xbf16>
    %18 = vector.shape_cast %17 : vector<16x16x64xbf16> to vector<256x64xbf16>
    %c2 = arith.constant 2 : index
    %c0_23 = arith.constant 0 : index
    %c0_24 = arith.constant 0 : index
    %19 = vector.load %arg3[%c2, %c0_23, %c0_24] : memref<16x64x128xbf16, #tpu.memory_space<vmem>>, vector<1x64x128xbf16>
    %20 = vector.shape_cast %19 : vector<1x64x128xbf16> to vector<64x128xbf16>
    %cst_25 = arith.constant dense<0.000000e+00> : vector<256x128xf32>
    %21 = tpu.matmul %18, %20, %cst_25 {dimension_numbers = #tpu.dot_dimension_numbers<[1], [0], [0], [1], [0, 0, 1, 1], [], []>} : vector<256x64xbf16>, vector<64x128xbf16>, vector<256x128xf32> -> vector<256x128xf32>
    %c0_26 = arith.constant 0 : index
    %c0_27 = arith.constant 0 : index
    %22 = vector.load %arg6[%c0_26, %c0_27] : memref<256x128xf32, #tpu.memory_space<vmem>>, vector<256x128xf32>
    %23 = arith.addf %22, %21 : vector<256x128xf32>
    %c0_28 = arith.constant 0 : index
    %c0_29 = arith.constant 0 : index
    %24 = vector.load %arg6[%c0_28, %c0_29] : memref<256x128xf32, #tpu.memory_space<vmem>>, vector<256x128xf32>
    tpu.vector_store %arg6[%c0_28, %c0_29], %23 {strides = array<i32>} : memref<256x128xf32, #tpu.memory_space<vmem>>, vector<256x128xf32>,
    %c0_30 = arith.constant 0 : index
    %c1_31 = arith.constant 1 : index
    %c1_32 = arith.constant 1 : index
    %c0_33 = arith.constant 0 : index
    %25 = vector.load %arg2[%c0_30, %c1_31, %c1_32, %c0_33] : memref<1x18x18x64xbf16, #tpu.memory_space<vmem>>, vector<1x16x16x64xbf16>
    %26 = vector.shape_cast %25 : vector<1x16x16x64xbf16> to vector<16x16x64xbf16>
    %27 = vector.shape_cast %26 : vector<16x16x64xbf16> to vector<256x64xbf16>
    %c3 = arith.constant 3 : index
    %c0_34 = arith.constant 0 : index
    %c0_35 = arith.constant 0 : index
    %28 = vector.load %arg3[%c3, %c0_34, %c0_35] : memref<16x64x128xbf16, #tpu.memory_space<vmem>>, vector<1x64x128xbf16>
    %29 = vector.shape_cast %28 : vector<1x64x128xbf16> to vector<64x128xbf16>
    %cst_36 = arith.constant dense<0.000000e+00> : vector<256x128xf32>
    %30 = tpu.matmul %27, %29, %cst_36 {dimension_numbers = #tpu.dot_dimension_numbers<[1], [0], [0], [1], [0, 0, 1, 1], [], []>} : vector<256x64xbf16>, vector<64x128xbf16>, vector<256x128xf32> -> vector<256x128xf32>
    %c0_37 = arith.constant 0 : index
    %c0_38 = arith.constant 0 : index
    %31 = vector.load %arg6[%c0_37, %c0_38] : memref<256x128xf32, #tpu.memory_space<vmem>>, vector<256x128xf32>
    %32 = arith.addf %31, %30 : vector<256x128xf32>
    %c0_39 = arith.constant 0 : index
    %c0_40 = arith.constant 0 : index
    %33 = vector.load %arg6[%c0_39, %c0_40] : memref<256x128xf32, #tpu.memory_space<vmem>>, vector<256x128xf32>
    tpu.vector_store %arg6[%c0_39, %c0_40], %32 {strides = array<i32>} : memref<256x128xf32, #tpu.memory_space<vmem>>, vector<256x128xf32>,
    %c0_41 = arith.constant 0 : index
    %c0_42 = arith.constant 0 : index
    %34 = vector.load %arg6[%c0_41, %c0_42] : memref<256x128xf32, #tpu.memory_space<vmem>>, vector<256x128xf32>
    %c0_43 = arith.constant 0 : index
    %c0_44 = arith.constant 0 : index
    %35 = vector.load %arg4[%c0_43, %c0_44] : memref<1x128xf32, #tpu.memory_space<vmem>>, vector<1x128xf32>
    %36 = vector.broadcast %35 : vector<1x128xf32> to vector<256x128xf32>
    %37 = arith.addf %34, %36 : vector<256x128xf32>
    %cst_45 = arith.constant 0.000000e+00 : f32
    %38 = vector.broadcast %cst_45 : f32 to vector<256x128xf32>
    %39 = arith.maximumf %37, %38 : vector<256x128xf32>
    %40 = vector.shape_cast %39 : vector<256x128xf32> to vector<16x16x128xf32>
    %c0_46 = arith.constant 0 : index
    %c0_47 = arith.constant 0 : index
    %c0_48 = arith.constant 0 : index
    %c0_49 = arith.constant 0 : index
    %41 = vector.load %arg5[%c0_46, %c0_47, %c0_48, %c0_49] : memref<1x64x16x128xf32, #tpu.memory_space<vmem>>, vector<1x16x16x128xf32>
    %42 = vector.shape_cast %41 : vector<1x16x16x128xf32> to vector<16x16x128xf32>
    %43 = vector.shape_cast %40 : vector<16x16x128xf32> to vector<1x16x16x128xf32>
    tpu.vector_store %arg5[%c0_46, %c0_47, %c0_48, %c0_49], %43 {strides = array<i32>} : memref<1x64x16x128xf32, #tpu.memory_space<vmem>>, vector<1x16x16x128xf32>,
    %c0_50 = arith.constant 0 : index
    %c0_51 = arith.constant 0 : index
    %c1_52 = arith.constant 1 : index
    %c0_53 = arith.constant 0 : index
    %44 = vector.load %arg2[%c0_50, %c0_51, %c1_52, %c0_53] : memref<1x18x18x64xbf16, #tpu.memory_space<vmem>>, vector<1x16x16x64xbf16>
    %45 = vector.shape_cast %44 : vector<1x16x16x64xbf16> to vector<16x16x64xbf16>
    %46 = vector.shape_cast %45 : vector<16x16x64xbf16> to vector<256x64xbf16>
    %c4 = arith.constant 4 : index
    %c0_54 = arith.constant 0 : index
    %c0_55 = arith.constant 0 : index
    %47 = vector.load %arg3[%c4, %c0_54, %c0_55] : memref<16x64x128xbf16, #tpu.memory_space<vmem>>, vector<1x64x128xbf16>
    %48 = vector.shape_cast %47 : vector<1x64x128xbf16> to vector<64x128xbf16>
    %cst_56 = arith.constant dense<0.000000e+00> : vector<256x128xf32>
    %49 = tpu.matmul %46, %48, %cst_56 {dimension_numbers = #tpu.dot_dimension_numbers<[1], [0], [0], [1], [0, 0, 1, 1], [], []>} : vector<256x64xbf16>, vector<64x128xbf16>, vector<256x128xf32> -> vector<256x128xf32>
    %c0_57 = arith.constant 0 : index
    %c0_58 = arith.constant 0 : index
    %50 = vector.load %arg6[%c0_57, %c0_58] : memref<256x128xf32, #tpu.memory_space<vmem>>, vector<256x128xf32>
    tpu.vector_store %arg6[%c0_57, %c0_58], %49 {strides = array<i32>} : memref<256x128xf32, #tpu.memory_space<vmem>>, vector<256x128xf32>,
    %c0_59 = arith.constant 0 : index
    %c0_60 = arith.constant 0 : index
    %c2_61 = arith.constant 2 : index
    %c0_62 = arith.constant 0 : index
    %51 = vector.load %arg2[%c0_59, %c0_60, %c2_61, %c0_62] : memref<1x18x18x64xbf16, #tpu.memory_space<vmem>>, vector<1x16x16x64xbf16>
    %52 = vector.shape_cast %51 : vector<1x16x16x64xbf16> to vector<16x16x64xbf16>
    %53 = vector.shape_cast %52 : vector<16x16x64xbf16> to vector<256x64xbf16>
    %c5 = arith.constant 5 : index
    %c0_63 = arith.constant 0 : index
    %c0_64 = arith.constant 0 : index
    %54 = vector.load %arg3[%c5, %c0_63, %c0_64] : memref<16x64x128xbf16, #tpu.memory_space<vmem>>, vector<1x64x128xbf16>
    %55 = vector.shape_cast %54 : vector<1x64x128xbf16> to vector<64x128xbf16>
    %cst_65 = arith.constant dense<0.000000e+00> : vector<256x128xf32>
    %56 = tpu.matmul %53, %55, %cst_65 {dimension_numbers = #tpu.dot_dimension_numbers<[1], [0], [0], [1], [0, 0, 1, 1], [], []>} : vector<256x64xbf16>, vector<64x128xbf16>, vector<256x128xf32> -> vector<256x128xf32>
    %c0_66 = arith.constant 0 : index
    %c0_67 = arith.constant 0 : index
    %57 = vector.load %arg6[%c0_66, %c0_67] : memref<256x128xf32, #tpu.memory_space<vmem>>, vector<256x128xf32>
    %58 = arith.addf %57, %56 : vector<256x128xf32>
    %c0_68 = arith.constant 0 : index
    %c0_69 = arith.constant 0 : index
    %59 = vector.load %arg6[%c0_68, %c0_69] : memref<256x128xf32, #tpu.memory_space<vmem>>, vector<256x128xf32>
    tpu.vector_store %arg6[%c0_68, %c0_69], %58 {strides = array<i32>} : memref<256x128xf32, #tpu.memory_space<vmem>>, vector<256x128xf32>,
    %c0_70 = arith.constant 0 : index
    %c1_71 = arith.constant 1 : index
    %c1_72 = arith.constant 1 : index
    %c0_73 = arith.constant 0 : index
    %60 = vector.load %arg2[%c0_70, %c1_71, %c1_72, %c0_73] : memref<1x18x18x64xbf16, #tpu.memory_space<vmem>>, vector<1x16x16x64xbf16>
    %61 = vector.shape_cast %60 : vector<1x16x16x64xbf16> to vector<16x16x64xbf16>
    %62 = vector.shape_cast %61 : vector<16x16x64xbf16> to vector<256x64xbf16>
    %c6 = arith.constant 6 : index
    %c0_74 = arith.constant 0 : index
    %c0_75 = arith.constant 0 : index
    %63 = vector.load %arg3[%c6, %c0_74, %c0_75] : memref<16x64x128xbf16, #tpu.memory_space<vmem>>, vector<1x64x128xbf16>
    %64 = vector.shape_cast %63 : vector<1x64x128xbf16> to vector<64x128xbf16>
    %cst_76 = arith.constant dense<0.000000e+00> : vector<256x128xf32>
    %65 = tpu.matmul %62, %64, %cst_76 {dimension_numbers = #tpu.dot_dimension_numbers<[1], [0], [0], [1], [0, 0, 1, 1], [], []>} : vector<256x64xbf16>, vector<64x128xbf16>, vector<256x128xf32> -> vector<256x128xf32>
    %c0_77 = arith.constant 0 : index
    %c0_78 = arith.constant 0 : index
    %66 = vector.load %arg6[%c0_77, %c0_78] : memref<256x128xf32, #tpu.memory_space<vmem>>, vector<256x128xf32>
    %67 = arith.addf %66, %65 : vector<256x128xf32>
    %c0_79 = arith.constant 0 : index
    %c0_80 = arith.constant 0 : index
    %68 = vector.load %arg6[%c0_79, %c0_80] : memref<256x128xf32, #tpu.memory_space<vmem>>, vector<256x128xf32>
    tpu.vector_store %arg6[%c0_79, %c0_80], %67 {strides = array<i32>} : memref<256x128xf32, #tpu.memory_space<vmem>>, vector<256x128xf32>,
    %c0_81 = arith.constant 0 : index
    %c1_82 = arith.constant 1 : index
    %c2_83 = arith.constant 2 : index
    %c0_84 = arith.constant 0 : index
    %69 = vector.load %arg2[%c0_81, %c1_82, %c2_83, %c0_84] : memref<1x18x18x64xbf16, #tpu.memory_space<vmem>>, vector<1x16x16x64xbf16>
    %70 = vector.shape_cast %69 : vector<1x16x16x64xbf16> to vector<16x16x64xbf16>
    %71 = vector.shape_cast %70 : vector<16x16x64xbf16> to vector<256x64xbf16>
    %c7 = arith.constant 7 : index
    %c0_85 = arith.constant 0 : index
    %c0_86 = arith.constant 0 : index
    %72 = vector.load %arg3[%c7, %c0_85, %c0_86] : memref<16x64x128xbf16, #tpu.memory_space<vmem>>, vector<1x64x128xbf16>
    %73 = vector.shape_cast %72 : vector<1x64x128xbf16> to vector<64x128xbf16>
    %cst_87 = arith.constant dense<0.000000e+00> : vector<256x128xf32>
    %74 = tpu.matmul %71, %73, %cst_87 {dimension_numbers = #tpu.dot_dimension_numbers<[1], [0], [0], [1], [0, 0, 1, 1], [], []>} : vector<256x64xbf16>, vector<64x128xbf16>, vector<256x128xf32> -> vector<256x128xf32>
    %c0_88 = arith.constant 0 : index
    %c0_89 = arith.constant 0 : index
    %75 = vector.load %arg6[%c0_88, %c0_89] : memref<256x128xf32, #tpu.memory_space<vmem>>, vector<256x128xf32>
    %76 = arith.addf %75, %74 : vector<256x128xf32>
    %c0_90 = arith.constant 0 : index
    %c0_91 = arith.constant 0 : index
    %77 = vector.load %arg6[%c0_90, %c0_91] : memref<256x128xf32, #tpu.memory_space<vmem>>, vector<256x128xf32>
    tpu.vector_store %arg6[%c0_90, %c0_91], %76 {strides = array<i32>} : memref<256x128xf32, #tpu.memory_space<vmem>>, vector<256x128xf32>,
    %c0_92 = arith.constant 0 : index
    %c0_93 = arith.constant 0 : index
    %78 = vector.load %arg6[%c0_92, %c0_93] : memref<256x128xf32, #tpu.memory_space<vmem>>, vector<256x128xf32>
    %c0_94 = arith.constant 0 : index
    %c0_95 = arith.constant 0 : index
    %79 = vector.load %arg4[%c0_94, %c0_95] : memref<1x128xf32, #tpu.memory_space<vmem>>, vector<1x128xf32>
    %80 = vector.broadcast %79 : vector<1x128xf32> to vector<256x128xf32>
    %81 = arith.addf %78, %80 : vector<256x128xf32>
    %cst_96 = arith.constant 0.000000e+00 : f32
    %82 = vector.broadcast %cst_96 : f32 to vector<256x128xf32>
    %83 = arith.maximumf %81, %82 : vector<256x128xf32>
    %84 = vector.shape_cast %83 : vector<256x128xf32> to vector<16x16x128xf32>
    %c0_97 = arith.constant 0 : index
    %c16 = arith.constant 16 : index
    %c0_98 = arith.constant 0 : index
    %c0_99 = arith.constant 0 : index
    %85 = vector.load %arg5[%c0_97, %c16, %c0_98, %c0_99] : memref<1x64x16x128xf32, #tpu.memory_space<vmem>>, vector<1x16x16x128xf32>
    %86 = vector.shape_cast %85 : vector<1x16x16x128xf32> to vector<16x16x128xf32>
    %87 = vector.shape_cast %84 : vector<16x16x128xf32> to vector<1x16x16x128xf32>
    tpu.vector_store %arg5[%c0_97, %c16, %c0_98, %c0_99], %87 {strides = array<i32>} : memref<1x64x16x128xf32, #tpu.memory_space<vmem>>, vector<1x16x16x128xf32>,
    %c0_100 = arith.constant 0 : index
    %c1_101 = arith.constant 1 : index
    %c0_102 = arith.constant 0 : index
    %c0_103 = arith.constant 0 : index
    %88 = vector.load %arg2[%c0_100, %c1_101, %c0_102, %c0_103] : memref<1x18x18x64xbf16, #tpu.memory_space<vmem>>, vector<1x16x16x64xbf16>
    %89 = vector.shape_cast %88 : vector<1x16x16x64xbf16> to vector<16x16x64xbf16>
    %90 = vector.shape_cast %89 : vector<16x16x64xbf16> to vector<256x64xbf16>
    %c8 = arith.constant 8 : index
    %c0_104 = arith.constant 0 : index
    %c0_105 = arith.constant 0 : index
    %91 = vector.load %arg3[%c8, %c0_104, %c0_105] : memref<16x64x128xbf16, #tpu.memory_space<vmem>>, vector<1x64x128xbf16>
    %92 = vector.shape_cast %91 : vector<1x64x128xbf16> to vector<64x128xbf16>
    %cst_106 = arith.constant dense<0.000000e+00> : vector<256x128xf32>
    %93 = tpu.matmul %90, %92, %cst_106 {dimension_numbers = #tpu.dot_dimension_numbers<[1], [0], [0], [1], [0, 0, 1, 1], [], []>} : vector<256x64xbf16>, vector<64x128xbf16>, vector<256x128xf32> -> vector<256x128xf32>
    %c0_107 = arith.constant 0 : index
    %c0_108 = arith.constant 0 : index
    %94 = vector.load %arg6[%c0_107, %c0_108] : memref<256x128xf32, #tpu.memory_space<vmem>>, vector<256x128xf32>
    tpu.vector_store %arg6[%c0_107, %c0_108], %93 {strides = array<i32>} : memref<256x128xf32, #tpu.memory_space<vmem>>, vector<256x128xf32>,
    %c0_109 = arith.constant 0 : index
    %c1_110 = arith.constant 1 : index
    %c1_111 = arith.constant 1 : index
    %c0_112 = arith.constant 0 : index
    %95 = vector.load %arg2[%c0_109, %c1_110, %c1_111, %c0_112] : memref<1x18x18x64xbf16, #tpu.memory_space<vmem>>, vector<1x16x16x64xbf16>
    %96 = vector.shape_cast %95 : vector<1x16x16x64xbf16> to vector<16x16x64xbf16>
    %97 = vector.shape_cast %96 : vector<16x16x64xbf16> to vector<256x64xbf16>
    %c9 = arith.constant 9 : index
    %c0_113 = arith.constant 0 : index
    %c0_114 = arith.constant 0 : index
    %98 = vector.load %arg3[%c9, %c0_113, %c0_114] : memref<16x64x128xbf16, #tpu.memory_space<vmem>>, vector<1x64x128xbf16>
    %99 = vector.shape_cast %98 : vector<1x64x128xbf16> to vector<64x128xbf16>
    %cst_115 = arith.constant dense<0.000000e+00> : vector<256x128xf32>
    %100 = tpu.matmul %97, %99, %cst_115 {dimension_numbers = #tpu.dot_dimension_numbers<[1], [0], [0], [1], [0, 0, 1, 1], [], []>} : vector<256x64xbf16>, vector<64x128xbf16>, vector<256x128xf32> -> vector<256x128xf32>
    %c0_116 = arith.constant 0 : index
    %c0_117 = arith.constant 0 : index
    %101 = vector.load %arg6[%c0_116, %c0_117] : memref<256x128xf32, #tpu.memory_space<vmem>>, vector<256x128xf32>
    %102 = arith.addf %101, %100 : vector<256x128xf32>
    %c0_118 = arith.constant 0 : index
    %c0_119 = arith.constant 0 : index
    %103 = vector.load %arg6[%c0_118, %c0_119] : memref<256x128xf32, #tpu.memory_space<vmem>>, vector<256x128xf32>
    tpu.vector_store %arg6[%c0_118, %c0_119], %102 {strides = array<i32>} : memref<256x128xf32, #tpu.memory_space<vmem>>, vector<256x128xf32>,
    %c0_120 = arith.constant 0 : index
    %c2_121 = arith.constant 2 : index
    %c0_122 = arith.constant 0 : index
    %c0_123 = arith.constant 0 : index
    %104 = vector.load %arg2[%c0_120, %c2_121, %c0_122, %c0_123] : memref<1x18x18x64xbf16, #tpu.memory_space<vmem>>, vector<1x16x16x64xbf16>
    %105 = vector.shape_cast %104 : vector<1x16x16x64xbf16> to vector<16x16x64xbf16>
    %106 = vector.shape_cast %105 : vector<16x16x64xbf16> to vector<256x64xbf16>
    %c10 = arith.constant 10 : index
    %c0_124 = arith.constant 0 : index
    %c0_125 = arith.constant 0 : index
    %107 = vector.load %arg3[%c10, %c0_124, %c0_125] : memref<16x64x128xbf16, #tpu.memory_space<vmem>>, vector<1x64x128xbf16>
    %108 = vector.shape_cast %107 : vector<1x64x128xbf16> to vector<64x128xbf16>
    %cst_126 = arith.constant dense<0.000000e+00> : vector<256x128xf32>
    %109 = tpu.matmul %106, %108, %cst_126 {dimension_numbers = #tpu.dot_dimension_numbers<[1], [0], [0], [1], [0, 0, 1, 1], [], []>} : vector<256x64xbf16>, vector<64x128xbf16>, vector<256x128xf32> -> vector<256x128xf32>
    %c0_127 = arith.constant 0 : index
    %c0_128 = arith.constant 0 : index
    %110 = vector.load %arg6[%c0_127, %c0_128] : memref<256x128xf32, #tpu.memory_space<vmem>>, vector<256x128xf32>
    %111 = arith.addf %110, %109 : vector<256x128xf32>
    %c0_129 = arith.constant 0 : index
    %c0_130 = arith.constant 0 : index
    %112 = vector.load %arg6[%c0_129, %c0_130] : memref<256x128xf32, #tpu.memory_space<vmem>>, vector<256x128xf32>
    tpu.vector_store %arg6[%c0_129, %c0_130], %111 {strides = array<i32>} : memref<256x128xf32, #tpu.memory_space<vmem>>, vector<256x128xf32>,
    %c0_131 = arith.constant 0 : index
    %c2_132 = arith.constant 2 : index
    %c1_133 = arith.constant 1 : index
    %c0_134 = arith.constant 0 : index
    %113 = vector.load %arg2[%c0_131, %c2_132, %c1_133, %c0_134] : memref<1x18x18x64xbf16, #tpu.memory_space<vmem>>, vector<1x16x16x64xbf16>
    %114 = vector.shape_cast %113 : vector<1x16x16x64xbf16> to vector<16x16x64xbf16>
    %115 = vector.shape_cast %114 : vector<16x16x64xbf16> to vector<256x64xbf16>
    %c11 = arith.constant 11 : index
    %c0_135 = arith.constant 0 : index
    %c0_136 = arith.constant 0 : index
    %116 = vector.load %arg3[%c11, %c0_135, %c0_136] : memref<16x64x128xbf16, #tpu.memory_space<vmem>>, vector<1x64x128xbf16>
    %117 = vector.shape_cast %116 : vector<1x64x128xbf16> to vector<64x128xbf16>
    %cst_137 = arith.constant dense<0.000000e+00> : vector<256x128xf32>
    %118 = tpu.matmul %115, %117, %cst_137 {dimension_numbers = #tpu.dot_dimension_numbers<[1], [0], [0], [1], [0, 0, 1, 1], [], []>} : vector<256x64xbf16>, vector<64x128xbf16>, vector<256x128xf32> -> vector<256x128xf32>
    %c0_138 = arith.constant 0 : index
    %c0_139 = arith.constant 0 : index
    %119 = vector.load %arg6[%c0_138, %c0_139] : memref<256x128xf32, #tpu.memory_space<vmem>>, vector<256x128xf32>
    %120 = arith.addf %119, %118 : vector<256x128xf32>
    %c0_140 = arith.constant 0 : index
    %c0_141 = arith.constant 0 : index
    %121 = vector.load %arg6[%c0_140, %c0_141] : memref<256x128xf32, #tpu.memory_space<vmem>>, vector<256x128xf32>
    tpu.vector_store %arg6[%c0_140, %c0_141], %120 {strides = array<i32>} : memref<256x128xf32, #tpu.memory_space<vmem>>, vector<256x128xf32>,
    %c0_142 = arith.constant 0 : index
    %c0_143 = arith.constant 0 : index
    %122 = vector.load %arg6[%c0_142, %c0_143] : memref<256x128xf32, #tpu.memory_space<vmem>>, vector<256x128xf32>
    %c0_144 = arith.constant 0 : index
    %c0_145 = arith.constant 0 : index
    %123 = vector.load %arg4[%c0_144, %c0_145] : memref<1x128xf32, #tpu.memory_space<vmem>>, vector<1x128xf32>
    %124 = vector.broadcast %123 : vector<1x128xf32> to vector<256x128xf32>
    %125 = arith.addf %122, %124 : vector<256x128xf32>
    %cst_146 = arith.constant 0.000000e+00 : f32
    %126 = vector.broadcast %cst_146 : f32 to vector<256x128xf32>
    %127 = arith.maximumf %125, %126 : vector<256x128xf32>
    %128 = vector.shape_cast %127 : vector<256x128xf32> to vector<16x16x128xf32>
    %c0_147 = arith.constant 0 : index
    %c32 = arith.constant 32 : index
    %c0_148 = arith.constant 0 : index
    %c0_149 = arith.constant 0 : index
    %129 = vector.load %arg5[%c0_147, %c32, %c0_148, %c0_149] : memref<1x64x16x128xf32, #tpu.memory_space<vmem>>, vector<1x16x16x128xf32>
    %130 = vector.shape_cast %129 : vector<1x16x16x128xf32> to vector<16x16x128xf32>
    %131 = vector.shape_cast %128 : vector<16x16x128xf32> to vector<1x16x16x128xf32>
    tpu.vector_store %arg5[%c0_147, %c32, %c0_148, %c0_149], %131 {strides = array<i32>} : memref<1x64x16x128xf32, #tpu.memory_space<vmem>>, vector<1x16x16x128xf32>,
    %c0_150 = arith.constant 0 : index
    %c1_151 = arith.constant 1 : index
    %c1_152 = arith.constant 1 : index
    %c0_153 = arith.constant 0 : index
    %132 = vector.load %arg2[%c0_150, %c1_151, %c1_152, %c0_153] : memref<1x18x18x64xbf16, #tpu.memory_space<vmem>>, vector<1x16x16x64xbf16>
    %133 = vector.shape_cast %132 : vector<1x16x16x64xbf16> to vector<16x16x64xbf16>
    %134 = vector.shape_cast %133 : vector<16x16x64xbf16> to vector<256x64xbf16>
    %c12 = arith.constant 12 : index
    %c0_154 = arith.constant 0 : index
    %c0_155 = arith.constant 0 : index
    %135 = vector.load %arg3[%c12, %c0_154, %c0_155] : memref<16x64x128xbf16, #tpu.memory_space<vmem>>, vector<1x64x128xbf16>
    %136 = vector.shape_cast %135 : vector<1x64x128xbf16> to vector<64x128xbf16>
    %cst_156 = arith.constant dense<0.000000e+00> : vector<256x128xf32>
    %137 = tpu.matmul %134, %136, %cst_156 {dimension_numbers = #tpu.dot_dimension_numbers<[1], [0], [0], [1], [0, 0, 1, 1], [], []>} : vector<256x64xbf16>, vector<64x128xbf16>, vector<256x128xf32> -> vector<256x128xf32>
    %c0_157 = arith.constant 0 : index
    %c0_158 = arith.constant 0 : index
    %138 = vector.load %arg6[%c0_157, %c0_158] : memref<256x128xf32, #tpu.memory_space<vmem>>, vector<256x128xf32>
    tpu.vector_store %arg6[%c0_157, %c0_158], %137 {strides = array<i32>} : memref<256x128xf32, #tpu.memory_space<vmem>>, vector<256x128xf32>,
    %c0_159 = arith.constant 0 : index
    %c1_160 = arith.constant 1 : index
    %c2_161 = arith.constant 2 : index
    %c0_162 = arith.constant 0 : index
    %139 = vector.load %arg2[%c0_159, %c1_160, %c2_161, %c0_162] : memref<1x18x18x64xbf16, #tpu.memory_space<vmem>>, vector<1x16x16x64xbf16>
    %140 = vector.shape_cast %139 : vector<1x16x16x64xbf16> to vector<16x16x64xbf16>
    %141 = vector.shape_cast %140 : vector<16x16x64xbf16> to vector<256x64xbf16>
    %c13 = arith.constant 13 : index
    %c0_163 = arith.constant 0 : index
    %c0_164 = arith.constant 0 : index
    %142 = vector.load %arg3[%c13, %c0_163, %c0_164] : memref<16x64x128xbf16, #tpu.memory_space<vmem>>, vector<1x64x128xbf16>
    %143 = vector.shape_cast %142 : vector<1x64x128xbf16> to vector<64x128xbf16>
    %cst_165 = arith.constant dense<0.000000e+00> : vector<256x128xf32>
    %144 = tpu.matmul %141, %143, %cst_165 {dimension_numbers = #tpu.dot_dimension_numbers<[1], [0], [0], [1], [0, 0, 1, 1], [], []>} : vector<256x64xbf16>, vector<64x128xbf16>, vector<256x128xf32> -> vector<256x128xf32>
    %c0_166 = arith.constant 0 : index
    %c0_167 = arith.constant 0 : index
    %145 = vector.load %arg6[%c0_166, %c0_167] : memref<256x128xf32, #tpu.memory_space<vmem>>, vector<256x128xf32>
    %146 = arith.addf %145, %144 : vector<256x128xf32>
    %c0_168 = arith.constant 0 : index
    %c0_169 = arith.constant 0 : index
    %147 = vector.load %arg6[%c0_168, %c0_169] : memref<256x128xf32, #tpu.memory_space<vmem>>, vector<256x128xf32>
    tpu.vector_store %arg6[%c0_168, %c0_169], %146 {strides = array<i32>} : memref<256x128xf32, #tpu.memory_space<vmem>>, vector<256x128xf32>,
    %c0_170 = arith.constant 0 : index
    %c2_171 = arith.constant 2 : index
    %c1_172 = arith.constant 1 : index
    %c0_173 = arith.constant 0 : index
    %148 = vector.load %arg2[%c0_170, %c2_171, %c1_172, %c0_173] : memref<1x18x18x64xbf16, #tpu.memory_space<vmem>>, vector<1x16x16x64xbf16>
    %149 = vector.shape_cast %148 : vector<1x16x16x64xbf16> to vector<16x16x64xbf16>
    %150 = vector.shape_cast %149 : vector<16x16x64xbf16> to vector<256x64xbf16>
    %c14 = arith.constant 14 : index
    %c0_174 = arith.constant 0 : index
    %c0_175 = arith.constant 0 : index
    %151 = vector.load %arg3[%c14, %c0_174, %c0_175] : memref<16x64x128xbf16, #tpu.memory_space<vmem>>, vector<1x64x128xbf16>
    %152 = vector.shape_cast %151 : vector<1x64x128xbf16> to vector<64x128xbf16>
    %cst_176 = arith.constant dense<0.000000e+00> : vector<256x128xf32>
    %153 = tpu.matmul %150, %152, %cst_176 {dimension_numbers = #tpu.dot_dimension_numbers<[1], [0], [0], [1], [0, 0, 1, 1], [], []>} : vector<256x64xbf16>, vector<64x128xbf16>, vector<256x128xf32> -> vector<256x128xf32>
    %c0_177 = arith.constant 0 : index
    %c0_178 = arith.constant 0 : index
    %154 = vector.load %arg6[%c0_177, %c0_178] : memref<256x128xf32, #tpu.memory_space<vmem>>, vector<256x128xf32>
    %155 = arith.addf %154, %153 : vector<256x128xf32>
    %c0_179 = arith.constant 0 : index
    %c0_180 = arith.constant 0 : index
    %156 = vector.load %arg6[%c0_179, %c0_180] : memref<256x128xf32, #tpu.memory_space<vmem>>, vector<256x128xf32>
    tpu.vector_store %arg6[%c0_179, %c0_180], %155 {strides = array<i32>} : memref<256x128xf32, #tpu.memory_space<vmem>>, vector<256x128xf32>,
    %c0_181 = arith.constant 0 : index
    %c2_182 = arith.constant 2 : index
    %c2_183 = arith.constant 2 : index
    %c0_184 = arith.constant 0 : index
    %157 = vector.load %arg2[%c0_181, %c2_182, %c2_183, %c0_184] : memref<1x18x18x64xbf16, #tpu.memory_space<vmem>>, vector<1x16x16x64xbf16>
    %158 = vector.shape_cast %157 : vector<1x16x16x64xbf16> to vector<16x16x64xbf16>
    %159 = vector.shape_cast %158 : vector<16x16x64xbf16> to vector<256x64xbf16>
    %c15 = arith.constant 15 : index
    %c0_185 = arith.constant 0 : index
    %c0_186 = arith.constant 0 : index
    %160 = vector.load %arg3[%c15, %c0_185, %c0_186] : memref<16x64x128xbf16, #tpu.memory_space<vmem>>, vector<1x64x128xbf16>
    %161 = vector.shape_cast %160 : vector<1x64x128xbf16> to vector<64x128xbf16>
    %cst_187 = arith.constant dense<0.000000e+00> : vector<256x128xf32>
    %162 = tpu.matmul %159, %161, %cst_187 {dimension_numbers = #tpu.dot_dimension_numbers<[1], [0], [0], [1], [0, 0, 1, 1], [], []>} : vector<256x64xbf16>, vector<64x128xbf16>, vector<256x128xf32> -> vector<256x128xf32>
    %c0_188 = arith.constant 0 : index
    %c0_189 = arith.constant 0 : index
    %163 = vector.load %arg6[%c0_188, %c0_189] : memref<256x128xf32, #tpu.memory_space<vmem>>, vector<256x128xf32>
    %164 = arith.addf %163, %162 : vector<256x128xf32>
    %c0_190 = arith.constant 0 : index
    %c0_191 = arith.constant 0 : index
    %165 = vector.load %arg6[%c0_190, %c0_191] : memref<256x128xf32, #tpu.memory_space<vmem>>, vector<256x128xf32>
    tpu.vector_store %arg6[%c0_190, %c0_191], %164 {strides = array<i32>} : memref<256x128xf32, #tpu.memory_space<vmem>>, vector<256x128xf32>,
    %c0_192 = arith.constant 0 : index
    %c0_193 = arith.constant 0 : index
    %166 = vector.load %arg6[%c0_192, %c0_193] : memref<256x128xf32, #tpu.memory_space<vmem>>, vector<256x128xf32>
    %c0_194 = arith.constant 0 : index
    %c0_195 = arith.constant 0 : index
    %167 = vector.load %arg4[%c0_194, %c0_195] : memref<1x128xf32, #tpu.memory_space<vmem>>, vector<1x128xf32>
    %168 = vector.broadcast %167 : vector<1x128xf32> to vector<256x128xf32>
    %169 = arith.addf %166, %168 : vector<256x128xf32>
    %cst_196 = arith.constant 0.000000e+00 : f32
    %170 = vector.broadcast %cst_196 : f32 to vector<256x128xf32>
    %171 = arith.maximumf %169, %170 : vector<256x128xf32>
    %172 = vector.shape_cast %171 : vector<256x128xf32> to vector<16x16x128xf32>
    %c0_197 = arith.constant 0 : index
    %c48 = arith.constant 48 : index
    %c0_198 = arith.constant 0 : index
    %c0_199 = arith.constant 0 : index
    %173 = vector.load %arg5[%c0_197, %c48, %c0_198, %c0_199] : memref<1x64x16x128xf32, #tpu.memory_space<vmem>>, vector<1x16x16x128xf32>
    %174 = vector.shape_cast %173 : vector<1x16x16x128xf32> to vector<16x16x128xf32>
    %175 = vector.shape_cast %172 : vector<16x16x128xf32> to vector<1x16x16x128xf32>
    tpu.vector_store %arg5[%c0_197, %c48, %c0_198, %c0_199], %175 {strides = array<i32>} : memref<1x64x16x128xf32, #tpu.memory_space<vmem>>, vector<1x16x16x128xf32>,
    return
  }
  func.func @transform_0(%arg0: i32, %arg1: i32) -> (i32, i32, i32, i32) {
    %c0_i32 = arith.constant 0 : i32
    %c0_i32_0 = arith.constant 0 : i32
    %c0_i32_1 = arith.constant 0 : i32
    %c0_i32_2 = arith.constant 0 : i32
    return %arg0, %c0_i32, %c0_i32_0, %c0_i32_1 : i32, i32, i32, i32
  }
  func.func @transform_1(%arg0: i32, %arg1: i32) -> (i32, i32, i32) {
    %c0_i32 = arith.constant 0 : i32
    %c0_i32_0 = arith.constant 0 : i32
    %c0_i32_1 = arith.constant 0 : i32
    return %c0_i32, %c0_i32_0, %arg1 : i32, i32, i32
  }
  func.func @transform_2(%arg0: i32, %arg1: i32) -> (i32, i32) {
    %c0_i32 = arith.constant 0 : i32
    %c0_i32_0 = arith.constant 0 : i32
    return %c0_i32, %arg1 : i32, i32
  }
  func.func @transform_3(%arg0: i32, %arg1: i32) -> (i32, i32, i32, i32) {
    %c0_i32 = arith.constant 0 : i32
    %c0_i32_0 = arith.constant 0 : i32
    %c0_i32_1 = arith.constant 0 : i32
    return %arg0, %c0_i32, %c0_i32_0, %arg1 : i32, i32, i32, i32
  }
}

</mosaic_0001>

<bundles_post_ra>
// kernel: decoder_block_forward.2
= control target key start
LH: loop header
LB: loop body
LE: loop exit
PB: predicated region body
PF: predicated region fallthrough
CT: control target
= control target key end

     0   :  { %s7388_s12 = smov 0   ;;  %s7390_s13 = smov 0   ;;  %s8703_s0 = inlined_call_operand.vmem [shape: bf16[2,18,18,32], index: 0, kind: input, shape index: {}]   ;;  %s8704_s1 = inlined_call_operand.vmem [shape: bf16[9,32,128], index: 1, kind: input, shape index: {}]   ;;  %s8705_s2 = inlined_call_operand.vmem [shape: f32[1,128], index: 2, kind: input, shape index: {}]   ;;  %s8706_s3 = inlined_call_operand.vmem [shape: f32[2,16,16,128], index: 3, kind: output, shape index: {}]  }
   0x1   :  { %s7392_s14 = smov 0  }
   0x2 LB: > { %s25_s15 = sadd.s32 1, %s7362_s13  ;;  %p5855_p0 = scmp.ge.s32.totalorder %s7366_s14, 1  ;;  %s7366_s14 = sphi %s7392_s14, %s13_s14   ;;  %s7362_s13 = sphi %s7390_s13, %s8712_s13   ;;  %s7358_s12 = sphi %s7388_s12, %s8711_s12  }
   0x3   : > { %p27_p1 = scmp.ge.s32.totalorder %s25_s15, 2  ;;  %p168_p2 = scmp.lt.s32.totalorder %s7366_s14, 3 }
   0x5   : > { %s8714_s15 = smov (%p27_p1, %s25_s15), 0  ;;  %p169_p3 = pnand %p5855_p0, %p168_p2 }
   0x6   : > { %v7276_v0 = vld [vmem:[%s8704_s1] sm:$0xff] (!%p169_p3)   ;;  %p202_p4 = scmp.lt.s32.totalorder (!%p169_p3), %s7358_s12, 1  ;;  %v7277_v1 = vld [vmem:[%s8704_s1 + $0x8] sm:$0xff] (!%p169_p3)   ;;  %v7284_v4 = vld [vmem:[%s8704_s1 + $0x10] sm:$0xff] (!%p169_p3)   ;;  %vm351_vm0 = vcmask (!%p169_p3), 261120   ;;  %vm1494_vm4 = vcmask (!%p169_p3), 1042432  }
   0x7   : > { %172 = sbr.rel (%p169_p3) target bundleno = 542 (0x21e), region = 32  ;;  %6667 = vmatprep.subr.bf16.mxu1 (!%p169_p3), %v7276_v0  ;;  %v7280_v2 = vld [vmem:[%s8704_s1 + $0x40] sm:$0xff] (!%p169_p3)   ;;  %v7281_v3 = vld [vmem:[%s8704_s1 + $0x48] sm:$0xff] (!%p169_p3)   ;;  %vm641_vm1 = vsmask.f32 (!%p169_p3), 3328  ;;  %v7432_v5 = vld [vmem:[%s8704_s1 + $0x50] sm:$0xff] (!%p169_p3)  }
   0x8   : > { %6668 = vmatpush3.bf16.msra.mxu1 (!%p169_p3), %v7276_v0  ;;  %6811 = vmatprep.subr.bf16.mxu0 (!%p169_p3), %v7280_v2  ;;  %vm642_vm2 = vsmask.f32 (!%p169_p3), 7440  ;;  %vm1495_vm5 = vcmask (!%p169_p3), 1046532  }
   0x9   : > { %6669 = vmatprep.subr.bf16.mxu1 (!%p169_p3), %v7277_v1  ;;  %6812 = vmatpush3.bf16.msra.mxu0 (!%p169_p3), %v7280_v2  ;;  %vm7451_vm3 = vmor (!%p169_p3), %vm641_vm1, %vm642_vm2 }
   0xa   : > { %6813 = vmatprep.subr.bf16.mxu0 (!%p169_p3), %v7281_v3  ;;  %vm7532_vm6 = vmor (!%p169_p3), %vm1494_vm4, %vm1495_vm5 }
   0xc   : > { %6670 = vmatpush3.bf16.msra.mxu1 (!%p169_p3), %v7277_v1 }
   0xd   : > { %6703 = vmatprep.subr.bf16.mxu1 (!%p169_p3), %v7284_v4  ;;  %6814 = vmatpush3.bf16.msra.mxu0 (!%p169_p3), %v7281_v3 }
   0xe   : > { %s8716_s12 = smov (!%p202_p4, %s7358_s12), 1  ;;  %6847 = vmatprep.subr.bf16.mxu0 %v7432_v5 }
   0xf   : > { %s7251_s24 = smul.u32 216, %s8716_s12  ;;  %s6504_s16 = sshll.u32 %s8716_s12, 8 }
  0x10   : > { %s8625_s19 = scalar_lea.vmem %s8706_s3, %s6504_s16 }
  0x11   : > { %s7427_s29 = scalar_lea.vmem %s8703_s0, %s7251_s24 }
  0x12   : > { %v7278_v6 = vld [vmem:[%s7427_s29] sm:$0xff]   ;;  %v7279_v7 = vld [vmem:[%s7427_s29 + $0xc] sm:$0xff]   ;;  %v7282_v8 = vld [vmem:[%s7427_s29 + $0x18] sm:$0xff]  }
  0x13   : > { %6671 = vmatprep.mubr.msk.bf16.mxu1 %vm351_vm0, %v7278_v6  ;;  %v6055_v9 = vld [vmem:[%s7427_s29 + $0xc] sm:$0xf]  ;;  %v6056_v10 = vld [vmem:[%s7427_s29 + $0x10] sm:$0xf]  ;;  %v6057_v11 = vld [vmem:[%s7427_s29 + $0x14] sm:$0x1] }
  0x14   : > { %6672 = vmatmul.mubr.msk.bf16.vlgmr.msra.gmra.mrb[0].mxu1 %vm351_vm0, %v7279_v7  ;;  %v7283_v12 = vld [vmem:[%s7427_s29 + $0x24] sm:$0xff]   ;;  %v2463_v13 = vshrl.u32 %v6055_v9, 16  ;;  %v2466_v14 = vshll.u32 %v6055_v9, 16  ;;  %v2472_v15 = vshll.u32 %v6056_v10, 16  ;;  %v2476_v16 = vshrl.u32 %v6056_v10, 16  ;;  %v7286_v34 = vld [vmem:[%s7427_s29 + $0x30] sm:$0xff]  }
  0x15   : > { %6675 = vmatprep.mubr.msk.bf16.mxu1 %vm351_vm0, %v7282_v8  ;;  %6704 = vmatpush3.bf16.msra.mxu1 %v7284_v4  ;;  %v6058_v17 = vld [vmem:[%s7427_s29 + $0x18] sm:$0xf]  ;;  %v2482_v18 = vshll.u32 %v6057_v11, 16  ;;  %v6059_v19 = vld [vmem:[%s7427_s29 + $0x1c] sm:$0xf]  ;;  %v7288_v61 = vld [vmem:[%s7427_s29 + $0x48] sm:$0xff]  }
  0x16   : > { %v6060_v20 = vld [vmem:[%s7427_s29 + $0x20] sm:$0x1]  ;;  %v2487_v21 = vshrl.u32 %v6058_v17, 16  ;;  %v2465_v22 = vrot.slane %v2463_v13, 4  ;;  %v2468_v23 = vrot.slane %v2466_v14, 5  ;;  %v2474_v24 = vrot.slane %v2472_v15, 5 }
  0x17   : > { %v2478_v25 = vrot.slane %v2476_v16, 4  ;;  %v2484_v26 = vrot.slane %v2482_v18, 5  ;;  %v2490_v28 = vshll.u32 %v6058_v17, 16  ;;  %v2496_v29 = vshll.u32 %v6059_v19, 16  ;;  %v6061_v38 = vld [vmem:[%s7427_s29 + $0x24] sm:$0xf] }
  0x18   : > { %v2489_v27 = vrot.slane %v2487_v21, 4  ;;  %v2469_v30 = vor.u32 %v2468_v23, %v2465_v22  ;;  %v2500_v32 = vshrl.u32 %v6059_v19, 16  ;;  %v2506_v33 = vshll.u32 %v6060_v20, 16  ;;  %v6062_v43 = vld [vmem:[%s7427_s29 + $0x28] sm:$0xf]  ;;  %v7287_v52 = vld [vmem:[%s7427_s29 + $0x3c] sm:$0xff]  }
  0x19   : > { %v2479_v31 = vor.u32 %v2478_v25, %v2474_v24  ;;  %v2492_v36 = vrot.slane %v2490_v28, 5  ;;  %v2498_v37 = vrot.slane %v2496_v29, 5  ;;  %v6063_v45 = vld [vmem:[%s7427_s29 + $0x2c] sm:$0x1]  ;;  %v2511_v46 = vshrl.u32 %v6061_v38, 16  ;;  %v7290_v17 = vld [vmem:[%s8704_s1 + $0x58] sm:$0xff]  }
  0x1a   : > { %v2470_v39 = vrot.slane %v2469_v30, 4  ;;  %v2502_v41 = vrot.slane %v2500_v32, 4  ;;  %v2508_v42 = vrot.slane %v2506_v33, 5  ;;  %v2514_v47 = vshll.u32 %v6061_v38, 16  ;;  %v6064_v54 = vld [vmem:[%s7427_s29 + $0x30] sm:$0xf] }
  0x1b   : > { %v2480_v40 = vrot.slane %v2479_v31, 4  ;;  %v2493_v44 = vor.u32 %v2492_v36, %v2489_v27  ;;  %v2520_v48 = vshll.u32 %v6062_v43, 16  ;;  %v2524_v53 = vshrl.u32 %v6062_v43, 16  ;;  %v6065_v55 = vld [vmem:[%s7427_s29 + $0x34] sm:$0xf]  ;;  %v7291_v43 = vld [vmem:[%s7427_s29 + $0x60] sm:$0xff]  }
  0x1c   : > { %6676 = vmatmul.mubr.msk.bf16.gmra.mrb[4].mxu1 %vm351_vm0, %v7283_v12  ;;  %v2475_v49 = vsel %vm7451_vm3, %v2470_v39, %v2474_v24  ;;  %v2503_v51 = vor.u32 %v2502_v41, %v2498_v37  ;;  %v2513_v58 = vrot.slane %v2511_v46, 4  ;;  %v2516_v59 = vrot.slane %v2514_v47, 5  ;;  %v6066_v60 = vld [vmem:[%s7427_s29 + $0x38] sm:$0x1]  ;;  %v6067_v11 = vld [vmem:[%s7427_s29 + $0x3c] sm:$0xf] }
  0x1d   : > { %6679 = vmatprep.mubr.msk.bf16.mxu1 %vm351_vm0, %v7286_v34  ;;  %v2485_v50 = vsel %vm7451_vm3, %v2480_v40, %v2484_v26  ;;  %v2494_v57 = vrot.slane %v2493_v44, 4  ;;  %v2522_v63 = vrot.slane %v2520_v48, 5  ;;  %v2526_v0 = vrot.slane %v2524_v53, 4  ;;  %v6068_v16 = vld [vmem:[%s7427_s29 + $0x40] sm:$0xf]  ;;  %v7289_v34 = vld [vmem:[%s7427_s29 + $0x54] sm:$0xff]  }
  0x1e   : > { %v6107_v56 = vcombine.low %v2475_v49, %v2485_v50  ;;  %v2504_v62 = vrot.slane %v2503_v51, 4  ;;  %v2530_v1 = vshll.u32 %v6063_v45, 16  ;;  %v2517_v3 = vor.u32 %v2516_v59, %v2513_v58  ;;  %v6069_v22 = vld [vmem:[%s7427_s29 + $0x44] sm:$0x1]  ;;  %v6070_v31 = vld [vmem:[%s7427_s29 + $0x48] sm:$0xf] }
  0x1f   : > { %v2499_v2 = vsel %vm7451_vm3, %v2494_v57, %v2498_v37  ;;  %v2535_v4 = vshrl.u32 %v6064_v54, 16  ;;  %v2538_v6 = vshll.u32 %v6064_v54, 16  ;;  %v2527_v8 = vor.u32 %v2526_v0, %v2522_v63  ;;  %v6071_v38 = vld [vmem:[%s7427_s29 + $0x4c] sm:$0xf] }
  0x20   : > { %6815 = vmatprep.mubr.msk.bf16.mxu0 %vm351_vm0, %v6107_v56  ;;  %v2509_v7 = vsel %vm7451_vm3, %v2504_v62, %v2508_v42  ;;  %v2532_v9 = vrot.slane %v2530_v1, 5  ;;  %v2544_v10 = vshll.u32 %v6065_v55, 16  ;;  %v2518_v13 = vrot.slane %v2517_v3, 4  ;;  %v6072_v42 = vld [vmem:[%s7427_s29 + $0x50] sm:$0x1]  ;;  %v7295_v3 = vld [vmem:[%s8704_s1 + $0x18] sm:$0xff]  }
  0x21   : > { %v6108_v12 = vcombine.low %v2499_v2, %v2509_v7  ;;  %v2537_v14 = vrot.slane %v2535_v4, 4  ;;  %v2540_v15 = vrot.slane %v2538_v6, 5  ;;  %v2528_v18 = vrot.slane %v2527_v8, 4  ;;  %v6075_v2 = vld [vmem:[%s7427_s29 + $0x5c] sm:$0x1]  ;;  %v7292_v7 = vld [vmem:[%s7427_s29 + $0x6c] sm:$0xff]   ;;  %6705 = vmatprep.subr.bf16.mxu1 %v7295_v3 }
  0x22   : > { %v2546_v19 = vrot.slane %v2544_v10, 5  ;;  %v2548_v20 = vshrl.u32 %v6065_v55, 16  ;;  %v2554_v21 = vshll.u32 %v6066_v60, 16  ;;  %v2523_v23 = vsel %vm7451_vm3, %v2518_v13, %v2522_v63  ;;  %v6073_v60 = vld [vmem:[%s7427_s29 + $0x54] sm:$0xf]  ;;  %6706 = vmatpush3.bf16.msra.mxu1 %v7295_v3 }
  0x23   : > { %6816 = vmatmul.mubr.msk.bf16.vlgmr.msra.gmra.mrb[0].mxu0 %vm351_vm0, %v6108_v12  ;;  %v2541_v24 = vor.u32 %v2540_v15, %v2537_v14  ;;  %v2559_v25 = vshrl.u32 %v6067_v11, 16  ;;  %v2562_v26 = vshll.u32 %v6067_v11, 16  ;;  %v2533_v27 = vsel %vm7451_vm3, %v2528_v18, %v2532_v9  ;;  %v6076_v10 = vld [vmem:[%s7427_s29 + $0x60] sm:$0xf]  ;;  %v6077_v15 = vld [vmem:[%s7427_s29 + $0x64] sm:$0xf] }
  0x24   : > { %6680 = vmatmul.mubr.msk.bf16.gmra.mrb[8].mxu1 %vm351_vm0, %v7287_v52  ;;  %6848 = vmatpush3.bf16.msra.mxu0 %v7432_v5  ;;  %v2550_v28 = vrot.slane %v2548_v20, 4  ;;  %v2556_v29 = vrot.slane %v2554_v21, 5  ;;  %v2568_v30 = vshll.u32 %v6068_v16, 16  ;;  %v6109_v32 = vcombine.low %v2523_v23, %v2533_v27  ;;  %v6078_v21 = vld [vmem:[%s7427_s29 + $0x68] sm:$0x1]  ;;  %v7297_v3 = vld [vmem:[%s7427_s29 + $0x90] sm:$0xff]  }
  0x25   : > { %6683 = vmatprep.mubr.msk.bf16.mxu1 %vm351_vm0, %v7288_v61  ;;  %v2542_v33 = vrot.slane %v2541_v24, 4  ;;  %v2561_v36 = vrot.slane %v2559_v25, 4  ;;  %v2564_v37 = vrot.slane %v2562_v26, 5  ;;  %6849 = vmatprep.subr.bf16.mxu0 %v7290_v17  ;;  %v2572_v41 = vshrl.u32 %v6068_v16, 16  ;;  %v6074_v61 = vld [vmem:[%s7427_s29 + $0x58] sm:$0xf] }
  0x26   : > { %v2551_v39 = vor.u32 %v2550_v28, %v2546_v19  ;;  %v2570_v40 = vrot.slane %v2568_v30, 5  ;;  %v2578_v5 = vshll.u32 %v6069_v22, 16  ;;  %6819 = vmatprep.mubr.msk.bf16.mxu0 %vm351_vm0, %v6109_v32  ;;  %v2583_v46 = vshrl.u32 %v6070_v31, 16  ;;  %v7515_v16 = vld [vmem:[%s8704_s1 + $0x60] sm:$0xff]   ;;  %v7293_v22 = vld [vmem:[%s7427_s29 + $0x78] sm:$0xff]  }
  0x27   : > { %v2547_v44 = vsel %vm7451_vm3, %v2542_v33, %v2546_v19  ;;  %v2565_v45 = vor.u32 %v2564_v37, %v2561_v36  ;;  %v2586_v47 = vshll.u32 %v6070_v31, 16  ;;  %v2574_v49 = vrot.slane %v2572_v41, 4 }
  0x28   : > { %v2552_v48 = vrot.slane %v2551_v39, 4  ;;  %v2580_v50 = vrot.slane %v2578_v5, 5  ;;  %v2592_v51 = vshll.u32 %v6071_v38, 16  ;;  %6850 = vmatpush3.bf16.msra.mxu0 %v7290_v17  ;;  %v2585_v53 = vrot.slane %v2583_v46, 4 }
  0x29   : > { %v2566_v52 = vrot.slane %v2565_v45, 4  ;;  %v2588_v54 = vrot.slane %v2586_v47, 5  ;;  %v2596_v55 = vshrl.u32 %v6071_v38, 16  ;;  %v2575_v57 = vor.u32 %v2574_v49, %v2570_v40  ;;  %6883 = vmatprep.subr.bf16.mxu0 %v7515_v16  ;;  %v6142_v45 = vld [vmem:[%s7427_s29 + $0x10] sm:$0xf] }
  0x2a   : > { %v2557_v56 = vsel %vm7451_vm3, %v2552_v48, %v2556_v29  ;;  %v2594_v58 = vrot.slane %v2592_v51, 5  ;;  %v2602_v59 = vshll.u32 %v6072_v42, 16  ;;  %v2607_v8 = vshrl.u32 %v6073_v60, 16  ;;  %v7294_v48 = vld [vmem:[%s7427_s29 + $0x84] sm:$0xff]   ;;  %v6143_v49 = vld [vmem:[%s7427_s29 + $0x14] sm:$0x1] }
  0x2b   : > { %v6110_v62 = vcombine.low %v2547_v44, %v2557_v56  ;;  %v2571_v63 = vsel %vm7451_vm3, %v2566_v52, %v2570_v40  ;;  %v2589_v0 = vor.u32 %v2588_v54, %v2585_v53  ;;  %v2598_v1 = vrot.slane %v2596_v55, 4  ;;  %v6141_v40 = vld [vmem:[%s7427_s29 + $0xc] sm:$0xe] }
  0x2c   : > { %6684 = vmatmul.mubr.msk.bf16.gmra.mrb[12].mxu1 %vm351_vm0, %v7289_v34  ;;  %v2576_v4 = vrot.slane %v2575_v57, 4  ;;  %v2604_v6 = vrot.slane %v2602_v59, 5  ;;  %v2610_v9 = vshll.u32 %v6073_v60, 16  ;;  %v2616_v13 = vshll.u32 %v6074_v61, 16  ;;  %v6144_v59 = vld [vmem:[%s7427_s29 + $0x18] sm:$0xe] }
  0x2d   : > { %6687 = vmatprep.mubr.msk.bf16.mxu1 %vm351_vm0, %v7291_v43  ;;  %6820 = vmatmul.mubr.msk.bf16.gmra.mrb[4].mxu0 %vm351_vm0, %v6110_v62  ;;  %v2590_v11 = vrot.slane %v2589_v0, 4  ;;  %v2599_v12 = vor.u32 %v2598_v1, %v2594_v58  ;;  %v2620_v14 = vshrl.u32 %v6074_v61, 16  ;;  %v2609_v18 = vrot.slane %v2607_v8, 4  ;;  %v6145_v60 = vld [vmem:[%s7427_s29 + $0x1c] sm:$0xf]  ;;  %v7551_v61 = vld [vmem:[%s8704_s1 + $0x20] sm:$0xff]  }
  0x2e   : > { %v2581_v17 = vsel %vm7451_vm3, %v2576_v4, %v2580_v50  ;;  %v2612_v19 = vrot.slane %v2610_v9, 5  ;;  %v2626_v20 = vshll.u32 %v6075_v2, 16  ;;  %v2618_v26 = vrot.slane %v2616_v13, 5  ;;  %v6146_v1 = vld [vmem:[%s7427_s29 + $0x20] sm:$0x1]  ;;  %6739 = vmatprep.subr.bf16.mxu1 %v7551_v61 }
  0x2f   : > { %v6111_v23 = vcombine.low %v2571_v63, %v2581_v17  ;;  %v2595_v24 = vsel %vm7451_vm3, %v2590_v11, %v2594_v58  ;;  %v2600_v25 = vrot.slane %v2599_v12, 4  ;;  %v2622_v28 = vrot.slane %v2620_v14, 4  ;;  %v6148_v14 = vld [vmem:[%s7427_s29 + $0x28] sm:$0xf] }
  0x30   : > { %v2613_v27 = vor.u32 %v2612_v19, %v2609_v18  ;;  %v2628_v29 = vrot.slane %v2626_v20, 5  ;;  %v2631_v30 = vshrl.u32 %v6076_v10, 16  ;;  %v2634_v32 = vshll.u32 %v6076_v10, 16  ;;  %v6147_v10 = vld [vmem:[%s7427_s29 + $0x24] sm:$0xe] }
  0x31   : > { %6823 = vmatprep.mubr.msk.bf16.mxu0 %vm351_vm0, %v6111_v23  ;;  %v2605_v31 = vsel %vm7451_vm3, %v2600_v25, %v2604_v6  ;;  %v2640_v33 = vshll.u32 %v6077_v15, 16  ;;  %v2644_v34 = vshrl.u32 %v6077_v15, 16  ;;  %v2623_v38 = vor.u32 %v2622_v28, %v2618_v26  ;;  %v6149_v15 = vld [vmem:[%s7427_s29 + $0x2c] sm:$0x1]  ;;  %v6150_v20 = vld [vmem:[%s7427_s29 + $0x30] sm:$0xe] }
  0x32   : > { %v6112_v36 = vcombine.low %v2595_v24, %v2605_v31  ;;  %v2614_v37 = vrot.slane %v2613_v27, 4  ;;  %v2633_v39 = vrot.slane %v2631_v30, 4  ;;  %v2636_v41 = vrot.slane %v2634_v32, 5  ;;  %v6153_v32 = vld [vmem:[%s7427_s29 + $0x3c] sm:$0xe] }
  0x33   : > { %v2642_v5 = vrot.slane %v2640_v33, 5  ;;  %v2646_v42 = vrot.slane %v2644_v34, 4  ;;  %v2650_v43 = vshll.u32 %v6078_v21, 16  ;;  %v2624_v47 = vrot.slane %v2623_v38, 4  ;;  %v6151_v21 = vld [vmem:[%s7427_s29 + $0x34] sm:$0xf] }
  0x34   : > { %6688 = vmatmul.mubr.msk.bf16.gmra.mrb[16].mxu1 %vm351_vm0, %v7292_v7  ;;  %v2619_v46 = vsel %vm7451_vm3, %v2614_v37, %v2618_v26  ;;  %v6189_v50 = vrot.slane %v6141_v40, 9  ;;  %v3314_v51 = vrot.slane %v6142_v45, 5  ;;  %v2637_v52 = vor.u32 %v2636_v41, %v2633_v39  ;;  %v6154_v37 = vld [vmem:[%s7427_s29 + $0x40] sm:$0xf]  ;;  %v6155_v38 = vld [vmem:[%s7427_s29 + $0x44] sm:$0x1] }
  0x35   : > { %6691 = vmatprep.mubr.msk.bf16.mxu1 %vm351_vm0, %v7293_v22  ;;  %6824 = vmatmul.mubr.msk.bf16.gmra.mrb[8].mxu0 %vm351_vm0, %v6112_v36  ;;  %v2647_v53 = vor.u32 %v2646_v42, %v2642_v5  ;;  %v2652_v54 = vrot.slane %v2650_v43, 5  ;;  %v3317_v55 = vrot.slane %v6143_v49, 5  ;;  %v2629_v56 = vsel %vm7451_vm3, %v2624_v47, %v2628_v29  ;;  %v6152_v22 = vld [vmem:[%s7427_s29 + $0x38] sm:$0x1]  ;;  %v7298_v29 = vld [vmem:[%s7427_s29 + $0x9c] sm:$0xff]   ;;  %v7299_v36 = vld [vmem:[%s7427_s29 + $0xa8] sm:$0xff]  }
  0x36   : > { %v3315_v57 = vsel %vm7532_vm6, %v6189_v50, %v3314_v51  ;;  %v3316_v58 = vrot.slane %v3314_v51, 4  ;;  %v6113_v62 = vcombine.low %v2619_v46, %v2629_v56  ;;  %v2638_v63 = vrot.slane %v2637_v52, 4  ;;  %v6156_v42 = vld [vmem:[%s7427_s29 + $0x48] sm:$0xe]  ;;  %v6157_v43 = vld [vmem:[%s7427_s29 + $0x4c] sm:$0xf] }
  0x37   : > { %v2648_v0 = vrot.slane %v2647_v53, 4  ;;  %v6190_v2 = vrot.slane %v6144_v59, 9  ;;  %v3321_v6 = vrot.slane %v6145_v60, 5  ;;  %v3324_v7 = vrot.slane %v6146_v1, 5  ;;  %v6158_v47 = vld [vmem:[%s7427_s29 + $0x50] sm:$0x1] }
  0x38   : > { %v3318_v4 = vsel %vm7532_vm6, %v3316_v58, %v3317_v55  ;;  %6827 = vmatprep.mubr.msk.bf16.mxu0 %vm351_vm0, %v6113_v62  ;;  %v2643_v8 = vsel %vm7451_vm3, %v2638_v63, %v2642_v5  ;;  %v6191_v17 = vrot.slane %v6147_v10, 9  ;;  %v3328_v18 = vrot.slane %v6148_v14, 5  ;;  %v593_v50 = vld [vmem:[%s7427_s29] sm:$0xf]  ;;  %v594_v55 = vld [vmem:[%s7427_s29 + $0x4] sm:$0xf] }
  0x39   : > { %v2653_v9 = vsel %vm7451_vm3, %v2648_v0, %v2652_v54  ;;  %v6209_v12 = vcombine.low %v3315_v57, %v3318_v4  ;;  %v3323_v13 = vrot.slane %v3321_v6, 4  ;;  %v3331_v19 = vrot.slane %v6149_v15, 5  ;;  %v595_v56 = vld [vmem:[%s7427_s29 + $0x8] sm:$0x1]  ;;  %v596_v62 = vld [vmem:[%s7427_s29 + $0xc] sm:$0xf] }
  0x3a   : > { %v6114_v11 = vcombine.low %v2643_v8, %v2653_v9  ;;  %v6192_v23 = vrot.slane %v6150_v20, 9  ;;  %v3335_v24 = vrot.slane %v6151_v21, 5  ;;  %v3330_v25 = vrot.slane %v3328_v18, 4  ;;  %v7302_v63 = vld [vmem:[%s8704_s1 + $0x68] sm:$0xff]   ;;  %v597_v4 = vld [vmem:[%s7427_s29 + $0x10] sm:$0xf] }
  0x3b   : > { %v3338_v26 = vrot.slane %v6152_v22, 5  ;;  %v3322_v27 = vsel %vm7532_vm6, %v6190_v2, %v3321_v6  ;;  %v3325_v28 = vsel %vm7532_vm6, %v3323_v13, %v3324_v7  ;;  %v3329_v30 = vsel %vm7532_vm6, %v6191_v17, %v3328_v18  ;;  %v598_v10 = vld [vmem:[%s7427_s29 + $0x14] sm:$0x1]  ;;  %v6160_v18 = vld [vmem:[%s7427_s29 + $0x58] sm:$0xf] }
  0x3c   : > { %6692 = vmatmul.mubr.msk.bf16.gmra.mrb[20].mxu1 %vm351_vm0, %v7294_v48  ;;  %v3337_v31 = vrot.slane %v3335_v24, 4  ;;  %v3332_v33 = vsel %vm7532_vm6, %v3330_v25, %v3331_v19  ;;  %v7585_v34 = vsel %vm7532_vm6, %v6192_v23, %v3335_v24  ;;  %v6193_v39 = vrot.slane %v6153_v32, 9  ;;  %v6161_v23 = vld [vmem:[%s7427_s29 + $0x5c] sm:$0x1] }
  0x3d   : > { %6695 = vmatprep.mubr.msk.bf16.mxu1 %vm351_vm0, %v7297_v3  ;;  %6828 = vmatmul.mubr.msk.bf16.gmra.mrb[12].mxu0 %vm351_vm0, %v6114_v11  ;;  %v3342_v41 = vrot.slane %v6154_v37, 5  ;;  %v3345_v5 = vrot.slane %v6155_v38, 5  ;;  %v6210_v45 = vcombine.low %v3322_v27, %v3325_v28  ;;  %v6211_v46 = vcombine.low %v3329_v30, %v3332_v33  ;;  %v6159_v11 = vld [vmem:[%s7427_s29 + $0x54] sm:$0xe]  ;;  %v6162_v28 = vld [vmem:[%s7427_s29 + $0x60] sm:$0xe] }
  0x3e   : > { %6851 = vmatprep.mubr.msk.bf16.mxu0 %vm351_vm0, %v6209_v12  ;;  %v7592_v40 = vsel %vm7532_vm6, %v3337_v31, %v3338_v26  ;;  %v6194_v48 = vrot.slane %v6156_v42, 9  ;;  %v3349_v49 = vrot.slane %v6157_v43, 5  ;;  %v3352_v54 = vrot.slane %v6158_v47, 5  ;;  %v7300_v12 = vld [vmem:[%s7427_s29 + $0xb4] sm:$0xff]   ;;  %v6163_v33 = vld [vmem:[%s7427_s29 + $0x64] sm:$0xf] }
  0x3f   : > { %v6212_v51 = vcombine.low %v7585_v34, %v7592_v40  ;;  %v7603_v52 = vsel %vm7532_vm6, %v6193_v39, %v3342_v41  ;;  %v3344_v53 = vrot.slane %v3342_v41, 4  ;;  %v645_v59 = vshrl.u32 %v593_v50, 16  ;;  %v6164_v41 = vld [vmem:[%s7427_s29 + $0x68] sm:$0x1] }
  0x40   : > { %v7610_v57 = vsel %vm7532_vm6, %v6194_v48, %v3349_v49  ;;  %v3351_v58 = vrot.slane %v3349_v49, 4  ;;  %v648_v60 = vshll.u32 %v593_v50, 16  ;;  %v654_v1 = vshll.u32 %v594_v55, 16 }
  0x41   : > { %v7618_v0 = vsel %vm7532_vm6, %v3344_v53, %v3345_v5  ;;  %v658_v2 = vshrl.u32 %v594_v55, 16  ;;  %v664_v3 = vshll.u32 %v595_v56, 16  ;;  %v647_v8 = vrot.slane %v645_v59, 4  ;;  %v601_v53 = vld [vmem:[%s7427_s29 + $0x20] sm:$0x1] }
  0x42   : > { %v6213_v6 = vcombine.low %v7603_v52, %v7618_v0  ;;  %v7626_v7 = vsel %vm7532_vm6, %v3351_v58, %v3352_v54  ;;  %v650_v9 = vrot.slane %v648_v60, 5  ;;  %v656_v14 = vrot.slane %v654_v1, 5  ;;  %v600_v52 = vld [vmem:[%s7427_s29 + $0x1c] sm:$0xf]  ;;  %v602_v59 = vld [vmem:[%s7427_s29 + $0x24] sm:$0xf] }
  0x43   : > { %v6214_v13 = vcombine.low %v7610_v57, %v7626_v7  ;;  %v660_v15 = vrot.slane %v658_v2, 4  ;;  %v666_v17 = vrot.slane %v664_v3, 5  ;;  %v669_v20 = vshrl.u32 %v596_v62, 16  ;;  %v603_v1 = vld [vmem:[%s7427_s29 + $0x28] sm:$0xf] }
  0x44   : > { %6696 = vmatmul.mubr.msk.bf16.gmra.mrb[24].mxu1 %vm351_vm0, %v7298_v29  ;;  %v651_v19 = vor.u32 %v650_v9, %v647_v8  ;;  %v672_v21 = vshll.u32 %v596_v62, 16  ;;  %v678_v22 = vshll.u32 %v597_v4, 16  ;;  %v682_v25 = vshrl.u32 %v597_v4, 16  ;;  %v604_v9 = vld [vmem:[%s7427_s29 + $0x2c] sm:$0x1] }
  0x45   : > { %6699 = vmatprep.mubr.msk.bf16.mxu1 %vm351_vm0, %v7299_v36  ;;  %6852 = vmatmul.mubr.msk.bf16.vlgmr.msra.gmra.mrb[0].mxu0 %vm351_vm0, %v6210_v45  ;;  %v661_v24 = vor.u32 %v660_v15, %v656_v14  ;;  %v688_v26 = vshll.u32 %v598_v10, 16  ;;  %v6195_v27 = vrot.slane %v6159_v11, 9  ;;  %v671_v30 = vrot.slane %v669_v20, 4  ;;  %v7303_v10 = vld [vmem:[%s8704_s1 + $0x28] sm:$0xff]  }
  0x46   : > { %6884 = vmatpush3.bf16.msra.mxu0 %v7515_v16  ;;  %6855 = vmatprep.mubr.msk.bf16.mxu0 %vm351_vm0, %v6211_v46  ;;  %v7640_v16 = vld [vmem:[%s8704_s1 + $0x70] sm:$0xff]   ;;  %v652_v29 = vrot.slane %v651_v19, 4  ;;  %v674_v31 = vrot.slane %v672_v21, 5  ;;  %v680_v32 = vrot.slane %v678_v22, 5  ;;  %v684_v37 = vrot.slane %v682_v25, 4 }
  0x47   : > { %6885 = vmatprep.subr.bf16.mxu0 %v7302_v63  ;;  %v662_v36 = vrot.slane %v661_v24, 4  ;;  %v690_v38 = vrot.slane %v688_v26, 5  ;;  %v3356_v39 = vrot.slane %v6160_v18, 5  ;;  %v3359_v43 = vrot.slane %v6161_v23, 5  ;;  %v599_v46 = vld [vmem:[%s7427_s29 + $0x18] sm:$0xf] }
  0x48   : > { %v657_v5 = vsel %vm7451_vm3, %v652_v29, %v656_v14  ;;  %v675_v42 = vor.u32 %v674_v31, %v671_v30  ;;  %v6196_v45 = vrot.slane %v6162_v28, 9  ;;  %v685_v48 = vor.u32 %v684_v37, %v680_v32  ;;  %v6166_v18 = vld [vmem:[%s7427_s29 + $0x70] sm:$0xf]  ;;  %v6167_v23 = vld [vmem:[%s7427_s29 + $0x74] sm:$0x1] }
  0x49   : > { %v667_v47 = vsel %vm7451_vm3, %v662_v36, %v666_v17  ;;  %v3357_v49 = vsel %vm7532_vm6, %v6195_v27, %v3356_v39  ;;  %v3358_v50 = vrot.slane %v3356_v39, 4  ;;  %v3363_v56 = vrot.slane %v6163_v33, 5  ;;  %v6165_v17 = vld [vmem:[%s7427_s29 + $0x6c] sm:$0xe]  ;;  %v6168_v28 = vld [vmem:[%s7427_s29 + $0x78] sm:$0xe] }
  0x4a   : > { %6886 = vmatpush3.bf16.msra.mxu0 %v7302_v63  ;;  %v5897_v54 = vcombine.low %v657_v5, %v667_v47  ;;  %v676_v55 = vrot.slane %v675_v42, 4  ;;  %v3366_v58 = vrot.slane %v6164_v41, 5  ;;  %v686_v60 = vrot.slane %v685_v48, 4  ;;  %v6169_v33 = vld [vmem:[%s7427_s29 + $0x7c] sm:$0xf]  ;;  %v7699_v5 = vld [vmem:[%s8704_s1 + $0x30] sm:$0xff]  }
  0x4b   : > { %6919 = vmatprep.subr.bf16.mxu0 %v7640_v16  ;;  %v3360_v62 = vsel %vm7532_vm6, %v3358_v50, %v3359_v43  ;;  %v693_v63 = vshrl.u32 %v599_v46, 16  ;;  %v696_v0 = vshll.u32 %v599_v46, 16  ;;  %v3365_v2 = vrot.slane %v3363_v56, 4  ;;  %v6170_v41 = vld [vmem:[%s7427_s29 + $0x80] sm:$0x1] }
  0x4c   : > { %6700 = vmatmul.mubr.msk.bf16.gmra.mrb[28].mxu1 %vm351_vm0, %v7300_v12  ;;  %v681_v34 = vsel %vm7451_vm3, %v676_v55, %v680_v32  ;;  %v6215_v40 = vcombine.low %v3357_v49, %v3360_v62  ;;  %v691_v3 = vsel %vm7451_vm3, %v686_v60, %v690_v38  ;;  %v702_v8 = vshll.u32 %v600_v52, 16 }
  0x4d   : > { %6856 = vmatmul.mubr.msk.bf16.gmra.mrb[4].mxu0 %vm351_vm0, %v6212_v51  ;;  %6707 = vmatprep.mubr.msk.bf16.mxu1 %vm351_vm0, %v5897_v54  ;;  %v7670_v51 = vsel %vm7532_vm6, %v6196_v45, %v3363_v56  ;;  %v695_v4 = vrot.slane %v693_v63, 4  ;;  %v5898_v11 = vcombine.low %v681_v34, %v691_v3  ;;  %v7680_v12 = vsel %vm7532_vm6, %v3365_v2, %v3366_v58  ;;  %v606_v56 = vld [vmem:[%s7427_s29 + $0x34] sm:$0xf] }
  0x4e   : > { %6859 = vmatprep.mubr.msk.bf16.mxu0 %vm351_vm0, %v6213_v6  ;;  %v698_v6 = vrot.slane %v696_v0, 5  ;;  %v706_v14 = vshrl.u32 %v600_v52, 16  ;;  %v712_v15 = vshll.u32 %v601_v53, 16  ;;  %v6216_v19 = vcombine.low %v7670_v51, %v7680_v12  ;;  %v607_v0 = vld [vmem:[%s7427_s29 + $0x38] sm:$0x1] }
  0x4f   : > { %v704_v21 = vrot.slane %v702_v8, 5  ;;  %v717_v22 = vshrl.u32 %v602_v59, 16  ;;  %v720_v26 = vshll.u32 %v602_v59, 16  ;;  %v726_v27 = vshll.u32 %v603_v1, 16 }
  0x50   : > { %v699_v20 = vor.u32 %v698_v6, %v695_v4  ;;  %v708_v24 = vrot.slane %v706_v14, 4  ;;  %v714_v25 = vrot.slane %v712_v15, 5  ;;  %v730_v31 = vshrl.u32 %v603_v1, 16  ;;  %v608_v1 = vld [vmem:[%s7427_s29 + $0x3c] sm:$0xf] }
  0x51   : > { %v719_v30 = vrot.slane %v717_v22, 4  ;;  %v736_v32 = vshll.u32 %v604_v9, 16  ;;  %v722_v37 = vrot.slane %v720_v26, 5  ;;  %v728_v38 = vrot.slane %v726_v27, 5  ;;  %v609_v9 = vld [vmem:[%s7427_s29 + $0x40] sm:$0xf] }
  0x52   : > { %v700_v29 = vrot.slane %v699_v20, 4  ;;  %v709_v36 = vor.u32 %v708_v24, %v704_v21  ;;  %v6197_v39 = vrot.slane %v6165_v17, 9  ;;  %v732_v42 = vrot.slane %v730_v31, 4  ;;  %v610_v14 = vld [vmem:[%s7427_s29 + $0x44] sm:$0x1] }
  0x53   : > { %v738_v57 = vrot.slane %v736_v32, 5  ;;  %v3370_v7 = vrot.slane %v6166_v18, 5  ;;  %v723_v45 = vor.u32 %v722_v37, %v719_v30  ;;  %v3373_v46 = vrot.slane %v6167_v23, 5  ;;  %v6171_v17 = vld [vmem:[%s7427_s29 + $0x84] sm:$0xe] }
  0x54   : > { %6708 = vmatmul.mubr.msk.bf16.vlgmr.msra.gmra.mrb[0].mxu1 %vm351_vm0, %v5898_v11  ;;  %v710_v43 = vrot.slane %v709_v36, 4  ;;  %v6198_v47 = vrot.slane %v6168_v28, 9  ;;  %v733_v48 = vor.u32 %v732_v42, %v728_v38  ;;  %v3377_v52 = vrot.slane %v6169_v33, 5  ;;  %v6172_v23 = vld [vmem:[%s7427_s29 + $0x88] sm:$0xf] }
  0x55   : > { %6740 = vmatpush3.bf16.msra.mxu1 %v7551_v61  ;;  %6860 = vmatmul.mubr.msk.bf16.gmra.mrb[8].mxu0 %vm351_vm0, %v6214_v13  ;;  %v705_v61 = vsel %vm7451_vm3, %v700_v29, %v704_v21  ;;  %v605_v13 = vld [vmem:[%s7427_s29 + $0x30] sm:$0xf]  ;;  %v3371_v49 = vsel %vm7532_vm6, %v6197_v39, %v3370_v7  ;;  %v3372_v50 = vrot.slane %v3370_v7, 4  ;;  %v724_v54 = vrot.slane %v723_v45, 4  ;;  %v6173_v31 = vld [vmem:[%s7427_s29 + $0x8c] sm:$0x1] }
  0x56   : > { %6741 = vmatprep.subr.bf16.mxu1 %v7303_v10  ;;  %6863 = vmatprep.mubr.msk.bf16.mxu0 %vm351_vm0, %v6215_v40  ;;  %v715_v53 = vsel %vm7451_vm3, %v710_v43, %v714_v25  ;;  %v3380_v55 = vrot.slane %v6170_v41, 5  ;;  %v741_v58 = vshrl.u32 %v605_v13, 16  ;;  %v734_v60 = vrot.slane %v733_v48, 4 }
  0x57   : > { %v5899_v59 = vcombine.low %v705_v61, %v715_v53  ;;  %v3374_v62 = vsel %vm7532_vm6, %v3372_v50, %v3373_v46  ;;  %v3378_v63 = vsel %vm7532_vm6, %v6198_v47, %v3377_v52  ;;  %v729_v34 = vsel %vm7451_vm3, %v724_v54, %v728_v38  ;;  %v6174_v38 = vld [vmem:[%s7427_s29 + $0x90] sm:$0xe]  ;;  %v6176_v46 = vld [vmem:[%s7427_s29 + $0x98] sm:$0x1]  ;;  %v611_v47 = vld [vmem:[%s7427_s29 + $0x48] sm:$0xf] }
  0x58   : > { %v6217_v40 = vcombine.low %v3371_v49, %v3374_v62  ;;  %v3379_v51 = vrot.slane %v3377_v52, 4  ;;  %v743_v2 = vrot.slane %v741_v58, 4  ;;  %v739_v3 = vsel %vm7451_vm3, %v734_v60, %v738_v57  ;;  %v6175_v57 = vld [vmem:[%s7427_s29 + $0x94] sm:$0xf]  ;;  %v612_v58 = vld [vmem:[%s7427_s29 + $0x4c] sm:$0xf] }
  0x59   : > { %6742 = vmatpush3.bf16.msra.mxu1 %v7303_v10  ;;  %6711 = vmatprep.mubr.msk.bf16.mxu1 %vm351_vm0, %v5899_v59  ;;  %v744_v4 = vshll.u32 %v605_v13, 16  ;;  %v750_v6 = vshll.u32 %v606_v56, 16  ;;  %v754_v8 = vshrl.u32 %v606_v56, 16  ;;  %v5900_v10 = vcombine.low %v729_v34, %v739_v3 }
  0x5a   : > { %6775 = vmatprep.subr.bf16.mxu1 %v7699_v5  ;;  %v3381_v11 = vsel %vm7532_vm6, %v3379_v51, %v3380_v55  ;;  %v760_v12 = vshll.u32 %v607_v0, 16  ;;  %v765_v15 = vshrl.u32 %v608_v1, 16  ;;  %v768_v25 = vshll.u32 %v608_v1, 16 }
  0x5b   : > { %v6218_v18 = vcombine.low %v3378_v63, %v3381_v11  ;;  %v746_v20 = vrot.slane %v744_v4, 5  ;;  %v752_v21 = vrot.slane %v750_v6, 5  ;;  %v756_v22 = vrot.slane %v754_v8, 4  ;;  %v613_v63 = vld [vmem:[%s7427_s29 + $0x50] sm:$0x1] }
  0x5c   : > { %6712 = vmatmul.mubr.msk.bf16.gmra.mrb[4].mxu1 %vm351_vm0, %v5900_v10  ;;  %v767_v24 = vrot.slane %v765_v15, 4  ;;  %v774_v26 = vshll.u32 %v609_v9, 16  ;;  %v778_v29 = vshrl.u32 %v609_v9, 16  ;;  %v784_v30 = vshll.u32 %v610_v14, 16  ;;  %v615_v9 = vld [vmem:[%s7427_s29 + $0x58] sm:$0xf] }
  0x5d   : > { %6864 = vmatmul.mubr.msk.bf16.gmra.mrb[12].mxu0 %vm351_vm0, %v6216_v19  ;;  %v762_v19 = vrot.slane %v760_v12, 5  ;;  %v747_v27 = vor.u32 %v746_v20, %v743_v2  ;;  %v757_v28 = vor.u32 %v756_v22, %v752_v21  ;;  %v770_v32 = vrot.slane %v768_v25, 5  ;;  %v614_v2 = vld [vmem:[%s7427_s29 + $0x54] sm:$0xf]  ;;  %v616_v15 = vld [vmem:[%s7427_s29 + $0x5c] sm:$0x1] }
  0x5e   : > { %6867 = vmatprep.mubr.msk.bf16.mxu0 %vm351_vm0, %v6217_v40  ;;  %v776_v33 = vrot.slane %v774_v26, 5  ;;  %v6199_v36 = vrot.slane %v6171_v17, 9  ;;  %v3384_v37 = vrot.slane %v6172_v23, 5  ;;  %v780_v61 = vrot.slane %v778_v29, 4  ;;  %v6177_v17 = vld [vmem:[%s7427_s29 + $0x9c] sm:$0xe] }
  0x5f   : > { %v748_v39 = vrot.slane %v747_v27, 4  ;;  %v758_v41 = vrot.slane %v757_v28, 4  ;;  %v786_v42 = vrot.slane %v784_v30, 5  ;;  %v771_v7 = vor.u32 %v770_v32, %v767_v24  ;;  %v6178_v23 = vld [vmem:[%s7427_s29 + $0xa0] sm:$0xf] }
  0x60   : > { %v3385_v13 = vsel %vm7532_vm6, %v6199_v36, %v3384_v37  ;;  %v3386_v43 = vrot.slane %v3384_v37, 4  ;;  %v3387_v45 = vrot.slane %v6173_v31, 5  ;;  %v781_v50 = vor.u32 %v780_v61, %v776_v33  ;;  %v6179_v27 = vld [vmem:[%s7427_s29 + $0xa4] sm:$0x1]  ;;  %v6180_v32 = vld [vmem:[%s7427_s29 + $0xa8] sm:$0xe] }
  0x61   : > { %v753_v48 = vsel %vm7451_vm3, %v748_v39, %v752_v21  ;;  %v763_v49 = vsel %vm7451_vm3, %v758_v41, %v762_v19  ;;  %v6200_v52 = vrot.slane %v6174_v38, 9  ;;  %v772_v54 = vrot.slane %v771_v7, 4  ;;  %v6181_v39 = vld [vmem:[%s7427_s29 + $0xac] sm:$0xf]  ;;  %v6182_v7 = vld [vmem:[%s7427_s29 + $0xb0] sm:$0x1] }
  0x62   : > { %v5901_v53 = vcombine.low %v753_v48, %v763_v49  ;;  %v3388_v55 = vsel %vm7532_vm6, %v3386_v43, %v3387_v45  ;;  %v3391_v56 = vrot.slane %v6175_v57, 5  ;;  %v782_v59 = vrot.slane %v781_v50, 4 }
  0x63   : > { %v6219_v60 = vcombine.low %v3385_v13, %v3388_v55  ;;  %v3394_v62 = vrot.slane %v6176_v46, 5  ;;  %v789_v0 = vshrl.u32 %v611_v47, 16  ;;  %v777_v1 = vsel %vm7451_vm3, %v772_v54, %v776_v33  ;;  %v619_v54 = vld [vmem:[%s7427_s29 + $0x68] sm:$0x1] }
  0x64   : > { %6715 = vmatprep.mubr.msk.bf16.mxu1 %vm351_vm0, %v5901_v53  ;;  %v3392_v34 = vsel %vm7532_vm6, %v6200_v52, %v3391_v56  ;;  %v3393_v40 = vrot.slane %v3391_v56, 4  ;;  %v792_v51 = vshll.u32 %v611_v47, 16  ;;  %v787_v3 = vsel %vm7451_vm3, %v782_v59, %v786_v42  ;;  %v617_v47 = vld [vmem:[%s7427_s29 + $0x60] sm:$0xf]  ;;  %v618_v53 = vld [vmem:[%s7427_s29 + $0x64] sm:$0xf] }
  0x65   : > { %6868 = vmatmul.mubr.msk.bf16.gmra.mrb[16].mxu0 %vm351_vm0, %v6218_v18  ;;  %v791_v4 = vrot.slane %v789_v0, 4  ;;  %v798_v6 = vshll.u32 %v612_v58, 16  ;;  %v802_v8 = vshrl.u32 %v612_v58, 16  ;;  %v5902_v10 = vcombine.low %v777_v1, %v787_v3 }
  0x66   : > { %6871 = vmatprep.mubr.msk.bf16.mxu0 %vm351_vm0, %v6219_v60  ;;  %v3395_v11 = vsel %vm7532_vm6, %v3393_v40, %v3394_v62  ;;  %v794_v12 = vrot.slane %v792_v51, 5  ;;  %v808_v14 = vshll.u32 %v613_v63, 16  ;;  %v813_v22 = vshrl.u32 %v614_v2, 16  ;;  %v620_v60 = vld [vmem:[%s7427_s29 + $0x6c] sm:$0xf] }
  0x67   : > { %v6220_v18 = vcombine.low %v3392_v34, %v3395_v11  ;;  %v800_v20 = vrot.slane %v798_v6, 5  ;;  %v804_v21 = vrot.slane %v802_v8, 4  ;;  %6716 = vmatmul.mubr.msk.bf16.gmra.mrb[8].mxu1 %vm351_vm0, %v5902_v10  ;;  %v816_v25 = vshll.u32 %v614_v2, 16  ;;  %v621_v34 = vld [vmem:[%s7427_s29 + $0x70] sm:$0xf] }
  0x68   : > { %v795_v19 = vor.u32 %v794_v12, %v791_v4  ;;  %v810_v24 = vrot.slane %v808_v14, 5  ;;  %v822_v26 = vshll.u32 %v615_v9, 16  ;;  %v815_v29 = vrot.slane %v813_v22, 4  ;;  %v622_v4 = vld [vmem:[%s7427_s29 + $0x74] sm:$0x1] }
  0x69   : > { %v805_v28 = vor.u32 %v804_v21, %v800_v20  ;;  %v826_v30 = vshrl.u32 %v615_v9, 16  ;;  %v832_v31 = vshll.u32 %v616_v15, 16  ;;  %v818_v36 = vrot.slane %v816_v25, 5  ;;  %v6183_v11 = vld [vmem:[%s7427_s29 + $0xb4] sm:$0xe] }
  0x6a   : > { %v796_v33 = vrot.slane %v795_v19, 4  ;;  %v824_v37 = vrot.slane %v822_v26, 5  ;;  %v6201_v38 = vrot.slane %v6177_v17, 9  ;;  %v3398_v57 = vrot.slane %v6178_v23, 5  ;;  %v6185_v19 = vld [vmem:[%s7427_s29 + $0xbc] sm:$0x1] }
  0x6b   : > { %v806_v41 = vrot.slane %v805_v28, 4  ;;  %v828_v61 = vrot.slane %v826_v30, 4  ;;  %v834_v42 = vrot.slane %v832_v31, 5  ;;  %v819_v43 = vor.u32 %v818_v36, %v815_v29  ;;  %v6187_v29 = vld [vmem:[%s7427_s29 + $0xc4] sm:$0xf] }
  0x6c   : > { %v801_v13 = vsel %vm7451_vm3, %v796_v33, %v800_v20  ;;  %v3401_v45 = vrot.slane %v6179_v27, 5  ;;  %v6202_v46 = vrot.slane %v6180_v32, 9  ;;  %v3399_v50 = vsel %vm7532_vm6, %v6201_v38, %v3398_v57 }
  0x6d   : > { %6872 = vmatmul.mubr.msk.bf16.gmra.mrb[20].mxu0 %vm351_vm0, %v6220_v18  ;;  %v811_v48 = vsel %vm7451_vm3, %v806_v41, %v810_v24  ;;  %v829_v49 = vor.u32 %v828_v61, %v824_v37  ;;  %v3400_v52 = vrot.slane %v3398_v57, 4  ;;  %v820_v56 = vrot.slane %v819_v43, 4  ;;  %v6184_v18 = vld [vmem:[%s7427_s29 + $0xb8] sm:$0xf]  ;;  %v6186_v24 = vld [vmem:[%s7427_s29 + $0xc0] sm:$0xe] }
  0x6e   : > { %v5903_v55 = vcombine.low %v801_v13, %v811_v48  ;;  %v3405_v58 = vrot.slane %v6181_v39, 5  ;;  %v3408_v59 = vrot.slane %v6182_v7, 5  ;;  %v837_v0 = vshrl.u32 %v617_v47, 16  ;;  %v6188_v41 = vld [vmem:[%s7427_s29 + $0xc8] sm:$0x1] }
  0x6f   : > { %v830_v62 = vrot.slane %v829_v49, 4  ;;  %v3402_v63 = vsel %vm7532_vm6, %v3400_v52, %v3401_v45  ;;  %v840_v1 = vshll.u32 %v617_v47, 16  ;;  %v825_v40 = vsel %vm7451_vm3, %v820_v56, %v824_v37  ;;  %v623_v13 = vld [vmem:[%s7427_s29 + $0x78] sm:$0xf] }
  0x70   : > { %6719 = vmatprep.mubr.msk.bf16.mxu1 %vm351_vm0, %v5903_v55  ;;  %v6221_v51 = vcombine.low %v3399_v50, %v3402_v63  ;;  %v3406_v2 = vsel %vm7532_vm6, %v6202_v46, %v3405_v58  ;;  %v3407_v3 = vrot.slane %v3405_v58, 4  ;;  %v839_v8 = vrot.slane %v837_v0, 4 }
  0x71   : > { %v835_v6 = vsel %vm7451_vm3, %v830_v62, %v834_v42  ;;  %v842_v9 = vrot.slane %v840_v1, 5  ;;  %v846_v10 = vshll.u32 %v618_v53, 16  ;;  %v850_v15 = vshrl.u32 %v618_v53, 16  ;;  %v624_v53 = vld [vmem:[%s7427_s29 + $0x7c] sm:$0xf] }
  0x72   : > { %v5904_v12 = vcombine.low %v825_v40, %v835_v6  ;;  %6875 = vmatprep.mubr.msk.bf16.mxu0 %vm351_vm0, %v6221_v51  ;;  %v3409_v14 = vsel %vm7532_vm6, %v3407_v3, %v3408_v59  ;;  %v856_v17 = vshll.u32 %v619_v54, 16  ;;  %v861_v23 = vshrl.u32 %v620_v60, 16  ;;  %v625_v54 = vld [vmem:[%s7427_s29 + $0x80] sm:$0x1] }
  0x73   : > { %v6222_v20 = vcombine.low %v3406_v2, %v3409_v14  ;;  %v843_v21 = vor.u32 %v842_v9, %v839_v8  ;;  %v848_v22 = vrot.slane %v846_v10, 5  ;;  %v852_v25 = vrot.slane %v850_v15, 4  ;;  %v627_v9 = vld [vmem:[%s7427_s29 + $0x88] sm:$0xf]  ;;  %v628_v14 = vld [vmem:[%s7427_s29 + $0x8c] sm:$0x1] }
  0x74   : > { %6720 = vmatmul.mubr.msk.bf16.gmra.mrb[12].mxu1 %vm351_vm0, %v5904_v12  ;;  %v858_v26 = vrot.slane %v856_v17, 5  ;;  %v864_v27 = vshll.u32 %v620_v60, 16  ;;  %v870_v28 = vshll.u32 %v621_v34, 16  ;;  %v863_v31 = vrot.slane %v861_v23, 4  ;;  %v626_v60 = vld [vmem:[%s7427_s29 + $0x84] sm:$0xf] }
  0x75   : > { %6876 = vmatmul.mubr.msk.bf16.gmra.mrb[24].mxu0 %vm351_vm0, %v6222_v20  ;;  %v844_v30 = vrot.slane %v843_v21, 4  ;;  %v874_v32 = vshrl.u32 %v621_v34, 16  ;;  %v880_v33 = vshll.u32 %v622_v4, 16  ;;  %v853_v36 = vor.u32 %v852_v25, %v848_v22  ;;  %v7304_v17 = vld [vmem:[%s7427_s29 + $0x18] sm:$0xff]   ;;  %v629_v23 = vld [vmem:[%s7427_s29 + $0x90] sm:$0xf] }
  0x76   : > { %v866_v37 = vrot.slane %v864_v27, 5  ;;  %v872_v38 = vrot.slane %v870_v28, 5  ;;  %v6203_v39 = vrot.slane %v6183_v11, 9  ;;  %v3412_v7 = vrot.slane %v6184_v18, 5 }
  0x77   : > { %v849_v61 = vsel %vm7451_vm3, %v844_v30, %v848_v22  ;;  %v876_v42 = vrot.slane %v874_v32, 4  ;;  %v882_v57 = vrot.slane %v880_v33, 5  ;;  %v854_v43 = vrot.slane %v853_v36, 4  ;;  %v631_v36 = vld [vmem:[%s7427_s29 + $0x98] sm:$0x1] }
  0x78   : > { %v867_v45 = vor.u32 %v866_v37, %v863_v31  ;;  %v3415_v46 = vrot.slane %v6185_v19, 5  ;;  %v6204_v47 = vrot.slane %v6186_v24, 9  ;;  %v3413_v49 = vsel %vm7532_vm6, %v6203_v39, %v3412_v7  ;;  %v630_v31 = vld [vmem:[%s7427_s29 + $0x94] sm:$0xf]  ;;  %v632_v39 = vld [vmem:[%s7427_s29 + $0x9c] sm:$0xf] }
  0x79   : > { %v877_v48 = vor.u32 %v876_v42, %v872_v38  ;;  %v3414_v50 = vrot.slane %v3412_v7, 4  ;;  %v3419_v52 = vrot.slane %v6187_v29, 5  ;;  %v859_v55 = vsel %vm7451_vm3, %v854_v43, %v858_v26 }
  0x7a   : > { %v868_v56 = vrot.slane %v867_v45, 4  ;;  %v3422_v58 = vrot.slane %v6188_v41, 5  ;;  %v885_v59 = vshrl.u32 %v623_v13, 16  ;;  %v5905_v62 = vcombine.low %v849_v61, %v859_v55 }
  0x7b   : > { %v878_v63 = vrot.slane %v877_v48, 4  ;;  %v3416_v0 = vsel %vm7532_vm6, %v3414_v50, %v3415_v46  ;;  %v3420_v1 = vsel %vm7532_vm6, %v6204_v47, %v3419_v52  ;;  %v3421_v51 = vrot.slane %v3419_v52, 4  ;;  %v633_v52 = vld [vmem:[%s7427_s29 + $0xa0] sm:$0xf] }
  0x7c   : > { %v873_v34 = vsel %vm7451_vm3, %v868_v56, %v872_v38  ;;  %v6223_v40 = vcombine.low %v3413_v49, %v3416_v0  ;;  %v887_v2 = vrot.slane %v885_v59, 4  ;;  %6723 = vmatprep.mubr.msk.bf16.mxu1 %vm351_vm0, %v5905_v62  ;;  %v888_v4 = vshll.u32 %v623_v13, 16  ;;  %v7306_v49 = vld [vmem:[%s7427_s29 + $0x24] sm:$0xff]   ;;  %v7307_v59 = vld [vmem:[%s7427_s29 + $0x30] sm:$0xff]  }
  0x7d   : > { %v883_v3 = vsel %vm7451_vm3, %v878_v63, %v882_v57  ;;  %v894_v6 = vshll.u32 %v624_v53, 16  ;;  %v898_v8 = vshrl.u32 %v624_v53, 16  ;;  %v3423_v11 = vsel %vm7532_vm6, %v3421_v51, %v3422_v58  ;;  %v634_v58 = vld [vmem:[%s7427_s29 + $0xa4] sm:$0x1] }
  0x7e   : > { %v5906_v10 = vcombine.low %v873_v34, %v883_v3  ;;  %6879 = vmatprep.mubr.msk.bf16.mxu0 %vm351_vm0, %v6223_v40  ;;  %v904_v12 = vshll.u32 %v625_v54, 16  ;;  %v909_v15 = vshrl.u32 %v626_v60, 16  ;;  %v6224_v18 = vcombine.low %v3420_v1, %v3423_v11  ;;  %v635_v34 = vld [vmem:[%s7427_s29 + $0xa8] sm:$0xf]  ;;  %v7854_v11 = vld [vmem:[%s8704_s1 + $0x80] sm:$0xff]  }
  0x7f   : > { %v890_v20 = vrot.slane %v888_v4, 5  ;;  %v896_v21 = vrot.slane %v894_v6, 5  ;;  %v900_v22 = vrot.slane %v898_v8, 4  ;;  %v912_v25 = vshll.u32 %v626_v60, 16  ;;  %v7315_v60 = vld [vmem:[%s8704_s1 + $0x78] sm:$0xff]  }
  0x80   : > { %6724 = vmatmul.mubr.msk.bf16.gmra.mrb[16].mxu1 %vm351_vm0, %v5906_v10  ;;  %v906_v19 = vrot.slane %v904_v12, 5  ;;  %v911_v24 = vrot.slane %v909_v15, 4  ;;  %v918_v26 = vshll.u32 %v627_v9, 16  ;;  %6880 = vmatmul.mubr.msk.bf16.gmra.mrb[28].mxu0 %vm351_vm0, %v6224_v18  ;;  %v922_v29 = vshrl.u32 %v627_v9, 16  ;;  %v636_v4 = vld [vmem:[%s7427_s29 + $0xac] sm:$0xf] }
  0x81   : > { %v891_v27 = vor.u32 %v890_v20, %v887_v2  ;;  %v901_v28 = vor.u32 %v900_v22, %v896_v21  ;;  %v928_v30 = vshll.u32 %v628_v14, 16  ;;  %v914_v32 = vrot.slane %v912_v25, 5  ;;  %6887 = vmatprep.mubr.msk.bf16.mxu0 %vm351_vm0, %v7304_v17  ;;  %v637_v22 = vld [vmem:[%s7427_s29 + $0xb0] sm:$0x1] }
  0x82   : > { %v920_v33 = vrot.slane %v918_v26, 5  ;;  %v933_v37 = vshrl.u32 %v629_v23, 16  ;;  %v936_v38 = vshll.u32 %v629_v23, 16  ;;  %v924_v42 = vrot.slane %v922_v29, 4  ;;  %v638_v26 = vld [vmem:[%s7427_s29 + $0xb4] sm:$0xf] }
  0x83   : > { %v892_v41 = vrot.slane %v891_v27, 4  ;;  %v902_v61 = vrot.slane %v901_v28, 4  ;;  %v930_v57 = vrot.slane %v928_v30, 5  ;;  %v915_v7 = vor.u32 %v914_v32, %v911_v24  ;;  %v7308_v30 = vld [vmem:[%s7427_s29 + $0x3c] sm:$0xff]   ;;  %v639_v32 = vld [vmem:[%s7427_s29 + $0xb8] sm:$0xf] }
  0x84   : > { %v935_v13 = vrot.slane %v933_v37, 4  ;;  %v938_v43 = vrot.slane %v936_v38, 5  ;;  %v942_v45 = vshll.u32 %v630_v31, 16  ;;  %v925_v48 = vor.u32 %v924_v42, %v920_v33 }
  0x85   : > { %v897_v46 = vsel %vm7451_vm3, %v892_v41, %v896_v21  ;;  %v907_v47 = vsel %vm7451_vm3, %v902_v61, %v906_v19  ;;  %v946_v50 = vshrl.u32 %v630_v31, 16  ;;  %v916_v54 = vrot.slane %v915_v7, 4  ;;  %v7309_v41 = vld [vmem:[%s7427_s29 + $0x48] sm:$0xff]  }
  0x86   : > { %v5907_v53 = vcombine.low %v897_v46, %v907_v47  ;;  %v939_v55 = vor.u32 %v938_v43, %v935_v13  ;;  %v944_v56 = vrot.slane %v942_v45, 5  ;;  %v926_v62 = vrot.slane %v925_v48, 4  ;;  %v1398_v13 = vld [vmem:[%s7427_s29] sm:$0xe]  ;;  %v1399_v48 = vld [vmem:[%s7427_s29 + $0x4] sm:$0xf] }
  0x87   : > { %v948_v63 = vrot.slane %v946_v50, 4  ;;  %v952_v0 = vshll.u32 %v631_v36, 16  ;;  %v957_v1 = vshrl.u32 %v632_v39, 16  ;;  %v921_v40 = vsel %vm7451_vm3, %v916_v54, %v920_v33 }
  0x88   : > { %6727 = vmatprep.mubr.msk.bf16.mxu1 %vm351_vm0, %v5907_v53  ;;  %v940_v51 = vrot.slane %v939_v55, 4  ;;  %v960_v2 = vshll.u32 %v632_v39, 16  ;;  %v966_v3 = vshll.u32 %v633_v52, 16  ;;  %v931_v6 = vsel %vm7451_vm3, %v926_v62, %v930_v57  ;;  %6888 = vmatmul.mubr.msk.bf16.vlgmr.msra.gmra.mrb[0].mxu0 %vm351_vm0, %v7306_v49  ;;  %v640_v39 = vld [vmem:[%s7427_s29 + $0xbc] sm:$0x1] }
  0x89   : > { %v949_v8 = vor.u32 %v948_v63, %v944_v56  ;;  %v954_v9 = vrot.slane %v952_v0, 5  ;;  %v959_v10 = vrot.slane %v957_v1, 4  ;;  %v5908_v12 = vcombine.low %v921_v40, %v931_v6  ;;  %6920 = vmatpush3.bf16.msra.mxu0 %v7640_v16  ;;  %6891 = vmatprep.mubr.msk.bf16.mxu0 %vm351_vm0, %v7307_v59  ;;  %v1400_v49 = vld [vmem:[%s7427_s29 + $0x8] sm:$0x1]  ;;  %v1402_v62 = vld [vmem:[%s7427_s29 + $0x10] sm:$0xf] }
  0x8a   : > { %v945_v14 = vsel %vm7451_vm3, %v940_v51, %v944_v56  ;;  %v962_v15 = vrot.slane %v960_v2, 5  ;;  %v968_v17 = vrot.slane %v966_v3, 5  ;;  %v970_v20 = vshrl.u32 %v633_v52, 16  ;;  %6921 = vmatprep.subr.bf16.mxu0 %v7315_v60  ;;  %v1403_v6 = vld [vmem:[%s7427_s29 + $0x14] sm:$0x1] }
  0x8b   : > { %v950_v18 = vrot.slane %v949_v8, 4  ;;  %v976_v21 = vshll.u32 %v634_v58, 16  ;;  %v981_v23 = vshrl.u32 %v635_v34, 16  ;;  %6728 = vmatmul.mubr.msk.bf16.gmra.mrb[20].mxu1 %vm351_vm0, %v5908_v12  ;;  %v984_v19 = vshll.u32 %v635_v34, 16  ;;  %v7310_v34 = vld [vmem:[%s7427_s29 + $0x54] sm:$0xff]   ;;  %v7311_v8 = vld [vmem:[%s7427_s29 + $0x60] sm:$0xff]  }
  0x8c   : > { %v963_v16 = vor.u32 %v962_v15, %v959_v10  ;;  %v990_v24 = vshll.u32 %v636_v4, 16  ;;  %v994_v25 = vshrl.u32 %v636_v4, 16  ;;  %v972_v28 = vrot.slane %v970_v20, 4 }
  0x8d   : > { %v955_v27 = vsel %vm7451_vm3, %v950_v18, %v954_v9  ;;  %v978_v29 = vrot.slane %v976_v21, 5  ;;  %v983_v31 = vrot.slane %v981_v23, 4  ;;  %v986_v37 = vrot.slane %v984_v19, 5  ;;  %6922 = vmatpush3.bf16.msra.mxu0 %v7315_v60  ;;  %v7879_v60 = vld [vmem:[%s7427_s29 + $0xc] sm:$0xe] }
  0x8e   : > { %v5909_v33 = vcombine.low %v945_v14, %v955_v27  ;;  %v964_v36 = vrot.slane %v963_v16, 4  ;;  %v992_v38 = vrot.slane %v990_v24, 5  ;;  %v973_v61 = vor.u32 %v972_v28, %v968_v17  ;;  %6955 = vmatprep.subr.bf16.mxu0 %v7854_v11  ;;  %v1405_v14 = vld [vmem:[%s7427_s29 + $0x1c] sm:$0xf]  ;;  %v1404_v21 = vld [vmem:[%s7427_s29 + $0x18] sm:$0xe] }
  0x8f   : > { %v996_v42 = vrot.slane %v994_v25, 4  ;;  %v1000_v57 = vshll.u32 %v637_v22, 16  ;;  %v1005_v7 = vshrl.u32 %v638_v26, 16  ;;  %v987_v45 = vor.u32 %v986_v37, %v983_v31  ;;  %v1406_v19 = vld [vmem:[%s7427_s29 + $0x20] sm:$0x1] }
  0x90   : > { %6731 = vmatprep.mubr.msk.bf16.mxu1 %vm351_vm0, %v5909_v33  ;;  %v969_v43 = vsel %vm7451_vm3, %v964_v36, %v968_v17  ;;  %v1008_v46 = vshll.u32 %v638_v26, 16  ;;  %v1014_v47 = vshll.u32 %v639_v32, 16  ;;  %v974_v50 = vrot.slane %v973_v61, 4  ;;  %6892 = vmatmul.mubr.msk.bf16.gmra.mrb[4].mxu0 %vm351_vm0, %v7308_v30  ;;  %v1407_v28 = vld [vmem:[%s7427_s29 + $0x24] sm:$0xe] }
  0x91   : > { %v997_v52 = vor.u32 %v996_v42, %v992_v38  ;;  %v1002_v53 = vrot.slane %v1000_v57, 5  ;;  %v1007_v54 = vrot.slane %v1005_v7, 4  ;;  %v988_v55 = vrot.slane %v987_v45, 4  ;;  %6895 = vmatprep.mubr.msk.bf16.mxu0 %vm351_vm0, %v7309_v41  ;;  %v1409_v30 = vld [vmem:[%s7427_s29 + $0x2c] sm:$0x1] }
  0x92   : > { %v1010_v56 = vrot.slane %v1008_v46, 5  ;;  %v1016_v58 = vrot.slane %v1014_v47, 5  ;;  %v1018_v59 = vshrl.u32 %v639_v32, 16  ;;  %v979_v63 = vsel %vm7451_vm3, %v974_v50, %v978_v29  ;;  %v1408_v29 = vld [vmem:[%s7427_s29 + $0x28] sm:$0xf]  ;;  %v7312_v7 = vld [vmem:[%s7427_s29 + $0x6c] sm:$0xff]  }
  0x93   : > { %v998_v0 = vrot.slane %v997_v52, 4  ;;  %v1024_v1 = vshll.u32 %v640_v39, 16  ;;  %v5931_v40 = vrot.slane %v1398_v13, 9  ;;  %v5910_v51 = vcombine.low %v969_v43, %v979_v63  ;;  %v1410_v36 = vld [vmem:[%s7427_s29 + $0x30] sm:$0xe]  ;;  %v7314_v47 = vld [vmem:[%s7427_s29 + $0x78] sm:$0xff]  }
  0x94   : > { %v993_v2 = vsel %vm7451_vm3, %v988_v55, %v992_v38  ;;  %v1011_v3 = vor.u32 %v1010_v56, %v1007_v54  ;;  %v1020_v4 = vrot.slane %v1018_v59, 4  ;;  %v1499_v10 = vrot.slane %v1399_v48, 5  ;;  %v1411_v37 = vld [vmem:[%s7427_s29 + $0x34] sm:$0xf]  ;;  %v1412_v39 = vld [vmem:[%s7427_s29 + $0x38] sm:$0x1] }
  0x95   : > { %v1003_v9 = vsel %vm7451_vm3, %v998_v0, %v1002_v53  ;;  %v1502_v12 = vrot.slane %v1400_v49, 5  ;;  %6732 = vmatmul.mubr.msk.bf16.gmra.mrb[24].mxu1 %vm351_vm0, %v5910_v51  ;;  %v1026_v20 = vrot.slane %v1024_v1, 5  ;;  %v5932_v23 = vrot.slane %v7879_v60, 9  ;;  %v7914_v41 = vld [vmem:[%s7427_s29 + $0x3c] sm:$0xe] }
  0x96   : > { %v5911_v15 = vcombine.low %v993_v2, %v1003_v9  ;;  %v1012_v17 = vrot.slane %v1011_v3, 4  ;;  %v1021_v18 = vor.u32 %v1020_v4, %v1016_v58  ;;  %v1501_v22 = vrot.slane %v1499_v10, 4  ;;  %v7917_v61 = vld [vmem:[%s7427_s29 + $0x40] sm:$0xf]  ;;  %v1415_v48 = vld [vmem:[%s7427_s29 + $0x44] sm:$0x1] }
  0x97   : > { %v1506_v16 = vrot.slane %v1402_v62, 5  ;;  %v1500_v26 = vsel %vm7532_vm6, %v5931_v40, %v1499_v10  ;;  %v1513_v27 = vrot.slane %v1405_v14, 5  ;;  %v1509_v33 = vrot.slane %v1403_v6, 5  ;;  %v1417_v54 = vld [vmem:[%s7427_s29 + $0x4c] sm:$0xf] }
  0x98   : > { %6735 = vmatprep.mubr.msk.bf16.mxu1 %vm351_vm0, %v5911_v15  ;;  %v1017_v24 = vsel %vm7451_vm3, %v1012_v17, %v1016_v58  ;;  %v1022_v25 = vrot.slane %v1021_v18, 4  ;;  %6896 = vmatmul.mubr.msk.bf16.gmra.mrb[8].mxu0 %vm351_vm0, %v7310_v34  ;;  %v1503_v31 = vsel %vm7532_vm6, %v1501_v22, %v1502_v12  ;;  %v5933_v13 = vrot.slane %v1404_v21, 9  ;;  %v1416_v60 = vld [vmem:[%s7427_s29 + $0x48] sm:$0xe]  ;;  %v1418_v62 = vld [vmem:[%s7427_s29 + $0x50] sm:$0x1] }
  0x99   : > { %v1508_v32 = vrot.slane %v1506_v16, 4  ;;  %6899 = vmatprep.mubr.msk.bf16.mxu0 %vm351_vm0, %v7311_v8  ;;  %v5951_v57 = vcombine.low %v1500_v26, %v1503_v31  ;;  %v1520_v43 = vrot.slane %v1408_v29, 5  ;;  %v1515_v45 = vrot.slane %v1513_v27, 4  ;;  %v1419_v1 = vld [vmem:[%s7427_s29 + $0x54] sm:$0xe]  ;;  %v7323_v18 = vld [vmem:[%s8704_s1 + $0x38] sm:$0xff]  }
  0x9a   : > { %v1027_v38 = vsel %vm7451_vm3, %v1022_v25, %v1026_v20  ;;  %v1516_v46 = vrot.slane %v1406_v19, 5  ;;  %v5934_v49 = vrot.slane %v1407_v28, 9  ;;  %v1523_v50 = vrot.slane %v1409_v30, 5  ;;  %v1420_v34 = vld [vmem:[%s7427_s29 + $0x58] sm:$0xf]  ;;  %v7316_v21 = vld [vmem:[%s7427_s29 + $0x84] sm:$0xff]  }
  0x9b   : > { %v5912_v42 = vcombine.low %v1017_v24, %v1027_v38  ;;  %v5935_v52 = vrot.slane %v1410_v36, 9  ;;  %v1527_v53 = vrot.slane %v1411_v37, 5  ;;  %v1507_v55 = vsel %vm7532_vm6, %v5932_v23, %v1506_v16  ;;  %v1421_v8 = vld [vmem:[%s7427_s29 + $0x5c] sm:$0x1]  ;;  %v1422_v17 = vld [vmem:[%s7427_s29 + $0x60] sm:$0xe] }
  0x9c   : > { %v1510_v56 = vsel %vm7532_vm6, %v1508_v32, %v1509_v33  ;;  %v1522_v58 = vrot.slane %v1520_v43, 4  ;;  %v1534_v59 = vrot.slane %v7917_v61, 5  ;;  %v1530_v63 = vrot.slane %v1412_v39, 5  ;;  %v1423_v19 = vld [vmem:[%s7427_s29 + $0x64] sm:$0xf]  ;;  %v7317_v25 = vld [vmem:[%s7427_s29 + $0x90] sm:$0xff]  }
  0x9d   : > { %6736 = vmatmul.mubr.msk.bf16.gmra.mrb[28].mxu1 %vm351_vm0, %v5912_v42  ;;  %v5936_v0 = vrot.slane %v7914_v41, 9  ;;  %v1514_v40 = vsel %vm7532_vm6, %v5933_v13, %v1513_v27  ;;  %v1517_v51 = vsel %vm7532_vm6, %v1515_v45, %v1516_v46  ;;  %v1537_v2 = vrot.slane %v1415_v48, 5  ;;  %v1424_v24 = vld [vmem:[%s7427_s29 + $0x68] sm:$0x1]  ;;  %v1425_v30 = vld [vmem:[%s7427_s29 + $0x6c] sm:$0xe] }
  0x9e   : > { %6743 = vmatprep.mubr.msk.bf16.mxu1 %vm351_vm0, %v5951_v57  ;;  %v1541_v3 = vrot.slane %v1417_v54, 5  ;;  %v5952_v4 = vcombine.low %v1507_v55, %v1510_v56  ;;  %v1529_v6 = vrot.slane %v1527_v53, 4  ;;  %v1548_v9 = vrot.slane %v1420_v34, 5  ;;  %v1426_v37 = vld [vmem:[%s7427_s29 + $0x70] sm:$0xf] }
  0x9f   : > { %v7943_v10 = vsel %vm7532_vm6, %v5934_v49, %v1520_v43  ;;  %v7947_v12 = vsel %vm7532_vm6, %v1522_v58, %v1523_v50  ;;  %v1536_v14 = vrot.slane %v1534_v59, 4  ;;  %v5937_v15 = vrot.slane %v1416_v60, 9  ;;  %v1427_v38 = vld [vmem:[%s7427_s29 + $0x74] sm:$0x1]  ;;  %v1428_v48 = vld [vmem:[%s7427_s29 + $0x78] sm:$0xe] }
  0xa0   : > { %6900 = vmatmul.mubr.msk.bf16.gmra.mrb[12].mxu0 %vm351_vm0, %v7312_v7  ;;  %v5953_v20 = vcombine.low %v1514_v40, %v1517_v51  ;;  %v7957_v22 = vsel %vm7532_vm6, %v5935_v52, %v1527_v53  ;;  %v1543_v23 = vrot.slane %v1541_v3, 4  ;;  %v1544_v16 = vrot.slane %v1418_v62, 5  ;;  %v1429_v49 = vld [vmem:[%s7427_s29 + $0x7c] sm:$0xf]  ;;  %v1430_v53 = vld [vmem:[%s7427_s29 + $0x80] sm:$0x1] }
  0xa1   : > { %6903 = vmatprep.mubr.msk.bf16.mxu0 %vm351_vm0, %v7314_v47  ;;  %v5938_v26 = vrot.slane %v1419_v1, 9  ;;  %v1550_v27 = vrot.slane %v1548_v9, 4  ;;  %v1551_v28 = vrot.slane %v1421_v8, 5  ;;  %v1555_v29 = vrot.slane %v1423_v19, 5  ;;  %v1431_v56 = vld [vmem:[%s7427_s29 + $0x84] sm:$0xe] }
  0xa2   : > { %v5954_v31 = vcombine.low %v7943_v10, %v7947_v12  ;;  %v7967_v32 = vsel %vm7532_vm6, %v1529_v6, %v1530_v63  ;;  %v5939_v33 = vrot.slane %v1422_v17, 9  ;;  %v1558_v36 = vrot.slane %v1424_v24, 5  ;;  %v1432_v62 = vld [vmem:[%s7427_s29 + $0x88] sm:$0xf]  ;;  %v1433_v63 = vld [vmem:[%s7427_s29 + $0x8c] sm:$0x1] }
  0xa3   : > { %v7974_v39 = vsel %vm7532_vm6, %v5936_v0, %v1534_v59  ;;  %v7978_v41 = vsel %vm7532_vm6, %v1536_v14, %v1537_v2  ;;  %v1557_v61 = vrot.slane %v1555_v29, 4  ;;  %v1562_v42 = vrot.slane %v1426_v37, 5  ;;  %v7318_v2 = vld [vmem:[%s7427_s29 + $0x9c] sm:$0xff]  }
  0xa4   : > { %v7984_v57 = vsel %vm7532_vm6, %v5937_v15, %v1541_v3  ;;  %v7988_v7 = vsel %vm7532_vm6, %v1543_v23, %v1544_v16  ;;  %v5940_v13 = vrot.slane %v1425_v30, 9  ;;  %v1565_v43 = vrot.slane %v1427_v38, 5  ;;  %v6314_v10 = vld [vmem:[%s7427_s29 + $0x1c] sm:$0xf]  ;;  %v8042_v12 = vld [vmem:[%s8704_s1 + $0x40] sm:$0xff]  }
  0xa5   : > { %6744 = vmatmul.mubr.msk.bf16.vlgmr.msra.gmra.mrb[0].mxu1 %vm351_vm0, %v5952_v4  ;;  %v5955_v45 = vcombine.low %v7957_v22, %v7967_v32  ;;  %v7994_v46 = vsel %vm7532_vm6, %v5938_v26, %v1548_v9  ;;  %v1564_v47 = vrot.slane %v1562_v42, 4  ;;  %v8005_v50 = vsel %vm7532_vm6, %v5939_v33, %v1555_v29  ;;  %v6313_v9 = vld [vmem:[%s7427_s29 + $0x18] sm:$0xf]  ;;  %v6317_v29 = vld [vmem:[%s7427_s29 + $0x28] sm:$0xf] }
  0xa6   : > { %6747 = vmatprep.mubr.msk.bf16.mxu1 %vm351_vm0, %v5953_v20  ;;  %6776 = vmatpush3.bf16.msra.mxu1 %v7699_v5  ;;  %v7998_v5 = vsel %vm7532_vm6, %v1550_v27, %v1551_v28  ;;  %v8009_v52 = vsel %vm7532_vm6, %v1557_v61, %v1558_v36  ;;  %v5941_v54 = vrot.slane %v1428_v48, 9  ;;  %v1569_v55 = vrot.slane %v1429_v49, 5  ;;  %v6316_v28 = vld [vmem:[%s7427_s29 + $0x24] sm:$0xf]  ;;  %v6318_v36 = vld [vmem:[%s7427_s29 + $0x2c] sm:$0x1] }
  0xa7   : > { %6777 = vmatprep.subr.bf16.mxu1 %v7323_v18  ;;  %v5956_v58 = vcombine.low %v7974_v39, %v7978_v41  ;;  %v5957_v59 = vcombine.low %v7984_v57, %v7988_v7  ;;  %v1572_v60 = vrot.slane %v1430_v53, 5  ;;  %v5942_v0 = vrot.slane %v1431_v56, 9  ;;  %v1435_v49 = vld [vmem:[%s7427_s29 + $0x94] sm:$0xf]  ;;  %v1436_v53 = vld [vmem:[%s7427_s29 + $0x98] sm:$0x1] }
  0xa8   : > { %6904 = vmatmul.mubr.msk.bf16.gmra.mrb[16].mxu0 %vm351_vm0, %v7316_v21  ;;  %v8022_v1 = vsel %vm7532_vm6, %v5940_v13, %v1562_v42  ;;  %v8026_v34 = vsel %vm7532_vm6, %v1564_v47, %v1565_v43  ;;  %v1571_v40 = vrot.slane %v1569_v55, 4  ;;  %v1576_v51 = vrot.slane %v1432_v62, 5  ;;  %v7319_v21 = vld [vmem:[%s7427_s29 + $0xa8] sm:$0xff]   ;;  %v1434_v13 = vld [vmem:[%s7427_s29 + $0x90] sm:$0xe] }
  0xa9   : > { %6907 = vmatprep.mubr.msk.bf16.mxu0 %vm351_vm0, %v7317_v25  ;;  %v5958_v3 = vcombine.low %v7994_v46, %v7998_v5  ;;  %v5959_v4 = vcombine.low %v8005_v50, %v8009_v52  ;;  %v8035_v6 = vsel %vm7532_vm6, %v5941_v54, %v1569_v55  ;;  %v1579_v8 = vrot.slane %v1433_v63, 5  ;;  %v1437_v62 = vld [vmem:[%s7427_s29 + $0x9c] sm:$0xe] }
  0xaa   : > { %6778 = vmatpush3.bf16.msra.mxu1 %v7323_v18  ;;  %v8047_v14 = vsel %vm7532_vm6, %v1571_v40, %v1572_v60  ;;  %v8051_v15 = vsel %vm7532_vm6, %v5942_v0, %v1576_v51  ;;  %v1578_v17 = vrot.slane %v1576_v51, 4  ;;  %v6315_v18 = vld [vmem:[%s7427_s29 + $0x20] sm:$0x1]  ;;  %v4278_v20 = vshrl.u32 %v6313_v9, 16 }
  0xab   : > { %6991 = vmatprep.subr.bf16.mxu1 %v8042_v12  ;;  %v5960_v22 = vcombine.low %v8022_v1, %v8026_v34  ;;  %v4281_v23 = vshll.u32 %v6313_v9, 16  ;;  %v4287_v16 = vshll.u32 %v6314_v10, 16  ;;  %v4291_v19 = vshrl.u32 %v6314_v10, 16 }
  0xac   : > { %v5961_v24 = vcombine.low %v8035_v6, %v8047_v14  ;;  %v8063_v25 = vsel %vm7532_vm6, %v1578_v17, %v1579_v8  ;;  %v4280_v26 = vrot.slane %v4278_v20, 4  ;;  %v4297_v27 = vshll.u32 %v6315_v18, 16  ;;  %v7320_v8 = vld [vmem:[%s7427_s29 + $0xb4] sm:$0xff]   ;;  %v1439_v18 = vld [vmem:[%s7427_s29 + $0xa4] sm:$0x1] }
  0xad   : > { %6748 = vmatmul.mubr.msk.bf16.gmra.mrb[4].mxu1 %vm351_vm0, %v5954_v31  ;;  %v5962_v30 = vcombine.low %v8051_v15, %v8063_v25  ;;  %v4283_v31 = vrot.slane %v4281_v23, 5  ;;  %v4289_v32 = vrot.slane %v4287_v16, 5  ;;  %v4293_v33 = vrot.slane %v4291_v19, 4 }
  0xae   : > { %6751 = vmatprep.mubr.msk.bf16.mxu1 %vm351_vm0, %v5955_v45  ;;  %v4299_v37 = vrot.slane %v4297_v27, 5  ;;  %v4302_v38 = vshrl.u32 %v6316_v28, 16  ;;  %v4305_v61 = vshll.u32 %v6316_v28, 16  ;;  %v4311_v42 = vshll.u32 %v6317_v29, 16  ;;  %v6319_v27 = vld [vmem:[%s7427_s29 + $0x30] sm:$0xf] }
  0xaf   : > { %v4284_v43 = vor.u32 %v4283_v31, %v4280_v26  ;;  %v4294_v45 = vor.u32 %v4293_v33, %v4289_v32  ;;  %v4315_v47 = vshrl.u32 %v6317_v29, 16  ;;  %v4321_v48 = vshll.u32 %v6318_v36, 16  ;;  %v6320_v29 = vld [vmem:[%s7427_s29 + $0x34] sm:$0xf] }
  0xb0   : > { %6908 = vmatmul.mubr.msk.bf16.gmra.mrb[20].mxu0 %vm351_vm0, %v7318_v2  ;;  %v4304_v54 = vrot.slane %v4302_v38, 4  ;;  %v4307_v55 = vrot.slane %v4305_v61, 5  ;;  %v4313_v56 = vrot.slane %v4311_v42, 5  ;;  %v5943_v60 = vrot.slane %v1434_v13, 9  ;;  %v1438_v2 = vld [vmem:[%s7427_s29 + $0xa0] sm:$0xf] }
  0xb1   : > { %6911 = vmatprep.mubr.msk.bf16.mxu0 %vm351_vm0, %v7319_v21  ;;  %v4285_v63 = vrot.slane %v4284_v43, 4  ;;  %v4295_v0 = vrot.slane %v4294_v45, 4  ;;  %v4317_v40 = vrot.slane %v4315_v47, 4  ;;  %v4323_v51 = vrot.slane %v4321_v48, 5  ;;  %v7321_v21 = vld [vmem:[%s7427_s29 + $0xc0] sm:$0xff]  }
  0xb2   : > { %v4308_v9 = vor.u32 %v4307_v55, %v4304_v54  ;;  %v1583_v10 = vrot.slane %v1435_v49, 5  ;;  %v1586_v17 = vrot.slane %v1436_v53, 5  ;;  %v5944_v20 = vrot.slane %v1437_v62, 9  ;;  %v6322_v61 = vld [vmem:[%s7427_s29 + $0x3c] sm:$0xf] }
  0xb3   : > { %v4290_v23 = vsel %vm7451_vm3, %v4285_v63, %v4289_v32  ;;  %v4300_v16 = vsel %vm7451_vm3, %v4295_v0, %v4299_v37  ;;  %v4318_v19 = vor.u32 %v4317_v40, %v4313_v56  ;;  %v1590_v26 = vrot.slane %v1438_v2, 5  ;;  %v6323_v47 = vld [vmem:[%s7427_s29 + $0x40] sm:$0xf]  ;;  %v6324_v55 = vld [vmem:[%s7427_s29 + $0x44] sm:$0x1] }
  0xb4   : > { %v6365_v39 = vcombine.low %v4290_v23, %v4300_v16  ;;  %v4309_v41 = vrot.slane %v4308_v9, 4  ;;  %v1585_v28 = vrot.slane %v1583_v10, 4  ;;  %v1593_v36 = vrot.slane %v1439_v18, 5  ;;  %v1441_v40 = vld [vmem:[%s7427_s29 + $0xac] sm:$0xf] }
  0xb5   : > { %6752 = vmatmul.mubr.msk.bf16.gmra.mrb[8].mxu1 %vm351_vm0, %v5956_v58  ;;  %v8095_v58 = vsel %vm7532_vm6, %v5943_v60, %v1583_v10  ;;  %v4319_v31 = vrot.slane %v4318_v19, 4  ;;  %v8100_v32 = vsel %vm7532_vm6, %v5944_v20, %v1590_v26  ;;  %v1592_v33 = vrot.slane %v1590_v26, 4  ;;  %v1443_v16 = vld [vmem:[%s7427_s29 + $0xb4] sm:$0xe] }
  0xb6   : > { %6755 = vmatprep.mubr.msk.bf16.mxu1 %vm351_vm0, %v5957_v59  ;;  %v4314_v57 = vsel %vm7451_vm3, %v4309_v41, %v4313_v56  ;;  %v8107_v7 = vsel %vm7532_vm6, %v1585_v28, %v1586_v17  ;;  %v6321_v59 = vld [vmem:[%s7427_s29 + $0x38] sm:$0x1]  ;;  %v4326_v37 = vshrl.u32 %v6319_v27, 16  ;;  %v4329_v38 = vshll.u32 %v6319_v27, 16  ;;  %v1440_v56 = vld [vmem:[%s7427_s29 + $0xa8] sm:$0xe] }
  0xb7   : > { %v4324_v42 = vsel %vm7451_vm3, %v4319_v31, %v4323_v51  ;;  %v5963_v13 = vcombine.low %v8095_v58, %v8107_v7  ;;  %v8118_v43 = vsel %vm7532_vm6, %v1592_v33, %v1593_v36  ;;  %v4335_v45 = vshll.u32 %v6320_v29, 16  ;;  %v7322_v51 = vld [vmem:[%s7427_s29 + $0xcc] sm:$0xff]   ;;  %v1444_v28 = vld [vmem:[%s7427_s29 + $0xb8] sm:$0xf]  ;;  %v1445_v31 = vld [vmem:[%s7427_s29 + $0xbc] sm:$0x1] }
  0xb8   : > { %6912 = vmatmul.mubr.msk.bf16.gmra.mrb[24].mxu0 %vm351_vm0, %v7320_v8  ;;  %v8121_v48 = vcombine.low %v4314_v57, %v4324_v42  ;;  %v5964_v49 = vcombine.low %v8100_v32, %v8118_v43  ;;  %v4328_v53 = vrot.slane %v4326_v37, 4  ;;  %v4331_v54 = vrot.slane %v4329_v38, 5  ;;  %v1442_v17 = vld [vmem:[%s7427_s29 + $0xb0] sm:$0x1]  ;;  %v6325_v36 = vld [vmem:[%s7427_s29 + $0x48] sm:$0xf] }
  0xb9   : > { %6915 = vmatprep.mubr.msk.bf16.mxu0 %vm351_vm0, %v7321_v21  ;;  %v4337_v60 = vrot.slane %v4335_v45, 5  ;;  %v4339_v62 = vshrl.u32 %v6320_v29, 16  ;;  %v4345_v63 = vshll.u32 %v6321_v59, 16  ;;  %v4350_v0 = vshrl.u32 %v6322_v61, 16  ;;  %v6327_v42 = vld [vmem:[%s7427_s29 + $0x50] sm:$0x1] }
  0xba   : > { %v4332_v2 = vor.u32 %v4331_v54, %v4328_v53  ;;  %v4353_v8 = vshll.u32 %v6322_v61, 16  ;;  %v4359_v9 = vshll.u32 %v6323_v47, 16  ;;  %v4363_v10 = vshrl.u32 %v6323_v47, 16  ;;  %v6326_v61 = vld [vmem:[%s7427_s29 + $0x4c] sm:$0xf] }
  0xbb   : > { %v4341_v18 = vrot.slane %v4339_v62, 4  ;;  %v4347_v20 = vrot.slane %v4345_v63, 5  ;;  %v4352_v21 = vrot.slane %v4350_v0, 4  ;;  %v4369_v23 = vshll.u32 %v6324_v55, 16  ;;  %v6342_v43 = vld [vmem:[%s7427_s29 + $0x8c] sm:$0x1] }
  0xbc   : > { %v4333_v19 = vrot.slane %v4332_v2, 4  ;;  %v4355_v26 = vrot.slane %v4353_v8, 5  ;;  %v4361_v27 = vrot.slane %v4359_v9, 5  ;;  %v4365_v41 = vrot.slane %v4363_v10, 4  ;;  %v6329_v2 = vld [vmem:[%s7427_s29 + $0x58] sm:$0xf] }
  0xbd   : > { %6756 = vmatmul.mubr.msk.bf16.gmra.mrb[12].mxu1 %vm351_vm0, %v5958_v3  ;;  %v4342_v46 = vor.u32 %v4341_v18, %v4337_v60  ;;  %v4371_v5 = vrot.slane %v4369_v23, 5  ;;  %v5945_v3 = vrot.slane %v1440_v56, 9  ;;  %v1597_v29 = vrot.slane %v1441_v40, 5  ;;  %v6330_v18 = vld [vmem:[%s7427_s29 + $0x5c] sm:$0x1] }
  0xbe   : > { %6759 = vmatprep.mubr.msk.bf16.mxu1 %vm351_vm0, %v5959_v4  ;;  %v4338_v50 = vsel %vm7451_vm3, %v4333_v19, %v4337_v60  ;;  %v4356_v52 = vor.u32 %v4355_v26, %v4352_v21  ;;  %v4366_v4 = vor.u32 %v4365_v41, %v4361_v27  ;;  %v1600_v33 = vrot.slane %v1442_v17, 5  ;;  %v6331_v23 = vld [vmem:[%s7427_s29 + $0x60] sm:$0xf] }
  0xbf   : > { %v4343_v57 = vrot.slane %v4342_v46, 4  ;;  %v8148_v59 = vsel %vm7532_vm6, %v5945_v3, %v1597_v29  ;;  %v1599_v37 = vrot.slane %v1597_v29, 4  ;;  %v5946_v38 = vrot.slane %v1443_v16, 9  ;;  %v6332_v16 = vld [vmem:[%s7427_s29 + $0x64] sm:$0xf] }
  0xc0   : > { %6916 = vmatmul.mubr.msk.bf16.gmra.mrb[28].mxu0 %vm351_vm0, %v7322_v51  ;;  %v4357_v45 = vrot.slane %v4356_v52, 4  ;;  %v4367_v47 = vrot.slane %v4366_v4, 4  ;;  %v1604_v53 = vrot.slane %v1444_v28, 5  ;;  %v1607_v54 = vrot.slane %v1445_v31, 5  ;;  %v6328_v51 = vld [vmem:[%s7427_s29 + $0x54] sm:$0xf] }
  0xc1   : > { %6923 = vmatprep.mubr.msk.bf16.mxu0 %vm351_vm0, %v6365_v39  ;;  %v4348_v55 = vsel %vm7451_vm3, %v4343_v57, %v4347_v20  ;;  %v8156_v39 = vsel %vm7532_vm6, %v1599_v37, %v1600_v33  ;;  %v4374_v56 = vshrl.u32 %v6325_v36, 16  ;;  %v4377_v60 = vshll.u32 %v6325_v36, 16  ;;  %v7329_v20 = vld [vmem:[%s8704_s1 + $0x88] sm:$0xff]  }
  0xc2   : > { %v6367_v62 = vcombine.low %v4338_v50, %v4348_v55  ;;  %v4362_v63 = vsel %vm7451_vm3, %v4357_v45, %v4361_v27  ;;  %v4372_v0 = vsel %vm7451_vm3, %v4367_v47, %v4371_v5  ;;  %v5965_v40 = vcombine.low %v8148_v59, %v8156_v39  ;;  %v6333_v33 = vld [vmem:[%s7427_s29 + $0x68] sm:$0x1]  ;;  %v6334_v45 = vld [vmem:[%s7427_s29 + $0x6c] sm:$0xf] }
  0xc3   : > { %v6368_v8 = vcombine.low %v4362_v63, %v4372_v0  ;;  %v8172_v9 = vsel %vm7532_vm6, %v5946_v38, %v1604_v53  ;;  %v1606_v10 = vrot.slane %v1604_v53, 4  ;;  %v4376_v17 = vrot.slane %v4374_v56, 4 }
  0xc4   : > { %v4379_v1 = vrot.slane %v4377_v60, 5  ;;  %v4383_v34 = vshll.u32 %v6326_v61, 16  ;;  %v4393_v21 = vshll.u32 %v6327_v42, 16  ;;  %v4398_v26 = vshrl.u32 %v6328_v51, 16 }
  0xc5   : > { %6760 = vmatmul.mubr.msk.bf16.gmra.mrb[16].mxu1 %vm351_vm0, %v5960_v22  ;;  %v4387_v22 = vshrl.u32 %v6326_v61, 16  ;;  %v8186_v19 = vsel %vm7532_vm6, %v1606_v10, %v1607_v54  ;;  %v4401_v27 = vshll.u32 %v6328_v51, 16  ;;  %v4407_v41 = vshll.u32 %v6329_v2, 16  ;;  %v6336_v51 = vld [vmem:[%s7427_s29 + $0x74] sm:$0x1] }
  0xc6   : > { %6763 = vmatprep.mubr.msk.bf16.mxu1 %vm351_vm0, %v5961_v24  ;;  %v5966_v6 = vcombine.low %v8172_v9, %v8186_v19  ;;  %v4380_v14 = vor.u32 %v4379_v1, %v4376_v17  ;;  %v4385_v24 = vrot.slane %v4383_v34, 5  ;;  %v4395_v46 = vrot.slane %v4393_v21, 5  ;;  %v6337_v10 = vld [vmem:[%s7427_s29 + $0x78] sm:$0xf] }
  0xc7   : > { %v4389_v28 = vrot.slane %v4387_v22, 4  ;;  %v4400_v5 = vrot.slane %v4398_v26, 4  ;;  %v4403_v3 = vrot.slane %v4401_v27, 5  ;;  %v4409_v29 = vrot.slane %v4407_v41, 5 }
  0xc8   : > { %6924 = vmatmul.mubr.msk.bf16.vlgmr.msra.gmra.mrb[0].mxu0 %vm351_vm0, %v8121_v48  ;;  %v4381_v31 = vrot.slane %v4380_v14, 4  ;;  %v4411_v52 = vshrl.u32 %v6329_v2, 16  ;;  %v4417_v48 = vshll.u32 %v6330_v18, 16  ;;  %v4422_v36 = vshrl.u32 %v6331_v23, 16  ;;  %v6338_v18 = vld [vmem:[%s7427_s29 + $0x7c] sm:$0xf] }
  0xc9   : > { %6956 = vmatpush3.bf16.msra.mxu0 %v7854_v11  ;;  %6927 = vmatprep.mubr.msk.bf16.mxu0 %vm351_vm0, %v6367_v62  ;;  %v4390_v50 = vor.u32 %v4389_v28, %v4385_v24  ;;  %v4404_v4 = vor.u32 %v4403_v3, %v4400_v5  ;;  %v4425_v57 = vshll.u32 %v6331_v23, 16  ;;  %v4431_v37 = vshll.u32 %v6332_v16, 16  ;;  %v6335_v62 = vld [vmem:[%s7427_s29 + $0x70] sm:$0xf] }
  0xca   : > { %6957 = vmatprep.subr.bf16.mxu0 %v7329_v20  ;;  %v4386_v11 = vsel %vm7451_vm3, %v4381_v31, %v4385_v24  ;;  %v4413_v61 = vrot.slane %v4411_v52, 4  ;;  %v4419_v42 = vrot.slane %v4417_v48, 5  ;;  %v4424_v53 = vrot.slane %v4422_v36, 4  ;;  %v6339_v24 = vld [vmem:[%s7427_s29 + $0x80] sm:$0x1] }
  0xcb   : > { %v4391_v38 = vrot.slane %v4390_v50, 4  ;;  %v4405_v47 = vrot.slane %v4404_v4, 4  ;;  %v4427_v54 = vrot.slane %v4425_v57, 5  ;;  %v4433_v55 = vrot.slane %v4431_v37, 5  ;;  %v6341_v4 = vld [vmem:[%s7427_s29 + $0x88] sm:$0xf] }
  0xcc   : > { %v4414_v60 = vor.u32 %v4413_v61, %v4409_v29  ;;  %v4435_v15 = vshrl.u32 %v6332_v16, 16  ;;  %v4441_v25 = vshll.u32 %v6333_v33, 16  ;;  %v4446_v2 = vshrl.u32 %v6334_v45, 16  ;;  %v6343_v61 = vld [vmem:[%s7427_s29 + $0x90] sm:$0xf] }
  0xcd   : > { %6764 = vmatmul.mubr.msk.bf16.gmra.mrb[20].mxu1 %vm351_vm0, %v5962_v30  ;;  %6958 = vmatpush3.bf16.msra.mxu0 %v7329_v20  ;;  %v4396_v56 = vsel %vm7451_vm3, %v4391_v38, %v4395_v46  ;;  %v4410_v63 = vsel %vm7451_vm3, %v4405_v47, %v4409_v29  ;;  %v4428_v0 = vor.u32 %v4427_v54, %v4424_v53  ;;  %v4449_v17 = vshll.u32 %v6334_v45, 16  ;;  %v6340_v29 = vld [vmem:[%s7427_s29 + $0x84] sm:$0xf] }
  0xce   : > { %6767 = vmatprep.mubr.msk.bf16.mxu1 %vm351_vm0, %v5963_v13  ;;  %v6369_v30 = vcombine.low %v4386_v11, %v4396_v56  ;;  %v4415_v58 = vrot.slane %v4414_v60, 4  ;;  %v4437_v7 = vrot.slane %v4435_v15, 4  ;;  %v4443_v13 = vrot.slane %v4441_v25, 5 }
  0xcf   : > { %v4429_v20 = vrot.slane %v4428_v0, 4  ;;  %v4448_v1 = vrot.slane %v4446_v2, 4  ;;  %v4455_v34 = vshll.u32 %v6335_v62, 16  ;;  %v4459_v22 = vshrl.u32 %v6335_v62, 16  ;;  %v6344_v62 = vld [vmem:[%s7427_s29 + $0x94] sm:$0xf] }
  0xd0   : > { %6928 = vmatmul.mubr.msk.bf16.gmra.mrb[4].mxu0 %vm351_vm0, %v6368_v8  ;;  %v4420_v21 = vsel %vm7451_vm3, %v4415_v58, %v4419_v42  ;;  %v4438_v23 = vor.u32 %v4437_v7, %v4433_v55  ;;  %v4451_v16 = vrot.slane %v4449_v17, 5  ;;  %v4465_v26 = vshll.u32 %v6336_v51, 16  ;;  %v7325_v42 = vld [vmem:[%s7427_s29 + $0xc] sm:$0xff]  }
  0xd1   : > { %6931 = vmatprep.mubr.msk.bf16.mxu0 %vm351_vm0, %v6369_v30  ;;  %v6370_v8 = vcombine.low %v4410_v63, %v4420_v21  ;;  %v4434_v27 = vsel %vm7451_vm3, %v4429_v20, %v4433_v55  ;;  %v4457_v41 = vrot.slane %v4455_v34, 5  ;;  %v4461_v14 = vrot.slane %v4459_v22, 4  ;;  %v6345_v20 = vld [vmem:[%s7427_s29 + $0x98] sm:$0x1]  ;;  %v6346_v34 = vld [vmem:[%s7427_s29 + $0x9c] sm:$0xf] }
  0xd2   : > { %v4439_v28 = vrot.slane %v4438_v23, 4  ;;  %v4452_v46 = vor.u32 %v4451_v16, %v4448_v1  ;;  %v4467_v5 = vrot.slane %v4465_v26, 5  ;;  %v4470_v3 = vshrl.u32 %v6337_v10, 16 }
  0xd3   : > { %v4462_v31 = vor.u32 %v4461_v14, %v4457_v41  ;;  %v4473_v50 = vshll.u32 %v6337_v10, 16  ;;  %v4479_v52 = vshll.u32 %v6338_v18, 16  ;;  %v4483_v48 = vshrl.u32 %v6338_v18, 16 }
  0xd4   : > { %v4444_v33 = vsel %vm7451_vm3, %v4439_v28, %v4443_v13  ;;  %v4453_v36 = vrot.slane %v4452_v46, 4  ;;  %v4472_v57 = vrot.slane %v4470_v3, 4  ;;  %v4489_v32 = vshll.u32 %v6339_v24, 16 }
  0xd5   : > { %6768 = vmatmul.mubr.msk.bf16.gmra.mrb[24].mxu1 %vm351_vm0, %v5964_v49  ;;  %v6371_v49 = vcombine.low %v4434_v27, %v4444_v33  ;;  %v4463_v37 = vrot.slane %v4462_v31, 4  ;;  %v4475_v11 = vrot.slane %v4473_v50, 5  ;;  %v4481_v38 = vrot.slane %v4479_v52, 5  ;;  %v6348_v27 = vld [vmem:[%s7427_s29 + $0xa4] sm:$0x1] }
  0xd6   : > { %6771 = vmatprep.mubr.msk.bf16.mxu1 %vm351_vm0, %v5965_v40  ;;  %v4458_v59 = vsel %vm7451_vm3, %v4453_v36, %v4457_v41  ;;  %v4485_v39 = vrot.slane %v4483_v48, 4  ;;  %v4491_v40 = vrot.slane %v4489_v32, 5  ;;  %v4494_v45 = vshrl.u32 %v6340_v29, 16  ;;  %v6349_v41 = vld [vmem:[%s7427_s29 + $0xa8] sm:$0xf] }
  0xd7   : > { %v4468_v47 = vsel %vm7451_vm3, %v4463_v37, %v4467_v5  ;;  %v4476_v53 = vor.u32 %v4475_v11, %v4472_v57  ;;  %v4497_v54 = vshll.u32 %v6340_v29, 16  ;;  %v4503_v55 = vshll.u32 %v6341_v4, 16  ;;  %v7326_v5 = vld [vmem:[%s7427_s29 + $0x18] sm:$0xff]   ;;  %v7327_v52 = vld [vmem:[%s7427_s29 + $0x24] sm:$0xff]   ;;  %v6350_v57 = vld [vmem:[%s7427_s29 + $0xac] sm:$0xf] }
  0xd8   : > { %6932 = vmatmul.mubr.msk.bf16.gmra.mrb[8].mxu0 %vm351_vm0, %v6370_v8  ;;  %v6372_v56 = vcombine.low %v4458_v59, %v4468_v47  ;;  %v4486_v60 = vor.u32 %v4485_v39, %v4481_v38  ;;  %v4496_v15 = vrot.slane %v4494_v45, 4  ;;  %v4507_v25 = vshrl.u32 %v6341_v4, 16 }
  0xd9   : > { %6935 = vmatprep.mubr.msk.bf16.mxu0 %vm351_vm0, %v6371_v49  ;;  %v4477_v30 = vrot.slane %v4476_v53, 4  ;;  %v4499_v63 = vrot.slane %v4497_v54, 5  ;;  %v4505_v0 = vrot.slane %v4503_v55, 5  ;;  %v4513_v51 = vshll.u32 %v6342_v43, 16  ;;  %v6352_v53 = vld [vmem:[%s7427_s29 + $0xb4] sm:$0xf] }
  0xda   : > { %v4487_v2 = vrot.slane %v4486_v60, 4  ;;  %v4509_v10 = vrot.slane %v4507_v25, 4  ;;  %v4518_v58 = vshrl.u32 %v6343_v61, 16  ;;  %v4521_v7 = vshll.u32 %v6343_v61, 16  ;;  %v7328_v25 = vld [vmem:[%s7427_s29 + $0x30] sm:$0xff]  }
  0xdb   : > { %v4482_v13 = vsel %vm7451_vm3, %v4477_v30, %v4481_v38  ;;  %v4500_v17 = vor.u32 %v4499_v63, %v4496_v15  ;;  %v4515_v18 = vrot.slane %v4513_v51, 5  ;;  %v4527_v1 = vshll.u32 %v6344_v62, 16  ;;  %v6353_v15 = vld [vmem:[%s7427_s29 + $0xb8] sm:$0xf]  ;;  %v7343_v51 = vld [vmem:[%s8704_s1 + $0x48] sm:$0xff]  }
  0xdc   : > { %v4492_v22 = vsel %vm7451_vm3, %v4487_v2, %v4491_v40  ;;  %v4510_v21 = vor.u32 %v4509_v10, %v4505_v0  ;;  %v4520_v9 = vrot.slane %v4518_v58, 4  ;;  %v4523_v19 = vrot.slane %v4521_v7, 5 }
  0xdd   : > { %6772 = vmatmul.mubr.msk.bf16.gmra.mrb[28].mxu1 %vm351_vm0, %v5966_v6  ;;  %v6347_v6 = vld [vmem:[%s7427_s29 + $0xa0] sm:$0xf]  ;;  %v6373_v23 = vcombine.low %v4482_v13, %v4492_v22  ;;  %v4501_v16 = vrot.slane %v4500_v17, 4  ;;  %v4529_v26 = vrot.slane %v4527_v1, 5  ;;  %v4531_v8 = vshrl.u32 %v6344_v62, 16 }
  0xde   : > { %6779 = vmatprep.mubr.msk.bf16.mxu1 %vm351_vm0, %v7325_v42  ;;  %v4511_v14 = vrot.slane %v4510_v21, 4  ;;  %v4524_v24 = vor.u32 %v4523_v19, %v4520_v9  ;;  %v4537_v28 = vshll.u32 %v6345_v20, 16  ;;  %v4542_v46 = vshrl.u32 %v6346_v34, 16  ;;  %v6351_v42 = vld [vmem:[%s7427_s29 + $0xb0] sm:$0x1]  ;;  %v7330_v1 = vld [vmem:[%s7427_s29 + $0x3c] sm:$0xff]  }
  0xdf   : > { %v4506_v3 = vsel %vm7451_vm3, %v4501_v16, %v4505_v0  ;;  %v4533_v29 = vrot.slane %v4531_v8, 4  ;;  %v4545_v31 = vshll.u32 %v6346_v34, 16  ;;  %v4551_v50 = vshll.u32 %v6347_v6, 16  ;;  %v6354_v17 = vld [vmem:[%s7427_s29 + $0xbc] sm:$0x1] }
  0xe0   : > { %6936 = vmatmul.mubr.msk.bf16.gmra.mrb[12].mxu0 %vm351_vm0, %v6372_v56  ;;  %v4516_v48 = vsel %vm7451_vm3, %v4511_v14, %v4515_v18  ;;  %v4525_v4 = vrot.slane %v4524_v24, 4  ;;  %v4539_v33 = vrot.slane %v4537_v28, 5  ;;  %v4544_v36 = vrot.slane %v4542_v46, 4  ;;  %v6356_v24 = vld [vmem:[%s7427_s29 + $0xc4] sm:$0xf] }
  0xe1   : > { %6939 = vmatprep.mubr.msk.bf16.mxu0 %vm351_vm0, %v6373_v23  ;;  %v6374_v32 = vcombine.low %v4506_v3, %v4516_v48  ;;  %v4534_v43 = vor.u32 %v4533_v29, %v4529_v26  ;;  %v4547_v49 = vrot.slane %v4545_v31, 5  ;;  %v4553_v37 = vrot.slane %v4551_v50, 5  ;;  %v6357_v29 = vld [vmem:[%s7427_s29 + $0xc8] sm:$0x1]  ;;  %v6358_v31 = vld [vmem:[%s7427_s29 + $0xcc] sm:$0xf] }
  0xe2   : > { %v4530_v11 = vsel %vm7451_vm3, %v4525_v4, %v4529_v26  ;;  %v4555_v38 = vshrl.u32 %v6347_v6, 16  ;;  %v4561_v61 = vshll.u32 %v6348_v27, 16  ;;  %v4566_v59 = vshrl.u32 %v6349_v41, 16  ;;  %v6355_v26 = vld [vmem:[%s7427_s29 + $0xc0] sm:$0xf] }
  0xe3   : > { %v4535_v39 = vrot.slane %v4534_v43, 4  ;;  %v4548_v40 = vor.u32 %v4547_v49, %v4544_v36  ;;  %v4569_v45 = vshll.u32 %v6349_v41, 16  ;;  %v4575_v47 = vshll.u32 %v6350_v57, 16 }
  0xe4   : > { %v4557_v54 = vrot.slane %v4555_v38, 4  ;;  %v4563_v55 = vrot.slane %v4561_v61, 5  ;;  %v4568_v56 = vrot.slane %v4566_v59, 4  ;;  %v4579_v60 = vshrl.u32 %v6350_v57, 16  ;;  %v6360_v61 = vld [vmem:[%s7427_s29 + $0xd4] sm:$0x1] }
  0xe5   : > { %6780 = vmatmul.mubr.msk.bf16.vlgmr.msra.gmra.mrb[0].mxu1 %vm351_vm0, %v7326_v5  ;;  %v4540_v62 = vsel %vm7451_vm3, %v4535_v39, %v4539_v33  ;;  %v4549_v30 = vrot.slane %v4548_v40, 4  ;;  %v4571_v63 = vrot.slane %v4569_v45, 5  ;;  %v4577_v0 = vrot.slane %v4575_v47, 5  ;;  %v6359_v33 = vld [vmem:[%s7427_s29 + $0xd0] sm:$0xf]  ;;  %v7331_v59 = vld [vmem:[%s7427_s29 + $0x48] sm:$0xff]  }
  0xe6   : > { %6783 = vmatprep.mubr.msk.bf16.mxu1 %vm351_vm0, %v7327_v52  ;;  %6993 = vmatpush3.bf16.msra.mxu1 %v8042_v12  ;;  %v6375_v12 = vcombine.low %v4530_v11, %v4540_v62  ;;  %v4558_v2 = vor.u32 %v4557_v54, %v4553_v37  ;;  %v4581_v10 = vrot.slane %v4579_v60, 4  ;;  %v4585_v58 = vshll.u32 %v6351_v42, 16  ;;  %v6399_v42 = vld [vmem:[%s7427_s29 + $0x18] sm:$0xe] }
  0xe7   : > { %6992 = vmatprep.subr.bf16.mxu1 %v7343_v51  ;;  %v4554_v7 = vsel %vm7451_vm3, %v4549_v30, %v4553_v37  ;;  %v4572_v13 = vor.u32 %v4571_v63, %v4568_v56  ;;  %v4590_v18 = vshrl.u32 %v6352_v53, 16  ;;  %v4593_v20 = vshll.u32 %v6352_v53, 16  ;;  %v6400_v53 = vld [vmem:[%s7427_s29 + $0x1c] sm:$0xf]  ;;  %v7332_v54 = vld [vmem:[%s7427_s29 + $0x54] sm:$0xff]  }
  0xe8   : > { %6940 = vmatmul.mubr.msk.bf16.gmra.mrb[16].mxu0 %vm351_vm0, %v6374_v32  ;;  %v4559_v34 = vrot.slane %v4558_v2, 4  ;;  %v4582_v22 = vor.u32 %v4581_v10, %v4577_v0  ;;  %v4587_v21 = vrot.slane %v4585_v58, 5  ;;  %v4599_v9 = vshll.u32 %v6353_v15, 16 }
  0xe9   : > { %6943 = vmatprep.mubr.msk.bf16.mxu0 %vm351_vm0, %v6375_v12  ;;  %v4573_v19 = vrot.slane %v4572_v13, 4  ;;  %v4592_v6 = vrot.slane %v4590_v18, 4  ;;  %v4595_v23 = vrot.slane %v4593_v20, 5  ;;  %v4603_v16 = vshrl.u32 %v6353_v15, 16  ;;  %v6404_v13 = vld [vmem:[%s7427_s29 + $0x2c] sm:$0x1] }
  0xea   : > { %6994 = vmatpush3.bf16.msra.mxu1 %v7343_v51  ;;  %v4564_v8 = vsel %vm7451_vm3, %v4559_v34, %v4563_v55  ;;  %v4583_v27 = vrot.slane %v4582_v22, 4  ;;  %v4601_v41 = vrot.slane %v4599_v9, 5  ;;  %v4609_v14 = vshll.u32 %v6354_v17, 16  ;;  %v6402_v51 = vld [vmem:[%s7427_s29 + $0x24] sm:$0xe] }
  0xeb   : > { %v6376_v28 = vcombine.low %v4554_v7, %v4564_v8  ;;  %v4578_v46 = vsel %vm7451_vm3, %v4573_v19, %v4577_v0  ;;  %v4596_v5 = vor.u32 %v4595_v23, %v4592_v6  ;;  %v4605_v3 = vrot.slane %v4603_v16, 4  ;;  %v6403_v7 = vld [vmem:[%s7427_s29 + $0x28] sm:$0xf]  ;;  %v6405_v34 = vld [vmem:[%s7427_s29 + $0x30] sm:$0xe]  ;;  %v7333_v23 = vld [vmem:[%s7427_s29 + $0x60] sm:$0xff]  }
  0xec   : > { %v4588_v50 = vsel %vm7451_vm3, %v4583_v27, %v4587_v21  ;;  %v4611_v52 = vrot.slane %v4609_v14, 5  ;;  %v4614_v48 = vshrl.u32 %v6355_v26, 16  ;;  %v4617_v4 = vshll.u32 %v6355_v26, 16  ;;  %v6406_v22 = vld [vmem:[%s7427_s29 + $0x34] sm:$0xf] }
  0xed   : > { %6784 = vmatmul.mubr.msk.bf16.gmra.mrb[4].mxu1 %vm351_vm0, %v7328_v25  ;;  %v6377_v36 = vcombine.low %v4578_v46, %v4588_v50  ;;  %v4597_v57 = vrot.slane %v4596_v5, 4  ;;  %v4606_v32 = vor.u32 %v4605_v3, %v4601_v41  ;;  %v4623_v43 = vshll.u32 %v6356_v24, 16  ;;  %v6401_v25 = vld [vmem:[%s7427_s29 + $0x20] sm:$0x1]  ;;  %v6407_v46 = vld [vmem:[%s7427_s29 + $0x38] sm:$0x1] }
  0xee   : > { %6787 = vmatprep.mubr.msk.bf16.mxu1 %vm351_vm0, %v7330_v1  ;;  %v4616_v49 = vrot.slane %v4614_v48, 4  ;;  %v4619_v37 = vrot.slane %v4617_v4, 5  ;;  %v4627_v11 = vshrl.u32 %v6356_v24, 16  ;;  %v4633_v38 = vshll.u32 %v6357_v29, 16  ;;  %v7334_v5 = vld [vmem:[%s7427_s29 + $0x6c] sm:$0xff]  }
  0xef   : > { %v4602_v39 = vsel %vm7451_vm3, %v4597_v57, %v4601_v41  ;;  %v4607_v40 = vrot.slane %v4606_v32, 4  ;;  %v4625_v45 = vrot.slane %v4623_v43, 5  ;;  %v4638_v47 = vshrl.u32 %v6358_v31, 16  ;;  %v6409_v57 = vld [vmem:[%s7427_s29 + $0x40] sm:$0xf] }
  0xf0   : > { %6944 = vmatmul.mubr.msk.bf16.gmra.mrb[20].mxu0 %vm351_vm0, %v6376_v28  ;;  %v4620_v55 = vor.u32 %v4619_v37, %v4616_v49  ;;  %v4629_v56 = vrot.slane %v4627_v11, 4  ;;  %v4635_v60 = vrot.slane %v4633_v38, 5  ;;  %v4641_v15 = vshll.u32 %v6358_v31, 16  ;;  %v6410_v32 = vld [vmem:[%s7427_s29 + $0x44] sm:$0x1] }
  0xf1   : > { %6947 = vmatprep.mubr.msk.bf16.mxu0 %vm351_vm0, %v6377_v36  ;;  %v4612_v62 = vsel %vm7451_vm3, %v4607_v40, %v4611_v52  ;;  %v4640_v30 = vrot.slane %v4638_v47, 4  ;;  %v4647_v63 = vshll.u32 %v6359_v33, 16  ;;  %v4651_v0 = vshrl.u32 %v6359_v33, 16  ;;  %v6408_v52 = vld [vmem:[%s7427_s29 + $0x3c] sm:$0xe] }
  0xf2   : > { %v6378_v12 = vcombine.low %v4602_v39, %v4612_v62  ;;  %v4621_v2 = vrot.slane %v4620_v55, 4  ;;  %v4630_v10 = vor.u32 %v4629_v56, %v4625_v45  ;;  %v4643_v58 = vrot.slane %v4641_v15, 5  ;;  %v6411_v11 = vld [vmem:[%s7427_s29 + $0x48] sm:$0xe]  ;;  %v6412_v38 = vld [vmem:[%s7427_s29 + $0x4c] sm:$0xf] }
  0xf3   : > { %v4649_v17 = vrot.slane %v4647_v63, 5  ;;  %v4653_v18 = vrot.slane %v4651_v0, 4  ;;  %v4657_v20 = vshll.u32 %v6360_v61, 16  ;;  %v6447_v1 = vrot.slane %v6399_v42, 9  ;;  %v6413_v40 = vld [vmem:[%s7427_s29 + $0x50] sm:$0x1] }
  0xf4   : > { %v4626_v21 = vsel %vm7451_vm3, %v4621_v2, %v4625_v45  ;;  %v4631_v9 = vrot.slane %v4630_v10, 4  ;;  %v4644_v19 = vor.u32 %v4643_v58, %v4640_v30  ;;  %v5129_v6 = vrot.slane %v6400_v53, 5  ;;  %v6414_v45 = vld [vmem:[%s7427_s29 + $0x54] sm:$0xe]  ;;  %v6415_v56 = vld [vmem:[%s7427_s29 + $0x58] sm:$0xf] }
  0xf5   : > { %6788 = vmatmul.mubr.msk.bf16.gmra.mrb[8].mxu1 %vm351_vm0, %v7331_v59  ;;  %v4654_v16 = vor.u32 %v4653_v18, %v4649_v17  ;;  %v4659_v26 = vrot.slane %v4657_v20, 5  ;;  %v5132_v8 = vrot.slane %v6401_v25, 5  ;;  %v6448_v27 = vrot.slane %v6402_v51, 9  ;;  %v6416_v30 = vld [vmem:[%s7427_s29 + $0x5c] sm:$0x1] }
  0xf6   : > { %6791 = vmatprep.mubr.msk.bf16.mxu1 %vm351_vm0, %v7332_v54  ;;  %v4636_v41 = vsel %vm7451_vm3, %v4631_v9, %v4635_v60  ;;  %v4645_v14 = vrot.slane %v4644_v19, 4  ;;  %v5130_v24 = vsel %vm7532_vm6, %v6447_v1, %v5129_v6  ;;  %v5131_v28 = vrot.slane %v5129_v6, 4  ;;  %v6079_v63 = vld [vmem:[%s7427_s29 + $0x6c] sm:$0xf]  ;;  %v6080_v10 = vld [vmem:[%s7427_s29 + $0x70] sm:$0xf] }
  0xf7   : > { %v6379_v3 = vcombine.low %v4626_v21, %v4636_v41  ;;  %v4655_v29 = vrot.slane %v4654_v16, 4  ;;  %v5136_v31 = vrot.slane %v6403_v7, 5  ;;  %v5139_v50 = vrot.slane %v6404_v13, 5  ;;  %v6081_v18 = vld [vmem:[%s7427_s29 + $0x74] sm:$0x1]  ;;  %v7335_v20 = vld [vmem:[%s7427_s29 + $0x78] sm:$0xff]  }
  0xf8   : > { %6948 = vmatmul.mubr.msk.bf16.gmra.mrb[24].mxu0 %vm351_vm0, %v6378_v12  ;;  %v4650_v48 = vsel %vm7451_vm3, %v4645_v14, %v4649_v17  ;;  %v5133_v4 = vsel %vm7532_vm6, %v5131_v28, %v5132_v8  ;;  %v6449_v33 = vrot.slane %v6405_v34, 9  ;;  %v5143_v36 = vrot.slane %v6406_v22, 5  ;;  %v6082_v9 = vld [vmem:[%s7427_s29 + $0x78] sm:$0xf]  ;;  %v7336_v19 = vld [vmem:[%s7427_s29 + $0x84] sm:$0xff]  }
  0xf9   : > { %6951 = vmatprep.mubr.msk.bf16.mxu0 %vm351_vm0, %v6379_v3  ;;  %v4660_v43 = vsel %vm7451_vm3, %v4655_v29, %v4659_v26  ;;  %v8340_v49 = vsel %vm7532_vm6, %v6448_v27, %v5136_v31  ;;  %v5138_v37 = vrot.slane %v5136_v31, 4  ;;  %v6467_v42 = vcombine.low %v5130_v24, %v5133_v4  ;;  %v6083_v24 = vld [vmem:[%s7427_s29 + $0x7c] sm:$0xf]  ;;  %v6084_v3 = vld [vmem:[%s7427_s29 + $0x80] sm:$0x1] }
  0xfa   : > { %v6380_v61 = vcombine.low %v4650_v48, %v4660_v43  ;;  %v5145_v59 = vrot.slane %v5143_v36, 4  ;;  %v5146_v39 = vrot.slane %v6407_v46, 5  ;;  %v6450_v53 = vrot.slane %v6408_v52, 9  ;;  %v6417_v4 = vld [vmem:[%s7427_s29 + $0x60] sm:$0xe] }
  0xfb   : > { %v8349_v47 = vsel %vm7532_vm6, %v5138_v37, %v5139_v50  ;;  %v5150_v54 = vrot.slane %v6409_v57, 5  ;;  %v5153_v55 = vrot.slane %v6410_v32, 5  ;;  %v8357_v15 = vsel %vm7532_vm6, %v6449_v33, %v5143_v36  ;;  %v6418_v33 = vld [vmem:[%s7427_s29 + $0x64] sm:$0xf] }
  0xfc   : > { %v6468_v60 = vcombine.low %v8340_v49, %v8349_v47  ;;  %v6451_v25 = vrot.slane %v6411_v11, 9  ;;  %v5157_v62 = vrot.slane %v6412_v38, 5  ;;  %v5147_v0 = vsel %vm7532_vm6, %v5145_v59, %v5146_v39  ;;  %v6421_v47 = vld [vmem:[%s7427_s29 + $0x70] sm:$0xf] }
  0xfd   : > { %6792 = vmatmul.mubr.msk.bf16.gmra.mrb[12].mxu1 %vm351_vm0, %v7333_v23  ;;  %v8365_v51 = vsel %vm7532_vm6, %v6450_v53, %v5150_v54  ;;  %v5152_v12 = vrot.slane %v5150_v54, 4  ;;  %v5160_v2 = vrot.slane %v6413_v40, 5  ;;  %v6452_v13 = vrot.slane %v6414_v45, 9  ;;  %v7338_v53 = vld [vmem:[%s7427_s29 + $0x9c] sm:$0xff]  }
  0xfe   : > { %6795 = vmatprep.mubr.msk.bf16.mxu1 %vm351_vm0, %v7334_v5  ;;  %v8371_v58 = vsel %vm7532_vm6, %v6451_v25, %v5157_v62  ;;  %v5159_v7 = vrot.slane %v5157_v62, 4  ;;  %v5164_v17 = vrot.slane %v6415_v56, 5  ;;  %v5167_v34 = vrot.slane %v6416_v30, 5  ;;  %v6085_v25 = vld [vmem:[%s7427_s29 + $0x84] sm:$0xf] }
  0xff   : > { %v8378_v1 = vsel %vm7532_vm6, %v5152_v12, %v5153_v55  ;;  %v2655_v22 = vshrl.u32 %v6079_v63, 16  ;;  %v2658_v21 = vshll.u32 %v6079_v63, 16  ;;  %v6469_v6 = vcombine.low %v8357_v15, %v5147_v0  ;;  %v6422_v12 = vld [vmem:[%s7427_s29 + $0x74] sm:$0x1] }
 0x100   : > { %6952 = vmatmul.mubr.msk.bf16.gmra.mrb[28].mxu0 %vm351_vm0, %v6380_v61  ;;  %v6470_v23 = vcombine.low %v8365_v51, %v8378_v1  ;;  %v8387_v16 = vsel %vm7532_vm6, %v5159_v7, %v5160_v2  ;;  %v5166_v26 = vrot.slane %v5164_v17, 4  ;;  %v8391_v8 = vsel %vm7532_vm6, %v6452_v13, %v5164_v17  ;;  %v6419_v61 = vld [vmem:[%s7427_s29 + $0x68] sm:$0x1] }
 0x101   : > { %6959 = vmatprep.mubr.msk.bf16.mxu0 %vm351_vm0, %v6467_v42  ;;  %v2657_v27 = vrot.slane %v2655_v22, 4  ;;  %v2660_v41 = vrot.slane %v2658_v21, 5  ;;  %v2664_v14 = vshll.u32 %v6080_v10, 16  ;;  %v6471_v28 = vcombine.low %v8371_v58, %v8387_v16  ;;  %v7337_v42 = vld [vmem:[%s7427_s29 + $0x90] sm:$0xff]   ;;  %v6087_v22 = vld [vmem:[%s7427_s29 + $0x8c] sm:$0x1] }
 0x102   : > { %v2668_v46 = vshrl.u32 %v6080_v10, 16  ;;  %v2674_v5 = vshll.u32 %v6081_v18, 16  ;;  %v2679_v29 = vshrl.u32 %v6082_v9, 16  ;;  %v8400_v31 = vsel %vm7532_vm6, %v5166_v26, %v5167_v34  ;;  %v6086_v34 = vld [vmem:[%s7427_s29 + $0x88] sm:$0xf] }
 0x103   : > { %v2661_v50 = vor.u32 %v2660_v41, %v2657_v27  ;;  %v2666_v52 = vrot.slane %v2664_v14, 5  ;;  %v2682_v48 = vshll.u32 %v6082_v9, 16  ;;  %v2688_v43 = vshll.u32 %v6083_v24, 16  ;;  %v6088_v27 = vld [vmem:[%s7427_s29 + $0x90] sm:$0xf] }
 0x104   : > { %v2670_v36 = vrot.slane %v2668_v46, 4  ;;  %v2676_v57 = vrot.slane %v2674_v5, 5  ;;  %v2681_v32 = vrot.slane %v2679_v29, 4  ;;  %v2692_v11 = vshrl.u32 %v6083_v24, 16 }
 0x105   : > { %6796 = vmatmul.mubr.msk.bf16.gmra.mrb[16].mxu1 %vm351_vm0, %v7335_v20  ;;  %v2662_v49 = vrot.slane %v2661_v50, 4  ;;  %v2684_v37 = vrot.slane %v2682_v48, 5  ;;  %v2698_v38 = vshll.u32 %v6084_v3, 16  ;;  %v2690_v39 = vrot.slane %v2688_v43, 5  ;;  %v7339_v43 = vld [vmem:[%s7427_s29 + $0xa8] sm:$0xff]  }
 0x106   : > { %6799 = vmatprep.mubr.msk.bf16.mxu1 %vm351_vm0, %v7336_v19  ;;  %v2671_v59 = vor.u32 %v2670_v36, %v2666_v52  ;;  %v6453_v40 = vrot.slane %v6417_v4, 9  ;;  %v5171_v45 = vrot.slane %v6418_v33, 5  ;;  %v6472_v54 = vcombine.low %v8391_v8, %v8400_v31  ;;  %v6090_v36 = vld [vmem:[%s7427_s29 + $0x98] sm:$0x1] }
 0x107   : > { %v2667_v55 = vsel %vm7451_vm3, %v2662_v49, %v2666_v52  ;;  %v2685_v56 = vor.u32 %v2684_v37, %v2681_v32  ;;  %v2694_v15 = vrot.slane %v2692_v11, 4  ;;  %v2700_v30 = vrot.slane %v2698_v38, 5  ;;  %v6089_v52 = vld [vmem:[%s7427_s29 + $0x94] sm:$0xf]  ;;  %v6423_v32 = vld [vmem:[%s7427_s29 + $0x78] sm:$0xe] }
 0x108   : > { %6960 = vmatmul.mubr.msk.bf16.vlgmr.msra.gmra.mrb[0].mxu0 %vm351_vm0, %v6468_v60  ;;  %v6420_v60 = vld [vmem:[%s7427_s29 + $0x6c] sm:$0xe]  ;;  %v2672_v62 = vrot.slane %v2671_v59, 4  ;;  %v5173_v63 = vrot.slane %v5171_v45, 4  ;;  %v5174_v0 = vrot.slane %v6419_v61, 5  ;;  %v8420_v7 = vsel %vm7532_vm6, %v6453_v40, %v5171_v45  ;;  %v7340_v11 = vld [vmem:[%s7427_s29 + $0xb4] sm:$0xff]  }
 0x109   : > { %6963 = vmatprep.mubr.msk.bf16.mxu0 %vm351_vm0, %v6469_v6  ;;  %v2686_v2 = vrot.slane %v2685_v56, 4  ;;  %v2695_v10 = vor.u32 %v2694_v15, %v2690_v39  ;;  %v5178_v13 = vrot.slane %v6421_v47, 5  ;;  %v6454_v20 = vrot.slane %v6420_v60, 9  ;;  %v6424_v37 = vld [vmem:[%s7427_s29 + $0x7c] sm:$0xf] }
 0x10a   : > { %v2677_v17 = vsel %vm7451_vm3, %v2672_v62, %v2676_v57  ;;  %v8426_v18 = vsel %vm7532_vm6, %v5173_v63, %v5174_v0  ;;  %v2703_v21 = vshrl.u32 %v6085_v25, 16  ;;  %v5181_v26 = vrot.slane %v6422_v12, 5  ;;  %v6426_v45 = vld [vmem:[%s7427_s29 + $0x84] sm:$0xe]  ;;  %v6427_v15 = vld [vmem:[%s7427_s29 + $0x88] sm:$0xf] }
 0x10b   : > { %v8431_v9 = vcombine.low %v2667_v55, %v2677_v17  ;;  %v2691_v19 = vsel %vm7451_vm3, %v2686_v2, %v2690_v39  ;;  %v2696_v6 = vrot.slane %v2695_v10, 4  ;;  %v6473_v41 = vcombine.low %v8420_v7, %v8426_v18  ;;  %v6425_v39 = vld [vmem:[%s7427_s29 + $0x80] sm:$0x1]  ;;  %v6428_v63 = vld [vmem:[%s7427_s29 + $0x8c] sm:$0x1] }
 0x10c   : > { %v5180_v14 = vrot.slane %v5178_v13, 4  ;;  %v2705_v24 = vrot.slane %v2703_v21, 4  ;;  %v2706_v46 = vshll.u32 %v6085_v25, 16  ;;  %v2712_v3 = vshll.u32 %v6086_v34, 16  ;;  %v6092_v21 = vld [vmem:[%s7427_s29 + $0xa0] sm:$0xf] }
 0x10d   : > { %6800 = vmatmul.mubr.msk.bf16.gmra.mrb[20].mxu1 %vm351_vm0, %v7337_v42  ;;  %v2701_v5 = vsel %vm7451_vm3, %v2696_v6, %v2700_v30  ;;  %v2716_v29 = vshrl.u32 %v6086_v34, 16  ;;  %v2722_v50 = vshll.u32 %v6087_v22, 16  ;;  %v8450_v4 = vsel %vm7532_vm6, %v6454_v20, %v5178_v13  ;;  %v6091_v22 = vld [vmem:[%s7427_s29 + $0x9c] sm:$0xf] }
 0x10e   : > { %6803 = vmatprep.mubr.msk.bf16.mxu1 %vm351_vm0, %v7338_v53  ;;  %v8446_v48 = vcombine.low %v2691_v19, %v2701_v5  ;;  %v2708_v33 = vrot.slane %v2706_v46, 5  ;;  %v2727_v57 = vshrl.u32 %v6088_v27, 16  ;;  %v8461_v51 = vsel %vm7532_vm6, %v5180_v14, %v5181_v26  ;;  %v6093_v14 = vld [vmem:[%s7427_s29 + $0xa4] sm:$0x1] }
 0x10f   : > { %v2714_v1 = vrot.slane %v2712_v3, 5  ;;  %v2724_v49 = vrot.slane %v2722_v50, 5  ;;  %v2730_v42 = vshll.u32 %v6088_v27, 16  ;;  %v2736_v59 = vshll.u32 %v6089_v52, 16 }
 0x110   : > { %6964 = vmatmul.mubr.msk.bf16.gmra.mrb[4].mxu0 %vm351_vm0, %v6470_v23  ;;  %v2718_v23 = vrot.slane %v2716_v29, 4  ;;  %v2709_v38 = vor.u32 %v2708_v33, %v2705_v24  ;;  %v2729_v61 = vrot.slane %v2727_v57, 4  ;;  %v2740_v16 = vshrl.u32 %v6089_v52, 16  ;;  %v7341_v24 = vld [vmem:[%s7427_s29 + $0xc0] sm:$0xff]   ;;  %v6094_v52 = vld [vmem:[%s7427_s29 + $0xa8] sm:$0xf] }
 0x111   : > { %6967 = vmatprep.mubr.msk.bf16.mxu0 %vm351_vm0, %v6471_v28  ;;  %v2746_v28 = vshll.u32 %v6090_v36, 16  ;;  %v6455_v40 = vrot.slane %v6423_v32, 9  ;;  %v2732_v53 = vrot.slane %v2730_v42, 5  ;;  %v2738_v55 = vrot.slane %v2736_v59, 5  ;;  %v6095_v33 = vld [vmem:[%s7427_s29 + $0xac] sm:$0xf] }
 0x112   : > { %v2719_v58 = vor.u32 %v2718_v23, %v2714_v1  ;;  %v2710_v47 = vrot.slane %v2709_v38, 4  ;;  %v5185_v56 = vrot.slane %v6424_v37, 5  ;;  %v2742_v25 = vrot.slane %v2740_v16, 4  ;;  %v6430_v38 = vld [vmem:[%s7427_s29 + $0x94] sm:$0xf] }
 0x113   : > { %v2748_v62 = vrot.slane %v2746_v28, 5  ;;  %v5188_v30 = vrot.slane %v6425_v39, 5  ;;  %v2733_v12 = vor.u32 %v2732_v53, %v2729_v61  ;;  %v6456_v20 = vrot.slane %v6426_v45, 9 }
 0x114   : > { %v2720_v60 = vrot.slane %v2719_v58, 4  ;;  %v2715_v0 = vsel %vm7451_vm3, %v2710_v47, %v2714_v1  ;;  %v5186_v2 = vsel %vm7532_vm6, %v6455_v40, %v5185_v56  ;;  %v5187_v10 = vrot.slane %v5185_v56, 4  ;;  %v6429_v1 = vld [vmem:[%s7427_s29 + $0x90] sm:$0xe]  ;;  %v6431_v58 = vld [vmem:[%s7427_s29 + $0x98] sm:$0x1] }
 0x115   : > { %6804 = vmatmul.mubr.msk.bf16.gmra.mrb[24].mxu1 %vm351_vm0, %v7339_v43  ;;  %v2743_v17 = vor.u32 %v2742_v25, %v2738_v55  ;;  %v5192_v34 = vrot.slane %v6427_v15, 5  ;;  %v6474_v19 = vcombine.low %v8450_v4, %v8461_v51  ;;  %v2734_v6 = vrot.slane %v2733_v12, 4  ;;  %v6096_v51 = vld [vmem:[%s7427_s29 + $0xb0] sm:$0x1]  ;;  %v6432_v47 = vld [vmem:[%s7427_s29 + $0x9c] sm:$0xe] }
 0x116   : > { %6807 = vmatprep.mubr.msk.bf16.mxu1 %vm351_vm0, %v7340_v11  ;;  %v2725_v13 = vsel %vm7451_vm3, %v2720_v60, %v2724_v49  ;;  %v5189_v26 = vsel %vm7532_vm6, %v5187_v10, %v5188_v30  ;;  %v5195_v27 = vrot.slane %v6428_v63, 5  ;;  %v2751_v3 = vshrl.u32 %v6091_v22, 16  ;;  %v6433_v15 = vld [vmem:[%s7427_s29 + $0xa0] sm:$0xf]  ;;  %v6434_v63 = vld [vmem:[%s7427_s29 + $0xa4] sm:$0x1] }
 0x117   : > { %v8493_v8 = vcombine.low %v2715_v0, %v2725_v13  ;;  %v2744_v31 = vrot.slane %v2743_v17, 4  ;;  %v5194_v46 = vrot.slane %v5192_v34, 4  ;;  %v2739_v5 = vsel %vm7451_vm3, %v2734_v6, %v2738_v55  ;;  %v6097_v13 = vld [vmem:[%s7427_s29 + $0xb4] sm:$0xf] }
 0x118   : > { %6968 = vmatmul.mubr.msk.bf16.gmra.mrb[8].mxu0 %vm351_vm0, %v6472_v54  ;;  %v6475_v54 = vcombine.low %v5186_v2, %v5189_v26  ;;  %v2754_v29 = vshll.u32 %v6091_v22, 16  ;;  %v2760_v50 = vshll.u32 %v6092_v21, 16  ;;  %v8502_v7 = vsel %vm7532_vm6, %v6456_v20, %v5192_v34 }
 0x119   : > { %6971 = vmatprep.mubr.msk.bf16.mxu0 %vm351_vm0, %v6473_v41  ;;  %v2749_v4 = vsel %vm7451_vm3, %v2744_v31, %v2748_v62  ;;  %v2764_v18 = vshrl.u32 %v6092_v21, 16  ;;  %v2770_v41 = vshll.u32 %v6093_v14, 16  ;;  %v8509_v57 = vsel %vm7532_vm6, %v5194_v46, %v5195_v27  ;;  %v6098_v27 = vld [vmem:[%s7427_s29 + $0xb8] sm:$0xf] }
 0x11a   : > { %v8505_v36 = vcombine.low %v2739_v5, %v2749_v4  ;;  %v2753_v32 = vrot.slane %v2751_v3, 4  ;;  %v2756_v43 = vrot.slane %v2754_v29, 5  ;;  %v2762_v23 = vrot.slane %v2760_v50, 5  ;;  %v6100_v50 = vld [vmem:[%s7427_s29 + $0xc0] sm:$0xf] }
 0x11b   : > { %v2766_v49 = vrot.slane %v2764_v18, 4  ;;  %v2772_v37 = vrot.slane %v2770_v41, 5  ;;  %v2775_v11 = vshrl.u32 %v6094_v52, 16  ;;  %v2778_v42 = vshll.u32 %v6094_v52, 16  ;;  %v6101_v52 = vld [vmem:[%s7427_s29 + $0xc4] sm:$0xf] }
 0x11c   : > { %v2757_v61 = vor.u32 %v2756_v43, %v2753_v32  ;;  %v2784_v59 = vshll.u32 %v6095_v33, 16  ;;  %v2788_v39 = vshrl.u32 %v6095_v33, 16  ;;  %v2794_v40 = vshll.u32 %v6096_v51, 16  ;;  %v6102_v41 = vld [vmem:[%s7427_s29 + $0xc8] sm:$0x1] }
 0x11d   : > { %6808 = vmatmul.mubr.msk.bf16.gmra.mrb[28].mxu1 %vm351_vm0, %v7341_v24  ;;  %v2767_v16 = vor.u32 %v2766_v49, %v2762_v23  ;;  %v2777_v28 = vrot.slane %v2775_v11, 4  ;;  %v6457_v45 = vrot.slane %v6429_v1, 9  ;;  %v2780_v55 = vrot.slane %v2778_v42, 5  ;;  %v6435_v51 = vld [vmem:[%s7427_s29 + $0xa8] sm:$0xe] }
 0x11e   : > { %6831 = vmatprep.mubr.msk.bf16.mxu1 %vm351_vm0, %v8431_v9  ;;  %v2758_v53 = vrot.slane %v2757_v61, 4  ;;  %v8520_v56 = vrot.slane %v2784_v59, 5  ;;  %v2790_v9 = vrot.slane %v2788_v39, 4  ;;  %v8524_v25 = vrot.slane %v2794_v40, 5  ;;  %v6436_v11 = vld [vmem:[%s7427_s29 + $0xac] sm:$0xf] }
 0x11f   : > { %v2768_v60 = vrot.slane %v2767_v16, 4  ;;  %v5199_v62 = vrot.slane %v6430_v38, 5  ;;  %v5202_v30 = vrot.slane %v6431_v58, 5  ;;  %v2781_v12 = vor.u32 %v2780_v55, %v2777_v28  ;;  %v6437_v39 = vld [vmem:[%s7427_s29 + $0xb0] sm:$0x1] }
 0x120   : > { %6972 = vmatmul.mubr.msk.bf16.gmra.mrb[12].mxu0 %vm351_vm0, %v6474_v19  ;;  %v2763_v0 = vsel %vm7451_vm3, %v2758_v53, %v2762_v23  ;;  %v2791_v2 = vor.u32 %v2790_v9, %v8520_v56  ;;  %v6458_v10 = vrot.slane %v6432_v47, 9  ;;  %v5206_v22 = vrot.slane %v6433_v15, 5  ;;  %v6439_v9 = vld [vmem:[%s7427_s29 + $0xb8] sm:$0xf] }
 0x121   : > { %6975 = vmatprep.mubr.msk.bf16.mxu0 %vm351_vm0, %v6475_v54  ;;  %v2773_v17 = vsel %vm7451_vm3, %v2768_v60, %v2772_v37  ;;  %v5200_v20 = vsel %vm7532_vm6, %v6457_v45, %v5199_v62  ;;  %v5201_v34 = vrot.slane %v5199_v62, 4  ;;  %v6476_v21 = vcombine.low %v8502_v7, %v8509_v57  ;;  %v6099_v54 = vld [vmem:[%s7427_s29 + $0xbc] sm:$0x1]  ;;  %v6438_v45 = vld [vmem:[%s7427_s29 + $0xb4] sm:$0xe] }
 0x122   : > { %v2782_v19 = vrot.slane %v2781_v12, 4  ;;  %v2792_v6 = vrot.slane %v2791_v2, 4  ;;  %v5209_v26 = vrot.slane %v6434_v63, 5  ;;  %v5207_v24 = vsel %vm7532_vm6, %v6458_v10, %v5206_v22  ;;  %v6440_v62 = vld [vmem:[%s7427_s29 + $0xbc] sm:$0x1] }
 0x123   : > { %v5203_v14 = vsel %vm7532_vm6, %v5201_v34, %v5202_v30  ;;  %v5208_v31 = vrot.slane %v5206_v22, 4  ;;  %v2799_v46 = vshrl.u32 %v6097_v13, 16  ;;  %v6119_v5 = vcombine.low %v2763_v0, %v2773_v17  ;;  %v6441_v30 = vld [vmem:[%s7427_s29 + $0xc0] sm:$0xe]  ;;  %v6443_v34 = vld [vmem:[%s7427_s29 + $0xc8] sm:$0x1] }
 0x124   : > { %v2787_v3 = vsel %vm7451_vm3, %v2782_v19, %v8520_v56  ;;  %v2802_v29 = vshll.u32 %v6097_v13, 16  ;;  %v2797_v4 = vsel %vm7451_vm3, %v2792_v6, %v8524_v25  ;;  %v2812_v32 = vshrl.u32 %v6098_v27, 16 }
 0x125   : > { %6832 = vmatmul.mubr.msk.bf16.vlgmr.msra.gmra.mrb[16].mxu1 %vm351_vm0, %v8446_v48  ;;  %v6477_v48 = vcombine.low %v5200_v20, %v5203_v14  ;;  %v5210_v7 = vsel %vm7532_vm6, %v5208_v31, %v5209_v26  ;;  %v2801_v18 = vrot.slane %v2799_v46, 4  ;;  %v2818_v43 = vshll.u32 %v6099_v54, 16  ;;  %v6442_v20 = vld [vmem:[%s7427_s29 + $0xc4] sm:$0xf]  ;;  %v6445_v26 = vld [vmem:[%s7427_s29 + $0xd0] sm:$0xf] }
 0x126   : > { %6835 = vmatprep.mubr.msk.bf16.mxu1 %vm351_vm0, %v8493_v8  ;;  %v2808_v8 = vshll.u32 %v6098_v27, 16  ;;  %v6478_v33 = vcombine.low %v5207_v24, %v5210_v7  ;;  %v2804_v57 = vrot.slane %v2802_v29, 5  ;;  %v2823_v23 = vshrl.u32 %v6100_v50, 16  ;;  %v6446_v29 = vld [vmem:[%s7427_s29 + $0xd4] sm:$0x1] }
 0x127   : > { %v2826_v49 = vshll.u32 %v6100_v50, 16  ;;  %v2832_v37 = vshll.u32 %v6101_v52, 16  ;;  %v2814_v61 = vrot.slane %v2812_v32, 4  ;;  %v2820_v42 = vrot.slane %v2818_v43, 5 }
 0x128   : > { %6976 = vmatmul.mubr.msk.bf16.gmra.mrb[16].mxu0 %vm351_vm0, %v6476_v21  ;;  %v2810_v1 = vrot.slane %v2808_v8, 5  ;;  %v2805_v38 = vor.u32 %v2804_v57, %v2801_v18  ;;  %v2836_v59 = vshrl.u32 %v6101_v52, 16  ;;  %v2825_v58 = vrot.slane %v2823_v23, 4 }
 0x129   : > { %6979 = vmatprep.mubr.msk.bf16.mxu0 %vm351_vm0, %v6477_v48  ;;  %v2828_v16 = vrot.slane %v2826_v49, 5  ;;  %v2834_v28 = vrot.slane %v2832_v37, 5  ;;  %v2842_v40 = vshll.u32 %v6102_v41, 16  ;;  %v6459_v56 = vrot.slane %v6435_v51, 9  ;;  %v6444_v48 = vld [vmem:[%s7427_s29 + $0xcc] sm:$0xe] }
 0x12a   : > { %v2806_v47 = vrot.slane %v2805_v38, 4  ;;  %v2815_v53 = vor.u32 %v2814_v61, %v2810_v1  ;;  %v2838_v55 = vrot.slane %v2836_v59, 4  ;;  %v5213_v60 = vrot.slane %v6436_v11, 5 }
 0x12b   : > { %v2829_v15 = vor.u32 %v2828_v16, %v2825_v58  ;;  %v5216_v25 = vrot.slane %v6437_v39, 5  ;;  %v6460_v2 = vrot.slane %v6438_v45, 9  ;;  %v6120_v10 = vcombine.low %v2787_v3, %v2797_v4 }
 0x12c   : > { %v2811_v63 = vsel %vm7451_vm3, %v2806_v47, %v2810_v1  ;;  %v2816_v0 = vrot.slane %v2815_v53, 4  ;;  %v2839_v12 = vor.u32 %v2838_v55, %v2834_v28  ;;  %v5214_v13 = vsel %vm7532_vm6, %v6459_v56, %v5213_v60 }
 0x12d   : > { %6836 = vmatmul.mubr.msk.bf16.gmra.mrb[20].mxu1 %vm351_vm0, %v8505_v36  ;;  %v5215_v36 = vrot.slane %v5213_v60, 4  ;;  %v5220_v17 = vrot.slane %v6439_v9, 5  ;;  %v2844_v21 = vrot.slane %v2842_v40, 5  ;;  %v5223_v19 = vrot.slane %v6440_v62, 5 }
 0x12e   : > { %6839 = vmatprep.mubr.msk.bf16.mxu1 %vm351_vm0, %v6119_v5  ;;  %v2821_v22 = vsel %vm7451_vm3, %v2816_v0, %v2820_v42  ;;  %v6461_v6 = vrot.slane %v6441_v30, 9  ;;  %v2830_v14 = vrot.slane %v2829_v15, 4  ;;  %v2840_v24 = vrot.slane %v2839_v12, 4  ;;  %v8618_v15 = vld [vmem:[%s8705_s2] ss:$0 sm:$0xff] }
 0x12f   : > { %v6121_v27 = vcombine.low %v2811_v63, %v2821_v22  ;;  %v5217_v31 = vsel %vm7532_vm6, %v5215_v36, %v5216_v25  ;;  %v5221_v46 = vsel %vm7532_vm6, %v6460_v2, %v5220_v17  ;;  %v5222_v5 = vrot.slane %v5220_v17, 4 }
 0x130   : > { %6980 = vmatmul.mubr.msk.bf16.gmra.mrb[20].mxu0 %vm351_vm0, %v6478_v33  ;;  %v6479_v54 = vcombine.low %v5214_v13, %v5217_v31  ;;  %v5227_v3 = vrot.slane %v6442_v20, 5  ;;  %v5230_v50 = vrot.slane %v6443_v34, 5  ;;  %v5234_v52 = vrot.slane %v6445_v26, 5 }
 0x131   : > { %v5224_v4 = vsel %vm7532_vm6, %v5222_v5, %v5223_v19  ;;  %v6462_v41 = vrot.slane %v6444_v48, 9  ;;  %v5237_v57 = vrot.slane %v6446_v29, 5  ;;  %v2835_v32 = vsel %vm7451_vm3, %v2830_v14, %v2834_v28 }
 0x132   : > { %6983 = vmatprep.mubr.msk.bf16.mxu0 %vm351_vm0, %v6479_v54  ;;  %v5228_v7 = vsel %vm7532_vm6, %v6461_v6, %v5227_v3  ;;  %v5229_v18 = vrot.slane %v5227_v3, 4  ;;  %v6480_v8 = vcombine.low %v5221_v46, %v5224_v4  ;;  %v5236_v33 = vrot.slane %v5234_v52, 4 }
 0x133   : > { %v2845_v43 = vsel %vm7451_vm3, %v2840_v24, %v2844_v21  ;;  %v5235_v49 = vsel %vm7532_vm6, %v6462_v41, %v5234_v52 }
 0x134   : > { %v5231_v51 = vsel %vm7532_vm6, %v5229_v18, %v5230_v50  ;;  %v6122_v23 = vcombine.low %v2835_v32, %v2845_v43  ;;  %v5238_v37 = vsel %vm7532_vm6, %v5236_v33, %v5237_v57 }
 0x135   : > { %6840 = vmatmul.mubr.msk.bf16.gmra.mrb[24].mxu1 %vm351_vm0, %v6120_v10  ;;  %v6481_v1 = vcombine.low %v5228_v7, %v5231_v51  ;;  %v6482_v11 = vcombine.low %v5235_v49, %v5238_v37 }
 0x136   : > { %6843 = vmatprep.mubr.msk.bf16.mxu1 %vm351_vm0, %v6121_v27 }
 0x138   : > { %6984 = vmatmul.mubr.msk.bf16.gmra.mrb[24].mxu0 %vm351_vm0, %v6480_v8 }
 0x139   : > { %6987 = vmatprep.mubr.msk.bf16.mxu0 %vm351_vm0, %v6481_v1 }
 0x13d   : > { %6844 = vmatmul.mubr.msk.bf16.gmra.mrb[28].mxu1 %vm351_vm0, %v6122_v23 }
 0x140   : > { %6988 = vmatmul.mubr.msk.bf16.gmra.mrb[28].mxu0 %vm351_vm0, %v6482_v11 }
 0x1b8   : > { %v6781_v35 = vpop.f32.mrb[0].mxu1 }
 0x1b9   : > { %v2191_v38 = vpop.f32.mrb[1].mxu1 }
 0x1ba   : > { %v6782_v61 = vpop.f32.mrb[2].mxu1 }
 0x1bb   : > { %v2194_v42 = vpop.f32.mrb[3].mxu1 }
 0x1c0   : > { %v6785_v59 = vpop.f32.mrb[4].mxu1 }
 0x1c1   : > { %v2207_v39 = vpop.f32.mrb[5].mxu1 }
 0x1c2   : > { %v6786_v58 = vpop.f32.mrb[6].mxu1 }
 0x1c3   : > { %v2210_v16 = vpop.f32.mrb[7].mxu1 }
 0x1c8   : > { %v6789_v28 = vpop.f32.mrb[8].mxu1 }
 0x1c9   : > { %v2223_v40 = vpop.f32.mrb[9].mxu1 }
 0x1ca   : > { %v6790_v45 = vpop.f32.mrb[10].mxu1 }
 0x1cb   : > { %v2226_v47 = vpop.f32.mrb[11].mxu1 }
 0x1d0   : > { %v8607_v44 = vpop.f32.mrb[12].mxu1 }
 0x1d1   : > { %v8609_v53 = vpop.f32.mrb[13].mxu1 }
 0x1d2   : > { %v8611_v55 = vpop.f32.mrb[14].mxu1 }
 0x1d3   : > { %v8613_v56 = vpop.f32.mrb[15].mxu1 }
 0x1db   : > { %v6961_v9 = vpop.f32.mrb[0].mxu0 }
 0x1dc   : > { %v6995_v60 = vadd.f32 %v6961_v9, %v6781_v35  ;;  %v5386_v25 = vpop.f32.mrb[1].mxu0 }
 0x1dd   : > { %v6996_v62 = vadd.f32 %v5386_v25, %v2191_v38  ;;  %v6962_v30 = vpop.f32.mrb[2].mxu0 }
 0x1de   : > { %v5650_v63 = vadd.f32 %v6995_v60, %v8618_v15  ;;  %v6997_v0 = vadd.f32 %v6962_v30, %v6782_v61  ;;  %v5389_v12 = vpop.f32.mrb[3].mxu0 }
 0x1df   : > { %v5648_v2 = vadd.f32 %v6996_v62, %v8618_v15  ;;  %v6998_v10 = vadd.f32 %v5389_v12, %v2194_v42 }
 0x1e0   : > { %v5682_v13 = vmax.f32 %v5650_v63, 0.0  ;;  %v5651_v36 = vadd.f32 %v6997_v0, %v8618_v15 }
 0x1e1   : > { %v5680_v17 = vmax.f32 %v5648_v2, 0.0  ;;  %v5649_v20 = vadd.f32 %v6998_v10, %v8618_v15 }
 0x1e2   : > { %5714 = vst [vmem:[%s8625_s19 + $0x10] sm:$0xff] %v5682_v13  ;;  %v5683_v34 = vmax.f32 %v5651_v36, 0.0 }
 0x1e3   : > { %5712 = vst [vmem:[%s8625_s19] sm:$0xff] %v5680_v17  ;;  %v5681_v22 = vmax.f32 %v5649_v20, 0.0  ;;  %v6965_v21 = vpop.f32.mrb[4].mxu0 }
 0x1e4   : > { %5715 = vst [vmem:[%s8625_s19 + $0x18] sm:$0xff] %v5683_v34  ;;  %v6999_v19 = vadd.f32 %v6965_v21, %v6785_v59  ;;  %v5402_v6 = vpop.f32.mrb[5].mxu0 }
 0x1e5   : > { %5713 = vst [vmem:[%s8625_s19 + $0x8] sm:$0xff] %v5681_v22  ;;  %v7000_v26 = vadd.f32 %v5402_v6, %v2207_v39  ;;  %v6966_v27 = vpop.f32.mrb[6].mxu0 }
 0x1e6   : > { %v5654_v14 = vadd.f32 %v6999_v19, %v8618_v15  ;;  %v7001_v24 = vadd.f32 %v6966_v27, %v6786_v58  ;;  %v5405_v31 = vpop.f32.mrb[7].mxu0 }
 0x1e7   : > { %v5652_v54 = vadd.f32 %v7000_v26, %v8618_v15  ;;  %v7002_v46 = vadd.f32 %v5405_v31, %v2210_v16 }
 0x1e8   : > { %v5686_v5 = vmax.f32 %v5654_v14, 0.0  ;;  %v5655_v3 = vadd.f32 %v7001_v24, %v8618_v15 }
 0x1e9   : > { %v5684_v48 = vmax.f32 %v5652_v54, 0.0  ;;  %v5653_v29 = vadd.f32 %v7002_v46, %v8618_v15 }
 0x1ea   : > { %5718 = vst [vmem:[%s8625_s19 + $0x30] sm:$0xff] %v5686_v5  ;;  %v5687_v50 = vmax.f32 %v5655_v3, 0.0 }
 0x1eb   : > { %5716 = vst [vmem:[%s8625_s19 + $0x20] sm:$0xff] %v5684_v48  ;;  %v5685_v52 = vmax.f32 %v5653_v29, 0.0  ;;  %v6969_v4 = vpop.f32.mrb[8].mxu0 }
 0x1ec   : > { %5719 = vst [vmem:[%s8625_s19 + $0x38] sm:$0xff] %v5687_v50  ;;  %v7003_v7 = vadd.f32 %v6969_v4, %v6789_v28  ;;  %v5418_v18 = vpop.f32.mrb[9].mxu0 }
 0x1ed   : > { %5717 = vst [vmem:[%s8625_s19 + $0x28] sm:$0xff] %v5685_v52  ;;  %v7004_v8 = vadd.f32 %v5418_v18, %v2223_v40  ;;  %v6970_v41 = vpop.f32.mrb[10].mxu0 }
 0x1ee   : > { %v5658_v33 = vadd.f32 %v7003_v7, %v8618_v15  ;;  %v7005_v57 = vadd.f32 %v6970_v41, %v6790_v45  ;;  %v5421_v32 = vpop.f32.mrb[11].mxu0 }
 0x1ef   : > { %v5656_v43 = vadd.f32 %v7004_v8, %v8618_v15  ;;  %v7006_v51 = vadd.f32 %v5421_v32, %v2226_v47 }
 0x1f0   : > { %v5690_v1 = vmax.f32 %v5658_v33, 0.0  ;;  %v5659_v23 = vadd.f32 %v7005_v57, %v8618_v15 }
 0x1f1   : > { %v5688_v49 = vmax.f32 %v5656_v43, 0.0  ;;  %v5657_v37 = vadd.f32 %v7006_v51, %v8618_v15 }
 0x1f2   : > { %5722 = vst [vmem:[%s8625_s19 + $0x50] sm:$0xff] %v5690_v1  ;;  %v5691_v11 = vmax.f32 %v5659_v23, 0.0 }
 0x1f3   : > { %5720 = vst [vmem:[%s8625_s19 + $0x40] sm:$0xff] %v5688_v49  ;;  %v5689_v35 = vmax.f32 %v5657_v37, 0.0  ;;  %v6973_v38 = vpop.f32.mrb[12].mxu0 }
 0x1f4   : > { %5723 = vst [vmem:[%s8625_s19 + $0x58] sm:$0xff] %v5691_v11  ;;  %v7007_v61 = vadd.f32 %v6973_v38, %v8607_v44  ;;  %v5434_v42 = vpop.f32.mrb[13].mxu0 }
 0x1f5   : > { %5721 = vst [vmem:[%s8625_s19 + $0x48] sm:$0xff] %v5689_v35  ;;  %v7008_v59 = vadd.f32 %v5434_v42, %v8609_v53  ;;  %v6974_v39 = vpop.f32.mrb[14].mxu0 }
 0x1f6   : > { %v5662_v58 = vadd.f32 %v7007_v61, %v8618_v15  ;;  %v7009_v16 = vadd.f32 %v6974_v39, %v8611_v55  ;;  %v5437_v28 = vpop.f32.mrb[15].mxu0 }
 0x1f7   : > { %v5660_v40 = vadd.f32 %v7008_v59, %v8618_v15  ;;  %v7010_v45 = vadd.f32 %v5437_v28, %v8613_v56 }
 0x1f8   : > { %v6833_v47 = vpop.f32.mrb[16].mxu1  ;;  %v5694_v44 = vmax.f32 %v5662_v58, 0.0  ;;  %v5663_v9 = vadd.f32 %v7009_v16, %v8618_v15 }
 0x1f9   : > { %v3057_v60 = vpop.f32.mrb[17].mxu1  ;;  %v5692_v25 = vmax.f32 %v5660_v40, 0.0  ;;  %v5661_v53 = vadd.f32 %v7010_v45, %v8618_v15 }
 0x1fa   : > { %5726 = vst [vmem:[%s8625_s19 + $0x70] sm:$0xff] %v5694_v44  ;;  %v6834_v62 = vpop.f32.mrb[18].mxu1  ;;  %v5695_v30 = vmax.f32 %v5663_v9, 0.0 }
 0x1fb   : > { %5724 = vst [vmem:[%s8625_s19 + $0x60] sm:$0xff] %v5692_v25  ;;  %v3060_v55 = vpop.f32.mrb[19].mxu1  ;;  %v5693_v63 = vmax.f32 %v5661_v53, 0.0  ;;  %v6977_v0 = vpop.f32.mrb[16].mxu0 }
 0x1fc   : > { %5727 = vst [vmem:[%s8625_s19 + $0x78] sm:$0xff] %v5695_v30  ;;  %v7011_v12 = vadd.f32 %v6977_v0, %v6833_v47  ;;  %v5450_v56 = vpop.f32.mrb[17].mxu0 }
 0x1fd   : > { %5725 = vst [vmem:[%s8625_s19 + $0x68] sm:$0xff] %v5693_v63  ;;  %v7012_v2 = vadd.f32 %v5450_v56, %v3057_v60  ;;  %v6978_v10 = vpop.f32.mrb[18].mxu0 }
 0x1fe   : > { %v5666_v13 = vadd.f32 %v7011_v12, %v8618_v15  ;;  %v7013_v36 = vadd.f32 %v6978_v10, %v6834_v62  ;;  %v5453_v17 = vpop.f32.mrb[19].mxu0 }
 0x1ff   : > { %v5664_v20 = vadd.f32 %v7012_v2, %v8618_v15  ;;  %v7014_v34 = vadd.f32 %v5453_v17, %v3060_v55 }
 0x200   : > { %v6837_v22 = vpop.f32.mrb[20].mxu1  ;;  %v5698_v21 = vmax.f32 %v5666_v13, 0.0  ;;  %v5667_v19 = vadd.f32 %v7013_v36, %v8618_v15 }
 0x201   : > { %v3073_v6 = vpop.f32.mrb[21].mxu1  ;;  %v5696_v26 = vmax.f32 %v5664_v20, 0.0  ;;  %v5665_v27 = vadd.f32 %v7014_v34, %v8618_v15 }
 0x202   : > { %5730 = vst [vmem:[%s8625_s19 + $0x90] sm:$0xff] %v5698_v21  ;;  %v6838_v14 = vpop.f32.mrb[22].mxu1  ;;  %v5699_v24 = vmax.f32 %v5667_v19, 0.0 }
 0x203   : > { %5728 = vst [vmem:[%s8625_s19 + $0x80] sm:$0xff] %v5696_v26  ;;  %v3076_v31 = vpop.f32.mrb[23].mxu1  ;;  %v5697_v54 = vmax.f32 %v5665_v27, 0.0  ;;  %v6981_v46 = vpop.f32.mrb[20].mxu0 }
 0x204   : > { %5731 = vst [vmem:[%s8625_s19 + $0x98] sm:$0xff] %v5699_v24  ;;  %v7015_v5 = vadd.f32 %v6981_v46, %v6837_v22  ;;  %v5466_v3 = vpop.f32.mrb[21].mxu0 }
 0x205   : > { %5729 = vst [vmem:[%s8625_s19 + $0x88] sm:$0xff] %v5697_v54  ;;  %v7016_v48 = vadd.f32 %v5466_v3, %v3073_v6  ;;  %v6982_v29 = vpop.f32.mrb[22].mxu0 }
 0x206   : > { %v5670_v50 = vadd.f32 %v7015_v5, %v8618_v15  ;;  %v7017_v52 = vadd.f32 %v6982_v29, %v6838_v14  ;;  %v5469_v4 = vpop.f32.mrb[23].mxu0 }
 0x207   : > { %v5668_v7 = vadd.f32 %v7016_v48, %v8618_v15  ;;  %v7018_v18 = vadd.f32 %v5469_v4, %v3076_v31 }
 0x208   : > { %v6841_v8 = vpop.f32.mrb[24].mxu1  ;;  %v5702_v41 = vmax.f32 %v5670_v50, 0.0  ;;  %v5671_v33 = vadd.f32 %v7017_v52, %v8618_v15 }
 0x209   : > { %v3089_v57 = vpop.f32.mrb[25].mxu1  ;;  %v5700_v32 = vmax.f32 %v5668_v7, 0.0  ;;  %v5669_v43 = vadd.f32 %v7018_v18, %v8618_v15 }
 0x20a   : > { %5734 = vst [vmem:[%s8625_s19 + $0xb0] sm:$0xff] %v5702_v41  ;;  %v6842_v51 = vpop.f32.mrb[26].mxu1  ;;  %v5703_v1 = vmax.f32 %v5671_v33, 0.0 }
 0x20b   : > { %5732 = vst [vmem:[%s8625_s19 + $0xa0] sm:$0xff] %v5700_v32  ;;  %v3092_v23 = vpop.f32.mrb[27].mxu1  ;;  %v5701_v49 = vmax.f32 %v5669_v43, 0.0  ;;  %v6985_v37 = vpop.f32.mrb[24].mxu0 }
 0x20c   : > { %5735 = vst [vmem:[%s8625_s19 + $0xb8] sm:$0xff] %v5703_v1  ;;  %v7019_v11 = vadd.f32 %v6985_v37, %v6841_v8  ;;  %v5482_v35 = vpop.f32.mrb[25].mxu0 }
 0x20d   : > { %5733 = vst [vmem:[%s8625_s19 + $0xa8] sm:$0xff] %v5701_v49  ;;  %v7020_v38 = vadd.f32 %v5482_v35, %v3089_v57  ;;  %v6986_v61 = vpop.f32.mrb[26].mxu0 }
 0x20e   : > { %v5674_v42 = vadd.f32 %v7019_v11, %v8618_v15  ;;  %v7021_v59 = vadd.f32 %v6986_v61, %v6842_v51  ;;  %v5485_v39 = vpop.f32.mrb[27].mxu0 }
 0x20f   : > { %v5672_v58 = vadd.f32 %v7020_v38, %v8618_v15  ;;  %v7022_v16 = vadd.f32 %v5485_v39, %v3092_v23 }
 0x210   : > { %v6845_v28 = vpop.f32.mrb[28].mxu1  ;;  %v5706_v40 = vmax.f32 %v5674_v42, 0.0  ;;  %v5675_v45 = vadd.f32 %v7021_v59, %v8618_v15 }
 0x211   : > { %v3105_v47 = vpop.f32.mrb[29].mxu1  ;;  %v5704_v44 = vmax.f32 %v5672_v58, 0.0  ;;  %v5673_v9 = vadd.f32 %v7022_v16, %v8618_v15 }
 0x212   : > { %5738 = vst [vmem:[%s8625_s19 + $0xd0] sm:$0xff] %v5706_v40  ;;  %v6846_v60 = vpop.f32.mrb[30].mxu1  ;;  %v5707_v25 = vmax.f32 %v5675_v45, 0.0 }
 0x213   : > { %5736 = vst [vmem:[%s8625_s19 + $0xc0] sm:$0xff] %v5704_v44  ;;  %v3108_v53 = vpop.f32.mrb[31].mxu1  ;;  %v5705_v62 = vmax.f32 %v5673_v9, 0.0  ;;  %v6989_v30 = vpop.f32.mrb[28].mxu0 }
 0x214   : > { %5739 = vst [vmem:[%s8625_s19 + $0xd8] sm:$0xff] %v5707_v25  ;;  %v7023_v55 = vadd.f32 %v6989_v30, %v6845_v28  ;;  %v5498_v63 = vpop.f32.mrb[29].mxu0 }
 0x215   : > { %5737 = vst [vmem:[%s8625_s19 + $0xc8] sm:$0xff] %v5705_v62  ;;  %v7024_v0 = vadd.f32 %v5498_v63, %v3105_v47  ;;  %v6990_v12 = vpop.f32.mrb[30].mxu0 }
 0x216   : > { %v5678_v56 = vadd.f32 %v7023_v55, %v8618_v15  ;;  %v7025_v2 = vadd.f32 %v6990_v12, %v6846_v60  ;;  %v5501_v10 = vpop.f32.mrb[31].mxu0 }
 0x217   : > { %v5676_v13 = vadd.f32 %v7024_v0, %v8618_v15  ;;  %v7026_v36 = vadd.f32 %v5501_v10, %v3108_v53 }
 0x218   : > { %v5710_v17 = vmax.f32 %v5678_v56, 0.0  ;;  %v5679_v20 = vadd.f32 %v7025_v2, %v8618_v15 }
 0x219   : > { %v5708_v34 = vmax.f32 %v5676_v13, 0.0  ;;  %v5677_v22 = vadd.f32 %v7026_v36, %v8618_v15 }
 0x21a   : > { %5742 = vst [vmem:[%s8625_s19 + $0xf0] sm:$0xff] %v5710_v17  ;;  %v5711_v21 = vmax.f32 %v5679_v20, 0.0 }
 0x21b   : > { %5740 = vst [vmem:[%s8625_s19 + $0xe0] sm:$0xff] %v5708_v34  ;;  %v5709_v19 = vmax.f32 %v5677_v22, 0.0 }
 0x21c   : > { %5743 = vst [vmem:[%s8625_s19 + $0xf8] sm:$0xff] %v5711_v21 }
 0x21d   : > { %5741 = vst [vmem:[%s8625_s19 + $0xe8] sm:$0xff] %v5709_v19 }
 0x21e PF: > { %s13_s14 = sadd.s32 1, %s7366_s14   ;;  %s8711_s12 = smov %s7362_s13 }
 0x21f   : > { %p10_p5 = scmp.ge.s32.totalorder %s13_s14, 4   ;;  %s8712_s13 = smov %s8714_s15 }
 0x221   :  { %12 = sbr.rel (!%p10_p5) target bundleno = 2 (0x2), region = 78 }

// kernel: decoder_block_forward.3
= control target key start
LH: loop header
LB: loop body
LE: loop exit
PB: predicated region body
PF: predicated region fallthrough
CT: control target
= control target key end

     0   :  { %s14288_s12 = smov 0   ;;  %s14290_s13 = smov 0   ;;  %s16740_s0 = inlined_call_operand.vmem [shape: bf16[2,18,18,64], index: 0, kind: input, shape index: {}]   ;;  %s16741_s1 = inlined_call_operand.vmem [shape: bf16[16,64,128], index: 1, kind: input, shape index: {}]   ;;  %s16742_s2 = inlined_call_operand.vmem [shape: f32[1,128], index: 2, kind: input, shape index: {}]   ;;  %s16743_s3 = inlined_call_operand.vmem [shape: f32[2,64,16,128], index: 3, kind: output, shape index: {}]  }
   0x1   :  { %s14292_s14 = smov 0  }
   0x2 LB: > { %s25_s15 = sadd.s32 1, %s14262_s13  ;;  %p11349_p0 = scmp.ge.s32.totalorder %s14266_s14, 1  ;;  %s14266_s14 = sphi %s14292_s14, %s13_s14   ;;  %s14262_s13 = sphi %s14290_s13, %s16763_s13   ;;  %s14258_s12 = sphi %s14288_s12, %s16762_s12  }
   0x3   : > { %p27_p1 = scmp.ge.s32.totalorder %s25_s15, 2  ;;  %p168_p2 = scmp.lt.s32.totalorder %s14266_s14, 3 }
   0x5   : > { %s16765_s15 = smov (%p27_p1, %s25_s15), 0  ;;  %p169_p3 = pnand %p11349_p0, %p168_p2 }
   0x7   : > { %172 = sbr.rel (%p169_p3) target bundleno = 935 (0x3a7), region = 32 }
   0xe   : > { %v14113_v0 = vld [vmem:[%s16741_s1] sm:$0xff]   ;;  %p202_p4 = scmp.lt.s32.totalorder %s14258_s12, 1  ;;  %v14115_v2 = vld [vmem:[%s16741_s1 + $0x8] sm:$0xff]   ;;  %v14117_v4 = vld [vmem:[%s16741_s1 + $0x10] sm:$0xff]   ;;  %vm367_vm0 = vcmask 523264   ;;  %vm3684_vm4 = vcmask 1042432  }
   0xf   : > { %v14114_v1 = vld [vmem:[%s16741_s1 + $0x80] sm:$0xff]   ;;  %13064 = vmatprep.subr.bf16.mxu0 %v14113_v0  ;;  %v14116_v3 = vld [vmem:[%s16741_s1 + $0x88] sm:$0xff]   ;;  %v14118_v5 = vld [vmem:[%s16741_s1 + $0x90] sm:$0xff]   ;;  %vm657_vm1 = vsmask.f32 3328  ;;  %vm3685_vm5 = vcmask 1046532  }
  0x10   : > { %s16767_s12 = smov (!%p202_p4, %s14258_s12), 1  ;;  %13224 = vmatprep.subr.bf16.mxu1 %v14114_v1  ;;  %13065 = vmatpush3.bf16.msra.mxu0 %v14113_v0  ;;  %v14119_v6 = vld [vmem:[%s16741_s1 + $0x18] sm:$0xff]   ;;  %v14123_v9 = vld [vmem:[%s16741_s1 + $0x20] sm:$0xff]   ;;  %vm658_vm2 = vsmask.f32 7440  ;;  %v14129_v62 = vld [vmem:[%s16741_s1 + $0x28] sm:$0xff]  }
  0x11   : > { %13225 = vmatpush3.bf16.msra.mxu1 %v14114_v1  ;;  %13066 = vmatprep.subr.bf16.mxu0 %v14115_v2  ;;  %s14088_s26 = smul.u32 216, %s16767_s12  ;;  %v14120_v8 = vld [vmem:[%s16741_s1 + $0x98] sm:$0xff]   ;;  %v14350_v19 = vld [vmem:[%s16741_s1 + $0xa0] sm:$0xff]   ;;  %vm14358_vm3 = vmor %vm657_vm1, %vm658_vm2  ;;  %s12743_s17 = sshll.u32 %s16767_s12, 10 }
  0x12   : > { %13226 = vmatprep.subr.bf16.mxu1 %v14116_v3  ;;  %vm14559_vm6 = vmor %vm3684_vm4, %vm3685_vm5  ;;  %s15982_s24 = scalar_lea.vmem %s16743_s3, %s12743_s17 }
  0x13   : > { %s14333_s6 = scalar_lea.vmem %s16740_s0, %s14088_s26 }
  0x14   : > { %13067 = vmatpush3.bf16.msra.mxu0 %v14115_v2  ;;  %v14121_v7 = vld [vmem:[%s14333_s6] sm:$0xff]   ;;  %v14122_v11 = vld [vmem:[%s14333_s6 + $0xc] sm:$0xff]   ;;  %v2836_v13 = vld [vmem:[%s14333_s6 + $0x8] sm:$0x1] }
  0x15   : > { %13227 = vmatpush3.bf16.msra.mxu1 %v14116_v3  ;;  %13068 = vmatprep.subr.bf16.mxu0 %v14117_v4  ;;  %v2834_v10 = vld [vmem:[%s14333_s6] sm:$0xf]  ;;  %v2835_v12 = vld [vmem:[%s14333_s6 + $0x4] sm:$0xf]  ;;  %v2902_v18 = vshll.u32 %v2836_v13, 16  ;;  %v14125_v33 = vld [vmem:[%s14333_s6 + $0x18] sm:$0xff]  }
  0x16   : > { %13228 = vmatprep.subr.bf16.mxu1 %v14118_v5  ;;  %13072 = vmatprep.mubr.msk.bf16.mxu0 %vm367_vm0, %v14121_v7  ;;  %v2883_v14 = vshrl.u32 %v2834_v10, 16  ;;  %v2886_v15 = vshll.u32 %v2834_v10, 16  ;;  %v2892_v16 = vshll.u32 %v2835_v12, 16  ;;  %v2896_v17 = vshrl.u32 %v2835_v12, 16  ;;  %v2837_v22 = vld [vmem:[%s14333_s6 + $0xc] sm:$0xf] }
  0x17   : > { %v2904_v25 = vrot.slane %v2902_v18, 5  ;;  %v2838_v26 = vld [vmem:[%s14333_s6 + $0x10] sm:$0xf]  ;;  %v2907_v27 = vshrl.u32 %v2837_v22, 16  ;;  %v2839_v29 = vld [vmem:[%s14333_s6 + $0x14] sm:$0x1] }
  0x18   : > { %13069 = vmatpush3.bf16.msra.mxu0 %v14117_v4  ;;  %v2885_v20 = vrot.slane %v2883_v14, 4  ;;  %v2888_v21 = vrot.slane %v2886_v15, 5  ;;  %v2894_v23 = vrot.slane %v2892_v16, 5  ;;  %v2898_v24 = vrot.slane %v2896_v17, 4  ;;  %v14126_v47 = vld [vmem:[%s14333_s6 + $0x24] sm:$0xff]   ;;  %v14127_v56 = vld [vmem:[%s14333_s6 + $0x30] sm:$0xff]  }
  0x19   : > { %13229 = vmatpush3.bf16.msra.mxu1 %v14118_v5  ;;  %13070 = vmatprep.subr.bf16.mxu0 %v14119_v6  ;;  %v2910_v30 = vshll.u32 %v2837_v22, 16  ;;  %v2916_v31 = vshll.u32 %v2838_v26, 16  ;;  %v2920_v32 = vshrl.u32 %v2838_v26, 16  ;;  %v2909_v36 = vrot.slane %v2907_v27, 4  ;;  %v2840_v48 = vld [vmem:[%s14333_s6 + $0x18] sm:$0xf] }
  0x1a   : > { %13230 = vmatprep.subr.bf16.mxu1 %v14120_v8  ;;  %v2889_v28 = vor.u32 %v2888_v21, %v2885_v20  ;;  %v2899_v35 = vor.u32 %v2898_v24, %v2894_v23  ;;  %v2926_v37 = vshll.u32 %v2839_v29, 16  ;;  %v2841_v49 = vld [vmem:[%s14333_s6 + $0x1c] sm:$0xf]  ;;  %v2842_v50 = vld [vmem:[%s14333_s6 + $0x20] sm:$0x1]  ;;  %v2931_v52 = vshrl.u32 %v2840_v48, 16 }
  0x1b   : > { %v2912_v39 = vrot.slane %v2910_v30, 5  ;;  %v2918_v40 = vrot.slane %v2916_v31, 5  ;;  %v2922_v41 = vrot.slane %v2920_v32, 4  ;;  %v2934_v53 = vshll.u32 %v2840_v48, 16  ;;  %v2843_v55 = vld [vmem:[%s14333_s6 + $0x24] sm:$0xf] }
  0x1c   : > { %13071 = vmatpush3.bf16.msra.mxu0 %v14119_v6  ;;  %v2890_v38 = vrot.slane %v2889_v28, 4  ;;  %v2900_v42 = vrot.slane %v2899_v35, 4  ;;  %v2928_v43 = vrot.slane %v2926_v37, 5  ;;  %v2940_v54 = vshll.u32 %v2841_v49, 16  ;;  %v2844_v61 = vld [vmem:[%s14333_s6 + $0x28] sm:$0xf] }
  0x1d   : > { %13231 = vmatpush3.bf16.msra.mxu1 %v14120_v8  ;;  %13104 = vmatprep.subr.bf16.mxu0 %v14123_v9  ;;  %v2913_v45 = vor.u32 %v2912_v39, %v2909_v36  ;;  %v2923_v46 = vor.u32 %v2922_v41, %v2918_v40  ;;  %v2944_v60 = vshrl.u32 %v2841_v49, 16  ;;  %v2933_v63 = vrot.slane %v2931_v52, 4  ;;  %v2845_v3 = vld [vmem:[%s14333_s6 + $0x2c] sm:$0x1]  ;;  %v14128_v24 = vld [vmem:[%s14333_s6 + $0x3c] sm:$0xff]  }
  0x1e   : > { %13264 = vmatprep.subr.bf16.mxu1 %v14350_v19  ;;  %v2895_v44 = vsel %vm14358_vm3, %v2890_v38, %v2894_v23  ;;  %v2905_v51 = vsel %vm14358_vm3, %v2900_v42, %v2904_v25  ;;  %v2936_v0 = vrot.slane %v2934_v53, 5  ;;  %v2942_v1 = vrot.slane %v2940_v54, 5  ;;  %v14130_v16 = vld [vmem:[%s16741_s1 + $0xa8] sm:$0xff]   ;;  %v2846_v25 = vld [vmem:[%s14333_s6 + $0x30] sm:$0xf] }
  0x1f   : > { %13073 = vmatmul.mubr.msk.bf16.vlgmr.msra.gmra.mrb[0].mxu0 %vm367_vm0, %v14122_v11  ;;  %v11610_v57 = vcombine.low %v2895_v44, %v2905_v51  ;;  %v2914_v58 = vrot.slane %v2913_v45, 4  ;;  %v2924_v59 = vrot.slane %v2923_v46, 4  ;;  %v2950_v2 = vshll.u32 %v2842_v50, 16  ;;  %v2847_v29 = vld [vmem:[%s14333_s6 + $0x34] sm:$0xf]  ;;  %v14131_v41 = vld [vmem:[%s14333_s6 + $0x48] sm:$0xff]  }
  0x20   : > { %13105 = vmatpush3.bf16.msra.mxu0 %v14123_v9  ;;  %13076 = vmatprep.mubr.msk.bf16.mxu0 %vm367_vm0, %v14125_v33  ;;  %v2946_v6 = vrot.slane %v2944_v60, 4  ;;  %v2955_v7 = vshrl.u32 %v2843_v55, 16  ;;  %v2937_v9 = vor.u32 %v2936_v0, %v2933_v63  ;;  %v2958_v11 = vshll.u32 %v2843_v55, 16  ;;  %v2848_v30 = vld [vmem:[%s14333_s6 + $0x38] sm:$0x1] }
  0x21   : > { %13232 = vmatprep.mubr.msk.bf16.mxu1 %vm367_vm0, %v11610_v57  ;;  %v2919_v4 = vsel %vm14358_vm3, %v2914_v58, %v2918_v40  ;;  %v2929_v5 = vsel %vm14358_vm3, %v2924_v59, %v2928_v43  ;;  %13106 = vmatprep.subr.bf16.mxu0 %v14129_v62  ;;  %v2952_v10 = vrot.slane %v2950_v2, 5  ;;  %v2964_v14 = vshll.u32 %v2844_v61, 16  ;;  %v2849_v40 = vld [vmem:[%s14333_s6 + $0x3c] sm:$0xf]  ;;  %v2850_v46 = vld [vmem:[%s14333_s6 + $0x40] sm:$0xf] }
  0x22   : > { %v11611_v8 = vcombine.low %v2919_v4, %v2929_v5  ;;  %v2947_v12 = vor.u32 %v2946_v6, %v2942_v1  ;;  %v2957_v13 = vrot.slane %v2955_v7, 4  ;;  %v2968_v15 = vshrl.u32 %v2844_v61, 16  ;;  %v2851_v49 = vld [vmem:[%s14333_s6 + $0x44] sm:$0x1]  ;;  %v14132_v0 = vld [vmem:[%s14333_s6 + $0x54] sm:$0xff]  }
  0x23   : > { %v2938_v17 = vrot.slane %v2937_v9, 4  ;;  %v2960_v18 = vrot.slane %v2958_v11, 5  ;;  %v2974_v20 = vshll.u32 %v2845_v3, 16  ;;  %v2966_v22 = vrot.slane %v2964_v14, 5  ;;  %v2853_v4 = vld [vmem:[%s14333_s6 + $0x4c] sm:$0xf] }
  0x24   : > { %13107 = vmatpush3.bf16.msra.mxu0 %v14129_v62  ;;  %13233 = vmatmul.mubr.msk.bf16.vlgmr.msra.gmra.mrb[0].mxu1 %vm367_vm0, %v11611_v8  ;;  %v2948_v21 = vrot.slane %v2947_v12, 4  ;;  %v2970_v23 = vrot.slane %v2968_v15, 4  ;;  %v2979_v31 = vshrl.u32 %v2846_v25, 16  ;;  %v2982_v33 = vshll.u32 %v2846_v25, 16  ;;  %v2854_v5 = vld [vmem:[%s14333_s6 + $0x50] sm:$0x1] }
  0x25   : > { %13265 = vmatpush3.bf16.msra.mxu1 %v14350_v19  ;;  %v2943_v26 = vsel %vm14358_vm3, %v2938_v17, %v2942_v1  ;;  %v2961_v27 = vor.u32 %v2960_v18, %v2957_v13  ;;  %v2976_v28 = vrot.slane %v2974_v20, 5  ;;  %v2988_v35 = vshll.u32 %v2847_v29, 16  ;;  %v2852_v1 = vld [vmem:[%s14333_s6 + $0x48] sm:$0xf]  ;;  %v14133_v7 = vld [vmem:[%s14333_s6 + $0x60] sm:$0xff]   ;;  %v14135_v13 = vld [vmem:[%s16741_s1 + $0x30] sm:$0xff]  }
  0x26   : > { %13266 = vmatprep.subr.bf16.mxu1 %v14130_v16  ;;  %v2953_v19 = vsel %vm14358_vm3, %v2948_v21, %v2952_v10  ;;  %v2971_v32 = vor.u32 %v2970_v23, %v2966_v22  ;;  %v2981_v38 = vrot.slane %v2979_v31, 4  ;;  %v2992_v39 = vshrl.u32 %v2847_v29, 16  ;;  %v2855_v12 = vld [vmem:[%s14333_s6 + $0x54] sm:$0xf]  ;;  %v2856_v18 = vld [vmem:[%s14333_s6 + $0x58] sm:$0xf]  ;;  %13108 = vmatprep.subr.bf16.mxu0 %v14135_v13 }
  0x27   : > { %13077 = vmatmul.mubr.msk.bf16.gmra.mrb[4].mxu0 %vm367_vm0, %v14126_v47  ;;  %v11612_v36 = vcombine.low %v2943_v26, %v2953_v19  ;;  %v2962_v37 = vrot.slane %v2961_v27, 4  ;;  %v2984_v43 = vrot.slane %v2982_v33, 5  ;;  %v2990_v44 = vrot.slane %v2988_v35, 5  ;;  %v14136_v20 = vld [vmem:[%s16741_s1 + $0xb0] sm:$0xff]   ;;  %v2857_v25 = vld [vmem:[%s14333_s6 + $0x5c] sm:$0x1] }
  0x28   : > { %13080 = vmatprep.mubr.msk.bf16.mxu0 %vm367_vm0, %v14127_v56  ;;  %v2972_v42 = vrot.slane %v2971_v32, 4  ;;  %v2998_v45 = vshll.u32 %v2848_v30, 16  ;;  %v2994_v48 = vrot.slane %v2992_v39, 4  ;;  %v3003_v50 = vshrl.u32 %v2849_v40, 16  ;;  %13109 = vmatpush3.bf16.msra.mxu0 %v14135_v13 }
  0x29   : > { %13267 = vmatpush3.bf16.msra.mxu1 %v14130_v16  ;;  %13236 = vmatprep.mubr.msk.bf16.mxu1 %vm367_vm0, %v11612_v36  ;;  %v2967_v47 = vsel %vm14358_vm3, %v2962_v37, %v2966_v22  ;;  %v3006_v51 = vshll.u32 %v2849_v40, 16  ;;  %v2985_v53 = vor.u32 %v2984_v43, %v2981_v38  ;;  %v3012_v55 = vshll.u32 %v2850_v46, 16 }
  0x2a   : > { %v2977_v52 = vsel %vm14358_vm3, %v2972_v42, %v2976_v28  ;;  %v3000_v54 = vrot.slane %v2998_v45, 5  ;;  %v2995_v57 = vor.u32 %v2994_v48, %v2990_v44  ;;  %v3005_v58 = vrot.slane %v3003_v50, 4  ;;  %13268 = vmatprep.subr.bf16.mxu1 %v14136_v20 }
  0x2b   : > { %v11613_v56 = vcombine.low %v2967_v47, %v2977_v52  ;;  %v3008_v59 = vrot.slane %v3006_v51, 5  ;;  %v2986_v60 = vrot.slane %v2985_v53, 4  ;;  %v3014_v61 = vrot.slane %v3012_v55, 5  ;;  %v2858_v47 = vld [vmem:[%s14333_s6 + $0x60] sm:$0xf] }
  0x2c   : > { %v3016_v62 = vshrl.u32 %v2850_v46, 16  ;;  %v3022_v63 = vshll.u32 %v2851_v49, 16  ;;  %v2996_v2 = vrot.slane %v2995_v57, 4  ;;  %v3027_v6 = vshrl.u32 %v2852_v1, 16  ;;  %v14134_v46 = vld [vmem:[%s14333_s6 + $0x6c] sm:$0xff]  }
  0x2d   : > { %13237 = vmatmul.mubr.msk.bf16.gmra.mrb[4].mxu1 %vm367_vm0, %v11613_v56  ;;  %v3009_v3 = vor.u32 %v3008_v59, %v3005_v58  ;;  %v2991_v8 = vsel %vm14358_vm3, %v2986_v60, %v2990_v44  ;;  %v3030_v11 = vshll.u32 %v2852_v1, 16  ;;  %v3036_v17 = vshll.u32 %v2853_v4, 16  ;;  %v2859_v51 = vld [vmem:[%s14333_s6 + $0x64] sm:$0xf]  ;;  %v2860_v52 = vld [vmem:[%s14333_s6 + $0x68] sm:$0x1] }
  0x2e   : > { %v3018_v9 = vrot.slane %v3016_v62, 4  ;;  %v3024_v10 = vrot.slane %v3022_v63, 5  ;;  %v3001_v14 = vsel %vm14358_vm3, %v2996_v2, %v3000_v54  ;;  %v3029_v16 = vrot.slane %v3027_v6, 4  ;;  %13269 = vmatpush3.bf16.msra.mxu1 %v14136_v20  ;;  %v14137_v58 = vld [vmem:[%s14333_s6 + $0x78] sm:$0xff]   ;;  %v14138_v20 = vld [vmem:[%s14333_s6 + $0x84] sm:$0xff]  }
  0x2f   : > { %13081 = vmatmul.mubr.msk.bf16.gmra.mrb[8].mxu0 %vm367_vm0, %v14128_v24  ;;  %v3010_v15 = vrot.slane %v3009_v3, 4  ;;  %v11614_v21 = vcombine.low %v2991_v8, %v3001_v14  ;;  %v3032_v23 = vrot.slane %v3030_v11, 5  ;;  %v3040_v24 = vshrl.u32 %v2853_v4, 16  ;;  %v14141_v63 = vld [vmem:[%s16741_s1 + $0x38] sm:$0xff]   ;;  %v2861_v4 = vld [vmem:[%s14333_s6 + $0x6c] sm:$0xf] }
  0x30   : > { %13084 = vmatprep.mubr.msk.bf16.mxu0 %vm367_vm0, %v14131_v41  ;;  %v3019_v22 = vor.u32 %v3018_v9, %v3014_v61  ;;  %v3038_v27 = vrot.slane %v3036_v17, 5  ;;  %v3046_v28 = vshll.u32 %v2854_v5, 16  ;;  %v3051_v29 = vshrl.u32 %v2855_v12, 16  ;;  %v14142_v5 = vld [vmem:[%s16741_s1 + $0xb8] sm:$0xff]   ;;  %v2862_v9 = vld [vmem:[%s14333_s6 + $0x70] sm:$0xf]  ;;  %13110 = vmatprep.subr.bf16.mxu0 %v14141_v63 }
  0x31   : > { %v3015_v26 = vsel %vm14358_vm3, %v3010_v15, %v3014_v61  ;;  %13240 = vmatprep.mubr.msk.bf16.mxu1 %vm367_vm0, %v11614_v21  ;;  %v3033_v31 = vor.u32 %v3032_v23, %v3029_v16  ;;  %v3042_v19 = vrot.slane %v3040_v24, 4  ;;  %v3054_v32 = vshll.u32 %v2855_v12, 16  ;;  %13270 = vmatprep.subr.bf16.mxu1 %v14142_v5 }
  0x32   : > { %v3020_v30 = vrot.slane %v3019_v22, 4  ;;  %v3048_v33 = vrot.slane %v3046_v28, 5  ;;  %v3053_v35 = vrot.slane %v3051_v29, 4  ;;  %v3060_v36 = vshll.u32 %v2856_v18, 16  ;;  %13111 = vmatpush3.bf16.msra.mxu0 %v14141_v63  ;;  %13271 = vmatpush3.bf16.msra.mxu1 %v14142_v5 }
  0x33   : > { %v3064_v37 = vshrl.u32 %v2856_v18, 16  ;;  %v3034_v39 = vrot.slane %v3033_v31, 4  ;;  %v3043_v40 = vor.u32 %v3042_v19, %v3038_v27  ;;  %v3056_v41 = vrot.slane %v3054_v32, 5 }
  0x34   : > { %v3025_v38 = vsel %vm14358_vm3, %v3020_v30, %v3024_v10  ;;  %v3062_v43 = vrot.slane %v3060_v36, 5  ;;  %v3070_v45 = vshll.u32 %v2857_v25, 16  ;;  %v3075_v53 = vshrl.u32 %v2858_v47, 16  ;;  %v2863_v10 = vld [vmem:[%s14333_s6 + $0x74] sm:$0x1] }
  0x35   : > { %v11615_v42 = vcombine.low %v3015_v26, %v3025_v38  ;;  %v3066_v44 = vrot.slane %v3064_v37, 4  ;;  %v3039_v48 = vsel %vm14358_vm3, %v3034_v39, %v3038_v27  ;;  %v3044_v49 = vrot.slane %v3043_v40, 4  ;;  %v2864_v25 = vld [vmem:[%s14333_s6 + $0x78] sm:$0xf]  ;;  %v14139_v26 = vld [vmem:[%s14333_s6 + $0x90] sm:$0xff]  }
  0x36   : > { %v3057_v50 = vor.u32 %v3056_v41, %v3053_v35  ;;  %v3072_v55 = vrot.slane %v3070_v45, 5  ;;  %v3078_v56 = vshll.u32 %v2858_v47, 16  ;;  %v3084_v57 = vshll.u32 %v2859_v51, 16  ;;  %v2865_v30 = vld [vmem:[%s14333_s6 + $0x7c] sm:$0xf] }
  0x37   : > { %13085 = vmatmul.mubr.msk.bf16.gmra.mrb[12].mxu0 %vm367_vm0, %v14132_v0  ;;  %13241 = vmatmul.mubr.msk.bf16.gmra.mrb[8].mxu1 %vm367_vm0, %v11615_v42  ;;  %v3067_v54 = vor.u32 %v3066_v44, %v3062_v43  ;;  %v3049_v59 = vsel %vm14358_vm3, %v3044_v49, %v3048_v33  ;;  %v3077_v61 = vrot.slane %v3075_v53, 4  ;;  %v3088_v62 = vshrl.u32 %v2859_v51, 16  ;;  %v2866_v35 = vld [vmem:[%s14333_s6 + $0x80] sm:$0x1]  ;;  %v2867_v37 = vld [vmem:[%s14333_s6 + $0x84] sm:$0xf] }
  0x38   : > { %13088 = vmatprep.mubr.msk.bf16.mxu0 %vm367_vm0, %v14133_v7  ;;  %v3058_v60 = vrot.slane %v3057_v50, 4  ;;  %v11616_v0 = vcombine.low %v3039_v48, %v3049_v59  ;;  %v3080_v2 = vrot.slane %v3078_v56, 5  ;;  %v3086_v3 = vrot.slane %v3084_v57, 5  ;;  %v2868_v42 = vld [vmem:[%s14333_s6 + $0x88] sm:$0xf] }
  0x39   : > { %v3068_v1 = vrot.slane %v3067_v54, 4  ;;  %v3090_v7 = vrot.slane %v3088_v62, 4  ;;  %v3094_v8 = vshll.u32 %v2860_v52, 16  ;;  %v3099_v13 = vshrl.u32 %v2861_v4, 16  ;;  %v2869_v47 = vld [vmem:[%s14333_s6 + $0x8c] sm:$0x1] }
  0x3a   : > { %v3063_v6 = vsel %vm14358_vm3, %v3058_v60, %v3062_v43  ;;  %13244 = vmatprep.mubr.msk.bf16.mxu1 %vm367_vm0, %v11616_v0  ;;  %v3081_v12 = vor.u32 %v3080_v2, %v3077_v61  ;;  %v3102_v14 = vshll.u32 %v2861_v4, 16  ;;  %v3108_v18 = vshll.u32 %v2862_v9, 16  ;;  %v14140_v60 = vld [vmem:[%s14333_s6 + $0x9c] sm:$0xff]  }
  0x3b   : > { %v3073_v11 = vsel %vm14358_vm3, %v3068_v1, %v3072_v55  ;;  %v3091_v16 = vor.u32 %v3090_v7, %v3086_v3  ;;  %v3096_v17 = vrot.slane %v3094_v8, 5  ;;  %v3101_v22 = vrot.slane %v3099_v13, 4  ;;  %v14143_v1 = vld [vmem:[%s14333_s6 + $0xa8] sm:$0xff]   ;;  %v2871_v7 = vld [vmem:[%s14333_s6 + $0x94] sm:$0xf] }
  0x3c   : > { %v11617_v15 = vcombine.low %v3063_v6, %v3073_v11  ;;  %v3082_v21 = vrot.slane %v3081_v12, 4  ;;  %v3104_v23 = vrot.slane %v3102_v14, 5  ;;  %v3112_v24 = vshrl.u32 %v2862_v9, 16  ;;  %v2870_v6 = vld [vmem:[%s14333_s6 + $0x90] sm:$0xf] }
  0x3d   : > { %v3092_v27 = vrot.slane %v3091_v16, 4  ;;  %v3110_v28 = vrot.slane %v3108_v18, 5  ;;  %v3118_v29 = vshll.u32 %v2863_v10, 16  ;;  %v3123_v31 = vshrl.u32 %v2864_v25, 16  ;;  %v2872_v11 = vld [vmem:[%s14333_s6 + $0x98] sm:$0x1] }
  0x3e   : > { %v3087_v19 = vsel %vm14358_vm3, %v3082_v21, %v3086_v3  ;;  %v3105_v32 = vor.u32 %v3104_v23, %v3101_v22  ;;  %v3114_v33 = vrot.slane %v3112_v24, 4  ;;  %v3126_v36 = vshll.u32 %v2864_v25, 16  ;;  %v2873_v22 = vld [vmem:[%s14333_s6 + $0x9c] sm:$0xf]  ;;  %v14495_v23 = vld [vmem:[%s16741_s1 + $0x40] sm:$0xff]  }
  0x3f   : > { %13089 = vmatmul.mubr.msk.bf16.gmra.mrb[16].mxu0 %vm367_vm0, %v14134_v46  ;;  %13245 = vmatmul.mubr.msk.bf16.gmra.mrb[12].mxu1 %vm367_vm0, %v11617_v15  ;;  %v3097_v38 = vsel %vm14358_vm3, %v3092_v27, %v3096_v17  ;;  %v3120_v39 = vrot.slane %v3118_v29, 5  ;;  %v3125_v40 = vrot.slane %v3123_v31, 4  ;;  %v3132_v41 = vshll.u32 %v2865_v30, 16  ;;  %v14504_v29 = vld [vmem:[%s16741_s1 + $0xc0] sm:$0xff]  }
  0x40   : > { %13092 = vmatprep.mubr.msk.bf16.mxu0 %vm367_vm0, %v14137_v58  ;;  %v11618_v43 = vcombine.low %v3087_v19, %v3097_v38  ;;  %v3106_v44 = vrot.slane %v3105_v32, 4  ;;  %v3115_v45 = vor.u32 %v3114_v33, %v3110_v28  ;;  %v3128_v46 = vrot.slane %v3126_v36, 5  ;;  %v2875_v33 = vld [vmem:[%s14333_s6 + $0xa4] sm:$0x1]  ;;  %13144 = vmatprep.subr.bf16.mxu0 %v14495_v23 }
  0x41   : > { %v3134_v48 = vrot.slane %v3132_v41, 5  ;;  %v3136_v49 = vshrl.u32 %v2865_v30, 16  ;;  %v3142_v50 = vshll.u32 %v2866_v35, 16  ;;  %v3147_v51 = vshrl.u32 %v2867_v37, 16  ;;  %13304 = vmatprep.subr.bf16.mxu1 %v14504_v29 }
  0x42   : > { %13248 = vmatprep.mubr.msk.bf16.mxu1 %vm367_vm0, %v11618_v43  ;;  %v3111_v52 = vsel %vm14358_vm3, %v3106_v44, %v3110_v28  ;;  %v3116_v53 = vrot.slane %v3115_v45, 4  ;;  %v3129_v54 = vor.u32 %v3128_v46, %v3125_v40  ;;  %v3150_v55 = vshll.u32 %v2867_v37, 16  ;;  %v2874_v28 = vld [vmem:[%s14333_s6 + $0xa0] sm:$0xf] }
  0x43   : > { %v3138_v56 = vrot.slane %v3136_v49, 4  ;;  %v3144_v57 = vrot.slane %v3142_v50, 5  ;;  %v3149_v58 = vrot.slane %v3147_v51, 4  ;;  %v3156_v59 = vshll.u32 %v2868_v42, 16 }
  0x44   : > { %v3121_v61 = vsel %vm14358_vm3, %v3116_v53, %v3120_v39  ;;  %v3130_v62 = vrot.slane %v3129_v54, 4  ;;  %v3152_v63 = vrot.slane %v3150_v55, 5  ;;  %v3160_v0 = vshrl.u32 %v2868_v42, 16  ;;  %v2877_v53 = vld [vmem:[%s14333_s6 + $0xac] sm:$0xf] }
  0x45   : > { %v11619_v2 = vcombine.low %v3111_v52, %v3121_v61  ;;  %v3139_v3 = vor.u32 %v3138_v56, %v3134_v48  ;;  %v3158_v4 = vrot.slane %v3156_v59, 5  ;;  %v3166_v5 = vshll.u32 %v2869_v47, 16  ;;  %v14144_v47 = vld [vmem:[%s14333_s6 + $0xb4] sm:$0xff]   ;;  %v2878_v56 = vld [vmem:[%s14333_s6 + $0xb0] sm:$0x1] }
  0x46   : > { %v3135_v8 = vsel %vm14358_vm3, %v3130_v62, %v3134_v48  ;;  %v3153_v9 = vor.u32 %v3152_v63, %v3149_v58  ;;  %v3162_v10 = vrot.slane %v3160_v0, 4  ;;  %v3171_v12 = vshrl.u32 %v2870_v6, 16  ;;  %v2876_v48 = vld [vmem:[%s14333_s6 + $0xa8] sm:$0xf]  ;;  %v2879_v63 = vld [vmem:[%s14333_s6 + $0xb4] sm:$0xf] }
  0x47   : > { %13093 = vmatmul.mubr.msk.bf16.gmra.mrb[20].mxu0 %vm367_vm0, %v14138_v20  ;;  %13249 = vmatmul.mubr.msk.bf16.gmra.mrb[16].mxu1 %vm367_vm0, %v11619_v2  ;;  %v3140_v13 = vrot.slane %v3139_v3, 4  ;;  %v3168_v14 = vrot.slane %v3166_v5, 5  ;;  %v3174_v15 = vshll.u32 %v2870_v6, 16  ;;  %v3180_v16 = vshll.u32 %v2871_v7, 16 }
  0x48   : > { %13096 = vmatprep.mubr.msk.bf16.mxu0 %vm367_vm0, %v14139_v26  ;;  %v3154_v17 = vrot.slane %v3153_v9, 4  ;;  %v3163_v18 = vor.u32 %v3162_v10, %v3158_v4  ;;  %v3173_v20 = vrot.slane %v3171_v12, 4  ;;  %v3184_v21 = vshrl.u32 %v2871_v7, 16 }
  0x49   : > { %v3145_v24 = vsel %vm14358_vm3, %v3140_v13, %v3144_v57  ;;  %v3176_v25 = vrot.slane %v3174_v15, 5  ;;  %v3182_v26 = vrot.slane %v3180_v16, 5  ;;  %v3190_v27 = vshll.u32 %v2872_v11, 16  ;;  %v2881_v11 = vld [vmem:[%s14333_s6 + $0xbc] sm:$0x1] }
  0x4a   : > { %v11620_v30 = vcombine.low %v3135_v8, %v3145_v24  ;;  %v3159_v31 = vsel %vm14358_vm3, %v3154_v17, %v3158_v4  ;;  %v3164_v19 = vrot.slane %v3163_v18, 4  ;;  %v3186_v32 = vrot.slane %v3184_v21, 4  ;;  %v2880_v4 = vld [vmem:[%s14333_s6 + $0xb8] sm:$0xf]  ;;  %v609_v18 = vld [vmem:[%s14333_s6] sm:$0xf] }
  0x4b   : > { %v3177_v35 = vor.u32 %v3176_v25, %v3173_v20  ;;  %v3192_v36 = vrot.slane %v3190_v27, 5  ;;  %v3195_v37 = vshrl.u32 %v2873_v22, 16  ;;  %v3198_v38 = vshll.u32 %v2873_v22, 16  ;;  %v610_v25 = vld [vmem:[%s14333_s6 + $0x4] sm:$0xf] }
  0x4c   : > { %13252 = vmatprep.mubr.msk.bf16.mxu1 %vm367_vm0, %v11620_v30  ;;  %v3169_v39 = vsel %vm14358_vm3, %v3164_v19, %v3168_v14  ;;  %v3187_v40 = vor.u32 %v3186_v32, %v3182_v26  ;;  %v3204_v41 = vshll.u32 %v2874_v28, 16  ;;  %v3208_v42 = vshrl.u32 %v2874_v28, 16  ;;  %v611_v32 = vld [vmem:[%s14333_s6 + $0x8] sm:$0x1] }
  0x4d   : > { %v11621_v43 = vcombine.low %v3159_v31, %v3169_v39  ;;  %v3178_v44 = vrot.slane %v3177_v35, 4  ;;  %v3197_v45 = vrot.slane %v3195_v37, 4  ;;  %v3200_v46 = vrot.slane %v3198_v38, 5 }
  0x4e   : > { %v3188_v49 = vrot.slane %v3187_v40, 4  ;;  %v3206_v50 = vrot.slane %v3204_v41, 5  ;;  %v3210_v51 = vrot.slane %v3208_v42, 4  ;;  %v3214_v52 = vshll.u32 %v2875_v33, 16  ;;  %v612_v40 = vld [vmem:[%s14333_s6 + $0xc] sm:$0xf] }
  0x4f   : > { %13097 = vmatmul.mubr.msk.bf16.gmra.mrb[24].mxu0 %vm367_vm0, %v14140_v60  ;;  %13253 = vmatmul.mubr.msk.bf16.gmra.mrb[20].mxu1 %vm367_vm0, %v11621_v43  ;;  %v3183_v54 = vsel %vm14358_vm3, %v3178_v44, %v3182_v26  ;;  %v3201_v55 = vor.u32 %v3200_v46, %v3197_v45  ;;  %v3219_v57 = vshrl.u32 %v2876_v48, 16  ;;  %v3222_v58 = vshll.u32 %v2876_v48, 16  ;;  %v613_v45 = vld [vmem:[%s14333_s6 + $0x10] sm:$0xf] }
  0x50   : > { %13100 = vmatprep.mubr.msk.bf16.mxu0 %vm367_vm0, %v14143_v1  ;;  %v3193_v59 = vsel %vm14358_vm3, %v3188_v49, %v3192_v36  ;;  %v3211_v60 = vor.u32 %v3210_v51, %v3206_v50  ;;  %v3216_v61 = vrot.slane %v3214_v52, 5  ;;  %v3228_v62 = vshll.u32 %v2877_v53, 16 }
  0x51   : > { %v11622_v0 = vcombine.low %v3183_v54, %v3193_v59  ;;  %v3202_v1 = vrot.slane %v3201_v55, 4  ;;  %v3221_v2 = vrot.slane %v3219_v57, 4  ;;  %v3224_v3 = vrot.slane %v3222_v58, 5  ;;  %v614_v54 = vld [vmem:[%s14333_s6 + $0x14] sm:$0x1] }
  0x52   : > { %v3212_v5 = vrot.slane %v3211_v60, 4  ;;  %v3230_v6 = vrot.slane %v3228_v62, 5  ;;  %v3232_v7 = vshrl.u32 %v2877_v53, 16  ;;  %v3238_v8 = vshll.u32 %v2878_v56, 16  ;;  %v3588_v55 = vld [vmem:[%s14333_s6] sm:$0xe] }
  0x53   : > { %13256 = vmatprep.mubr.msk.bf16.mxu1 %vm367_vm0, %v11622_v0  ;;  %v3207_v9 = vsel %vm14358_vm3, %v3202_v1, %v3206_v50  ;;  %v3225_v10 = vor.u32 %v3224_v3, %v3221_v2  ;;  %v3243_v12 = vshrl.u32 %v2879_v63, 16  ;;  %v3246_v13 = vshll.u32 %v2879_v63, 16  ;;  %v3589_v60 = vld [vmem:[%s14333_s6 + $0x4] sm:$0xf]  ;;  %v3590_v1 = vld [vmem:[%s14333_s6 + $0x8] sm:$0x1] }
  0x54   : > { %v3217_v14 = vsel %vm14358_vm3, %v3212_v5, %v3216_v61  ;;  %v3234_v15 = vrot.slane %v3232_v7, 4  ;;  %v3240_v16 = vrot.slane %v3238_v8, 5  ;;  %v3252_v17 = vshll.u32 %v2880_v4, 16 }
  0x55   : > { %v11623_v20 = vcombine.low %v3207_v9, %v3217_v14  ;;  %v3226_v21 = vrot.slane %v3225_v10, 4  ;;  %v3245_v22 = vrot.slane %v3243_v12, 4  ;;  %v3248_v24 = vrot.slane %v3246_v13, 5  ;;  %v3593_v12 = vld [vmem:[%s14333_s6 + $0x14] sm:$0x1] }
  0x56   : > { %v3235_v26 = vor.u32 %v3234_v15, %v3230_v6  ;;  %v3254_v27 = vrot.slane %v3252_v17, 5  ;;  %v3256_v28 = vshrl.u32 %v2880_v4, 16  ;;  %v3262_v30 = vshll.u32 %v2881_v11, 16  ;;  %v3592_v11 = vld [vmem:[%s14333_s6 + $0x10] sm:$0xf] }
  0x57   : > { %13101 = vmatmul.mubr.msk.bf16.gmra.mrb[28].mxu0 %vm367_vm0, %v14144_v47  ;;  %13257 = vmatmul.mubr.msk.bf16.gmra.mrb[24].mxu1 %vm367_vm0, %v11623_v20  ;;  %v3231_v31 = vsel %vm14358_vm3, %v3226_v21, %v3230_v6  ;;  %v3249_v19 = vor.u32 %v3248_v24, %v3245_v22  ;;  %v661_v33 = vshrl.u32 %v609_v18, 16  ;;  %v664_v35 = vshll.u32 %v609_v18, 16  ;;  %v3591_v6 = vld [vmem:[%s14333_s6 + $0xc] sm:$0xe]  ;;  %v615_v18 = vld [vmem:[%s14333_s6 + $0x18] sm:$0xf] }
  0x58   : > { %v3236_v36 = vrot.slane %v3235_v26, 4  ;;  %v3258_v37 = vrot.slane %v3256_v28, 4  ;;  %v3264_v38 = vrot.slane %v3262_v30, 5  ;;  %v670_v39 = vshll.u32 %v610_v25, 16  ;;  %v616_v30 = vld [vmem:[%s14333_s6 + $0x1c] sm:$0xf] }
  0x59   : > { %v3250_v41 = vrot.slane %v3249_v19, 4  ;;  %v663_v42 = vrot.slane %v661_v33, 4  ;;  %v666_v43 = vrot.slane %v664_v35, 5  ;;  %v674_v44 = vshrl.u32 %v610_v25, 16 }
  0x5a   : > { %v3241_v46 = vsel %vm14358_vm3, %v3236_v36, %v3240_v16  ;;  %v3259_v47 = vor.u32 %v3258_v37, %v3254_v27  ;;  %v672_v48 = vrot.slane %v670_v39, 5  ;;  %v680_v49 = vshll.u32 %v611_v32, 16  ;;  %v617_v39 = vld [vmem:[%s14333_s6 + $0x20] sm:$0x1] }
  0x5b   : > { %v11624_v50 = vcombine.low %v3231_v31, %v3241_v46  ;;  %v3255_v51 = vsel %vm14358_vm3, %v3250_v41, %v3254_v27  ;;  %v667_v52 = vor.u32 %v666_v43, %v663_v42  ;;  %v676_v53 = vrot.slane %v674_v44, 4  ;;  %v618_v44 = vld [vmem:[%s14333_s6 + $0x24] sm:$0xf] }
  0x5c   : > { %v3260_v56 = vrot.slane %v3259_v47, 4  ;;  %v682_v57 = vrot.slane %v680_v49, 5  ;;  %v685_v58 = vshrl.u32 %v612_v40, 16  ;;  %v688_v59 = vshll.u32 %v612_v40, 16 }
  0x5d   : > { %13260 = vmatprep.mubr.msk.bf16.mxu1 %vm367_vm0, %v11624_v50  ;;  %v668_v61 = vrot.slane %v667_v52, 4  ;;  %v677_v62 = vor.u32 %v676_v53, %v672_v48  ;;  %v694_v63 = vshll.u32 %v613_v45, 16  ;;  %v698_v0 = vshrl.u32 %v613_v45, 16  ;;  %v14147_v45 = vld [vmem:[%s16741_s1 + $0x48] sm:$0xff]  }
  0x5e   : > { %v3265_v2 = vsel %vm14358_vm3, %v3260_v56, %v3264_v38  ;;  %v687_v3 = vrot.slane %v685_v58, 4  ;;  %v690_v4 = vrot.slane %v688_v59, 5  ;;  %v704_v5 = vshll.u32 %v614_v54, 16  ;;  %v619_v50 = vld [vmem:[%s14333_s6 + $0x28] sm:$0xf] }
  0x5f   : > { %v11625_v7 = vcombine.low %v3255_v51, %v3265_v2  ;;  %v673_v8 = vsel %vm14358_vm3, %v668_v61, %v672_v48  ;;  %v678_v9 = vrot.slane %v677_v62, 4  ;;  %v696_v10 = vrot.slane %v694_v63, 5  ;;  %v620_v51 = vld [vmem:[%s14333_s6 + $0x2c] sm:$0x1]  ;;  %v3595_v58 = vld [vmem:[%s14333_s6 + $0x1c] sm:$0xf] }
  0x60   : > { %v691_v13 = vor.u32 %v690_v4, %v687_v3  ;;  %v700_v14 = vrot.slane %v698_v0, 4  ;;  %v706_v15 = vrot.slane %v704_v5, 5  ;;  %v16748_v16 = vmov 0  ;;  %v14148_v52 = vld [vmem:[%s16741_s1 + $0xc8] sm:$0xff]   ;;  %v3596_v63 = vld [vmem:[%s14333_s6 + $0x20] sm:$0x1] }
  0x61   : > { %v16749_v16 = vsel %vm14559_vm6, 4294967295, %v16748_v16  ;;  %v11646_v17 = vrot.slane %v3588_v55, 9  ;;  %13261 = vmatmul.mubr.msk.bf16.gmra.mrb[28].mxu1 %vm367_vm0, %v11625_v7  ;;  %v683_v20 = vsel %vm14358_vm3, %v678_v9, %v682_v57  ;;  %v3689_v21 = vrot.slane %v3589_v60, 5  ;;  %v3594_v57 = vld [vmem:[%s14333_s6 + $0x18] sm:$0xe]  ;;  %v14149_v5 = vld [vmem:[%s16741_s1 + $0x50] sm:$0xff]  }
  0x62   : > { %16750 = vst [vmem:[#allocation3_spill] sm:$0xff] %v16749_v16  ;;  %v3692_v22 = vrot.slane %v3590_v1, 5  ;;  %v11647_v24 = vrot.slane %v3591_v6, 9  ;;  %v11397_v25 = vcombine.low %v673_v8, %v683_v20  ;;  %v692_v26 = vrot.slane %v691_v13, 4  ;;  %v3597_v4 = vld [vmem:[%s14333_s6 + $0x24] sm:$0xe] }
  0x63   : > { %v701_v27 = vor.u32 %v700_v14, %v696_v10  ;;  %v3696_v28 = vrot.slane %v3592_v11, 5  ;;  %v3690_v31 = vsel %vm14559_vm6, %v11646_v17, %v3689_v21  ;;  %v3691_v19 = vrot.slane %v3689_v21, 4  ;;  %v14150_v11 = vld [vmem:[%s16741_s1 + $0xd0] sm:$0xff]   ;;  %v3599_v20 = vld [vmem:[%s14333_s6 + $0x2c] sm:$0x1] }
  0x64   : > { %v3699_v32 = vrot.slane %v3593_v12, 5  ;;  %v709_v33 = vshrl.u32 %v615_v18, 16  ;;  %13112 = vmatprep.mubr.msk.bf16.mxu0 %vm367_vm0, %v11397_v25  ;;  %v697_v35 = vsel %vm14358_vm3, %v692_v26, %v696_v10  ;;  %v712_v42 = vshll.u32 %v615_v18, 16  ;;  %v3598_v10 = vld [vmem:[%s14333_s6 + $0x28] sm:$0xf] }
  0x65   : > { %v702_v36 = vrot.slane %v701_v27, 4  ;;  %v3697_v37 = vsel %vm14559_vm6, %v11647_v24, %v3696_v28  ;;  %v3698_v38 = vrot.slane %v3696_v28, 4  ;;  %v3693_v40 = vsel %vm14559_vm6, %v3691_v19, %v3692_v22  ;;  %v621_v26 = vld [vmem:[%s14333_s6 + $0x30] sm:$0xf]  ;;  %v14151_v27 = vld [vmem:[%s16741_s1 + $0x58] sm:$0xff]  }
  0x66   : > { %v711_v41 = vrot.slane %v709_v33, 4  ;;  %v718_v43 = vshll.u32 %v616_v30, 16  ;;  %v11670_v47 = vcombine.low %v3690_v31, %v3693_v40  ;;  %v722_v49 = vshrl.u32 %v616_v30, 16 }
  0x67   : > { %v707_v46 = vsel %vm14358_vm3, %v702_v36, %v706_v15  ;;  %v3700_v48 = vsel %vm14559_vm6, %v3698_v38, %v3699_v32  ;;  %v714_v55 = vrot.slane %v712_v42, 5  ;;  %v728_v60 = vshll.u32 %v617_v39, 16  ;;  %v14152_v38 = vld [vmem:[%s16741_s1 + $0xd8] sm:$0xff]  }
  0x68   : > { %v11398_v53 = vcombine.low %v697_v35, %v707_v46  ;;  %v11671_v54 = vcombine.low %v3697_v37, %v3700_v48  ;;  %v720_v56 = vrot.slane %v718_v43, 5  ;;  %13272 = vmatprep.mubr.msk.bf16.mxu1 %vm367_vm0, %v11670_v47  ;;  %v724_v59 = vrot.slane %v722_v49, 4  ;;  %v622_v37 = vld [vmem:[%s14333_s6 + $0x34] sm:$0xf] }
  0x69   : > { %v733_v61 = vshrl.u32 %v618_v44, 16  ;;  %v736_v62 = vshll.u32 %v618_v44, 16  ;;  %v715_v0 = vor.u32 %v714_v55, %v711_v41  ;;  %v742_v1 = vshll.u32 %v619_v50, 16  ;;  %v623_v41 = vld [vmem:[%s14333_s6 + $0x38] sm:$0x1] }
  0x6a   : > { %13113 = vmatmul.mubr.msk.bf16.vlgmr.msra.gmra.mrb[0].mxu0 %vm367_vm0, %v11398_v53  ;;  %13273 = vmatmul.mubr.msk.bf16.vlgmr.msra.gmra.mrb[0].mxu1 %vm367_vm0, %v11671_v54  ;;  %v746_v2 = vshrl.u32 %v619_v50, 16  ;;  %v752_v3 = vshll.u32 %v620_v51, 16  ;;  %v725_v6 = vor.u32 %v724_v59, %v720_v56  ;;  %v730_v7 = vrot.slane %v728_v60, 5  ;;  %v624_v44 = vld [vmem:[%s14333_s6 + $0x3c] sm:$0xf]  ;;  %v14637_v54 = vld [vmem:[%s16741_s1 + $0x60] sm:$0xff]  }
  0x6b   : > { %13145 = vmatpush3.bf16.msra.mxu0 %v14495_v23  ;;  %13305 = vmatpush3.bf16.msra.mxu1 %v14504_v29  ;;  %v735_v8 = vrot.slane %v733_v61, 4  ;;  %v738_v9 = vrot.slane %v736_v62, 5  ;;  %v716_v12 = vrot.slane %v715_v0, 4  ;;  %v744_v13 = vrot.slane %v742_v1, 5  ;;  %v625_v53 = vld [vmem:[%s14333_s6 + $0x40] sm:$0xf] }
  0x6c   : > { %v748_v14 = vrot.slane %v746_v2, 4  ;;  %v754_v15 = vrot.slane %v752_v3, 5  ;;  %13146 = vmatprep.subr.bf16.mxu0 %v14147_v45  ;;  %13306 = vmatprep.subr.bf16.mxu1 %v14148_v52  ;;  %v726_v23 = vrot.slane %v725_v6, 4  ;;  %v11648_v29 = vrot.slane %v3594_v57, 9  ;;  %v14646_v60 = vld [vmem:[%s16741_s1 + $0xe0] sm:$0xff]  }
  0x6d   : > { %v739_v17 = vor.u32 %v738_v9, %v735_v8  ;;  %v3703_v18 = vrot.slane %v3595_v58, 5  ;;  %v721_v21 = vsel %vm14358_vm3, %v716_v12, %v720_v56  ;;  %v3706_v24 = vrot.slane %v3596_v63, 5  ;;  %v626_v58 = vld [vmem:[%s14333_s6 + $0x44] sm:$0x1]  ;;  %v3600_v1 = vld [vmem:[%s14333_s6 + $0x30] sm:$0xe] }
  0x6e   : > { %v749_v22 = vor.u32 %v748_v14, %v744_v13  ;;  %v11649_v25 = vrot.slane %v3597_v4, 9  ;;  %v731_v28 = vsel %vm14358_vm3, %v726_v23, %v730_v7  ;;  %v3710_v35 = vrot.slane %v3598_v10, 5  ;;  %v3601_v2 = vld [vmem:[%s14333_s6 + $0x34] sm:$0xf]  ;;  %v3602_v7 = vld [vmem:[%s14333_s6 + $0x38] sm:$0x1] }
  0x6f   : > { %v740_v30 = vrot.slane %v739_v17, 4  ;;  %v3704_v31 = vsel %vm14559_vm6, %v11648_v29, %v3703_v18  ;;  %v3705_v19 = vrot.slane %v3703_v18, 4  ;;  %13147 = vmatpush3.bf16.msra.mxu0 %v14147_v45  ;;  %13307 = vmatpush3.bf16.msra.mxu1 %v14148_v52  ;;  %v11399_v32 = vcombine.low %v721_v21, %v731_v28  ;;  %v3603_v12 = vld [vmem:[%s14333_s6 + $0x3c] sm:$0xe]  ;;  %v3604_v17 = vld [vmem:[%s14333_s6 + $0x40] sm:$0xf] }
  0x70   : > { %v750_v33 = vrot.slane %v749_v22, 4  ;;  %v3713_v36 = vrot.slane %v3599_v20, 5  ;;  %13148 = vmatprep.subr.bf16.mxu0 %v14149_v5  ;;  %13308 = vmatprep.subr.bf16.mxu1 %v14150_v11  ;;  %v757_v42 = vshrl.u32 %v621_v26, 16  ;;  %v760_v43 = vshll.u32 %v621_v26, 16  ;;  %v3605_v22 = vld [vmem:[%s14333_s6 + $0x44] sm:$0x1] }
  0x71   : > { %v745_v39 = vsel %vm14358_vm3, %v740_v30, %v744_v13  ;;  %v3707_v40 = vsel %vm14559_vm6, %v3705_v19, %v3706_v24  ;;  %13116 = vmatprep.mubr.msk.bf16.mxu0 %vm367_vm0, %v11399_v32  ;;  %v3711_v47 = vsel %vm14559_vm6, %v11649_v25, %v3710_v35  ;;  %v3712_v48 = vrot.slane %v3710_v35, 4  ;;  %v627_v24 = vld [vmem:[%s14333_s6 + $0x48] sm:$0xf] }
  0x72   : > { %v755_v45 = vsel %vm14358_vm3, %v750_v33, %v754_v15  ;;  %v11672_v46 = vcombine.low %v3704_v31, %v3707_v40  ;;  %v759_v50 = vrot.slane %v757_v42, 4  ;;  %v762_v51 = vrot.slane %v760_v43, 5 }
  0x73   : > { %v11400_v49 = vcombine.low %v745_v39, %v755_v45  ;;  %v766_v52 = vshll.u32 %v622_v37, 16  ;;  %13149 = vmatpush3.bf16.msra.mxu0 %v14149_v5  ;;  %13309 = vmatpush3.bf16.msra.mxu1 %v14150_v11  ;;  %v3714_v55 = vsel %vm14559_vm6, %v3712_v48, %v3713_v36  ;;  %v770_v56 = vshrl.u32 %v622_v37, 16  ;;  %v628_v37 = vld [vmem:[%s14333_s6 + $0x4c] sm:$0xf]  ;;  %v631_v45 = vld [vmem:[%s14333_s6 + $0x58] sm:$0xf] }
  0x74   : > { %13276 = vmatprep.mubr.msk.bf16.mxu1 %vm367_vm0, %v11672_v46  ;;  %v776_v57 = vshll.u32 %v623_v41, 16  ;;  %v781_v59 = vshrl.u32 %v624_v44, 16  ;;  %13150 = vmatprep.subr.bf16.mxu0 %v14151_v27  ;;  %v11673_v61 = vcombine.low %v3711_v47, %v3714_v55  ;;  %v763_v62 = vor.u32 %v762_v51, %v759_v50  ;;  %v632_v50 = vld [vmem:[%s14333_s6 + $0x5c] sm:$0x1]  ;;  %v3606_v51 = vld [vmem:[%s14333_s6 + $0x48] sm:$0xe] }
  0x75   : > { %13117 = vmatmul.mubr.msk.bf16.gmra.mrb[4].mxu0 %vm367_vm0, %v11400_v49  ;;  %v768_v63 = vrot.slane %v766_v52, 5  ;;  %v784_v0 = vshll.u32 %v624_v44, 16  ;;  %13310 = vmatprep.subr.bf16.mxu1 %v14152_v38  ;;  %v772_v3 = vrot.slane %v770_v56, 4  ;;  %v790_v6 = vshll.u32 %v625_v53, 16  ;;  %v630_v44 = vld [vmem:[%s14333_s6 + $0x54] sm:$0xf] }
  0x76   : > { %v778_v4 = vrot.slane %v776_v57, 5  ;;  %v783_v5 = vrot.slane %v781_v59, 4  ;;  %13277 = vmatmul.mubr.msk.bf16.gmra.mrb[4].mxu1 %vm367_vm0, %v11673_v61  ;;  %v764_v8 = vrot.slane %v763_v62, 4  ;;  %v794_v10 = vshrl.u32 %v625_v53, 16  ;;  %v3607_v62 = vld [vmem:[%s14333_s6 + $0x4c] sm:$0xf] }
  0x77   : > { %v786_v9 = vrot.slane %v784_v0, 5  ;;  %v800_v11 = vshll.u32 %v626_v58, 16  ;;  %13151 = vmatpush3.bf16.msra.mxu0 %v14151_v27  ;;  %v773_v13 = vor.u32 %v772_v3, %v768_v63  ;;  %v792_v14 = vrot.slane %v790_v6, 5  ;;  %13311 = vmatpush3.bf16.msra.mxu1 %v14152_v38  ;;  %v629_v38 = vld [vmem:[%s14333_s6 + $0x50] sm:$0x1] }
  0x78   : > { %v11650_v15 = vrot.slane %v3600_v1, 9  ;;  %v3717_v23 = vrot.slane %v3601_v2, 5  ;;  %13184 = vmatprep.subr.bf16.mxu0 %v14637_v54  ;;  %v769_v29 = vsel %vm14358_vm3, %v764_v8, %v768_v63  ;;  %v796_v20 = vrot.slane %v794_v10, 4  ;;  %13344 = vmatprep.subr.bf16.mxu1 %v14646_v60  ;;  %v3608_v3 = vld [vmem:[%s14333_s6 + $0x50] sm:$0x1] }
  0x79   : > { %v787_v18 = vor.u32 %v786_v9, %v783_v5  ;;  %v802_v21 = vrot.slane %v800_v11, 5  ;;  %v774_v25 = vrot.slane %v773_v13, 4  ;;  %v3720_v28 = vrot.slane %v3602_v7, 5  ;;  %v3609_v8 = vld [vmem:[%s14333_s6 + $0x54] sm:$0xe] }
  0x7a   : > { %v3718_v26 = vsel %vm14559_vm6, %v11650_v15, %v3717_v23  ;;  %v3719_v27 = vrot.slane %v3717_v23, 4  ;;  %v797_v31 = vor.u32 %v796_v20, %v792_v14  ;;  %v11651_v19 = vrot.slane %v3603_v12, 9  ;;  %v3610_v9 = vld [vmem:[%s14333_s6 + $0x58] sm:$0xf] }
  0x7b   : > { %v788_v30 = vrot.slane %v787_v18, 4  ;;  %v3724_v32 = vrot.slane %v3604_v17, 5  ;;  %v779_v33 = vsel %vm14358_vm3, %v774_v25, %v778_v4  ;;  %v3727_v36 = vrot.slane %v3605_v22, 5  ;;  %v3611_v22 = vld [vmem:[%s14333_s6 + $0x5c] sm:$0x1] }
  0x7c   : > { %v3721_v35 = vsel %vm14559_vm6, %v3719_v27, %v3720_v28  ;;  %v805_v39 = vshrl.u32 %v627_v24, 16  ;;  %v11401_v40 = vcombine.low %v769_v29, %v779_v33  ;;  %v798_v42 = vrot.slane %v797_v31, 4  ;;  %v634_v33 = vld [vmem:[%s14333_s6 + $0x64] sm:$0xf] }
  0x7d   : > { %v793_v41 = vsel %vm14358_vm3, %v788_v30, %v792_v14  ;;  %v11674_v43 = vcombine.low %v3718_v26, %v3721_v35  ;;  %v3725_v46 = vsel %vm14559_vm6, %v11651_v19, %v3724_v32  ;;  %v3726_v47 = vrot.slane %v3724_v32, 4  ;;  %v633_v32 = vld [vmem:[%s14333_s6 + $0x60] sm:$0xf] }
  0x7e   : > { %v807_v48 = vrot.slane %v805_v39, 4  ;;  %v808_v49 = vshll.u32 %v627_v24, 16  ;;  %13120 = vmatprep.mubr.msk.bf16.mxu0 %vm367_vm0, %v11401_v40  ;;  %v803_v52 = vsel %vm14358_vm3, %v798_v42, %v802_v21  ;;  %v814_v53 = vshll.u32 %v628_v37, 16  ;;  %v635_v39 = vld [vmem:[%s14333_s6 + $0x68] sm:$0x1] }
  0x7f   : > { %13280 = vmatprep.mubr.msk.bf16.mxu1 %vm367_vm0, %v11674_v43  ;;  %v818_v55 = vshrl.u32 %v628_v37, 16  ;;  %v824_v56 = vshll.u32 %v629_v38, 16  ;;  %v11402_v57 = vcombine.low %v793_v41, %v803_v52  ;;  %v3728_v58 = vsel %vm14559_vm6, %v3726_v47, %v3727_v36 }
  0x80   : > { %v810_v59 = vrot.slane %v808_v49, 5  ;;  %v829_v61 = vshrl.u32 %v630_v44, 16  ;;  %v11675_v63 = vcombine.low %v3725_v46, %v3728_v58  ;;  %v816_v0 = vrot.slane %v814_v53, 5  ;;  %v637_v53 = vld [vmem:[%s14333_s6 + $0x70] sm:$0xf] }
  0x81   : > { %v820_v1 = vrot.slane %v818_v55, 4  ;;  %v826_v2 = vrot.slane %v824_v56, 5  ;;  %13121 = vmatmul.mubr.msk.bf16.gmra.mrb[8].mxu0 %vm367_vm0, %v11402_v57  ;;  %v832_v6 = vshll.u32 %v630_v44, 16  ;;  %v838_v7 = vshll.u32 %v631_v45, 16 }
  0x82   : > { %v811_v4 = vor.u32 %v810_v59, %v807_v48  ;;  %v831_v5 = vrot.slane %v829_v61, 4  ;;  %13281 = vmatmul.mubr.msk.bf16.gmra.mrb[8].mxu1 %vm367_vm0, %v11675_v63  ;;  %v842_v11 = vshrl.u32 %v631_v45, 16  ;;  %v848_v12 = vshll.u32 %v632_v50, 16  ;;  %v636_v48 = vld [vmem:[%s14333_s6 + $0x6c] sm:$0xf] }
  0x83   : > { %v821_v10 = vor.u32 %v820_v1, %v816_v0  ;;  %v11652_v13 = vrot.slane %v3606_v51, 9  ;;  %v834_v15 = vrot.slane %v832_v6, 5  ;;  %v840_v23 = vrot.slane %v838_v7, 5  ;;  %v638_v59 = vld [vmem:[%s14333_s6 + $0x74] sm:$0x1] }
  0x84   : > { %v812_v14 = vrot.slane %v811_v4, 4  ;;  %v3731_v17 = vrot.slane %v3607_v62, 5  ;;  %v844_v18 = vrot.slane %v842_v11, 4  ;;  %v850_v20 = vrot.slane %v848_v12, 5  ;;  %v3612_v61 = vld [vmem:[%s14333_s6 + $0x60] sm:$0xe] }
  0x85   : > { %v822_v29 = vrot.slane %v821_v10, 4  ;;  %v3734_v21 = vrot.slane %v3608_v3, 5  ;;  %v835_v25 = vor.u32 %v834_v15, %v831_v5  ;;  %v11653_v31 = vrot.slane %v3609_v8, 9  ;;  %v3614_v7 = vld [vmem:[%s14333_s6 + $0x68] sm:$0x1] }
  0x86   : > { %v817_v24 = vsel %vm14358_vm3, %v812_v14, %v816_v0  ;;  %v3732_v26 = vsel %vm14559_vm6, %v11652_v13, %v3731_v17  ;;  %v3733_v27 = vrot.slane %v3731_v17, 4  ;;  %v845_v30 = vor.u32 %v844_v18, %v840_v23  ;;  %v3615_v12 = vld [vmem:[%s14333_s6 + $0x6c] sm:$0xe]  ;;  %v3616_v17 = vld [vmem:[%s14333_s6 + $0x70] sm:$0xf] }
  0x87   : > { %v827_v28 = vsel %vm14358_vm3, %v822_v29, %v826_v2  ;;  %v3738_v19 = vrot.slane %v3610_v9, 5  ;;  %v836_v36 = vrot.slane %v835_v25, 4  ;;  %v3741_v38 = vrot.slane %v3611_v22, 5  ;;  %v3613_v2 = vld [vmem:[%s14333_s6 + $0x64] sm:$0xf] }
  0x88   : > { %v11403_v35 = vcombine.low %v817_v24, %v827_v28  ;;  %v3735_v37 = vsel %vm14559_vm6, %v3733_v27, %v3734_v21  ;;  %v846_v40 = vrot.slane %v845_v30, 4  ;;  %v853_v45 = vshrl.u32 %v633_v32, 16  ;;  %v3617_v22 = vld [vmem:[%s14333_s6 + $0x74] sm:$0x1]  ;;  %v639_v28 = vld [vmem:[%s14333_s6 + $0x78] sm:$0xf] }
  0x89   : > { %v11676_v41 = vcombine.low %v3732_v26, %v3735_v37  ;;  %v3739_v42 = vsel %vm14559_vm6, %v11653_v31, %v3738_v19  ;;  %v3740_v43 = vrot.slane %v3738_v19, 4  ;;  %v841_v44 = vsel %vm14358_vm3, %v836_v36, %v840_v23  ;;  %v640_v30 = vld [vmem:[%s14333_s6 + $0x7c] sm:$0xf] }
  0x8a   : > { %13124 = vmatprep.mubr.msk.bf16.mxu0 %vm367_vm0, %v11403_v35  ;;  %v856_v46 = vshll.u32 %v633_v32, 16  ;;  %v862_v47 = vshll.u32 %v634_v33, 16  ;;  %v851_v49 = vsel %vm14358_vm3, %v846_v40, %v850_v20  ;;  %v866_v51 = vshrl.u32 %v634_v33, 16 }
  0x8b   : > { %13284 = vmatprep.mubr.msk.bf16.mxu1 %vm367_vm0, %v11676_v41  ;;  %v3742_v50 = vsel %vm14559_vm6, %v3740_v43, %v3741_v38  ;;  %v872_v52 = vshll.u32 %v635_v39, 16  ;;  %v11404_v55 = vcombine.low %v841_v44, %v851_v49  ;;  %v855_v57 = vrot.slane %v853_v45, 4  ;;  %v641_v39 = vld [vmem:[%s14333_s6 + $0x80] sm:$0x1]  ;;  %v642_v44 = vld [vmem:[%s14333_s6 + $0x84] sm:$0xf] }
  0x8c   : > { %v11677_v56 = vcombine.low %v3739_v42, %v3742_v50  ;;  %v858_v58 = vrot.slane %v856_v46, 5  ;;  %v864_v62 = vrot.slane %v862_v47, 5  ;;  %v868_v63 = vrot.slane %v866_v51, 4  ;;  %v643_v45 = vld [vmem:[%s14333_s6 + $0x88] sm:$0xf] }
  0x8d   : > { %v874_v0 = vrot.slane %v872_v52, 5  ;;  %v877_v1 = vshrl.u32 %v636_v48, 16  ;;  %13125 = vmatmul.mubr.msk.bf16.gmra.mrb[12].mxu0 %vm367_vm0, %v11404_v55  ;;  %v880_v4 = vshll.u32 %v636_v48, 16  ;;  %v886_v5 = vshll.u32 %v637_v53, 16  ;;  %v644_v55 = vld [vmem:[%s14333_s6 + $0x8c] sm:$0x1] }
  0x8e   : > { %13285 = vmatmul.mubr.msk.bf16.gmra.mrb[12].mxu1 %vm367_vm0, %v11677_v56  ;;  %v859_v3 = vor.u32 %v858_v58, %v855_v57  ;;  %v890_v6 = vshrl.u32 %v637_v53, 16  ;;  %v869_v8 = vor.u32 %v868_v63, %v864_v62  ;;  %v896_v10 = vshll.u32 %v638_v59, 16  ;;  %v3618_v56 = vld [vmem:[%s14333_s6 + $0x78] sm:$0xe] }
  0x8f   : > { %v879_v9 = vrot.slane %v877_v1, 4  ;;  %v11654_v11 = vrot.slane %v3612_v61, 9  ;;  %v882_v14 = vrot.slane %v880_v4, 5  ;;  %v888_v15 = vrot.slane %v886_v5, 5 }
  0x90   : > { %v860_v13 = vrot.slane %v859_v3, 4  ;;  %v892_v23 = vrot.slane %v890_v6, 4  ;;  %v870_v29 = vrot.slane %v869_v8, 4  ;;  %v898_v18 = vrot.slane %v896_v10, 5  ;;  %v3620_v3 = vld [vmem:[%s14333_s6 + $0x80] sm:$0x1] }
  0x91   : > { %v3745_v20 = vrot.slane %v3613_v2, 5  ;;  %v3748_v21 = vrot.slane %v3614_v7, 5  ;;  %v883_v25 = vor.u32 %v882_v14, %v879_v9  ;;  %v11655_v27 = vrot.slane %v3615_v12, 9  ;;  %v3621_v8 = vld [vmem:[%s14333_s6 + $0x84] sm:$0xe] }
  0x92   : > { %v865_v24 = vsel %vm14358_vm3, %v860_v13, %v864_v62  ;;  %v893_v26 = vor.u32 %v892_v23, %v888_v15  ;;  %v875_v31 = vsel %vm14358_vm3, %v870_v29, %v874_v0  ;;  %v3752_v33 = vrot.slane %v3616_v17, 5  ;;  %v3619_v62 = vld [vmem:[%s14333_s6 + $0x7c] sm:$0xf]  ;;  %v3622_v13 = vld [vmem:[%s14333_s6 + $0x88] sm:$0xf] }
  0x93   : > { %v3746_v19 = vsel %vm14559_vm6, %v11654_v11, %v3745_v20  ;;  %v3747_v32 = vrot.slane %v3745_v20, 4  ;;  %v11405_v35 = vcombine.low %v865_v24, %v875_v31  ;;  %v884_v36 = vrot.slane %v883_v25, 4  ;;  %v3623_v29 = vld [vmem:[%s14333_s6 + $0x8c] sm:$0x1]  ;;  %v645_v24 = vld [vmem:[%s14333_s6 + $0x90] sm:$0xf] }
  0x94   : > { %v894_v37 = vrot.slane %v893_v26, 4  ;;  %v3755_v38 = vrot.slane %v3617_v22, 5  ;;  %v3753_v41 = vsel %vm14559_vm6, %v11655_v27, %v3752_v33  ;;  %v3754_v42 = vrot.slane %v3752_v33, 4 }
  0x95   : > { %v3749_v40 = vsel %vm14559_vm6, %v3747_v32, %v3748_v21  ;;  %v901_v43 = vshrl.u32 %v639_v28, 16  ;;  %13128 = vmatprep.mubr.msk.bf16.mxu0 %vm367_vm0, %v11405_v35  ;;  %v889_v46 = vsel %vm14358_vm3, %v884_v36, %v888_v15  ;;  %v904_v49 = vshll.u32 %v639_v28, 16 }
  0x96   : > { %v899_v47 = vsel %vm14358_vm3, %v894_v37, %v898_v18  ;;  %v11678_v48 = vcombine.low %v3746_v19, %v3749_v40  ;;  %v3756_v51 = vsel %vm14559_vm6, %v3754_v42, %v3755_v38  ;;  %v910_v53 = vshll.u32 %v640_v30, 16  ;;  %v646_v37 = vld [vmem:[%s14333_s6 + $0x94] sm:$0xf] }
  0x97   : > { %v11406_v50 = vcombine.low %v889_v46, %v899_v47  ;;  %v903_v52 = vrot.slane %v901_v43, 4  ;;  %v11679_v57 = vcombine.low %v3753_v41, %v3756_v51  ;;  %v906_v58 = vrot.slane %v904_v49, 5  ;;  %v647_v43 = vld [vmem:[%s14333_s6 + $0x98] sm:$0x1] }
  0x98   : > { %13288 = vmatprep.mubr.msk.bf16.mxu1 %vm367_vm0, %v11678_v48  ;;  %v914_v59 = vshrl.u32 %v640_v30, 16  ;;  %v920_v61 = vshll.u32 %v641_v39, 16  ;;  %v912_v63 = vrot.slane %v910_v53, 5  ;;  %v925_v0 = vshrl.u32 %v642_v44, 16 }
  0x99   : > { %13129 = vmatmul.mubr.msk.bf16.gmra.mrb[16].mxu0 %vm367_vm0, %v11406_v50  ;;  %v928_v1 = vshll.u32 %v642_v44, 16  ;;  %v934_v2 = vshll.u32 %v643_v45, 16  ;;  %13289 = vmatmul.mubr.msk.bf16.gmra.mrb[16].mxu1 %vm367_vm0, %v11679_v57  ;;  %v907_v4 = vor.u32 %v906_v58, %v903_v52  ;;  %v938_v7 = vshrl.u32 %v643_v45, 16  ;;  %v648_v44 = vld [vmem:[%s14333_s6 + $0x9c] sm:$0xf] }
  0x9a   : > { %v916_v5 = vrot.slane %v914_v59, 4  ;;  %v922_v6 = vrot.slane %v920_v61, 5  ;;  %v927_v9 = vrot.slane %v925_v0, 4  ;;  %v944_v12 = vshll.u32 %v644_v55, 16  ;;  %v649_v45 = vld [vmem:[%s14333_s6 + $0xa0] sm:$0xf] }
  0x9b   : > { %v930_v10 = vrot.slane %v928_v1, 5  ;;  %v936_v11 = vrot.slane %v934_v2, 5  ;;  %v908_v14 = vrot.slane %v907_v4, 4  ;;  %v940_v23 = vrot.slane %v938_v7, 4  ;;  %v650_v50 = vld [vmem:[%s14333_s6 + $0xa4] sm:$0x1] }
  0x9c   : > { %v917_v15 = vor.u32 %v916_v5, %v912_v63  ;;  %v11656_v17 = vrot.slane %v3618_v56, 9  ;;  %v946_v20 = vrot.slane %v944_v12, 5  ;;  %v3759_v21 = vrot.slane %v3619_v62, 5  ;;  %v3624_v56 = vld [vmem:[%s14333_s6 + $0x90] sm:$0xe] }
  0x9d   : > { %v931_v18 = vor.u32 %v930_v10, %v927_v9  ;;  %v3762_v22 = vrot.slane %v3620_v3, 5  ;;  %v913_v25 = vsel %vm14358_vm3, %v908_v14, %v912_v63  ;;  %v941_v27 = vor.u32 %v940_v23, %v936_v11  ;;  %v3625_v57 = vld [vmem:[%s14333_s6 + $0x94] sm:$0xf]  ;;  %v3626_v3 = vld [vmem:[%s14333_s6 + $0x98] sm:$0x1] }
  0x9e   : > { %v918_v26 = vrot.slane %v917_v15, 4  ;;  %v11657_v28 = vrot.slane %v3621_v8, 9  ;;  %v3760_v31 = vsel %vm14559_vm6, %v11656_v17, %v3759_v21  ;;  %v3761_v19 = vrot.slane %v3759_v21, 4  ;;  %v3627_v12 = vld [vmem:[%s14333_s6 + $0x9c] sm:$0xe] }
  0x9f   : > { %v932_v30 = vrot.slane %v931_v18, 4  ;;  %v3766_v32 = vrot.slane %v3622_v13, 5  ;;  %v942_v35 = vrot.slane %v941_v27, 4  ;;  %v3769_v36 = vrot.slane %v3623_v29, 5  ;;  %v3628_v13 = vld [vmem:[%s14333_s6 + $0xa0] sm:$0xf] }
  0xa0   : > { %v923_v33 = vsel %vm14358_vm3, %v918_v26, %v922_v6  ;;  %v949_v38 = vshrl.u32 %v645_v24, 16  ;;  %v3763_v41 = vsel %vm14559_vm6, %v3761_v19, %v3762_v22  ;;  %v952_v52 = vshll.u32 %v645_v24, 16  ;;  %v3629_v29 = vld [vmem:[%s14333_s6 + $0xa4] sm:$0x1]  ;;  %v651_v18 = vld [vmem:[%s14333_s6 + $0xa8] sm:$0xf] }
  0xa1   : > { %v11407_v39 = vcombine.low %v913_v25, %v923_v33  ;;  %v937_v40 = vsel %vm14358_vm3, %v932_v30, %v936_v11  ;;  %v3767_v42 = vsel %vm14559_vm6, %v11657_v28, %v3766_v32  ;;  %v947_v46 = vsel %vm14358_vm3, %v942_v35, %v946_v20  ;;  %v652_v33 = vld [vmem:[%s14333_s6 + $0xac] sm:$0xf]  ;;  %v653_v35 = vld [vmem:[%s14333_s6 + $0xb0] sm:$0x1] }
  0xa2   : > { %v11680_v47 = vcombine.low %v3760_v31, %v3763_v41  ;;  %v3768_v48 = vrot.slane %v3766_v32, 4  ;;  %v951_v49 = vrot.slane %v949_v38, 4  ;;  %v11408_v51 = vcombine.low %v937_v40, %v947_v46  ;;  %v654_v40 = vld [vmem:[%s14333_s6 + $0xb4] sm:$0xf] }
  0xa3   : > { %13132 = vmatprep.mubr.msk.bf16.mxu0 %vm367_vm0, %v11407_v39  ;;  %v958_v53 = vshll.u32 %v646_v37, 16  ;;  %v962_v55 = vshrl.u32 %v646_v37, 16  ;;  %v968_v59 = vshll.u32 %v647_v43, 16  ;;  %v973_v61 = vshrl.u32 %v648_v44, 16 }
  0xa4   : > { %13292 = vmatprep.mubr.msk.bf16.mxu1 %vm367_vm0, %v11680_v47  ;;  %v3770_v58 = vsel %vm14559_vm6, %v3768_v48, %v3769_v36  ;;  %v976_v62 = vshll.u32 %v648_v44, 16  ;;  %13133 = vmatmul.mubr.msk.bf16.gmra.mrb[20].mxu0 %vm367_vm0, %v11408_v51  ;;  %v954_v0 = vrot.slane %v952_v52, 5  ;;  %v982_v7 = vshll.u32 %v649_v45, 16  ;;  %v3630_v51 = vld [vmem:[%s14333_s6 + $0xa8] sm:$0xe] }
  0xa5   : > { %v11681_v63 = vcombine.low %v3767_v42, %v3770_v58  ;;  %v960_v1 = vrot.slane %v958_v53, 5  ;;  %v964_v2 = vrot.slane %v962_v55, 4  ;;  %v970_v4 = vrot.slane %v968_v59, 5 }
  0xa6   : > { %v975_v5 = vrot.slane %v973_v61, 4  ;;  %v978_v6 = vrot.slane %v976_v62, 5  ;;  %v955_v8 = vor.u32 %v954_v0, %v951_v49  ;;  %v986_v10 = vshrl.u32 %v649_v45, 16  ;;  %v655_v45 = vld [vmem:[%s14333_s6 + $0xb8] sm:$0xf] }
  0xa7   : > { %13293 = vmatmul.mubr.msk.bf16.gmra.mrb[20].mxu1 %vm367_vm0, %v11681_v63  ;;  %v965_v9 = vor.u32 %v964_v2, %v960_v1  ;;  %v992_v11 = vshll.u32 %v650_v50, 16  ;;  %v984_v15 = vrot.slane %v982_v7, 5  ;;  %v11658_v23 = vrot.slane %v3624_v56, 9  ;;  %v656_v50 = vld [vmem:[%s14333_s6 + $0xbc] sm:$0x1] }
  0xa8   : > { %v979_v14 = vor.u32 %v978_v6, %v975_v5  ;;  %v3773_v17 = vrot.slane %v3625_v57, 5  ;;  %v956_v20 = vrot.slane %v955_v8, 4  ;;  %v988_v22 = vrot.slane %v986_v10, 4  ;;  %v3631_v62 = vld [vmem:[%s14333_s6 + $0xac] sm:$0xf] }
  0xa9   : > { %v966_v21 = vrot.slane %v965_v9, 4  ;;  %v994_v24 = vrot.slane %v992_v11, 5  ;;  %v3776_v28 = vrot.slane %v3626_v3, 5  ;;  %v11659_v32 = vrot.slane %v3627_v12, 9  ;;  %v3632_v63 = vld [vmem:[%s14333_s6 + $0xb0] sm:$0x1] }
  0xaa   : > { %v980_v25 = vrot.slane %v979_v14, 4  ;;  %v3774_v26 = vsel %vm14559_vm6, %v11658_v23, %v3773_v17  ;;  %v3775_v27 = vrot.slane %v3773_v17, 4  ;;  %v961_v30 = vsel %vm14358_vm3, %v956_v20, %v960_v1  ;;  %v3634_v9 = vld [vmem:[%s14333_s6 + $0xb8] sm:$0xf]  ;;  %v3635_v14 = vld [vmem:[%s14333_s6 + $0xbc] sm:$0x1] }
  0xab   : > { %v971_v31 = vsel %vm14358_vm3, %v966_v21, %v970_v4  ;;  %v989_v19 = vor.u32 %v988_v22, %v984_v15  ;;  %v3780_v39 = vrot.slane %v3628_v13, 5  ;;  %v3783_v43 = vrot.slane %v3629_v29, 5  ;;  %v3633_v4 = vld [vmem:[%s14333_s6 + $0xb4] sm:$0xe] }
  0xac   : > { %v11409_v36 = vcombine.low %v961_v30, %v971_v31  ;;  %v985_v37 = vsel %vm14358_vm3, %v980_v25, %v984_v15  ;;  %v3777_v38 = vsel %vm14559_vm6, %v3775_v27, %v3776_v28  ;;  %v997_v44 = vshrl.u32 %v651_v18, 16  ;;  %v11707_v30 = vld [vmem:[%s14333_s6 + $0x10] sm:$0xf] }
  0xad   : > { %v990_v41 = vrot.slane %v989_v19, 4  ;;  %v11682_v42 = vcombine.low %v3774_v26, %v3777_v38  ;;  %v3781_v46 = vsel %vm14559_vm6, %v11659_v32, %v3780_v39  ;;  %v3782_v47 = vrot.slane %v3780_v39, 4 }
  0xae   : > { %13136 = vmatprep.mubr.msk.bf16.mxu0 %vm367_vm0, %v11409_v36  ;;  %v1000_v48 = vshll.u32 %v651_v18, 16  ;;  %v1006_v49 = vshll.u32 %v652_v33, 16  ;;  %v999_v53 = vrot.slane %v997_v44, 4  ;;  %v1010_v55 = vshrl.u32 %v652_v33, 16  ;;  %v11706_v18 = vld [vmem:[%s14333_s6 + $0xc] sm:$0xf] }
  0xaf   : > { %v995_v52 = vsel %vm14358_vm3, %v990_v41, %v994_v24  ;;  %13296 = vmatprep.mubr.msk.bf16.mxu1 %vm367_vm0, %v11682_v42  ;;  %v1016_v56 = vshll.u32 %v653_v35, 16  ;;  %v3784_v58 = vsel %vm14559_vm6, %v3782_v47, %v3783_v43  ;;  %v1021_v3 = vshrl.u32 %v654_v40, 16  ;;  %v11708_v42 = vld [vmem:[%s14333_s6 + $0x14] sm:$0x1]  ;;  %v11709_v44 = vld [vmem:[%s14333_s6 + $0x18] sm:$0xf] }
  0xb0   : > { %v11410_v57 = vcombine.low %v985_v37, %v995_v52  ;;  %v1002_v59 = vrot.slane %v1000_v48, 5  ;;  %v1008_v61 = vrot.slane %v1006_v49, 5  ;;  %v11683_v0 = vcombine.low %v3781_v46, %v3784_v58  ;;  %v14153_v48 = vld [vmem:[%s14333_s6 + $0xc] sm:$0xff]  }
  0xb1   : > { %v1012_v1 = vrot.slane %v1010_v55, 4  ;;  %v1018_v2 = vrot.slane %v1016_v56, 5  ;;  %v1024_v6 = vshll.u32 %v654_v40, 16  ;;  %v1030_v7 = vshll.u32 %v655_v45, 16  ;;  %v11711_v56 = vld [vmem:[%s14333_s6 + $0x20] sm:$0x1] }
  0xb2   : > { %13137 = vmatmul.mubr.msk.bf16.gmra.mrb[24].mxu0 %vm367_vm0, %v11410_v57  ;;  %v1003_v5 = vor.u32 %v1002_v59, %v999_v53  ;;  %v1034_v8 = vshrl.u32 %v655_v45, 16  ;;  %13297 = vmatmul.mubr.msk.bf16.gmra.mrb[24].mxu1 %vm367_vm0, %v11683_v0  ;;  %v1023_v11 = vrot.slane %v1021_v3, 4  ;;  %v1040_v12 = vshll.u32 %v656_v50, 16  ;;  %v11710_v50 = vld [vmem:[%s14333_s6 + $0x1c] sm:$0xf] }
  0xb3   : > { %v1013_v10 = vor.u32 %v1012_v1, %v1008_v61  ;;  %v11660_v13 = vrot.slane %v3630_v51, 9  ;;  %v1026_v23 = vrot.slane %v1024_v6, 5  ;;  %v1032_v17 = vrot.slane %v1030_v7, 5  ;;  %v11713_v3 = vld [vmem:[%s14333_s6 + $0x28] sm:$0xf] }
  0xb4   : > { %v1004_v15 = vrot.slane %v1003_v5, 4  ;;  %v1036_v29 = vrot.slane %v1034_v8, 4  ;;  %v1042_v21 = vrot.slane %v1040_v12, 5  ;;  %v3787_v22 = vrot.slane %v3631_v62, 5  ;;  %v11712_v62 = vld [vmem:[%s14333_s6 + $0x24] sm:$0xf] }
  0xb5   : > { %v1014_v20 = vrot.slane %v1013_v10, 4  ;;  %v3790_v24 = vrot.slane %v3632_v63, 5  ;;  %v1027_v26 = vor.u32 %v1026_v23, %v1023_v11  ;;  %v11661_v28 = vrot.slane %v3633_v4, 9  ;;  %v11714_v12 = vld [vmem:[%s14333_s6 + $0x2c] sm:$0x1] }
  0xb6   : > { %v1009_v25 = vsel %vm14358_vm3, %v1004_v15, %v1008_v61  ;;  %v1037_v27 = vor.u32 %v1036_v29, %v1032_v17  ;;  %v3788_v19 = vsel %vm14559_vm6, %v11660_v13, %v3787_v22  ;;  %v3789_v32 = vrot.slane %v3787_v22, 4  ;;  %v11715_v13 = vld [vmem:[%s14333_s6 + $0x30] sm:$0xf]  ;;  %v14154_v29 = vld [vmem:[%s14333_s6 + $0x18] sm:$0xff]  }
  0xb7   : > { %v1019_v31 = vsel %vm14358_vm3, %v1014_v20, %v1018_v2  ;;  %v3794_v33 = vrot.slane %v3634_v9, 5  ;;  %v1028_v36 = vrot.slane %v1027_v26, 4  ;;  %v3797_v38 = vrot.slane %v3635_v14, 5 }
  0xb8   : > { %v11411_v35 = vcombine.low %v1009_v25, %v1019_v31  ;;  %v1038_v37 = vrot.slane %v1037_v27, 4  ;;  %v3791_v39 = vsel %vm14559_vm6, %v3789_v32, %v3790_v24  ;;  %v4234_v43 = vshrl.u32 %v11706_v18, 16  ;;  %v14157_v27 = vld [vmem:[%s14333_s6 + $0x24] sm:$0xff]  }
  0xb9   : > { %v3795_v40 = vsel %vm14559_vm6, %v11661_v28, %v3794_v33  ;;  %v3796_v41 = vrot.slane %v3794_v33, 4  ;;  %v1033_v45 = vsel %vm14358_vm3, %v1028_v36, %v1032_v17  ;;  %v11684_v47 = vcombine.low %v3788_v19, %v3791_v39  ;;  %v14161_v33 = vld [vmem:[%s16741_s1 + $0x68] sm:$0xff]  }
  0xba   : > { %13140 = vmatprep.mubr.msk.bf16.mxu0 %vm367_vm0, %v11411_v35  ;;  %v1043_v46 = vsel %vm14358_vm3, %v1038_v37, %v1042_v21  ;;  %v4237_v49 = vshll.u32 %v11706_v18, 16  ;;  %v4236_v53 = vrot.slane %v4234_v43, 4  ;;  %v4243_v55 = vshll.u32 %v11707_v30, 16 }
  0xbb   : > { %v11412_v51 = vcombine.low %v1033_v45, %v1043_v46  ;;  %v3798_v52 = vsel %vm14559_vm6, %v3796_v41, %v3797_v38  ;;  %13300 = vmatprep.mubr.msk.bf16.mxu1 %vm367_vm0, %v11684_v47  ;;  %v4247_v59 = vshrl.u32 %v11707_v30, 16  ;;  %v4253_v61 = vshll.u32 %v11708_v42, 16  ;;  %v11716_v38 = vld [vmem:[%s14333_s6 + $0x34] sm:$0xf]  ;;  %v11718_v45 = vld [vmem:[%s14333_s6 + $0x3c] sm:$0xf] }
  0xbc   : > { %v11685_v57 = vcombine.low %v3795_v40, %v3798_v52  ;;  %v4239_v58 = vrot.slane %v4237_v49, 5  ;;  %v4245_v63 = vrot.slane %v4243_v55, 5  ;;  %v4258_v0 = vshrl.u32 %v11709_v44, 16  ;;  %v14868_v46 = vld [vmem:[%s16741_s1 + $0xe8] sm:$0xff]   ;;  %v14167_v52 = vld [vmem:[%s16741_s1 + $0x70] sm:$0xff]  }
  0xbd   : > { %13141 = vmatmul.mubr.msk.bf16.gmra.mrb[28].mxu0 %vm367_vm0, %v11412_v51  ;;  %v4261_v1 = vshll.u32 %v11709_v44, 16  ;;  %v4267_v2 = vshll.u32 %v11710_v50, 16  ;;  %v4249_v5 = vrot.slane %v4247_v59, 4  ;;  %v4255_v6 = vrot.slane %v4253_v61, 5  ;;  %v11717_v44 = vld [vmem:[%s14333_s6 + $0x38] sm:$0x1] }
  0xbe   : > { %13301 = vmatmul.mubr.msk.bf16.gmra.mrb[28].mxu1 %vm367_vm0, %v11685_v57  ;;  %13152 = vmatprep.mubr.msk.bf16.mxu0 %vm367_vm0, %v14153_v48  ;;  %v4240_v4 = vor.u32 %v4239_v58, %v4236_v53  ;;  %v4271_v7 = vshrl.u32 %v11710_v50, 16  ;;  %v4260_v8 = vrot.slane %v4258_v0, 4  ;;  %v4277_v11 = vshll.u32 %v11711_v56, 16  ;;  %v11719_v51 = vld [vmem:[%s14333_s6 + $0x40] sm:$0xf]  ;;  %v14158_v0 = vld [vmem:[%s14333_s6 + $0x30] sm:$0xff]  }
  0xbf   : > { %v4263_v9 = vrot.slane %v4261_v1, 5  ;;  %v4269_v10 = vrot.slane %v4267_v2, 5  ;;  %v4250_v15 = vor.u32 %v4249_v5, %v4245_v63  ;;  %v4282_v17 = vshrl.u32 %v11712_v62, 16  ;;  %v11720_v57 = vld [vmem:[%s14333_s6 + $0x44] sm:$0x1] }
  0xc0   : > { %v4241_v14 = vrot.slane %v4240_v4, 4  ;;  %v4273_v23 = vrot.slane %v4271_v7, 4  ;;  %v4279_v20 = vrot.slane %v4277_v11, 5  ;;  %v4285_v21 = vshll.u32 %v11712_v62, 16 }
  0xc1   : > { %v4264_v18 = vor.u32 %v4263_v9, %v4260_v8  ;;  %v4291_v22 = vshll.u32 %v11713_v3, 16  ;;  %v4251_v25 = vrot.slane %v4250_v15, 4  ;;  %v4284_v28 = vrot.slane %v4282_v17, 4  ;;  %v14159_v8 = vld [vmem:[%s14333_s6 + $0x3c] sm:$0xff]  }
  0xc2   : > { %v4246_v24 = vsel %vm14358_vm3, %v4241_v14, %v4245_v63  ;;  %v4274_v26 = vor.u32 %v4273_v23, %v4269_v10  ;;  %v4287_v31 = vrot.slane %v4285_v21, 5  ;;  %v4295_v32 = vshrl.u32 %v11713_v3, 16  ;;  %v11721_v63 = vld [vmem:[%s14333_s6 + $0x48] sm:$0xf]  ;;  %v14173_v14 = vld [vmem:[%s16741_s1 + $0x78] sm:$0xff]  }
  0xc3   : > { %v4265_v30 = vrot.slane %v4264_v18, 4  ;;  %v4293_v19 = vrot.slane %v4291_v22, 5  ;;  %v4256_v35 = vsel %vm14358_vm3, %v4251_v25, %v4255_v6  ;;  %v4301_v37 = vshll.u32 %v11714_v12, 16  ;;  %v11722_v18 = vld [vmem:[%s14333_s6 + $0x4c] sm:$0xf] }
  0xc4   : > { %v4275_v36 = vrot.slane %v4274_v26, 4  ;;  %v4306_v39 = vshrl.u32 %v11715_v13, 16  ;;  %v11762_v40 = vcombine.low %v4246_v24, %v4256_v35  ;;  %v4288_v42 = vor.u32 %v4287_v31, %v4284_v28  ;;  %v11724_v26 = vld [vmem:[%s14333_s6 + $0x54] sm:$0xf] }
  0xc5   : > { %13153 = vmatmul.mubr.msk.bf16.vlgmr.msra.gmra.mrb[0].mxu0 %vm367_vm0, %v14154_v29  ;;  %v4270_v41 = vsel %vm14358_vm3, %v4265_v30, %v4269_v10  ;;  %v4297_v43 = vrot.slane %v4295_v32, 4  ;;  %v4303_v48 = vrot.slane %v4301_v37, 5  ;;  %v4309_v50 = vshll.u32 %v11715_v13, 16  ;;  %v11725_v37 = vld [vmem:[%s14333_s6 + $0x58] sm:$0xf] }
  0xc6   : > { %13185 = vmatpush3.bf16.msra.mxu0 %v14637_v54  ;;  %v4280_v47 = vsel %vm14358_vm3, %v4275_v36, %v4279_v20  ;;  %13156 = vmatprep.mubr.msk.bf16.mxu0 %vm367_vm0, %v14157_v27  ;;  %v4308_v49 = vrot.slane %v4306_v39, 4  ;;  %v4289_v55 = vrot.slane %v4288_v42, 4  ;;  %v4315_v56 = vshll.u32 %v11716_v38, 16  ;;  %v11723_v20 = vld [vmem:[%s14333_s6 + $0x50] sm:$0x1] }
  0xc7   : > { %13312 = vmatprep.mubr.msk.bf16.mxu1 %vm367_vm0, %v11762_v40  ;;  %v11763_v53 = vcombine.low %v4270_v41, %v4280_v47  ;;  %v4298_v54 = vor.u32 %v4297_v43, %v4293_v19  ;;  %13186 = vmatprep.subr.bf16.mxu0 %v14161_v33  ;;  %v4311_v58 = vrot.slane %v4309_v50, 5  ;;  %v4319_v59 = vshrl.u32 %v11716_v38, 16  ;;  %v14174_v38 = vld [vmem:[%s16741_s1 + $0xf8] sm:$0xff]  }
  0xc8   : > { %v4325_v61 = vshll.u32 %v11717_v44, 16  ;;  %v4330_v62 = vshrl.u32 %v11718_v45, 16  ;;  %v4294_v1 = vsel %vm14358_vm3, %v4289_v55, %v4293_v19  ;;  %v4317_v3 = vrot.slane %v4315_v56, 5  ;;  %v14160_v19 = vld [vmem:[%s14333_s6 + $0x48] sm:$0xff]   ;;  %v11726_v43 = vld [vmem:[%s14333_s6 + $0x5c] sm:$0x1] }
  0xc9   : > { %13313 = vmatmul.mubr.msk.bf16.vlgmr.msra.gmra.mrb[0].mxu1 %vm367_vm0, %v11763_v53  ;;  %v4299_v2 = vrot.slane %v4298_v54, 4  ;;  %v4333_v4 = vshll.u32 %v11718_v45, 16  ;;  %v4312_v5 = vor.u32 %v4311_v58, %v4308_v49  ;;  %v4321_v6 = vrot.slane %v4319_v59, 4  ;;  %v14916_v44 = vld [vmem:[%s16741_s1 + $0x100] sm:$0xff]   ;;  %v14163_v53 = vld [vmem:[%s14333_s6 + $0x54] sm:$0xff]  }
  0xca   : > { %13345 = vmatpush3.bf16.msra.mxu1 %v14646_v60  ;;  %v4327_v7 = vrot.slane %v4325_v61, 5  ;;  %v4332_v9 = vrot.slane %v4330_v62, 4  ;;  %13187 = vmatpush3.bf16.msra.mxu0 %v14161_v33  ;;  %v4339_v12 = vshll.u32 %v11719_v51, 16  ;;  %v4343_v13 = vshrl.u32 %v11719_v51, 16  ;;  %v14168_v60 = vld [vmem:[%s16741_s1 + $0xf0] sm:$0xff]  }
  0xcb   : > { %v4304_v10 = vsel %vm14358_vm3, %v4299_v2, %v4303_v48  ;;  %v4335_v11 = vrot.slane %v4333_v4, 5  ;;  %13346 = vmatprep.subr.bf16.mxu1 %v14868_v46  ;;  %13188 = vmatprep.subr.bf16.mxu0 %v14167_v52  ;;  %v4313_v23 = vrot.slane %v4312_v5, 4  ;;  %v4322_v17 = vor.u32 %v4321_v6, %v4317_v3  ;;  %v11727_v49 = vld [vmem:[%s14333_s6 + $0x60] sm:$0xf] }
  0xcc   : > { %v11764_v15 = vcombine.low %v4294_v1, %v4304_v10  ;;  %v4349_v29 = vshll.u32 %v11720_v57, 16  ;;  %v4341_v22 = vrot.slane %v4339_v12, 5  ;;  %v4345_v24 = vrot.slane %v4343_v13, 4  ;;  %v14931_v5 = vld [vmem:[%s16741_s1 + $0x180] sm:$0xff]   ;;  %v11729_v13 = vld [vmem:[%s14333_s6 + $0x68] sm:$0x1] }
  0xcd   : > { %13157 = vmatmul.mubr.msk.bf16.gmra.mrb[4].mxu0 %vm367_vm0, %v14158_v0  ;;  %v4336_v21 = vor.u32 %v4335_v11, %v4332_v9  ;;  %v4354_v25 = vshrl.u32 %v11721_v63, 16  ;;  %v4318_v27 = vsel %vm14358_vm3, %v4313_v23, %v4317_v3  ;;  %v4323_v28 = vrot.slane %v4322_v17, 4  ;;  %v11728_v0 = vld [vmem:[%s14333_s6 + $0x64] sm:$0xf] }
  0xce   : > { %13316 = vmatprep.mubr.msk.bf16.mxu1 %vm367_vm0, %v11764_v15  ;;  %13160 = vmatprep.mubr.msk.bf16.mxu0 %vm367_vm0, %v14159_v8  ;;  %v4351_v30 = vrot.slane %v4349_v29, 5  ;;  %v4357_v31 = vshll.u32 %v11721_v63, 16  ;;  %v4346_v33 = vor.u32 %v4345_v24, %v4341_v22  ;;  %v4363_v36 = vshll.u32 %v11722_v18, 16 }
  0xcf   : > { %v4337_v32 = vrot.slane %v4336_v21, 4  ;;  %v4356_v35 = vrot.slane %v4354_v25, 4  ;;  %13347 = vmatpush3.bf16.msra.mxu1 %v14868_v46  ;;  %13189 = vmatpush3.bf16.msra.mxu0 %v14167_v52  ;;  %v4328_v39 = vsel %vm14358_vm3, %v4323_v28, %v4327_v7  ;;  %v4367_v41 = vshrl.u32 %v11722_v18, 16  ;;  %v11731_v18 = vld [vmem:[%s14333_s6 + $0x70] sm:$0xf]  ;;  %v14164_v21 = vld [vmem:[%s14333_s6 + $0x60] sm:$0xff]  }
  0xd0   : > { %v4359_v40 = vrot.slane %v4357_v31, 5  ;;  %v4373_v42 = vshll.u32 %v11723_v20, 16  ;;  %13348 = vmatprep.subr.bf16.mxu1 %v14168_v60  ;;  %13190 = vmatprep.subr.bf16.mxu0 %v14173_v14  ;;  %v11765_v45 = vcombine.low %v4318_v27, %v4328_v39  ;;  %v4347_v47 = vrot.slane %v4346_v33, 4  ;;  %v11733_v27 = vld [vmem:[%s14333_s6 + $0x78] sm:$0xf] }
  0xd1   : > { %v4342_v46 = vsel %vm14358_vm3, %v4337_v32, %v4341_v22  ;;  %v4365_v48 = vrot.slane %v4363_v36, 5  ;;  %v4369_v51 = vrot.slane %v4367_v41, 4  ;;  %v4378_v55 = vshrl.u32 %v11724_v26, 16  ;;  %v11734_v33 = vld [vmem:[%s14333_s6 + $0x7c] sm:$0xf] }
  0xd2   : > { %v4360_v50 = vor.u32 %v4359_v40, %v4356_v35  ;;  %v4375_v52 = vrot.slane %v4373_v42, 5  ;;  %13317 = vmatmul.mubr.msk.bf16.gmra.mrb[4].mxu1 %vm367_vm0, %v11765_v45  ;;  %v4352_v54 = vsel %vm14358_vm3, %v4347_v47, %v4351_v30  ;;  %v4381_v56 = vshll.u32 %v11724_v26, 16  ;;  %v11732_v26 = vld [vmem:[%s14333_s6 + $0x74] sm:$0x1] }
  0xd3   : > { %v4387_v57 = vshll.u32 %v11725_v37, 16  ;;  %v4391_v58 = vshrl.u32 %v11725_v37, 16  ;;  %13191 = vmatpush3.bf16.msra.mxu0 %v14173_v14  ;;  %v11766_v59 = vcombine.low %v4342_v46, %v4352_v54  ;;  %v4370_v62 = vor.u32 %v4369_v51, %v4365_v48  ;;  %13349 = vmatpush3.bf16.msra.mxu1 %v14168_v60  ;;  %v11730_v14 = vld [vmem:[%s14333_s6 + $0x6c] sm:$0xf] }
  0xd4   : > { %v4361_v61 = vrot.slane %v4360_v50, 4  ;;  %v4380_v63 = vrot.slane %v4378_v55, 4  ;;  %13384 = vmatprep.subr.bf16.mxu0 %v14916_v44  ;;  %v4383_v1 = vrot.slane %v4381_v56, 5  ;;  %v4397_v4 = vshll.u32 %v11726_v43, 16  ;;  %13350 = vmatprep.subr.bf16.mxu1 %v14174_v38  ;;  %v14166_v55 = vld [vmem:[%s14333_s6 + $0x78] sm:$0xff]  }
  0xd5   : > { %13161 = vmatmul.mubr.msk.bf16.gmra.mrb[8].mxu0 %vm367_vm0, %v14160_v19  ;;  %v4389_v2 = vrot.slane %v4387_v57, 5  ;;  %v4393_v3 = vrot.slane %v4391_v58, 4  ;;  %13320 = vmatprep.mubr.msk.bf16.mxu1 %vm367_vm0, %v11766_v59  ;;  %v4371_v7 = vrot.slane %v4370_v62, 4  ;;  %v4402_v8 = vshrl.u32 %v11727_v49, 16  ;;  %v14165_v19 = vld [vmem:[%s14333_s6 + $0x6c] sm:$0xff]  }
  0xd6   : > { %v4366_v6 = vsel %vm14358_vm3, %v4361_v61, %v4365_v48  ;;  %13164 = vmatprep.mubr.msk.bf16.mxu0 %vm367_vm0, %v14163_v53  ;;  %v4405_v9 = vshll.u32 %v11727_v49, 16  ;;  %v4384_v10 = vor.u32 %v4383_v1, %v4380_v63  ;;  %v4399_v12 = vrot.slane %v4397_v4, 5  ;;  %v11735_v48 = vld [vmem:[%s14333_s6 + $0x80] sm:$0x1]  ;;  %v11736_v53 = vld [vmem:[%s14333_s6 + $0x84] sm:$0xf] }
  0xd7   : > { %v4394_v11 = vor.u32 %v4393_v3, %v4389_v2  ;;  %v4411_v60 = vshll.u32 %v11728_v0, 16  ;;  %v4376_v15 = vsel %vm14358_vm3, %v4371_v7, %v4375_v52  ;;  %v4404_v23 = vrot.slane %v4402_v8, 4  ;;  %13351 = vmatpush3.bf16.msra.mxu1 %v14174_v38  ;;  %v11737_v59 = vld [vmem:[%s14333_s6 + $0x88] sm:$0xf]  ;;  %v11738_v7 = vld [vmem:[%s14333_s6 + $0x8c] sm:$0x1] }
  0xd8   : > { %v4407_v17 = vrot.slane %v4405_v9, 5  ;;  %v4415_v29 = vshrl.u32 %v11728_v0, 16  ;;  %v11767_v20 = vcombine.low %v4366_v6, %v4376_v15  ;;  %v4385_v22 = vrot.slane %v4384_v10, 4  ;;  %13544 = vmatprep.subr.bf16.mxu1 %v14931_v5  ;;  %v14169_v1 = vld [vmem:[%s14333_s6 + $0x84] sm:$0xff]  }
  0xd9   : > { %v4395_v24 = vrot.slane %v4394_v11, 4  ;;  %v4413_v25 = vrot.slane %v4411_v60, 5  ;;  %v4421_v31 = vshll.u32 %v11729_v13, 16  ;;  %v4426_v32 = vshrl.u32 %v11730_v14, 16 }
  0xda   : > { %v4408_v28 = vor.u32 %v4407_v17, %v4404_v23  ;;  %v4417_v30 = vrot.slane %v4415_v29, 4  ;;  %13321 = vmatmul.mubr.msk.bf16.gmra.mrb[8].mxu1 %vm367_vm0, %v11767_v20  ;;  %v4390_v35 = vsel %vm14358_vm3, %v4385_v22, %v4389_v2  ;;  %v4429_v37 = vshll.u32 %v11730_v14, 16  ;;  %v11740_v23 = vld [vmem:[%s14333_s6 + $0x94] sm:$0xf] }
  0xdb   : > { %v4400_v36 = vsel %vm14358_vm3, %v4395_v24, %v4399_v12  ;;  %v4435_v38 = vshll.u32 %v11731_v18, 16  ;;  %v4423_v42 = vrot.slane %v4421_v31, 5  ;;  %v4428_v43 = vrot.slane %v4426_v32, 4  ;;  %v11739_v12 = vld [vmem:[%s14333_s6 + $0x90] sm:$0xf] }
  0xdc   : > { %v11768_v39 = vcombine.low %v4390_v35, %v4400_v36  ;;  %v4409_v40 = vrot.slane %v4408_v28, 4  ;;  %v4418_v41 = vor.u32 %v4417_v30, %v4413_v25  ;;  %v4431_v45 = vrot.slane %v4429_v37, 5 }
  0xdd   : > { %13165 = vmatmul.mubr.msk.bf16.gmra.mrb[12].mxu0 %vm367_vm0, %v14164_v21  ;;  %v4437_v46 = vrot.slane %v4435_v38, 5  ;;  %v4439_v47 = vshrl.u32 %v11731_v18, 16  ;;  %v4445_v51 = vshll.u32 %v11732_v26, 16  ;;  %v4450_v52 = vshrl.u32 %v11733_v27, 16 }
  0xde   : > { %13324 = vmatprep.mubr.msk.bf16.mxu1 %vm367_vm0, %v11768_v39  ;;  %v4414_v49 = vsel %vm14358_vm3, %v4409_v40, %v4413_v25  ;;  %v4419_v50 = vrot.slane %v4418_v41, 4  ;;  %13168 = vmatprep.mubr.msk.bf16.mxu0 %vm367_vm0, %v14165_v19  ;;  %v4432_v54 = vor.u32 %v4431_v45, %v4428_v43  ;;  %v4453_v57 = vshll.u32 %v11733_v27, 16  ;;  %v11742_v40 = vld [vmem:[%s14333_s6 + $0x9c] sm:$0xf] }
  0xdf   : > { %v4441_v56 = vrot.slane %v4439_v47, 4  ;;  %v4459_v58 = vshll.u32 %v11734_v33, 16  ;;  %v4447_v62 = vrot.slane %v4445_v51, 5  ;;  %v4452_v63 = vrot.slane %v4450_v52, 4  ;;  %v11743_v47 = vld [vmem:[%s14333_s6 + $0xa0] sm:$0xf] }
  0xe0   : > { %v4424_v61 = vsel %vm14358_vm3, %v4419_v50, %v4423_v42  ;;  %v4463_v0 = vshrl.u32 %v11734_v33, 16  ;;  %v4433_v3 = vrot.slane %v4432_v54, 4  ;;  %v4455_v6 = vrot.slane %v4453_v57, 5  ;;  %v11741_v33 = vld [vmem:[%s14333_s6 + $0x98] sm:$0x1]  ;;  %v14170_v42 = vld [vmem:[%s14333_s6 + $0x90] sm:$0xff]  }
  0xe1   : > { %v11769_v2 = vcombine.low %v4414_v49, %v4424_v61  ;;  %v4442_v4 = vor.u32 %v4441_v56, %v4437_v46  ;;  %v4461_v8 = vrot.slane %v4459_v58, 5  ;;  %v4469_v10 = vshll.u32 %v11735_v48, 16  ;;  %v14171_v52 = vld [vmem:[%s14333_s6 + $0x9c] sm:$0xff]   ;;  %v11744_v54 = vld [vmem:[%s14333_s6 + $0xa4] sm:$0x1] }
  0xe2   : > { %v4465_v9 = vrot.slane %v4463_v0, 4  ;;  %v4474_v11 = vshrl.u32 %v11736_v53, 16  ;;  %v4438_v13 = vsel %vm14358_vm3, %v4433_v3, %v4437_v46  ;;  %v4456_v14 = vor.u32 %v4455_v6, %v4452_v63  ;;  %v11745_v63 = vld [vmem:[%s14333_s6 + $0xa8] sm:$0xf] }
  0xe3   : > { %13325 = vmatmul.mubr.msk.bf16.gmra.mrb[12].mxu1 %vm367_vm0, %v11769_v2  ;;  %v4443_v60 = vrot.slane %v4442_v4, 4  ;;  %v4477_v15 = vshll.u32 %v11736_v53, 16  ;;  %v4471_v29 = vrot.slane %v4469_v10, 5  ;;  %v4483_v20 = vshll.u32 %v11737_v59, 16  ;;  %v11746_v4 = vld [vmem:[%s14333_s6 + $0xac] sm:$0xf] }
  0xe4   : > { %v4466_v17 = vor.u32 %v4465_v9, %v4461_v8  ;;  %v4476_v18 = vrot.slane %v4474_v11, 4  ;;  %v4457_v22 = vrot.slane %v4456_v14, 4  ;;  %v4487_v25 = vshrl.u32 %v11737_v59, 16 }
  0xe5   : > { %13169 = vmatmul.mubr.msk.bf16.gmra.mrb[16].mxu0 %vm367_vm0, %v14166_v55  ;;  %v4448_v21 = vsel %vm14358_vm3, %v4443_v60, %v4447_v62  ;;  %v4479_v24 = vrot.slane %v4477_v15, 5  ;;  %v4485_v28 = vrot.slane %v4483_v20, 5  ;;  %v4493_v30 = vshll.u32 %v11738_v7, 16 }
  0xe6   : > { %v11770_v26 = vcombine.low %v4438_v13, %v4448_v21  ;;  %v4467_v27 = vrot.slane %v4466_v17, 4  ;;  %13172 = vmatprep.mubr.msk.bf16.mxu0 %vm367_vm0, %v14169_v1  ;;  %v4462_v31 = vsel %vm14358_vm3, %v4457_v22, %v4461_v8  ;;  %v4489_v32 = vrot.slane %v4487_v25, 4  ;;  %v11747_v13 = vld [vmem:[%s14333_s6 + $0xb0] sm:$0x1]  ;;  %v11749_v25 = vld [vmem:[%s14333_s6 + $0xb8] sm:$0xf] }
  0xe7   : > { %v4480_v19 = vor.u32 %v4479_v24, %v4476_v18  ;;  %v4498_v35 = vshrl.u32 %v11739_v12, 16  ;;  %v4495_v37 = vrot.slane %v4493_v30, 5  ;;  %v4501_v38 = vshll.u32 %v11739_v12, 16  ;;  %v14172_v18 = vld [vmem:[%s14333_s6 + $0xa8] sm:$0xff]  }
  0xe8   : > { %13328 = vmatprep.mubr.msk.bf16.mxu1 %vm367_vm0, %v11770_v26  ;;  %v4472_v36 = vsel %vm14358_vm3, %v4467_v27, %v4471_v29  ;;  %v4507_v39 = vshll.u32 %v11740_v23, 16  ;;  %v4490_v45 = vor.u32 %v4489_v32, %v4485_v28  ;;  %v4511_v50 = vshrl.u32 %v11740_v23, 16  ;;  %v11748_v29 = vld [vmem:[%s14333_s6 + $0xb4] sm:$0xf] }
  0xe9   : > { %v11771_v41 = vcombine.low %v4462_v31, %v4472_v36  ;;  %v4481_v43 = vrot.slane %v4480_v19, 4  ;;  %v4500_v46 = vrot.slane %v4498_v35, 4  ;;  %v4503_v48 = vrot.slane %v4501_v38, 5  ;;  %v14175_v31 = vld [vmem:[%s14333_s6 + $0xb4] sm:$0xff]   ;;  %v11750_v19 = vld [vmem:[%s14333_s6 + $0xbc] sm:$0x1] }
  0xea   : > { %v4509_v49 = vrot.slane %v4507_v39, 5  ;;  %v4517_v51 = vshll.u32 %v11741_v33, 16  ;;  %v4491_v55 = vrot.slane %v4490_v45, 4  ;;  %v4522_v56 = vshrl.u32 %v11742_v40, 16 }
  0xeb   : > { %13329 = vmatmul.mubr.msk.bf16.gmra.mrb[16].mxu1 %vm367_vm0, %v11771_v41  ;;  %v4486_v53 = vsel %vm14358_vm3, %v4481_v43, %v4485_v28  ;;  %v4525_v57 = vshll.u32 %v11742_v40, 16  ;;  %v4504_v58 = vor.u32 %v4503_v48, %v4500_v46  ;;  %v4513_v59 = vrot.slane %v4511_v50, 4 }
  0xec   : > { %v4519_v61 = vrot.slane %v4517_v51, 5  ;;  %v4531_v62 = vshll.u32 %v11743_v47, 16  ;;  %v4496_v0 = vsel %vm14358_vm3, %v4491_v55, %v4495_v37  ;;  %v4524_v1 = vrot.slane %v4522_v56, 4  ;;  %v11751_v37 = vld [vmem:[%s14333_s6 + $0xc0] sm:$0xf] }
  0xed   : > { %13173 = vmatmul.mubr.msk.bf16.gmra.mrb[20].mxu0 %vm367_vm0, %v14170_v42  ;;  %v4527_v2 = vrot.slane %v4525_v57, 5  ;;  %v4535_v3 = vshrl.u32 %v11743_v47, 16  ;;  %v11772_v6 = vcombine.low %v4486_v53, %v4496_v0  ;;  %v4505_v7 = vrot.slane %v4504_v58, 4  ;;  %v11752_v51 = vld [vmem:[%s14333_s6 + $0xc4] sm:$0xf] }
  0xee   : > { %v4514_v8 = vor.u32 %v4513_v59, %v4509_v49  ;;  %13176 = vmatprep.mubr.msk.bf16.mxu0 %vm367_vm0, %v14171_v52  ;;  %v4533_v9 = vrot.slane %v4531_v62, 5  ;;  %v4541_v12 = vshll.u32 %v11744_v54, 16  ;;  %v4546_v60 = vshrl.u32 %v11745_v63, 16  ;;  %v14176_v58 = vld [vmem:[%s14333_s6 + $0xc0] sm:$0xff]  }
  0xef   : > { %v4528_v10 = vor.u32 %v4527_v2, %v4524_v1  ;;  %v4537_v11 = vrot.slane %v4535_v3, 4  ;;  %13332 = vmatprep.mubr.msk.bf16.mxu1 %vm367_vm0, %v11772_v6  ;;  %v4510_v14 = vsel %vm14358_vm3, %v4505_v7, %v4509_v49  ;;  %v4549_v23 = vshll.u32 %v11745_v63, 16  ;;  %v11753_v1 = vld [vmem:[%s14333_s6 + $0xc8] sm:$0x1]  ;;  %v11509_v3 = vld [vmem:[%s14333_s6 + $0xc] sm:$0xf] }
  0xf0   : > { %v4515_v15 = vrot.slane %v4514_v8, 4  ;;  %v4555_v17 = vshll.u32 %v11746_v4, 16  ;;  %v4543_v22 = vrot.slane %v4541_v12, 5  ;;  %v4548_v24 = vrot.slane %v4546_v60, 4 }
  0xf1   : > { %v4529_v20 = vrot.slane %v4528_v10, 4  ;;  %v4538_v21 = vor.u32 %v4537_v11, %v4533_v9  ;;  %v4551_v27 = vrot.slane %v4549_v23, 5  ;;  %v4559_v30 = vshrl.u32 %v11746_v4, 16 }
  0xf2   : > { %v4520_v26 = vsel %vm14358_vm3, %v4515_v15, %v4519_v61  ;;  %v4557_v28 = vrot.slane %v4555_v17, 5  ;;  %v4565_v36 = vshll.u32 %v11747_v13, 16  ;;  %v4570_v40 = vshrl.u32 %v11748_v29, 16 }
  0xf3   : > { %v11773_v32 = vcombine.low %v4510_v14, %v4520_v26  ;;  %v4534_v33 = vsel %vm14358_vm3, %v4529_v20, %v4533_v9  ;;  %v4539_v35 = vrot.slane %v4538_v21, 4  ;;  %v4552_v38 = vor.u32 %v4551_v27, %v4548_v24  ;;  %v11510_v9 = vld [vmem:[%s14333_s6 + $0x10] sm:$0xf] }
  0xf4   : > { %v4561_v39 = vrot.slane %v4559_v30, 4  ;;  %v4573_v41 = vshll.u32 %v11748_v29, 16  ;;  %v4567_v43 = vrot.slane %v4565_v36, 5  ;;  %v4579_v45 = vshll.u32 %v11749_v25, 16 }
  0xf5   : > { %13333 = vmatmul.mubr.msk.bf16.gmra.mrb[20].mxu1 %vm367_vm0, %v11773_v32  ;;  %13177 = vmatmul.mubr.msk.bf16.gmra.mrb[24].mxu0 %vm367_vm0, %v14172_v18  ;;  %v4544_v42 = vsel %vm14358_vm3, %v4539_v35, %v4543_v22  ;;  %v4583_v46 = vshrl.u32 %v11749_v25, 16  ;;  %v4553_v48 = vrot.slane %v4552_v38, 4  ;;  %v4572_v50 = vrot.slane %v4570_v40, 4  ;;  %v11511_v18 = vld [vmem:[%s14333_s6 + $0x14] sm:$0x1] }
  0xf6   : > { %v11774_v47 = vcombine.low %v4534_v33, %v4544_v42  ;;  %v4562_v49 = vor.u32 %v4561_v39, %v4557_v28  ;;  %13180 = vmatprep.mubr.msk.bf16.mxu0 %vm367_vm0, %v14175_v31  ;;  %v4575_v52 = vrot.slane %v4573_v41, 5  ;;  %v4581_v53 = vrot.slane %v4579_v45, 5  ;;  %v11512_v22 = vld [vmem:[%s14333_s6 + $0x18] sm:$0xf] }
  0xf7   : > { %v4585_v55 = vrot.slane %v4583_v46, 4  ;;  %v4589_v54 = vshll.u32 %v11750_v19, 16  ;;  %v4558_v56 = vsel %vm14358_vm3, %v4553_v48, %v4557_v28  ;;  %v4594_v59 = vshrl.u32 %v11751_v37, 16  ;;  %v11513_v28 = vld [vmem:[%s14333_s6 + $0x1c] sm:$0xf] }
  0xf8   : > { %13336 = vmatprep.mubr.msk.bf16.mxu1 %vm367_vm0, %v11774_v47  ;;  %v4563_v57 = vrot.slane %v4562_v49, 4  ;;  %v4597_v61 = vshll.u32 %v11751_v37, 16  ;;  %v4576_v62 = vor.u32 %v4575_v52, %v4572_v50  ;;  %v4603_v2 = vshll.u32 %v11752_v51, 16  ;;  %v11514_v37 = vld [vmem:[%s14333_s6 + $0x20] sm:$0x1] }
  0xf9   : > { %v4586_v63 = vor.u32 %v4585_v55, %v4581_v53  ;;  %v4591_v0 = vrot.slane %v4589_v54, 5  ;;  %v4596_v6 = vrot.slane %v4594_v59, 4  ;;  %v4607_v8 = vshrl.u32 %v11752_v51, 16  ;;  %v11799_v49 = vld [vmem:[%s14333_s6 + $0x10] sm:$0xf] }
  0xfa   : > { %v4568_v4 = vsel %vm14358_vm3, %v4563_v57, %v4567_v43  ;;  %v4599_v7 = vrot.slane %v4597_v61, 5  ;;  %v4577_v11 = vrot.slane %v4576_v62, 4  ;;  %v4605_v13 = vrot.slane %v4603_v2, 5  ;;  %v11798_v43 = vld [vmem:[%s14333_s6 + $0xc] sm:$0xe] }
  0xfb   : > { %v11775_v10 = vcombine.low %v4558_v56, %v4568_v4  ;;  %v4587_v12 = vrot.slane %v4586_v63, 4  ;;  %v4609_v14 = vrot.slane %v4607_v8, 4  ;;  %v4613_v15 = vshll.u32 %v11753_v1, 16  ;;  %v11800_v55 = vld [vmem:[%s14333_s6 + $0x14] sm:$0x1] }
  0xfc   : > { %v4600_v60 = vor.u32 %v4599_v7, %v4596_v6  ;;  %v1930_v23 = vshrl.u32 %v11509_v3, 16  ;;  %v4582_v17 = vsel %vm14358_vm3, %v4577_v11, %v4581_v53  ;;  %v1933_v20 = vshll.u32 %v11509_v3, 16  ;;  %v11801_v54 = vld [vmem:[%s14333_s6 + $0x18] sm:$0xe]  ;;  %v11802_v61 = vld [vmem:[%s14333_s6 + $0x1c] sm:$0xf] }
  0xfd   : > { %13337 = vmatmul.mubr.msk.bf16.gmra.mrb[24].mxu1 %vm367_vm0, %v11775_v10  ;;  %13181 = vmatmul.mubr.msk.bf16.gmra.mrb[28].mxu0 %vm367_vm0, %v14176_v58  ;;  %v4592_v29 = vsel %vm14358_vm3, %v4587_v12, %v4591_v0  ;;  %v1939_v21 = vshll.u32 %v11510_v9, 16  ;;  %v4610_v26 = vor.u32 %v4609_v14, %v4605_v13  ;;  %v4615_v27 = vrot.slane %v4613_v15, 5  ;;  %v11803_v2 = vld [vmem:[%s14333_s6 + $0x20] sm:$0x1]  ;;  %v11515_v3 = vld [vmem:[%s14333_s6 + $0x24] sm:$0xf] }
  0xfe   : > { %v11776_v24 = vcombine.low %v4582_v17, %v4592_v29  ;;  %v4601_v25 = vrot.slane %v4600_v60, 4  ;;  %v1932_v30 = vrot.slane %v1930_v23, 4  ;;  %v1935_v31 = vrot.slane %v1933_v20, 5  ;;  %v11517_v60 = vld [vmem:[%s14333_s6 + $0x2c] sm:$0x1] }
  0xff   : > { %v1941_v19 = vrot.slane %v1939_v21, 5  ;;  %v1943_v32 = vshrl.u32 %v11510_v9, 16  ;;  %v4611_v35 = vrot.slane %v4610_v26, 4  ;;  %v1949_v36 = vshll.u32 %v11511_v18, 16  ;;  %v11516_v9 = vld [vmem:[%s14333_s6 + $0x28] sm:$0xf] }
 0x100   : > { %13340 = vmatprep.mubr.msk.bf16.mxu1 %vm367_vm0, %v11776_v24  ;;  %v4606_v33 = vsel %vm14358_vm3, %v4601_v25, %v4605_v13  ;;  %v1954_v38 = vshrl.u32 %v11512_v22, 16  ;;  %v1936_v39 = vor.u32 %v1935_v31, %v1932_v30  ;;  %v1957_v41 = vshll.u32 %v11512_v22, 16  ;;  %v11518_v14 = vld [vmem:[%s14333_s6 + $0x30] sm:$0xf] }
 0x101   : > { %v1945_v40 = vrot.slane %v1943_v32, 4  ;;  %v1963_v42 = vshll.u32 %v11513_v28, 16  ;;  %v4616_v45 = vsel %vm14358_vm3, %v4611_v35, %v4615_v27  ;;  %v1951_v46 = vrot.slane %v1949_v36, 5  ;;  %v11519_v32 = vld [vmem:[%s14333_s6 + $0x34] sm:$0xf] }
 0x102   : > { %v1956_v47 = vrot.slane %v1954_v38, 4  ;;  %v1967_v48 = vshrl.u32 %v11513_v28, 16  ;;  %v11777_v50 = vcombine.low %v4606_v33, %v4616_v45  ;;  %v1937_v51 = vrot.slane %v1936_v39, 4  ;;  %v14179_v33 = vld [vmem:[%s16741_s1 + $0x108] sm:$0xff]   ;;  %v11520_v38 = vld [vmem:[%s14333_s6 + $0x38] sm:$0x1] }
 0x103   : > { %v1946_v52 = vor.u32 %v1945_v40, %v1941_v19  ;;  %v1959_v53 = vrot.slane %v1957_v41, 5  ;;  %v1965_v56 = vrot.slane %v1963_v42, 5  ;;  %v1973_v58 = vshll.u32 %v11514_v37, 16  ;;  %v14180_v40 = vld [vmem:[%s16741_s1 + $0x188] sm:$0xff]  }
 0x104   : > { %v1969_v57 = vrot.slane %v1967_v48, 4  ;;  %v11846_v59 = vrot.slane %v11798_v43, 9  ;;  %v1942_v62 = vsel %vm14358_vm3, %v1937_v51, %v1941_v19  ;;  %v5101_v1 = vrot.slane %v11799_v49, 5  ;;  %v14181_v48 = vld [vmem:[%s16741_s1 + $0x110] sm:$0xff]  }
 0x105   : > { %13341 = vmatmul.mubr.msk.bf16.gmra.mrb[28].mxu1 %vm367_vm0, %v11777_v50  ;;  %v1947_v63 = vrot.slane %v1946_v52, 4  ;;  %v1960_v0 = vor.u32 %v1959_v53, %v1956_v47  ;;  %v1975_v6 = vrot.slane %v1973_v58, 5  ;;  %v5104_v7 = vrot.slane %v11800_v55, 5  ;;  %v11805_v47 = vld [vmem:[%s14333_s6 + $0x28] sm:$0xf] }
 0x106   : > { %v1970_v4 = vor.u32 %v1969_v57, %v1965_v56  ;;  %v11847_v8 = vrot.slane %v11801_v54, 9  ;;  %v5102_v12 = vsel %vm14559_vm6, %v11846_v59, %v5101_v1  ;;  %v5103_v13 = vrot.slane %v5101_v1, 4  ;;  %v11806_v53 = vld [vmem:[%s14333_s6 + $0x2c] sm:$0x1]  ;;  %v11807_v58 = vld [vmem:[%s14333_s6 + $0x30] sm:$0xe] }
 0x107   : > { %v1952_v10 = vsel %vm14358_vm3, %v1947_v63, %v1951_v46  ;;  %v1961_v11 = vrot.slane %v1960_v0, 4  ;;  %v5108_v17 = vrot.slane %v11802_v61, 5  ;;  %v5111_v29 = vrot.slane %v11803_v2, 5  ;;  %v11804_v46 = vld [vmem:[%s14333_s6 + $0x24] sm:$0xe]  ;;  %v14182_v0 = vld [vmem:[%s16741_s1 + $0x190] sm:$0xff]  }
 0x108   : > { %v11565_v15 = vcombine.low %v1942_v62, %v1952_v10  ;;  %v1971_v23 = vrot.slane %v1970_v4, 4  ;;  %v5105_v20 = vsel %vm14559_vm6, %v5103_v13, %v5104_v7  ;;  %v1978_v21 = vshrl.u32 %v11515_v3, 16  ;;  %v11808_v63 = vld [vmem:[%s14333_s6 + $0x34] sm:$0xf]  ;;  %v11521_v7 = vld [vmem:[%s14333_s6 + $0x3c] sm:$0xf] }
 0x109   : > { %v1966_v18 = vsel %vm14358_vm3, %v1961_v11, %v1965_v56  ;;  %v1981_v22 = vshll.u32 %v11515_v3, 16  ;;  %v11870_v25 = vcombine.low %v5102_v12, %v5105_v20  ;;  %v5109_v26 = vsel %vm14559_vm6, %v11847_v8, %v5108_v17 }
 0x10a   : > { %13192 = vmatprep.mubr.msk.bf16.mxu0 %vm367_vm0, %v11565_v15  ;;  %v1976_v24 = vsel %vm14358_vm3, %v1971_v23, %v1975_v6  ;;  %v5110_v27 = vrot.slane %v5108_v17, 4  ;;  %v1980_v30 = vrot.slane %v1978_v21, 4  ;;  %v1987_v19 = vshll.u32 %v11516_v9, 16  ;;  %v11809_v6 = vld [vmem:[%s14333_s6 + $0x38] sm:$0x1] }
 0x10b   : > { %v11566_v28 = vcombine.low %v1966_v18, %v1976_v24  ;;  %v1983_v31 = vrot.slane %v1981_v22, 5  ;;  %13352 = vmatprep.mubr.msk.bf16.mxu1 %vm367_vm0, %v11870_v25  ;;  %v1991_v36 = vshrl.u32 %v11516_v9, 16  ;;  %v1997_v37 = vshll.u32 %v11517_v60, 16  ;;  %v11523_v18 = vld [vmem:[%s14333_s6 + $0x44] sm:$0x1] }
 0x10c   : > { %v5112_v35 = vsel %vm14559_vm6, %v5110_v27, %v5111_v29  ;;  %v2002_v39 = vshrl.u32 %v11518_v14, 16  ;;  %v1989_v43 = vrot.slane %v1987_v19, 5  ;;  %v2005_v45 = vshll.u32 %v11518_v14, 16  ;;  %v14183_v14 = vld [vmem:[%s16741_s1 + $0x118] sm:$0xff]   ;;  %v11522_v29 = vld [vmem:[%s14333_s6 + $0x40] sm:$0xf] }
 0x10d   : > { %13193 = vmatmul.mubr.msk.bf16.vlgmr.msra.gmra.mrb[0].mxu0 %vm367_vm0, %v11566_v28  ;;  %v11871_v41 = vcombine.low %v5109_v26, %v5112_v35  ;;  %v1984_v42 = vor.u32 %v1983_v31, %v1980_v30  ;;  %v1993_v49 = vrot.slane %v1991_v36, 4  ;;  %v1999_v50 = vrot.slane %v1997_v37, 5  ;;  %v11524_v26 = vld [vmem:[%s14333_s6 + $0x48] sm:$0xf]  ;;  %v14184_v27 = vld [vmem:[%s16741_s1 + $0x198] sm:$0xff]  }
 0x10e   : > { %13385 = vmatpush3.bf16.msra.mxu0 %v14916_v44  ;;  %v2004_v51 = vrot.slane %v2002_v39, 4  ;;  %v2011_v52 = vshll.u32 %v11519_v32, 16  ;;  %v2007_v54 = vrot.slane %v2005_v45, 5  ;;  %v2015_v56 = vshrl.u32 %v11519_v32, 16  ;;  %v11525_v32 = vld [vmem:[%s14333_s6 + $0x4c] sm:$0xf] }
 0x10f   : > { %13353 = vmatmul.mubr.msk.bf16.vlgmr.msra.gmra.mrb[0].mxu1 %vm367_vm0, %v11871_v41  ;;  %v1985_v55 = vrot.slane %v1984_v42, 4  ;;  %v2021_v57 = vshll.u32 %v11520_v38, 16  ;;  %13386 = vmatprep.subr.bf16.mxu0 %v14179_v33  ;;  %v1994_v59 = vor.u32 %v1993_v49, %v1989_v43  ;;  %v11848_v61 = vrot.slane %v11804_v46, 9  ;;  %v11526_v38 = vld [vmem:[%s14333_s6 + $0x50] sm:$0x1]  ;;  %v15123_v39 = vld [vmem:[%s16741_s1 + $0x120] sm:$0xff]  }
 0x110   : > { %13545 = vmatpush3.bf16.msra.mxu1 %v14931_v5  ;;  %v2013_v44 = vrot.slane %v2011_v52, 5  ;;  %v5115_v62 = vrot.slane %v11805_v47, 5  ;;  %v2008_v2 = vor.u32 %v2007_v54, %v2004_v51  ;;  %v2017_v3 = vrot.slane %v2015_v56, 4  ;;  %v11810_v45 = vld [vmem:[%s14333_s6 + $0x3c] sm:$0xe]  ;;  %v15133_v52 = vld [vmem:[%s16741_s1 + $0x1a0] sm:$0xff]  }
 0x111   : > { %v1990_v1 = vsel %vm14358_vm3, %v1985_v55, %v1989_v43  ;;  %v2023_v4 = vrot.slane %v2021_v57, 5  ;;  %13546 = vmatprep.subr.bf16.mxu1 %v14180_v40  ;;  %v1995_v5 = vrot.slane %v1994_v59, 4  ;;  %v5118_v10 = vrot.slane %v11806_v53, 5  ;;  %v11811_v46 = vld [vmem:[%s14333_s6 + $0x40] sm:$0xf] }
 0x112   : > { %v5116_v8 = vsel %vm14559_vm6, %v11848_v61, %v5115_v62  ;;  %v5117_v9 = vrot.slane %v5115_v62, 4  ;;  %13387 = vmatpush3.bf16.msra.mxu0 %v14179_v33  ;;  %v2009_v11 = vrot.slane %v2008_v2, 4  ;;  %v2018_v12 = vor.u32 %v2017_v3, %v2013_v44  ;;  %v11812_v51 = vld [vmem:[%s14333_s6 + $0x44] sm:$0x1]  ;;  %v11813_v57 = vld [vmem:[%s14333_s6 + $0x48] sm:$0xe] }
 0x113   : > { %v11849_v13 = vrot.slane %v11807_v58, 9  ;;  %v5122_v60 = vrot.slane %v11808_v63, 5  ;;  %13388 = vmatprep.subr.bf16.mxu0 %v14181_v48  ;;  %v2000_v15 = vsel %vm14358_vm3, %v1995_v5, %v1999_v50  ;;  %v5125_v17 = vrot.slane %v11809_v6, 5  ;;  %v11814_v58 = vld [vmem:[%s14333_s6 + $0x4c] sm:$0xf] }
 0x114   : > { %v5119_v23 = vsel %vm14559_vm6, %v5117_v9, %v5118_v10  ;;  %v2026_v20 = vshrl.u32 %v11521_v7, 16  ;;  %13547 = vmatpush3.bf16.msra.mxu1 %v14180_v40  ;;  %v11567_v21 = vcombine.low %v1990_v1, %v2000_v15  ;;  %v2014_v22 = vsel %vm14358_vm3, %v2009_v11, %v2013_v44  ;;  %v11815_v63 = vld [vmem:[%s14333_s6 + $0x50] sm:$0x1]  ;;  %v11527_v15 = vld [vmem:[%s14333_s6 + $0x54] sm:$0xf] }
 0x115   : > { %v2019_v24 = vrot.slane %v2018_v12, 4  ;;  %v11872_v25 = vcombine.low %v5116_v8, %v5119_v23  ;;  %13548 = vmatprep.subr.bf16.mxu1 %v14182_v0  ;;  %v5123_v28 = vsel %vm14559_vm6, %v11849_v13, %v5122_v60  ;;  %v5124_v30 = vrot.slane %v5122_v60, 4  ;;  %v11528_v23 = vld [vmem:[%s14333_s6 + $0x58] sm:$0xf] }
 0x116   : > { %v2028_v31 = vrot.slane %v2026_v20, 4  ;;  %v2029_v19 = vshll.u32 %v11521_v7, 16  ;;  %13389 = vmatpush3.bf16.msra.mxu0 %v14181_v48  ;;  %13196 = vmatprep.mubr.msk.bf16.mxu0 %vm367_vm0, %v11567_v21  ;;  %v2035_v35 = vshll.u32 %v11522_v29, 16  ;;  %v2039_v36 = vshrl.u32 %v11522_v29, 16  ;;  %v11529_v21 = vld [vmem:[%s14333_s6 + $0x5c] sm:$0x1] }
 0x117   : > { %v2024_v33 = vsel %vm14358_vm3, %v2019_v24, %v2023_v4  ;;  %13356 = vmatprep.mubr.msk.bf16.mxu1 %vm367_vm0, %v11872_v25  ;;  %v2045_v37 = vshll.u32 %v11523_v18, 16  ;;  %v5126_v41 = vsel %vm14559_vm6, %v5124_v30, %v5125_v17  ;;  %v2050_v43 = vshrl.u32 %v11524_v26, 16  ;;  %13390 = vmatprep.subr.bf16.mxu0 %v14183_v14 }
 0x118   : > { %v11568_v40 = vcombine.low %v2014_v22, %v2024_v33  ;;  %v2031_v42 = vrot.slane %v2029_v19, 5  ;;  %13549 = vmatpush3.bf16.msra.mxu1 %v14182_v0  ;;  %v11873_v47 = vcombine.low %v5123_v28, %v5126_v41  ;;  %v2037_v48 = vrot.slane %v2035_v35, 5  ;;  %v11530_v19 = vld [vmem:[%s14333_s6 + $0x60] sm:$0xf] }
 0x119   : > { %v2041_v49 = vrot.slane %v2039_v36, 4  ;;  %v2047_v50 = vrot.slane %v2045_v37, 5  ;;  %13550 = vmatprep.subr.bf16.mxu1 %v14184_v27  ;;  %v2052_v55 = vrot.slane %v2050_v43, 4  ;;  %v2053_v54 = vshll.u32 %v11524_v26, 16  ;;  %v11531_v37 = vld [vmem:[%s14333_s6 + $0x64] sm:$0xf] }
 0x11a   : > { %13197 = vmatmul.mubr.msk.bf16.gmra.mrb[4].mxu0 %vm367_vm0, %v11568_v40  ;;  %v2032_v53 = vor.u32 %v2031_v42, %v2028_v31  ;;  %v2059_v56 = vshll.u32 %v11525_v32, 16  ;;  %13357 = vmatmul.mubr.msk.bf16.gmra.mrb[4].mxu1 %vm367_vm0, %v11873_v47  ;;  %v2063_v44 = vshrl.u32 %v11525_v32, 16  ;;  %v2069_v61 = vshll.u32 %v11526_v38, 16  ;;  %v11532_v43 = vld [vmem:[%s14333_s6 + $0x68] sm:$0x1] }
 0x11b   : > { %v2042_v59 = vor.u32 %v2041_v49, %v2037_v48  ;;  %v11850_v62 = vrot.slane %v11810_v45, 9  ;;  %13391 = vmatpush3.bf16.msra.mxu0 %v14183_v14  ;;  %v2055_v1 = vrot.slane %v2053_v54, 5  ;;  %v5129_v3 = vrot.slane %v11811_v46, 5  ;;  %v11816_v45 = vld [vmem:[%s14333_s6 + $0x54] sm:$0xe] }
 0x11c   : > { %v2033_v0 = vrot.slane %v2032_v53, 4  ;;  %v2061_v2 = vrot.slane %v2059_v56, 5  ;;  %13551 = vmatpush3.bf16.msra.mxu1 %v14184_v27  ;;  %13424 = vmatprep.subr.bf16.mxu0 %v15123_v39  ;;  %v2065_v6 = vrot.slane %v2063_v44, 4  ;;  %v2071_v7 = vrot.slane %v2069_v61, 5  ;;  %v11818_v56 = vld [vmem:[%s14333_s6 + $0x5c] sm:$0x1] }
 0x11d   : > { %v2043_v4 = vrot.slane %v2042_v59, 4  ;;  %v5132_v5 = vrot.slane %v11812_v51, 5  ;;  %13584 = vmatprep.subr.bf16.mxu1 %v15133_v52  ;;  %v2056_v9 = vor.u32 %v2055_v1, %v2052_v55  ;;  %v5130_v10 = vsel %vm14559_vm6, %v11850_v62, %v5129_v3  ;;  %v11819_v61 = vld [vmem:[%s14333_s6 + $0x60] sm:$0xe] }
 0x11e   : > { %v2038_v8 = vsel %vm14358_vm3, %v2033_v0, %v2037_v48  ;;  %v5131_v11 = vrot.slane %v5129_v3, 4  ;;  %v2066_v13 = vor.u32 %v2065_v6, %v2061_v2  ;;  %v11851_v60 = vrot.slane %v11813_v57, 9 }
 0x11f   : > { %v2048_v12 = vsel %vm14358_vm3, %v2043_v4, %v2047_v50  ;;  %v5136_v14 = vrot.slane %v11814_v58, 5  ;;  %v2057_v29 = vrot.slane %v2056_v9, 4  ;;  %v5139_v20 = vrot.slane %v11815_v63, 5  ;;  %v11817_v50 = vld [vmem:[%s14333_s6 + $0x58] sm:$0xf] }
 0x120   : > { %v11569_v17 = vcombine.low %v2038_v8, %v2048_v12  ;;  %v5133_v18 = vsel %vm14559_vm6, %v5131_v11, %v5132_v5  ;;  %v2067_v22 = vrot.slane %v2066_v13, 4  ;;  %v2074_v28 = vshrl.u32 %v11527_v15, 16  ;;  %v11821_v5 = vld [vmem:[%s14333_s6 + $0x68] sm:$0x1]  ;;  %v11533_v12 = vld [vmem:[%s14333_s6 + $0x6c] sm:$0xf] }
 0x121   : > { %v11874_v24 = vcombine.low %v5130_v10, %v5133_v18  ;;  %v5137_v25 = vsel %vm14559_vm6, %v11851_v60, %v5136_v14  ;;  %v5138_v26 = vrot.slane %v5136_v14, 4  ;;  %v2062_v27 = vsel %vm14358_vm3, %v2057_v29, %v2061_v2  ;;  %v11820_v2 = vld [vmem:[%s14333_s6 + $0x64] sm:$0xf] }
 0x122   : > { %13200 = vmatprep.mubr.msk.bf16.mxu0 %vm367_vm0, %v11569_v17  ;;  %v2077_v30 = vshll.u32 %v11527_v15, 16  ;;  %v2083_v31 = vshll.u32 %v11528_v23, 16  ;;  %v2072_v32 = vsel %vm14358_vm3, %v2067_v22, %v2071_v7  ;;  %v2087_v35 = vshrl.u32 %v11528_v23, 16  ;;  %v11534_v23 = vld [vmem:[%s14333_s6 + $0x70] sm:$0xf] }
 0x123   : > { %13360 = vmatprep.mubr.msk.bf16.mxu1 %vm367_vm0, %v11874_v24  ;;  %v5140_v33 = vsel %vm14559_vm6, %v5138_v26, %v5139_v20  ;;  %v2093_v36 = vshll.u32 %v11529_v21, 16  ;;  %v11570_v38 = vcombine.low %v2062_v27, %v2072_v32  ;;  %v2076_v41 = vrot.slane %v2074_v28, 4  ;;  %v11535_v21 = vld [vmem:[%s14333_s6 + $0x74] sm:$0x1]  ;;  %v11536_v27 = vld [vmem:[%s14333_s6 + $0x78] sm:$0xf] }
 0x124   : > { %v11875_v40 = vcombine.low %v5137_v25, %v5140_v33  ;;  %v2079_v42 = vrot.slane %v2077_v30, 5  ;;  %v2085_v46 = vrot.slane %v2083_v31, 5  ;;  %v2089_v47 = vrot.slane %v2087_v35, 4  ;;  %v11537_v28 = vld [vmem:[%s14333_s6 + $0x7c] sm:$0xf] }
 0x125   : > { %v2095_v48 = vrot.slane %v2093_v36, 5  ;;  %v2098_v49 = vshrl.u32 %v11530_v19, 16  ;;  %13201 = vmatmul.mubr.msk.bf16.gmra.mrb[8].mxu0 %vm367_vm0, %v11570_v38  ;;  %v2101_v53 = vshll.u32 %v11530_v19, 16  ;;  %v2107_v55 = vshll.u32 %v11531_v37, 16  ;;  %v11538_v33 = vld [vmem:[%s14333_s6 + $0x80] sm:$0x1] }
 0x126   : > { %13361 = vmatmul.mubr.msk.bf16.gmra.mrb[8].mxu1 %vm367_vm0, %v11875_v40  ;;  %v2080_v51 = vor.u32 %v2079_v42, %v2076_v41  ;;  %v2111_v54 = vshrl.u32 %v11531_v37, 16  ;;  %v2090_v57 = vor.u32 %v2089_v47, %v2085_v46  ;;  %v2117_v59 = vshll.u32 %v11532_v43, 16  ;;  %v11822_v40 = vld [vmem:[%s14333_s6 + $0x6c] sm:$0xe] }
 0x127   : > { %v2100_v58 = vrot.slane %v2098_v49, 4  ;;  %v11852_v44 = vrot.slane %v11816_v45, 9  ;;  %v2103_v63 = vrot.slane %v2101_v53, 5  ;;  %v2109_v0 = vrot.slane %v2107_v55, 5 }
 0x128   : > { %v2081_v62 = vrot.slane %v2080_v51, 4  ;;  %v2113_v1 = vrot.slane %v2111_v54, 4  ;;  %v2091_v3 = vrot.slane %v2090_v57, 4  ;;  %v2119_v4 = vrot.slane %v2117_v59, 5  ;;  %v11824_v51 = vld [vmem:[%s14333_s6 + $0x74] sm:$0x1] }
 0x129   : > { %v5143_v6 = vrot.slane %v11817_v50, 5  ;;  %v5146_v7 = vrot.slane %v11818_v56, 5  ;;  %v2104_v9 = vor.u32 %v2103_v63, %v2100_v58  ;;  %v11853_v11 = vrot.slane %v11819_v61, 9  ;;  %v11825_v57 = vld [vmem:[%s14333_s6 + $0x78] sm:$0xe] }
 0x12a   : > { %v2086_v8 = vsel %vm14358_vm3, %v2081_v62, %v2085_v46  ;;  %v2114_v10 = vor.u32 %v2113_v1, %v2109_v0  ;;  %v2096_v13 = vsel %vm14358_vm3, %v2091_v3, %v2095_v48  ;;  %v5150_v15 = vrot.slane %v11820_v2, 5  ;;  %v11823_v46 = vld [vmem:[%s14333_s6 + $0x70] sm:$0xf]  ;;  %v11826_v62 = vld [vmem:[%s14333_s6 + $0x7c] sm:$0xf] }
 0x12b   : > { %v5144_v60 = vsel %vm14559_vm6, %v11852_v44, %v5143_v6  ;;  %v5145_v14 = vrot.slane %v5143_v6, 4  ;;  %v11571_v17 = vcombine.low %v2086_v8, %v2096_v13  ;;  %v2105_v29 = vrot.slane %v2104_v9, 4  ;;  %v11827_v3 = vld [vmem:[%s14333_s6 + $0x80] sm:$0x1]  ;;  %v11539_v8 = vld [vmem:[%s14333_s6 + $0x84] sm:$0xf] }
 0x12c   : > { %v2115_v18 = vrot.slane %v2114_v10, 4  ;;  %v5153_v20 = vrot.slane %v11821_v5, 5  ;;  %v5151_v24 = vsel %vm14559_vm6, %v11853_v11, %v5150_v15  ;;  %v5152_v25 = vrot.slane %v5150_v15, 4 }
 0x12d   : > { %v5147_v22 = vsel %vm14559_vm6, %v5145_v14, %v5146_v7  ;;  %v2122_v26 = vshrl.u32 %v11533_v12, 16  ;;  %13204 = vmatprep.mubr.msk.bf16.mxu0 %vm367_vm0, %v11571_v17  ;;  %v2110_v30 = vsel %vm14358_vm3, %v2105_v29, %v2109_v0  ;;  %v2125_v32 = vshll.u32 %v11533_v12, 16 }
 0x12e   : > { %v2120_v31 = vsel %vm14358_vm3, %v2115_v18, %v2119_v4  ;;  %v11876_v19 = vcombine.low %v5144_v60, %v5147_v22  ;;  %v5154_v36 = vsel %vm14559_vm6, %v5152_v25, %v5153_v20  ;;  %v2131_v38 = vshll.u32 %v11534_v23, 16  ;;  %v11540_v18 = vld [vmem:[%s14333_s6 + $0x88] sm:$0xf] }
 0x12f   : > { %v11572_v35 = vcombine.low %v2110_v30, %v2120_v31  ;;  %v2124_v37 = vrot.slane %v2122_v26, 4  ;;  %v11877_v41 = vcombine.low %v5151_v24, %v5154_v36  ;;  %v2127_v42 = vrot.slane %v2125_v32, 5  ;;  %v11541_v26 = vld [vmem:[%s14333_s6 + $0x8c] sm:$0x1]  ;;  %v11543_v32 = vld [vmem:[%s14333_s6 + $0x94] sm:$0xf] }
 0x130   : > { %13364 = vmatprep.mubr.msk.bf16.mxu1 %vm367_vm0, %v11876_v19  ;;  %v2135_v43 = vshrl.u32 %v11534_v23, 16  ;;  %v2141_v45 = vshll.u32 %v11535_v21, 16  ;;  %v2133_v47 = vrot.slane %v2131_v38, 5  ;;  %v2146_v48 = vshrl.u32 %v11536_v27, 16 }
 0x131   : > { %13205 = vmatmul.mubr.msk.bf16.gmra.mrb[12].mxu0 %vm367_vm0, %v11572_v35  ;;  %v2149_v49 = vshll.u32 %v11536_v27, 16  ;;  %v2155_v50 = vshll.u32 %v11537_v28, 16  ;;  %13365 = vmatmul.mubr.msk.bf16.gmra.mrb[12].mxu1 %vm367_vm0, %v11877_v41  ;;  %v2128_v53 = vor.u32 %v2127_v42, %v2124_v37  ;;  %v2159_v56 = vshrl.u32 %v11537_v28, 16  ;;  %v11542_v27 = vld [vmem:[%s14333_s6 + $0x90] sm:$0xf] }
 0x132   : > { %v2137_v55 = vrot.slane %v2135_v43, 4  ;;  %v2143_v54 = vrot.slane %v2141_v45, 5  ;;  %v2148_v58 = vrot.slane %v2146_v48, 4  ;;  %v2165_v61 = vshll.u32 %v11538_v33, 16  ;;  %v11544_v33 = vld [vmem:[%s14333_s6 + $0x98] sm:$0x1] }
 0x133   : > { %v2151_v59 = vrot.slane %v2149_v49, 5  ;;  %v2157_v44 = vrot.slane %v2155_v50, 5  ;;  %v2129_v63 = vrot.slane %v2128_v53, 4  ;;  %v2161_v1 = vrot.slane %v2159_v56, 4  ;;  %v11829_v41 = vld [vmem:[%s14333_s6 + $0x88] sm:$0xf] }
 0x134   : > { %v2138_v0 = vor.u32 %v2137_v55, %v2133_v47  ;;  %v11854_v2 = vrot.slane %v11822_v40, 9  ;;  %v2167_v6 = vrot.slane %v2165_v61, 5  ;;  %v5157_v7 = vrot.slane %v11823_v46, 5  ;;  %v11828_v40 = vld [vmem:[%s14333_s6 + $0x84] sm:$0xe] }
 0x135   : > { %v2152_v4 = vor.u32 %v2151_v59, %v2148_v58  ;;  %v5160_v5 = vrot.slane %v11824_v51, 5  ;;  %v2134_v9 = vsel %vm14358_vm3, %v2129_v63, %v2133_v47  ;;  %v2162_v11 = vor.u32 %v2161_v1, %v2157_v44  ;;  %v11830_v51 = vld [vmem:[%s14333_s6 + $0x8c] sm:$0x1] }
 0x136   : > { %v2139_v10 = vrot.slane %v2138_v0, 4  ;;  %v11855_v12 = vrot.slane %v11825_v57, 9  ;;  %v5158_v60 = vsel %vm14559_vm6, %v11854_v2, %v5157_v7  ;;  %v5159_v14 = vrot.slane %v5157_v7, 4  ;;  %v11831_v57 = vld [vmem:[%s14333_s6 + $0x90] sm:$0xe] }
 0x137   : > { %v2153_v13 = vrot.slane %v2152_v4, 4  ;;  %v5164_v15 = vrot.slane %v11826_v62, 5  ;;  %v2163_v17 = vrot.slane %v2162_v11, 4  ;;  %v5167_v29 = vrot.slane %v11827_v3, 5  ;;  %v11832_v62 = vld [vmem:[%s14333_s6 + $0x94] sm:$0xf] }
 0x138   : > { %v2144_v23 = vsel %vm14358_vm3, %v2139_v10, %v2143_v54  ;;  %v2170_v20 = vshrl.u32 %v11539_v8, 16  ;;  %v5161_v24 = vsel %vm14559_vm6, %v5159_v14, %v5160_v5  ;;  %v2173_v36 = vshll.u32 %v11539_v8, 16  ;;  %v11833_v3 = vld [vmem:[%s14333_s6 + $0x98] sm:$0x1]  ;;  %v11545_v8 = vld [vmem:[%s14333_s6 + $0x9c] sm:$0xf] }
 0x139   : > { %v11573_v21 = vcombine.low %v2134_v9, %v2144_v23  ;;  %v2158_v22 = vsel %vm14358_vm3, %v2153_v13, %v2157_v44  ;;  %v5165_v25 = vsel %vm14559_vm6, %v11855_v12, %v5164_v15  ;;  %v2168_v28 = vsel %vm14358_vm3, %v2163_v17, %v2167_v6  ;;  %v11546_v13 = vld [vmem:[%s14333_s6 + $0xa0] sm:$0xf]  ;;  %v11547_v17 = vld [vmem:[%s14333_s6 + $0xa4] sm:$0x1] }
 0x13a   : > { %v11878_v30 = vcombine.low %v5158_v60, %v5161_v24  ;;  %v5166_v31 = vrot.slane %v5164_v15, 4  ;;  %v2172_v19 = vrot.slane %v2170_v20, 4  ;;  %v11574_v35 = vcombine.low %v2158_v22, %v2168_v28  ;;  %v11548_v22 = vld [vmem:[%s14333_s6 + $0xa8] sm:$0xf]  ;;  %v11549_v28 = vld [vmem:[%s14333_s6 + $0xac] sm:$0xf] }
 0x13b   : > { %13208 = vmatprep.mubr.msk.bf16.mxu0 %vm367_vm0, %v11573_v21  ;;  %v2179_v37 = vshll.u32 %v11540_v18, 16  ;;  %v2183_v38 = vshrl.u32 %v11540_v18, 16  ;;  %v2189_v43 = vshll.u32 %v11541_v26, 16  ;;  %v2194_v45 = vshrl.u32 %v11542_v27, 16 }
 0x13c   : > { %13368 = vmatprep.mubr.msk.bf16.mxu1 %vm367_vm0, %v11878_v30  ;;  %v5168_v42 = vsel %vm14559_vm6, %v5166_v31, %v5167_v29  ;;  %v2197_v46 = vshll.u32 %v11542_v27, 16  ;;  %13209 = vmatmul.mubr.msk.bf16.gmra.mrb[16].mxu0 %vm367_vm0, %v11574_v35  ;;  %v2175_v48 = vrot.slane %v2173_v36, 5  ;;  %v2203_v56 = vshll.u32 %v11543_v32, 16  ;;  %v11834_v35 = vld [vmem:[%s14333_s6 + $0x9c] sm:$0xe] }
 0x13d   : > { %v11879_v47 = vcombine.low %v5165_v25, %v5168_v42  ;;  %v2181_v49 = vrot.slane %v2179_v37, 5  ;;  %v2185_v50 = vrot.slane %v2183_v38, 4  ;;  %v2191_v53 = vrot.slane %v2189_v43, 5 }
 0x13e   : > { %v2196_v55 = vrot.slane %v2194_v45, 4  ;;  %v2199_v54 = vrot.slane %v2197_v46, 5  ;;  %v2176_v58 = vor.u32 %v2175_v48, %v2172_v19  ;;  %v2207_v44 = vshrl.u32 %v11543_v32, 16  ;;  %v11835_v46 = vld [vmem:[%s14333_s6 + $0xa0] sm:$0xf] }
 0x13f   : > { %13369 = vmatmul.mubr.msk.bf16.gmra.mrb[16].mxu1 %vm367_vm0, %v11879_v47  ;;  %v2186_v59 = vor.u32 %v2185_v50, %v2181_v49  ;;  %v2213_v61 = vshll.u32 %v11544_v33, 16  ;;  %v2205_v0 = vrot.slane %v2203_v56, 5  ;;  %v11856_v1 = vrot.slane %v11828_v40, 9  ;;  %v11550_v33 = vld [vmem:[%s14333_s6 + $0xb0] sm:$0x1] }
 0x140   : > { %v2200_v63 = vor.u32 %v2199_v54, %v2196_v55  ;;  %v5171_v2 = vrot.slane %v11829_v41, 5  ;;  %v2177_v4 = vrot.slane %v2176_v58, 4  ;;  %v2209_v7 = vrot.slane %v2207_v44, 4  ;;  %v11836_v56 = vld [vmem:[%s14333_s6 + $0xa4] sm:$0x1] }
 0x141   : > { %v2187_v6 = vrot.slane %v2186_v59, 4  ;;  %v2215_v5 = vrot.slane %v2213_v61, 5  ;;  %v5174_v12 = vrot.slane %v11830_v51, 5  ;;  %v11857_v23 = vrot.slane %v11831_v57, 9  ;;  %v11837_v61 = vld [vmem:[%s14333_s6 + $0xa8] sm:$0xe] }
 0x142   : > { %v2201_v9 = vrot.slane %v2200_v63, 4  ;;  %v5172_v10 = vsel %vm14559_vm6, %v11856_v1, %v5171_v2  ;;  %v5173_v11 = vrot.slane %v5171_v2, 4  ;;  %v2182_v60 = vsel %vm14358_vm3, %v2177_v4, %v2181_v49  ;;  %v11838_v2 = vld [vmem:[%s14333_s6 + $0xac] sm:$0xf] }
 0x143   : > { %v2192_v14 = vsel %vm14358_vm3, %v2187_v6, %v2191_v53  ;;  %v2210_v15 = vor.u32 %v2209_v7, %v2205_v0  ;;  %v5178_v21 = vrot.slane %v11832_v62, 5  ;;  %v5181_v26 = vrot.slane %v11833_v3, 5 }
 0x144   : > { %v11575_v29 = vcombine.low %v2182_v60, %v2192_v14  ;;  %v2206_v18 = vsel %vm14358_vm3, %v2201_v9, %v2205_v0  ;;  %v5175_v20 = vsel %vm14559_vm6, %v5173_v11, %v5174_v12  ;;  %v2218_v27 = vshrl.u32 %v11545_v8, 16  ;;  %v11551_v12 = vld [vmem:[%s14333_s6 + $0xb4] sm:$0xf] }
 0x145   : > { %v2211_v24 = vrot.slane %v2210_v15, 4  ;;  %v11880_v25 = vcombine.low %v5172_v10, %v5175_v20  ;;  %v5179_v30 = vsel %vm14559_vm6, %v11857_v23, %v5178_v21  ;;  %v5180_v31 = vrot.slane %v5178_v21, 4 }
 0x146   : > { %13212 = vmatprep.mubr.msk.bf16.mxu0 %vm367_vm0, %v11575_v29  ;;  %v2221_v19 = vshll.u32 %v11545_v8, 16  ;;  %v2227_v32 = vshll.u32 %v11546_v13, 16  ;;  %v2220_v37 = vrot.slane %v2218_v27, 4  ;;  %v2231_v38 = vshrl.u32 %v11546_v13, 16  ;;  %v11552_v13 = vld [vmem:[%s14333_s6 + $0xb8] sm:$0xf] }
 0x147   : > { %v2216_v36 = vsel %vm14358_vm3, %v2211_v24, %v2215_v5  ;;  %13372 = vmatprep.mubr.msk.bf16.mxu1 %vm367_vm0, %v11880_v25  ;;  %v2237_v40 = vshll.u32 %v11547_v17, 16  ;;  %v5182_v42 = vsel %vm14559_vm6, %v5180_v31, %v5181_v26  ;;  %v2242_v50 = vshrl.u32 %v11548_v22, 16  ;;  %v11839_v5 = vld [vmem:[%s14333_s6 + $0xb0] sm:$0x1]  ;;  %v11553_v17 = vld [vmem:[%s14333_s6 + $0xbc] sm:$0x1] }
 0x148   : > { %v11576_v41 = vcombine.low %v2206_v18, %v2216_v36  ;;  %v2223_v43 = vrot.slane %v2221_v19, 5  ;;  %v2229_v45 = vrot.slane %v2227_v32, 5  ;;  %v11881_v47 = vcombine.low %v5179_v30, %v5182_v42  ;;  %v11555_v32 = vld [vmem:[%s14333_s6 + $0xc4] sm:$0xf] }
 0x149   : > { %v2233_v48 = vrot.slane %v2231_v38, 4  ;;  %v2239_v49 = vrot.slane %v2237_v40, 5  ;;  %v2245_v53 = vshll.u32 %v11548_v22, 16  ;;  %v2251_v55 = vshll.u32 %v11549_v28, 16  ;;  %v11554_v22 = vld [vmem:[%s14333_s6 + $0xc0] sm:$0xf] }
 0x14a   : > { %13213 = vmatmul.mubr.msk.bf16.gmra.mrb[20].mxu0 %vm367_vm0, %v11576_v41  ;;  %v2224_v51 = vor.u32 %v2223_v43, %v2220_v37  ;;  %v2255_v54 = vshrl.u32 %v11549_v28, 16  ;;  %13373 = vmatmul.mubr.msk.bf16.gmra.mrb[20].mxu1 %vm367_vm0, %v11881_v47  ;;  %v2244_v58 = vrot.slane %v2242_v50, 4  ;;  %v2261_v59 = vshll.u32 %v11550_v33, 16  ;;  %v11556_v38 = vld [vmem:[%s14333_s6 + $0xc8] sm:$0x1] }
 0x14b   : > { %v2234_v57 = vor.u32 %v2233_v48, %v2229_v45  ;;  %v11858_v44 = vrot.slane %v11834_v35, 9  ;;  %v2247_v63 = vrot.slane %v2245_v53, 5  ;;  %v2253_v0 = vrot.slane %v2251_v55, 5  ;;  %v11840_v40 = vld [vmem:[%s14333_s6 + $0xb4] sm:$0xe] }
 0x14c   : > { %v2225_v62 = vrot.slane %v2224_v51, 4  ;;  %v2257_v1 = vrot.slane %v2255_v54, 4  ;;  %v2263_v4 = vrot.slane %v2261_v59, 5  ;;  %v5185_v6 = vrot.slane %v11835_v46, 5  ;;  %v11841_v46 = vld [vmem:[%s14333_s6 + $0xb8] sm:$0xf] }
 0x14d   : > { %v2235_v3 = vrot.slane %v2234_v57, 4  ;;  %v5188_v7 = vrot.slane %v11836_v56, 5  ;;  %v2248_v9 = vor.u32 %v2247_v63, %v2244_v58  ;;  %v11859_v11 = vrot.slane %v11837_v61, 9  ;;  %v11842_v47 = vld [vmem:[%s14333_s6 + $0xbc] sm:$0x1] }
 0x14e   : > { %v2230_v8 = vsel %vm14358_vm3, %v2225_v62, %v2229_v45  ;;  %v2258_v10 = vor.u32 %v2257_v1, %v2253_v0  ;;  %v5186_v14 = vsel %vm14559_vm6, %v11858_v44, %v5185_v6  ;;  %v5187_v15 = vrot.slane %v5185_v6, 4  ;;  %v11843_v53 = vld [vmem:[%s14333_s6 + $0xc0] sm:$0xe]  ;;  %v11844_v58 = vld [vmem:[%s14333_s6 + $0xc4] sm:$0xf] }
 0x14f   : > { %v2240_v60 = vsel %vm14358_vm3, %v2235_v3, %v2239_v49  ;;  %v5192_v23 = vrot.slane %v11838_v2, 5  ;;  %v2249_v18 = vrot.slane %v2248_v9, 4  ;;  %v5195_v21 = vrot.slane %v11839_v5, 5  ;;  %v11845_v63 = vld [vmem:[%s14333_s6 + $0xc8] sm:$0x1] }
 0x150   : > { %v11577_v29 = vcombine.low %v2230_v8, %v2240_v60  ;;  %v2259_v20 = vrot.slane %v2258_v10, 4  ;;  %v5189_v24 = vsel %vm14559_vm6, %v5187_v15, %v5188_v7  ;;  %v2266_v27 = vshrl.u32 %v11551_v12, 16 }
 0x151   : > { %v5193_v25 = vsel %vm14559_vm6, %v11859_v11, %v5192_v23  ;;  %v5194_v26 = vrot.slane %v5192_v23, 4  ;;  %v2254_v28 = vsel %vm14358_vm3, %v2249_v18, %v2253_v0  ;;  %v11882_v31 = vcombine.low %v5186_v14, %v5189_v24  ;;  %v12309_v18 = vld [vmem:[%s14333_s6 + $0x10] sm:$0xf] }
 0x152   : > { %13216 = vmatprep.mubr.msk.bf16.mxu0 %vm367_vm0, %v11577_v29  ;;  %v2264_v30 = vsel %vm14358_vm3, %v2259_v20, %v2263_v4  ;;  %v2269_v19 = vshll.u32 %v11551_v12, 16  ;;  %v2268_v36 = vrot.slane %v2266_v27, 4  ;;  %v2275_v37 = vshll.u32 %v11552_v13, 16  ;;  %v12308_v4 = vld [vmem:[%s14333_s6 + $0xc] sm:$0xf] }
 0x153   : > { %v11578_v33 = vcombine.low %v2254_v28, %v2264_v30  ;;  %v5196_v35 = vsel %vm14559_vm6, %v5194_v26, %v5195_v21  ;;  %13376 = vmatprep.mubr.msk.bf16.mxu1 %vm367_vm0, %v11882_v31  ;;  %v2279_v43 = vshrl.u32 %v11552_v13, 16  ;;  %v2285_v45 = vshll.u32 %v11553_v17, 16  ;;  %v14185_v26 = vld [vmem:[%s14333_s6 + $0xc] sm:$0xff]   ;;  %v12310_v27 = vld [vmem:[%s14333_s6 + $0x14] sm:$0x1] }
 0x154   : > { %v11883_v41 = vcombine.low %v5193_v25, %v5196_v35  ;;  %v2271_v42 = vrot.slane %v2269_v19, 5  ;;  %v2277_v48 = vrot.slane %v2275_v37, 5  ;;  %v2290_v49 = vshrl.u32 %v11554_v22, 16  ;;  %v12311_v28 = vld [vmem:[%s14333_s6 + $0x18] sm:$0xf] }
 0x155   : > { %13217 = vmatmul.mubr.msk.bf16.gmra.mrb[24].mxu0 %vm367_vm0, %v11578_v33  ;;  %v2293_v50 = vshll.u32 %v11554_v22, 16  ;;  %v2299_v51 = vshll.u32 %v11555_v32, 16  ;;  %v2281_v54 = vrot.slane %v2279_v43, 4  ;;  %v2287_v56 = vrot.slane %v2285_v45, 5  ;;  %v12312_v33 = vld [vmem:[%s14333_s6 + $0x1c] sm:$0xf] }
 0x156   : > { %13377 = vmatmul.mubr.msk.bf16.gmra.mrb[24].mxu1 %vm367_vm0, %v11883_v41  ;;  %v2272_v55 = vor.u32 %v2271_v42, %v2268_v36  ;;  %v2303_v57 = vshrl.u32 %v11555_v32, 16  ;;  %v2292_v59 = vrot.slane %v2290_v49, 4  ;;  %v2309_v62 = vshll.u32 %v11556_v38, 16  ;;  %v12313_v35 = vld [vmem:[%s14333_s6 + $0x20] sm:$0x1] }
 0x157   : > { %v2295_v44 = vrot.slane %v2293_v50, 5  ;;  %v2301_v61 = vrot.slane %v2299_v51, 5  ;;  %v2282_v1 = vor.u32 %v2281_v54, %v2277_v48  ;;  %v11860_v3 = vrot.slane %v11840_v40, 9  ;;  %v12314_v41 = vld [vmem:[%s14333_s6 + $0x24] sm:$0xf] }
 0x158   : > { %v2273_v0 = vrot.slane %v2272_v55, 4  ;;  %v2305_v2 = vrot.slane %v2303_v57, 4  ;;  %v2311_v7 = vrot.slane %v2309_v62, 5  ;;  %v5199_v5 = vrot.slane %v11841_v46, 5  ;;  %v12315_v51 = vld [vmem:[%s14333_s6 + $0x28] sm:$0xf] }
 0x159   : > { %v2296_v6 = vor.u32 %v2295_v44, %v2292_v59  ;;  %v5202_v8 = vrot.slane %v11842_v47, 5  ;;  %v2283_v10 = vrot.slane %v2282_v1, 4  ;;  %v11861_v12 = vrot.slane %v11843_v53, 9 }
 0x15a   : > { %v2278_v9 = vsel %vm14358_vm3, %v2273_v0, %v2277_v48  ;;  %v2306_v11 = vor.u32 %v2305_v2, %v2301_v61  ;;  %v5200_v60 = vsel %vm14559_vm6, %v11860_v3, %v5199_v5  ;;  %v5201_v14 = vrot.slane %v5199_v5, 4  ;;  %v12316_v0 = vld [vmem:[%s14333_s6 + $0x2c] sm:$0x1]  ;;  %v14189_v5 = vld [vmem:[%s14333_s6 + $0x24] sm:$0xff]  }
 0x15b   : > { %v2297_v13 = vrot.slane %v2296_v6, 4  ;;  %v5206_v15 = vrot.slane %v11844_v58, 5  ;;  %v2288_v23 = vsel %vm14358_vm3, %v2283_v10, %v2287_v56  ;;  %v5209_v29 = vrot.slane %v11845_v63, 5 }
 0x15c   : > { %v2307_v17 = vrot.slane %v2306_v11, 4  ;;  %v8391_v20 = vshrl.u32 %v12308_v4, 16  ;;  %v11579_v21 = vcombine.low %v2278_v9, %v2288_v23  ;;  %v5203_v24 = vsel %vm14559_vm6, %v5201_v14, %v5202_v8  ;;  %v12317_v8 = vld [vmem:[%s14333_s6 + $0x30] sm:$0xf] }
 0x15d   : > { %v2302_v22 = vsel %vm14358_vm3, %v2297_v13, %v2301_v61  ;;  %v5207_v25 = vsel %vm14559_vm6, %v11861_v12, %v5206_v15  ;;  %v11884_v31 = vcombine.low %v5200_v60, %v5203_v24  ;;  %v5208_v19 = vrot.slane %v5206_v15, 4  ;;  %v14186_v61 = vld [vmem:[%s14333_s6 + $0x18] sm:$0xff]   ;;  %v12318_v13 = vld [vmem:[%s14333_s6 + $0x34] sm:$0xf] }
 0x15e   : > { %v2312_v30 = vsel %vm14358_vm3, %v2307_v17, %v2311_v7  ;;  %v8393_v32 = vrot.slane %v8391_v20, 4  ;;  %13220 = vmatprep.mubr.msk.bf16.mxu0 %vm367_vm0, %v11579_v21  ;;  %v8394_v37 = vshll.u32 %v12308_v4, 16  ;;  %v8400_v38 = vshll.u32 %v12309_v18, 16  ;;  %v14193_v17 = vld [vmem:[%s16741_s1 + $0x128] sm:$0xff]   ;;  %v12320_v24 = vld [vmem:[%s14333_s6 + $0x3c] sm:$0xf] }
 0x15f   : > { %v11580_v36 = vcombine.low %v2302_v22, %v2312_v30  ;;  %v8404_v40 = vshrl.u32 %v12309_v18, 16  ;;  %13380 = vmatprep.mubr.msk.bf16.mxu1 %vm367_vm0, %v11884_v31  ;;  %v5210_v42 = vsel %vm14559_vm6, %v5208_v19, %v5209_v29  ;;  %v8410_v43 = vshll.u32 %v12310_v27, 16  ;;  %v12319_v22 = vld [vmem:[%s14333_s6 + $0x38] sm:$0x1]  ;;  %v12321_v30 = vld [vmem:[%s14333_s6 + $0x40] sm:$0xf] }
 0x160   : > { %v8415_v45 = vshrl.u32 %v12311_v28, 16  ;;  %v8418_v46 = vshll.u32 %v12311_v28, 16  ;;  %v11885_v47 = vcombine.low %v5207_v25, %v5210_v42  ;;  %v8396_v48 = vrot.slane %v8394_v37, 5  ;;  %v15353_v31 = vld [vmem:[%s16741_s1 + $0x130] sm:$0xff]  }
 0x161   : > { %13221 = vmatmul.mubr.msk.bf16.gmra.mrb[28].mxu0 %vm367_vm0, %v11580_v36  ;;  %v8402_v49 = vrot.slane %v8400_v38, 5  ;;  %v8406_v50 = vrot.slane %v8404_v40, 4  ;;  %v8412_v53 = vrot.slane %v8410_v43, 5  ;;  %v8424_v56 = vshll.u32 %v12312_v33, 16  ;;  %v14190_v42 = vld [vmem:[%s14333_s6 + $0x30] sm:$0xff]  }
 0x162   : > { %13392 = vmatprep.mubr.msk.bf16.mxu0 %vm367_vm0, %v14185_v26  ;;  %v8417_v55 = vrot.slane %v8415_v45, 4  ;;  %v8420_v54 = vrot.slane %v8418_v46, 5  ;;  %13381 = vmatmul.mubr.msk.bf16.gmra.mrb[28].mxu1 %vm367_vm0, %v11885_v47  ;;  %v8397_v57 = vor.u32 %v8396_v48, %v8393_v32  ;;  %v8428_v59 = vshrl.u32 %v12312_v33, 16  ;;  %v14194_v46 = vld [vmem:[%s16741_s1 + $0x1a8] sm:$0xff]  }
 0x163   : > { %v8407_v58 = vor.u32 %v8406_v50, %v8402_v49  ;;  %v8434_v44 = vshll.u32 %v12313_v35, 16  ;;  %v8426_v63 = vrot.slane %v8424_v56, 5  ;;  %v8439_v1 = vshrl.u32 %v12314_v41, 16  ;;  %v12322_v50 = vld [vmem:[%s14333_s6 + $0x44] sm:$0x1] }
 0x164   : > { %v8421_v62 = vor.u32 %v8420_v54, %v8417_v55  ;;  %v8442_v2 = vshll.u32 %v12314_v41, 16  ;;  %v8398_v3 = vrot.slane %v8397_v57, 4  ;;  %v8430_v6 = vrot.slane %v8428_v59, 4  ;;  %v14191_v55 = vld [vmem:[%s14333_s6 + $0x3c] sm:$0xff]  }
 0x165   : > { %v8408_v4 = vrot.slane %v8407_v58, 4  ;;  %v8436_v7 = vrot.slane %v8434_v44, 5  ;;  %v8441_v10 = vrot.slane %v8439_v1, 4  ;;  %v8448_v12 = vshll.u32 %v12315_v51, 16  ;;  %v12323_v58 = vld [vmem:[%s14333_s6 + $0x48] sm:$0xf] }
 0x166   : > { %v8422_v9 = vrot.slane %v8421_v62, 4  ;;  %v8444_v11 = vrot.slane %v8442_v2, 5  ;;  %v8403_v60 = vsel %vm14358_vm3, %v8398_v3, %v8402_v49  ;;  %v8431_v15 = vor.u32 %v8430_v6, %v8426_v63  ;;  %v12326_v6 = vld [vmem:[%s14333_s6 + $0x54] sm:$0xf] }
 0x167   : > { %v8413_v14 = vsel %vm14358_vm3, %v8408_v4, %v8412_v53  ;;  %v8452_v23 = vshrl.u32 %v12315_v51, 16  ;;  %v8450_v21 = vrot.slane %v8448_v12, 5  ;;  %v8458_v27 = vshll.u32 %v12316_v0, 16  ;;  %v14200_v0 = vld [vmem:[%s16741_s1 + $0x1b0] sm:$0xff]  }
 0x168   : > { %v12364_v29 = vcombine.low %v8403_v60, %v8413_v14  ;;  %v8427_v18 = vsel %vm14358_vm3, %v8422_v9, %v8426_v63  ;;  %v8445_v20 = vor.u32 %v8444_v11, %v8441_v10  ;;  %v8432_v25 = vrot.slane %v8431_v15, 4  ;;  %v12324_v63 = vld [vmem:[%s14333_s6 + $0x4c] sm:$0xf]  ;;  %v15385_v11 = vld [vmem:[%s14333_s6 + $0x58] sm:$0xf] }
 0x169   : > { %13393 = vmatmul.mubr.msk.bf16.vlgmr.msra.gmra.mrb[32].mxu0 %vm367_vm0, %v14186_v61  ;;  %v8454_v26 = vrot.slane %v8452_v23, 4  ;;  %v8463_v28 = vshrl.u32 %v12317_v8, 16  ;;  %v8466_v32 = vshll.u32 %v12317_v8, 16  ;;  %v8472_v33 = vshll.u32 %v12318_v13, 16  ;;  %v14206_v15 = vld [vmem:[%s16741_s1 + $0x1b8] sm:$0xff]  }
 0x16a   : > { %13552 = vmatprep.mubr.msk.bf16.mxu1 %vm367_vm0, %v12364_v29  ;;  %13425 = vmatpush3.bf16.msra.mxu0 %v15123_v39  ;;  %v8446_v19 = vrot.slane %v8445_v20, 4  ;;  %v8476_v35 = vshrl.u32 %v12318_v13, 16  ;;  %v8437_v36 = vsel %vm14358_vm3, %v8432_v25, %v8436_v7  ;;  %v8460_v38 = vrot.slane %v8458_v27, 5  ;;  %v14205_v7 = vld [vmem:[%s16741_s1 + $0x138] sm:$0xff]   ;;  %v15402_v27 = vld [vmem:[%s16741_s1 + $0x140] sm:$0xff]  }
 0x16b   : > { %13396 = vmatprep.mubr.msk.bf16.mxu0 %vm367_vm0, %v14189_v5  ;;  %v8455_v37 = vor.u32 %v8454_v26, %v8450_v21  ;;  %v8465_v40 = vrot.slane %v8463_v28, 4  ;;  %13426 = vmatprep.subr.bf16.mxu0 %v14193_v17  ;;  %v12365_v41 = vcombine.low %v8427_v18, %v8437_v36  ;;  %v8468_v43 = vrot.slane %v8466_v32, 5  ;;  %v14195_v26 = vld [vmem:[%s14333_s6 + $0x54] sm:$0xff]   ;;  %v12328_v32 = vld [vmem:[%s14333_s6 + $0x5c] sm:$0x1] }
 0x16c   : > { %v8451_v39 = vsel %vm14358_vm3, %v8446_v19, %v8450_v21  ;;  %v8474_v45 = vrot.slane %v8472_v33, 5  ;;  %v8478_v48 = vrot.slane %v8476_v35, 4  ;;  %v8482_v49 = vshll.u32 %v12319_v22, 16 }
 0x16d   : > { %v8456_v47 = vrot.slane %v8455_v37, 4  ;;  %v8487_v51 = vshrl.u32 %v12320_v24, 16  ;;  %13553 = vmatmul.mubr.msk.bf16.vlgmr.msra.gmra.mrb[32].mxu1 %vm367_vm0, %v12365_v41  ;;  %v8469_v53 = vor.u32 %v8468_v43, %v8465_v40  ;;  %v8490_v54 = vshll.u32 %v12320_v24, 16  ;;  %v12330_v40 = vld [vmem:[%s14333_s6 + $0x64] sm:$0xf] }
 0x16e   : > { %v8496_v56 = vshll.u32 %v12321_v30, 16  ;;  %v8500_v57 = vshrl.u32 %v12321_v30, 16  ;;  %13427 = vmatpush3.bf16.msra.mxu0 %v14193_v17  ;;  %13585 = vmatpush3.bf16.msra.mxu1 %v15133_v52  ;;  %v8479_v44 = vor.u32 %v8478_v48, %v8474_v45  ;;  %v8484_v61 = vrot.slane %v8482_v49, 5  ;;  %v12325_v52 = vld [vmem:[%s14333_s6 + $0x50] sm:$0x1]  ;;  %v14192_v17 = vld [vmem:[%s14333_s6 + $0x48] sm:$0xff]  }
 0x16f   : > { %v8461_v59 = vsel %vm14358_vm3, %v8456_v47, %v8460_v38  ;;  %v8489_v62 = vrot.slane %v8487_v51, 4  ;;  %13428 = vmatprep.subr.bf16.mxu0 %v15353_v31  ;;  %v8470_v2 = vrot.slane %v8469_v53, 4  ;;  %v8492_v3 = vrot.slane %v8490_v54, 5  ;;  %13586 = vmatprep.subr.bf16.mxu1 %v14194_v46  ;;  %v12329_v38 = vld [vmem:[%s14333_s6 + $0x60] sm:$0xf] }
 0x170   : > { %v12366_v1 = vcombine.low %v8451_v39, %v8461_v59  ;;  %v8498_v4 = vrot.slane %v8496_v56, 5  ;;  %v8480_v5 = vrot.slane %v8479_v44, 4  ;;  %v8502_v8 = vrot.slane %v8500_v57, 4  ;;  %v15417_v49 = vld [vmem:[%s16741_s1 + $0x1c0] sm:$0xff]   ;;  %v12331_v57 = vld [vmem:[%s14333_s6 + $0x68] sm:$0x1] }
 0x171   : > { %13397 = vmatmul.mubr.msk.bf16.gmra.mrb[36].mxu0 %vm367_vm0, %v14190_v42  ;;  %v8506_v9 = vshll.u32 %v12322_v50, 16  ;;  %v8511_v10 = vshrl.u32 %v12323_v58, 16  ;;  %v8475_v12 = vsel %vm14358_vm3, %v8470_v2, %v8474_v45  ;;  %v8493_v13 = vor.u32 %v8492_v3, %v8489_v62  ;;  %v12332_v44 = vld [vmem:[%s14333_s6 + $0x6c] sm:$0xf]  ;;  %v14196_v62 = vld [vmem:[%s14333_s6 + $0x60] sm:$0xff]  }
 0x172   : > { %13556 = vmatprep.mubr.msk.bf16.mxu1 %vm367_vm0, %v12366_v1  ;;  %13400 = vmatprep.mubr.msk.bf16.mxu0 %vm367_vm0, %v14191_v55  ;;  %v8514_v60 = vshll.u32 %v12323_v58, 16  ;;  %v8520_v14 = vshll.u32 %v12324_v63, 16  ;;  %v8485_v23 = vsel %vm14358_vm3, %v8480_v5, %v8484_v61  ;;  %v8503_v29 = vor.u32 %v8502_v8, %v8498_v4  ;;  %v12333_v2 = vld [vmem:[%s14333_s6 + $0x70] sm:$0xf] }
 0x173   : > { %v8508_v18 = vrot.slane %v8506_v9, 5  ;;  %v8513_v20 = vrot.slane %v8511_v10, 4  ;;  %13587 = vmatpush3.bf16.msra.mxu1 %v14194_v46  ;;  %13429 = vmatpush3.bf16.msra.mxu0 %v15353_v31  ;;  %v12367_v21 = vcombine.low %v8475_v12, %v8485_v23  ;;  %v8494_v22 = vrot.slane %v8493_v13, 4 }
 0x174   : > { %v8516_v24 = vrot.slane %v8514_v60, 5  ;;  %v8522_v25 = vrot.slane %v8520_v14, 5  ;;  %13588 = vmatprep.subr.bf16.mxu1 %v14200_v0  ;;  %13430 = vmatprep.subr.bf16.mxu0 %v14205_v7  ;;  %v8504_v28 = vrot.slane %v8503_v29, 4  ;;  %v8524_v30 = vshrl.u32 %v12324_v63, 16  ;;  %v14197_v60 = vld [vmem:[%s14333_s6 + $0x6c] sm:$0xff]  }
 0x175   : > { %v8530_v19 = vshll.u32 %v12325_v52, 16  ;;  %v8535_v33 = vshrl.u32 %v12326_v6, 16  ;;  %13557 = vmatmul.mubr.msk.bf16.gmra.mrb[36].mxu1 %vm367_vm0, %v12367_v21  ;;  %v8499_v31 = vsel %vm14358_vm3, %v8494_v22, %v8498_v4  ;;  %v8538_v36 = vshll.u32 %v12326_v6, 16  ;;  %v12334_v14 = vld [vmem:[%s14333_s6 + $0x74] sm:$0x1] }
 0x176   : > { %v8517_v35 = vor.u32 %v8516_v24, %v8513_v20  ;;  %v8544_v37 = vshll.u32 %v15385_v11, 16  ;;  %v8509_v41 = vsel %vm14358_vm3, %v8504_v28, %v8508_v18  ;;  %v8526_v42 = vrot.slane %v8524_v30, 4  ;;  %v12336_v30 = vld [vmem:[%s14333_s6 + $0x7c] sm:$0xf] }
 0x177   : > { %v8532_v39 = vrot.slane %v8530_v19, 5  ;;  %v8537_v43 = vrot.slane %v8535_v33, 4  ;;  %13589 = vmatpush3.bf16.msra.mxu1 %v14200_v0  ;;  %13431 = vmatpush3.bf16.msra.mxu0 %v14205_v7  ;;  %v12368_v45 = vcombine.low %v8499_v31, %v8509_v41  ;;  %v8540_v47 = vrot.slane %v8538_v36, 5  ;;  %v12337_v36 = vld [vmem:[%s14333_s6 + $0x80] sm:$0x1] }
 0x178   : > { %v8518_v46 = vrot.slane %v8517_v35, 4  ;;  %v8546_v48 = vrot.slane %v8544_v37, 5  ;;  %13590 = vmatprep.subr.bf16.mxu1 %v14206_v15  ;;  %13464 = vmatprep.subr.bf16.mxu0 %v15402_v27  ;;  %v8527_v50 = vor.u32 %v8526_v42, %v8522_v25  ;;  %v8548_v51 = vshrl.u32 %v15385_v11, 16  ;;  %v12338_v42 = vld [vmem:[%s14333_s6 + $0x84] sm:$0xf] }
 0x179   : > { %13401 = vmatmul.mubr.msk.bf16.gmra.mrb[40].mxu0 %vm367_vm0, %v14192_v17  ;;  %v8554_v53 = vshll.u32 %v12328_v32, 16  ;;  %v8559_v55 = vshrl.u32 %v12329_v38, 16  ;;  %13560 = vmatprep.mubr.msk.bf16.mxu1 %vm367_vm0, %v12368_v45  ;;  %v8541_v56 = vor.u32 %v8540_v47, %v8537_v43  ;;  %v8562_v58 = vshll.u32 %v12329_v38, 16 }
 0x17a   : > { %v8523_v54 = vsel %vm14358_vm3, %v8518_v46, %v8522_v25  ;;  %13404 = vmatprep.mubr.msk.bf16.mxu0 %vm367_vm0, %v14195_v26  ;;  %v8568_v59 = vshll.u32 %v12330_v40, 16  ;;  %v8528_v61 = vrot.slane %v8527_v50, 4  ;;  %v8550_v63 = vrot.slane %v8548_v51, 4 }
 0x17b   : > { %v8556_v0 = vrot.slane %v8554_v53, 5  ;;  %v8561_v1 = vrot.slane %v8559_v55, 4  ;;  %13591 = vmatpush3.bf16.msra.mxu1 %v14206_v15  ;;  %v8542_v3 = vrot.slane %v8541_v56, 4  ;;  %v8564_v4 = vrot.slane %v8562_v58, 5  ;;  %v12335_v15 = vld [vmem:[%s14333_s6 + $0x78] sm:$0xf] }
 0x17c   : > { %v8570_v52 = vrot.slane %v8568_v59, 5  ;;  %v8572_v6 = vshrl.u32 %v12330_v40, 16  ;;  %13624 = vmatprep.subr.bf16.mxu1 %v15417_v49  ;;  %v8533_v7 = vsel %vm14358_vm3, %v8528_v61, %v8532_v39  ;;  %v8551_v5 = vor.u32 %v8550_v63, %v8546_v48  ;;  %v14201_v55 = vld [vmem:[%s14333_s6 + $0x84] sm:$0xff]   ;;  %v12340_v59 = vld [vmem:[%s14333_s6 + $0x8c] sm:$0x1] }
 0x17d   : > { %v8578_v8 = vshll.u32 %v12331_v57, 16  ;;  %v8583_v9 = vshrl.u32 %v12332_v44, 16  ;;  %v12369_v10 = vcombine.low %v8523_v54, %v8533_v7  ;;  %v8547_v11 = vsel %vm14358_vm3, %v8542_v3, %v8546_v48  ;;  %v14198_v48 = vld [vmem:[%s14333_s6 + $0x78] sm:$0xff]   ;;  %v12339_v54 = vld [vmem:[%s14333_s6 + $0x88] sm:$0xf] }
 0x17e   : > { %v8565_v12 = vor.u32 %v8564_v4, %v8561_v1  ;;  %v8574_v13 = vrot.slane %v8572_v6, 4  ;;  %v8552_v23 = vrot.slane %v8551_v5, 4  ;;  %v8586_v18 = vshll.u32 %v12332_v44, 16 }
 0x17f   : > { %v8580_v17 = vrot.slane %v8578_v8, 5  ;;  %v8585_v29 = vrot.slane %v8583_v9, 4  ;;  %13561 = vmatmul.mubr.msk.bf16.gmra.mrb[40].mxu1 %vm367_vm0, %v12369_v10  ;;  %v8592_v22 = vshll.u32 %v12333_v2, 16  ;;  %v8596_v24 = vshrl.u32 %v12333_v2, 16  ;;  %v12342_v9 = vld [vmem:[%s14333_s6 + $0x94] sm:$0xf] }
 0x180   : > { %v8566_v20 = vrot.slane %v8565_v12, 4  ;;  %v8575_v21 = vor.u32 %v8574_v13, %v8570_v52  ;;  %v8557_v25 = vsel %vm14358_vm3, %v8552_v23, %v8556_v0  ;;  %v8588_v26 = vrot.slane %v8586_v18, 5 }
 0x181   : > { %13405 = vmatmul.mubr.msk.bf16.gmra.mrb[44].mxu0 %vm367_vm0, %v14196_v62  ;;  %v8602_v28 = vshll.u32 %v12334_v14, 16  ;;  %v8607_v19 = vshrl.u32 %v12335_v15, 16  ;;  %v12370_v32 = vcombine.low %v8547_v11, %v8557_v25  ;;  %v8594_v35 = vrot.slane %v8592_v22, 5  ;;  %v12344_v22 = vld [vmem:[%s14333_s6 + $0x9c] sm:$0xf]  ;;  %v14202_v25 = vld [vmem:[%s14333_s6 + $0x90] sm:$0xff]  }
 0x182   : > { %v8571_v33 = vsel %vm14358_vm3, %v8566_v20, %v8570_v52  ;;  %v8576_v31 = vrot.slane %v8575_v21, 4  ;;  %13408 = vmatprep.mubr.msk.bf16.mxu0 %vm367_vm0, %v14197_v60  ;;  %v8589_v37 = vor.u32 %v8588_v26, %v8585_v29  ;;  %v8598_v38 = vrot.slane %v8596_v24, 4  ;;  %v12341_v52 = vld [vmem:[%s14333_s6 + $0x90] sm:$0xf]  ;;  %v12343_v60 = vld [vmem:[%s14333_s6 + $0x98] sm:$0x1] }
 0x183   : > { %v8604_v40 = vrot.slane %v8602_v28, 5  ;;  %v8609_v41 = vrot.slane %v8607_v19, 4  ;;  %13564 = vmatprep.mubr.msk.bf16.mxu1 %vm367_vm0, %v12370_v32  ;;  %v8610_v43 = vshll.u32 %v12335_v15, 16  ;;  %v8616_v45 = vshll.u32 %v12336_v30, 16  ;;  %v12345_v19 = vld [vmem:[%s14333_s6 + $0xa0] sm:$0xf] }
 0x184   : > { %v8581_v39 = vsel %vm14358_vm3, %v8576_v31, %v8580_v17  ;;  %v8620_v46 = vshrl.u32 %v12336_v30, 16  ;;  %v8590_v50 = vrot.slane %v8589_v37, 4  ;;  %v8599_v51 = vor.u32 %v8598_v38, %v8594_v35 }
 0x185   : > { %v12371_v47 = vcombine.low %v8571_v33, %v8581_v39  ;;  %v8626_v53 = vshll.u32 %v12337_v36, 16  ;;  %v8612_v56 = vrot.slane %v8610_v43, 5  ;;  %v8618_v57 = vrot.slane %v8616_v45, 5  ;;  %v14203_v36 = vld [vmem:[%s14333_s6 + $0x9c] sm:$0xff]  }
 0x186   : > { %v8622_v58 = vrot.slane %v8620_v46, 4  ;;  %v8631_v44 = vshrl.u32 %v12338_v42, 16  ;;  %v8595_v61 = vsel %vm14358_vm3, %v8590_v50, %v8594_v35  ;;  %v8600_v62 = vrot.slane %v8599_v51, 4 }
 0x187   : > { %v8628_v63 = vrot.slane %v8626_v53, 5  ;;  %v8634_v0 = vshll.u32 %v12338_v42, 16  ;;  %13565 = vmatmul.mubr.msk.bf16.gmra.mrb[44].mxu1 %vm367_vm0, %v12371_v47  ;;  %v8613_v1 = vor.u32 %v8612_v56, %v8609_v41  ;;  %v8640_v4 = vshll.u32 %v12339_v54, 16  ;;  %v12347_v47 = vld [vmem:[%s14333_s6 + $0xa8] sm:$0xf] }
 0x188   : > { %v8623_v2 = vor.u32 %v8622_v58, %v8618_v57  ;;  %v8633_v3 = vrot.slane %v8631_v44, 4  ;;  %v8605_v6 = vsel %vm14358_vm3, %v8600_v62, %v8604_v40  ;;  %v8644_v5 = vshrl.u32 %v12339_v54, 16  ;;  %v12346_v40 = vld [vmem:[%s14333_s6 + $0xa4] sm:$0x1] }
 0x189   : > { %13409 = vmatmul.mubr.msk.bf16.gmra.mrb[48].mxu0 %vm367_vm0, %v14198_v48  ;;  %v8636_v7 = vrot.slane %v8634_v0, 5  ;;  %v8650_v8 = vshll.u32 %v12340_v59, 16  ;;  %v12372_v10 = vcombine.low %v8595_v61, %v8605_v6  ;;  %v8614_v11 = vrot.slane %v8613_v1, 4  ;;  %v12349_v1 = vld [vmem:[%s14333_s6 + $0xb0] sm:$0x1] }
 0x18a   : > { %v8624_v12 = vrot.slane %v8623_v2, 4  ;;  %13412 = vmatprep.mubr.msk.bf16.mxu0 %vm367_vm0, %v14201_v55  ;;  %v8642_v13 = vrot.slane %v8640_v4, 5  ;;  %v8646_v15 = vrot.slane %v8644_v5, 4  ;;  %v8655_v17 = vshrl.u32 %v12341_v52, 16  ;;  %v12348_v55 = vld [vmem:[%s14333_s6 + $0xac] sm:$0xf] }
 0x18b   : > { %v8637_v14 = vor.u32 %v8636_v7, %v8633_v3  ;;  %v8652_v23 = vrot.slane %v8650_v8, 5  ;;  %13568 = vmatprep.mubr.msk.bf16.mxu1 %vm367_vm0, %v12372_v10  ;;  %v8619_v29 = vsel %vm14358_vm3, %v8614_v11, %v8618_v57  ;;  %v8658_v20 = vshll.u32 %v12341_v52, 16  ;;  %v14204_v4 = vld [vmem:[%s14333_s6 + $0xa8] sm:$0xff]   ;;  %v12350_v8 = vld [vmem:[%s14333_s6 + $0xb4] sm:$0xf] }
 0x18c   : > { %v8629_v18 = vsel %vm14358_vm3, %v8624_v12, %v8628_v63  ;;  %v8664_v21 = vshll.u32 %v12342_v9, 16  ;;  %v8647_v28 = vor.u32 %v8646_v15, %v8642_v13  ;;  %v8657_v30 = vrot.slane %v8655_v17, 4 }
 0x18d   : > { %v12373_v24 = vcombine.low %v8619_v29, %v8629_v18  ;;  %v8638_v26 = vrot.slane %v8637_v14, 4  ;;  %v8660_v32 = vrot.slane %v8658_v20, 5  ;;  %v8668_v31 = vshrl.u32 %v12342_v9, 16  ;;  %v12352_v20 = vld [vmem:[%s14333_s6 + $0xbc] sm:$0x1] }
 0x18e   : > { %v8666_v33 = vrot.slane %v8664_v21, 5  ;;  %v8674_v35 = vshll.u32 %v12343_v60, 16  ;;  %v8648_v38 = vrot.slane %v8647_v28, 4  ;;  %v8679_v41 = vshrl.u32 %v12344_v22, 16  ;;  %v12351_v60 = vld [vmem:[%s14333_s6 + $0xb8] sm:$0xf] }
 0x18f   : > { %v8643_v37 = vsel %vm14358_vm3, %v8638_v26, %v8642_v13  ;;  %v8682_v42 = vshll.u32 %v12344_v22, 16  ;;  %13569 = vmatmul.mubr.msk.bf16.gmra.mrb[48].mxu1 %vm367_vm0, %v12373_v24  ;;  %v8661_v39 = vor.u32 %v8660_v32, %v8657_v30  ;;  %v8670_v43 = vrot.slane %v8668_v31, 4  ;;  %v14207_v13 = vld [vmem:[%s14333_s6 + $0xb4] sm:$0xff]   ;;  %v12353_v30 = vld [vmem:[%s14333_s6 + $0xc0] sm:$0xf] }
 0x190   : > { %v8676_v45 = vrot.slane %v8674_v35, 5  ;;  %v8688_v46 = vshll.u32 %v12345_v19, 16  ;;  %v8653_v48 = vsel %vm14358_vm3, %v8648_v38, %v8652_v23  ;;  %v8681_v50 = vrot.slane %v8679_v41, 4  ;;  %v12354_v35 = vld [vmem:[%s14333_s6 + $0xc4] sm:$0xf] }
 0x191   : > { %13413 = vmatmul.mubr.msk.bf16.gmra.mrb[52].mxu0 %vm367_vm0, %v14202_v25  ;;  %v8684_v51 = vrot.slane %v8682_v42, 5  ;;  %v8692_v53 = vshrl.u32 %v12345_v19, 16  ;;  %v12374_v54 = vcombine.low %v8643_v37, %v8653_v48  ;;  %v8662_v56 = vrot.slane %v8661_v39, 4  ;;  %v12355_v41 = vld [vmem:[%s14333_s6 + $0xc8] sm:$0x1] }
 0x192   : > { %v8671_v57 = vor.u32 %v8670_v43, %v8666_v33  ;;  %13416 = vmatprep.mubr.msk.bf16.mxu0 %vm367_vm0, %v14203_v36  ;;  %v8690_v58 = vrot.slane %v8688_v46, 5  ;;  %v8698_v61 = vshll.u32 %v12346_v40, 16  ;;  %v8703_v62 = vshrl.u32 %v12347_v47, 16  ;;  %v14208_v43 = vld [vmem:[%s14333_s6 + $0xc0] sm:$0xff]  }
 0x193   : > { %v8685_v59 = vor.u32 %v8684_v51, %v8681_v50  ;;  %v8694_v44 = vrot.slane %v8692_v53, 4  ;;  %13572 = vmatprep.mubr.msk.bf16.mxu1 %vm367_vm0, %v12374_v54  ;;  %v8667_v63 = vsel %vm14358_vm3, %v8662_v56, %v8666_v33  ;;  %v8706_v2 = vshll.u32 %v12347_v47, 16  ;;  %v12015_v47 = vld [vmem:[%s14333_s6 + $0xc] sm:$0xf] }
 0x194   : > { %v8672_v0 = vrot.slane %v8671_v57, 4  ;;  %v8712_v3 = vshll.u32 %v12348_v55, 16  ;;  %v8700_v7 = vrot.slane %v8698_v61, 5  ;;  %v8705_v5 = vrot.slane %v8703_v62, 4 }
 0x195   : > { %v8686_v52 = vrot.slane %v8685_v59, 4  ;;  %v8695_v6 = vor.u32 %v8694_v44, %v8690_v58  ;;  %v8708_v10 = vrot.slane %v8706_v2, 5  ;;  %v8716_v12 = vshrl.u32 %v12348_v55, 16 }
 0x196   : > { %v8677_v9 = vsel %vm14358_vm3, %v8672_v0, %v8676_v45  ;;  %v8714_v11 = vrot.slane %v8712_v3, 5  ;;  %v8722_v17 = vshll.u32 %v12349_v1, 16  ;;  %v8727_v21 = vshrl.u32 %v12350_v8, 16 }
 0x197   : > { %v12375_v14 = vcombine.low %v8667_v63, %v8677_v9  ;;  %v8691_v15 = vsel %vm14358_vm3, %v8686_v52, %v8690_v58  ;;  %v8696_v23 = vrot.slane %v8695_v6, 4  ;;  %v8709_v29 = vor.u32 %v8708_v10, %v8705_v5  ;;  %v12016_v58 = vld [vmem:[%s14333_s6 + $0x10] sm:$0xf]  ;;  %v12017_v63 = vld [vmem:[%s14333_s6 + $0x14] sm:$0x1] }
 0x198   : > { %v8718_v18 = vrot.slane %v8716_v12, 4  ;;  %v8730_v22 = vshll.u32 %v12350_v8, 16  ;;  %v8724_v25 = vrot.slane %v8722_v17, 5  ;;  %v8736_v26 = vshll.u32 %v12351_v60, 16  ;;  %v12019_v12 = vld [vmem:[%s14333_s6 + $0x1c] sm:$0xf] }
 0x199   : > { %13573 = vmatmul.mubr.msk.bf16.gmra.mrb[52].mxu1 %vm367_vm0, %v12375_v14  ;;  %13417 = vmatmul.mubr.msk.bf16.gmra.mrb[56].mxu0 %vm367_vm0, %v14204_v4  ;;  %v8701_v24 = vsel %vm14358_vm3, %v8696_v23, %v8700_v7  ;;  %v8740_v28 = vshrl.u32 %v12351_v60, 16  ;;  %v8710_v32 = vrot.slane %v8709_v29, 4  ;;  %v8729_v31 = vrot.slane %v8727_v21, 4  ;;  %v12018_v4 = vld [vmem:[%s14333_s6 + $0x18] sm:$0xf] }
 0x19a   : > { %v12376_v19 = vcombine.low %v8691_v15, %v8701_v24  ;;  %v8719_v33 = vor.u32 %v8718_v18, %v8714_v11  ;;  %13420 = vmatprep.mubr.msk.bf16.mxu0 %vm367_vm0, %v14207_v13  ;;  %v8732_v36 = vrot.slane %v8730_v22, 5  ;;  %v8738_v37 = vrot.slane %v8736_v26, 5  ;;  %v12020_v18 = vld [vmem:[%s14333_s6 + $0x20] sm:$0x1]  ;;  %v12400_v26 = vld [vmem:[%s14333_s6 + $0xc] sm:$0xe] }
 0x19b   : > { %v8742_v38 = vrot.slane %v8740_v28, 4  ;;  %v8746_v40 = vshll.u32 %v12352_v20, 16  ;;  %v8715_v42 = vsel %vm14358_vm3, %v8710_v32, %v8714_v11  ;;  %v8751_v45 = vshrl.u32 %v12353_v30, 16 }
 0x19c   : > { %13576 = vmatprep.mubr.msk.bf16.mxu1 %vm367_vm0, %v12376_v19  ;;  %v8720_v39 = vrot.slane %v8719_v33, 4  ;;  %v8754_v46 = vshll.u32 %v12353_v30, 16  ;;  %v8733_v48 = vor.u32 %v8732_v36, %v8729_v31  ;;  %v8760_v53 = vshll.u32 %v12354_v35, 16  ;;  %v12401_v33 = vld [vmem:[%s14333_s6 + $0x10] sm:$0xf] }
 0x19d   : > { %v8743_v50 = vor.u32 %v8742_v38, %v8738_v37  ;;  %v8748_v51 = vrot.slane %v8746_v40, 5  ;;  %v8753_v54 = vrot.slane %v8751_v45, 4  ;;  %v8764_v57 = vshrl.u32 %v12354_v35, 16  ;;  %v12402_v38 = vld [vmem:[%s14333_s6 + $0x14] sm:$0x1] }
 0x19e   : > { %v8725_v55 = vsel %vm14358_vm3, %v8720_v39, %v8724_v25  ;;  %v8756_v56 = vrot.slane %v8754_v46, 5  ;;  %v8734_v44 = vrot.slane %v8733_v48, 4  ;;  %v8762_v62 = vrot.slane %v8760_v53, 5  ;;  %v12403_v40 = vld [vmem:[%s14333_s6 + $0x18] sm:$0xe] }
 0x19f   : > { %v12377_v59 = vcombine.low %v8715_v42, %v8725_v55  ;;  %v8744_v61 = vrot.slane %v8743_v50, 4  ;;  %v8766_v1 = vrot.slane %v8764_v57, 4  ;;  %v8770_v2 = vshll.u32 %v12355_v41, 16  ;;  %v12404_v50 = vld [vmem:[%s14333_s6 + $0x1c] sm:$0xf] }
 0x1a0   : > { %v8757_v0 = vor.u32 %v8756_v56, %v8753_v54  ;;  %v6168_v3 = vshrl.u32 %v12015_v47, 16  ;;  %v8739_v52 = vsel %vm14358_vm3, %v8734_v44, %v8738_v37  ;;  %v6171_v7 = vshll.u32 %v12015_v47, 16  ;;  %v12021_v57 = vld [vmem:[%s14333_s6 + $0x24] sm:$0xf] }
 0x1a1   : > { %13577 = vmatmul.mubr.msk.bf16.gmra.mrb[56].mxu1 %vm367_vm0, %v12377_v59  ;;  %13421 = vmatmul.mubr.msk.bf16.gmra.mrb[60].mxu0 %vm367_vm0, %v14208_v43  ;;  %v8749_v6 = vsel %vm14358_vm3, %v8744_v61, %v8748_v51  ;;  %v6177_v5 = vshll.u32 %v12016_v58, 16  ;;  %v8767_v10 = vor.u32 %v8766_v1, %v8762_v62  ;;  %v8772_v11 = vrot.slane %v8770_v2, 5  ;;  %v12405_v51 = vld [vmem:[%s14333_s6 + $0x20] sm:$0x1]  ;;  %v12022_v2 = vld [vmem:[%s14333_s6 + $0x28] sm:$0xf] }
 0x1a2   : > { %v12378_v8 = vcombine.low %v8739_v52, %v8749_v6  ;;  %v8758_v9 = vrot.slane %v8757_v0, 4  ;;  %v6170_v13 = vrot.slane %v6168_v3, 4  ;;  %v6173_v60 = vrot.slane %v6171_v7, 5  ;;  %v12023_v52 = vld [vmem:[%s14333_s6 + $0x2c] sm:$0x1] }
 0x1a3   : > { %v6179_v14 = vrot.slane %v6177_v5, 5  ;;  %v6181_v15 = vshrl.u32 %v12016_v58, 16  ;;  %v8768_v17 = vrot.slane %v8767_v10, 4  ;;  %v6187_v29 = vshll.u32 %v12017_v63, 16  ;;  %v12024_v5 = vld [vmem:[%s14333_s6 + $0x30] sm:$0xf] }
 0x1a4   : > { %13580 = vmatprep.mubr.msk.bf16.mxu1 %vm367_vm0, %v12378_v8  ;;  %v8763_v23 = vsel %vm14358_vm3, %v8758_v9, %v8762_v62  ;;  %v6192_v20 = vshrl.u32 %v12018_v4, 16  ;;  %v6174_v21 = vor.u32 %v6173_v60, %v6170_v13  ;;  %v6195_v24 = vshll.u32 %v12018_v4, 16  ;;  %v12026_v13 = vld [vmem:[%s14333_s6 + $0x38] sm:$0x1] }
 0x1a5   : > { %v6183_v22 = vrot.slane %v6181_v15, 4  ;;  %v6201_v25 = vshll.u32 %v12019_v12, 16  ;;  %v8773_v28 = vsel %vm14358_vm3, %v8768_v17, %v8772_v11  ;;  %v6189_v30 = vrot.slane %v6187_v29, 5  ;;  %v12406_v17 = vld [vmem:[%s14333_s6 + $0x24] sm:$0xe]  ;;  %v14211_v29 = vld [vmem:[%s16741_s1 + $0x148] sm:$0xff]  }
 0x1a6   : > { %v6194_v19 = vrot.slane %v6192_v20, 4  ;;  %v6205_v32 = vshrl.u32 %v12019_v12, 16  ;;  %v12379_v31 = vcombine.low %v8763_v23, %v8773_v28  ;;  %v6175_v35 = vrot.slane %v6174_v21, 4  ;;  %v12025_v12 = vld [vmem:[%s14333_s6 + $0x34] sm:$0xf] }
 0x1a7   : > { %v6184_v36 = vor.u32 %v6183_v22, %v6179_v14  ;;  %v6197_v37 = vrot.slane %v6195_v24, 5  ;;  %v6203_v41 = vrot.slane %v6201_v25, 5  ;;  %v6211_v39 = vshll.u32 %v12020_v18, 16  ;;  %v12407_v24 = vld [vmem:[%s14333_s6 + $0x28] sm:$0xf] }
 0x1a8   : > { %v6207_v42 = vrot.slane %v6205_v32, 4  ;;  %v12448_v43 = vrot.slane %v12400_v26, 9  ;;  %v6180_v45 = vsel %vm14358_vm3, %v6175_v35, %v6179_v14  ;;  %v9194_v48 = vrot.slane %v12401_v33, 5  ;;  %v14212_v25 = vld [vmem:[%s16741_s1 + $0x1c8] sm:$0xff]   ;;  %v14213_v33 = vld [vmem:[%s16741_s1 + $0x150] sm:$0xff]  }
 0x1a9   : > { %13581 = vmatmul.mubr.msk.bf16.gmra.mrb[60].mxu1 %vm367_vm0, %v12379_v31  ;;  %v6185_v46 = vrot.slane %v6184_v36, 4  ;;  %v6198_v47 = vor.u32 %v6197_v37, %v6194_v19  ;;  %v6213_v55 = vrot.slane %v6211_v39, 5  ;;  %v9197_v54 = vrot.slane %v12402_v38, 5  ;;  %v12408_v32 = vld [vmem:[%s14333_s6 + $0x2c] sm:$0x1] }
 0x1aa   : > { %v6208_v53 = vor.u32 %v6207_v42, %v6203_v41  ;;  %v12449_v56 = vrot.slane %v12403_v40, 9  ;;  %v9195_v44 = vsel %vm14559_vm6, %v12448_v43, %v9194_v48  ;;  %v9196_v61 = vrot.slane %v9194_v48, 4  ;;  %v12409_v38 = vld [vmem:[%s14333_s6 + $0x30] sm:$0xe]  ;;  %v12410_v40 = vld [vmem:[%s14333_s6 + $0x34] sm:$0xf] }
 0x1ab   : > { %v6190_v58 = vsel %vm14358_vm3, %v6185_v46, %v6189_v30  ;;  %v6199_v59 = vrot.slane %v6198_v47, 4  ;;  %v9201_v0 = vrot.slane %v12404_v50, 5  ;;  %v9204_v1 = vrot.slane %v12405_v51, 5  ;;  %v12027_v50 = vld [vmem:[%s14333_s6 + $0x3c] sm:$0xf]  ;;  %v14214_v51 = vld [vmem:[%s16741_s1 + $0x1d0] sm:$0xff]  }
 0x1ac   : > { %v12071_v62 = vcombine.low %v6180_v45, %v6190_v58  ;;  %v6209_v63 = vrot.slane %v6208_v53, 4  ;;  %v9198_v4 = vsel %vm14559_vm6, %v9196_v61, %v9197_v54  ;;  %v6216_v6 = vshrl.u32 %v12021_v57, 16  ;;  %v12411_v45 = vld [vmem:[%s14333_s6 + $0x38] sm:$0x1] }
 0x1ad   : > { %v6204_v3 = vsel %vm14358_vm3, %v6199_v59, %v6203_v41  ;;  %v6219_v7 = vshll.u32 %v12021_v57, 16  ;;  %v12472_v9 = vcombine.low %v9195_v44, %v9198_v4  ;;  %v9202_v10 = vsel %vm14559_vm6, %v12449_v56, %v9201_v0  ;;  %v12028_v4 = vld [vmem:[%s14333_s6 + $0x40] sm:$0xf] }
 0x1ae   : > { %13432 = vmatprep.mubr.msk.bf16.mxu0 %vm367_vm0, %v12071_v62  ;;  %v6214_v8 = vsel %vm14358_vm3, %v6209_v63, %v6213_v55  ;;  %v9203_v11 = vrot.slane %v9201_v0, 4  ;;  %v6218_v14 = vrot.slane %v6216_v6, 4  ;;  %v6225_v23 = vshll.u32 %v12022_v2, 16  ;;  %v14215_v0 = vld [vmem:[%s16741_s1 + $0x158] sm:$0xff]  }
 0x1af   : > { %v12072_v60 = vcombine.low %v6204_v3, %v6214_v8  ;;  %v6221_v15 = vrot.slane %v6219_v7, 5  ;;  %13592 = vmatprep.mubr.msk.bf16.mxu1 %vm367_vm0, %v12472_v9  ;;  %v6229_v20 = vshrl.u32 %v12022_v2, 16  ;;  %v6235_v21 = vshll.u32 %v12023_v52, 16  ;;  %v12029_v52 = vld [vmem:[%s14333_s6 + $0x44] sm:$0x1] }
 0x1b0   : > { %v9205_v18 = vsel %vm14559_vm6, %v9203_v11, %v9204_v1  ;;  %v6240_v22 = vshrl.u32 %v12024_v5, 16  ;;  %v6227_v30 = vrot.slane %v6225_v23, 5  ;;  %v6243_v19 = vshll.u32 %v12024_v5, 16  ;;  %v14216_v11 = vld [vmem:[%s16741_s1 + $0x1d8] sm:$0xff]  }
 0x1b1   : > { %13433 = vmatmul.mubr.msk.bf16.vlgmr.msra.gmra.mrb[32].mxu0 %vm367_vm0, %v12072_v60  ;;  %v12473_v26 = vcombine.low %v9202_v10, %v9205_v18  ;;  %v6222_v28 = vor.u32 %v6221_v15, %v6218_v14  ;;  %v6231_v31 = vrot.slane %v6229_v20, 4  ;;  %v6237_v35 = vrot.slane %v6235_v21, 5  ;;  %v12030_v10 = vld [vmem:[%s14333_s6 + $0x48] sm:$0xf]  ;;  %v12031_v18 = vld [vmem:[%s14333_s6 + $0x4c] sm:$0xf] }
 0x1b2   : > { %13465 = vmatpush3.bf16.msra.mxu0 %v15402_v27  ;;  %v6242_v36 = vrot.slane %v6240_v22, 4  ;;  %v6249_v37 = vshll.u32 %v12025_v12, 16  ;;  %v6245_v42 = vrot.slane %v6243_v19, 5  ;;  %v6253_v39 = vshrl.u32 %v12025_v12, 16  ;;  %v14219_v20 = vld [vmem:[%s16741_s1 + $0x160] sm:$0xff]  }
 0x1b3   : > { %13593 = vmatmul.mubr.msk.bf16.vlgmr.msra.gmra.mrb[32].mxu1 %vm367_vm0, %v12473_v26  ;;  %v6223_v41 = vrot.slane %v6222_v28, 4  ;;  %v6259_v43 = vshll.u32 %v12026_v13, 16  ;;  %13466 = vmatprep.subr.bf16.mxu0 %v14211_v29  ;;  %v6232_v46 = vor.u32 %v6231_v31, %v6227_v30  ;;  %v12450_v27 = vrot.slane %v12406_v17, 9  ;;  %v12412_v28 = vld [vmem:[%s14333_s6 + $0x3c] sm:$0xe] }
 0x1b4   : > { %13625 = vmatpush3.bf16.msra.mxu1 %v15417_v49  ;;  %v6251_v47 = vrot.slane %v6249_v37, 5  ;;  %v9208_v48 = vrot.slane %v12407_v24, 5  ;;  %v6246_v55 = vor.u32 %v6245_v42, %v6242_v36  ;;  %v6255_v54 = vrot.slane %v6253_v39, 4  ;;  %v12413_v31 = vld [vmem:[%s14333_s6 + $0x40] sm:$0xf] }
 0x1b5   : > { %v6228_v53 = vsel %vm14358_vm3, %v6223_v41, %v6227_v30  ;;  %v6261_v56 = vrot.slane %v6259_v43, 5  ;;  %13626 = vmatprep.subr.bf16.mxu1 %v14212_v25  ;;  %v6233_v57 = vrot.slane %v6232_v46, 4  ;;  %v9211_v59 = vrot.slane %v12408_v32, 5  ;;  %v12414_v41 = vld [vmem:[%s14333_s6 + $0x44] sm:$0x1] }
 0x1b6   : > { %v9209_v49 = vsel %vm14559_vm6, %v12450_v27, %v9208_v48  ;;  %v9210_v58 = vrot.slane %v9208_v48, 4  ;;  %13467 = vmatpush3.bf16.msra.mxu0 %v14211_v29  ;;  %v6247_v44 = vrot.slane %v6246_v55, 4  ;;  %v6256_v61 = vor.u32 %v6255_v54, %v6251_v47  ;;  %v12415_v46 = vld [vmem:[%s14333_s6 + $0x48] sm:$0xe] }
 0x1b7   : > { %v12451_v62 = vrot.slane %v12409_v38, 9  ;;  %v9215_v63 = vrot.slane %v12410_v40, 5  ;;  %13468 = vmatprep.subr.bf16.mxu0 %v14213_v33  ;;  %v6238_v1 = vsel %vm14358_vm3, %v6233_v57, %v6237_v35  ;;  %v9218_v3 = vrot.slane %v12411_v45, 5  ;;  %v14220_v35 = vld [vmem:[%s16741_s1 + $0x1e0] sm:$0xff]   ;;  %v12417_v57 = vld [vmem:[%s14333_s6 + $0x50] sm:$0x1] }
 0x1b8   : > { %v9212_v2 = vsel %vm14559_vm6, %v9210_v58, %v9211_v59  ;;  %v6264_v6 = vshrl.u32 %v12027_v50, 16  ;;  %13627 = vmatpush3.bf16.msra.mxu1 %v14212_v25  ;;  %v12073_v7 = vcombine.low %v6228_v53, %v6238_v1  ;;  %v6252_v5 = vsel %vm14358_vm3, %v6247_v44, %v6251_v47  ;;  %v12032_v25 = vld [vmem:[%s14333_s6 + $0x50] sm:$0x1]  ;;  %v12033_v1 = vld [vmem:[%s14333_s6 + $0x54] sm:$0xf] }
 0x1b9   : > { %v6257_v8 = vrot.slane %v6256_v61, 4  ;;  %v12474_v9 = vcombine.low %v9209_v49, %v9212_v2  ;;  %13628 = vmatprep.subr.bf16.mxu1 %v14214_v51  ;;  %v9216_v12 = vsel %vm14559_vm6, %v12451_v62, %v9215_v63  ;;  %v9217_v13 = vrot.slane %v9215_v63, 4  ;;  %v12034_v2 = vld [vmem:[%s14333_s6 + $0x58] sm:$0xf] }
 0x1ba   : > { %v6266_v60 = vrot.slane %v6264_v6, 4  ;;  %v6267_v14 = vshll.u32 %v12027_v50, 16  ;;  %13469 = vmatpush3.bf16.msra.mxu0 %v14213_v33  ;;  %13436 = vmatprep.mubr.msk.bf16.mxu0 %vm367_vm0, %v12073_v7  ;;  %v6273_v23 = vshll.u32 %v12028_v4, 16  ;;  %v6277_v17 = vshrl.u32 %v12028_v4, 16  ;;  %v12035_v7 = vld [vmem:[%s14333_s6 + $0x5c] sm:$0x1] }
 0x1bb   : > { %v6262_v15 = vsel %vm14358_vm3, %v6257_v8, %v6261_v56  ;;  %13596 = vmatprep.mubr.msk.bf16.mxu1 %vm367_vm0, %v12474_v9  ;;  %v6283_v29 = vshll.u32 %v12029_v52, 16  ;;  %v9219_v22 = vsel %vm14559_vm6, %v9217_v13, %v9218_v3  ;;  %v6288_v26 = vshrl.u32 %v12030_v10, 16  ;;  %13470 = vmatprep.subr.bf16.mxu0 %v14215_v0 }
 0x1bc   : > { %v12074_v21 = vcombine.low %v6252_v5, %v6262_v15  ;;  %v6269_v24 = vrot.slane %v6267_v14, 5  ;;  %13629 = vmatpush3.bf16.msra.mxu1 %v14214_v51  ;;  %v12475_v30 = vcombine.low %v9216_v12, %v9219_v22  ;;  %v6275_v19 = vrot.slane %v6273_v23, 5  ;;  %v12416_v51 = vld [vmem:[%s14333_s6 + $0x4c] sm:$0xf]  ;;  %v12036_v5 = vld [vmem:[%s14333_s6 + $0x60] sm:$0xf] }
 0x1bd   : > { %v6279_v32 = vrot.slane %v6277_v17, 4  ;;  %v6285_v33 = vrot.slane %v6283_v29, 5  ;;  %13630 = vmatprep.subr.bf16.mxu1 %v14216_v11  ;;  %v6290_v37 = vrot.slane %v6288_v26, 4  ;;  %v6291_v38 = vshll.u32 %v12030_v10, 16  ;;  %v12037_v15 = vld [vmem:[%s14333_s6 + $0x64] sm:$0xf] }
 0x1be   : > { %13437 = vmatmul.mubr.msk.bf16.gmra.mrb[36].mxu0 %vm367_vm0, %v12074_v21  ;;  %v6270_v36 = vor.u32 %v6269_v24, %v6266_v60  ;;  %v6297_v40 = vshll.u32 %v12031_v18, 16  ;;  %13597 = vmatmul.mubr.msk.bf16.gmra.mrb[36].mxu1 %vm367_vm0, %v12475_v30  ;;  %v6301_v39 = vshrl.u32 %v12031_v18, 16  ;;  %v6307_v43 = vshll.u32 %v12032_v25, 16  ;;  %v12418_v21 = vld [vmem:[%s14333_s6 + $0x54] sm:$0xe] }
 0x1bf   : > { %v6280_v42 = vor.u32 %v6279_v32, %v6275_v19  ;;  %v12452_v45 = vrot.slane %v12412_v28, 9  ;;  %13471 = vmatpush3.bf16.msra.mxu0 %v14215_v0  ;;  %v6293_v27 = vrot.slane %v6291_v38, 5  ;;  %v9222_v50 = vrot.slane %v12413_v31, 5  ;;  %v12420_v38 = vld [vmem:[%s14333_s6 + $0x5c] sm:$0x1] }
 0x1c0   : > { %v6271_v47 = vrot.slane %v6270_v36, 4  ;;  %v6299_v48 = vrot.slane %v6297_v40, 5  ;;  %13631 = vmatpush3.bf16.msra.mxu1 %v14216_v11  ;;  %13504 = vmatprep.subr.bf16.mxu0 %v14219_v20  ;;  %v6303_v55 = vrot.slane %v6301_v39, 4  ;;  %v6309_v54 = vrot.slane %v6307_v43, 5  ;;  %v12038_v20 = vld [vmem:[%s14333_s6 + $0x68] sm:$0x1] }
 0x1c1   : > { %v6281_v53 = vrot.slane %v6280_v42, 4  ;;  %v9225_v56 = vrot.slane %v12414_v41, 5  ;;  %13664 = vmatprep.subr.bf16.mxu1 %v14220_v35  ;;  %v6294_v58 = vor.u32 %v6293_v27, %v6290_v37  ;;  %v9223_v59 = vsel %vm14559_vm6, %v12452_v45, %v9222_v50  ;;  %v12421_v43 = vld [vmem:[%s14333_s6 + $0x60] sm:$0xe] }
 0x1c2   : > { %v6276_v49 = vsel %vm14358_vm3, %v6271_v47, %v6275_v19  ;;  %v9224_v44 = vrot.slane %v9222_v50, 4  ;;  %v6304_v62 = vor.u32 %v6303_v55, %v6299_v48  ;;  %v12453_v63 = vrot.slane %v12415_v46, 9 }
 0x1c3   : > { %v6286_v61 = vsel %vm14358_vm3, %v6281_v53, %v6285_v33  ;;  %v9229_v0 = vrot.slane %v12416_v51, 5  ;;  %v6295_v4 = vrot.slane %v6294_v58, 4  ;;  %v9232_v6 = vrot.slane %v12417_v57, 5  ;;  %v12419_v33 = vld [vmem:[%s14333_s6 + $0x58] sm:$0xf] }
 0x1c4   : > { %v12075_v3 = vcombine.low %v6276_v49, %v6286_v61  ;;  %v9226_v52 = vsel %vm14559_vm6, %v9224_v44, %v9225_v56  ;;  %v6305_v8 = vrot.slane %v6304_v62, 4  ;;  %v6312_v13 = vshrl.u32 %v12033_v1, 16 }
 0x1c5   : > { %v12476_v9 = vcombine.low %v9223_v59, %v9226_v52  ;;  %v9230_v10 = vsel %vm14559_vm6, %v12453_v63, %v9229_v0  ;;  %v9231_v11 = vrot.slane %v9229_v0, 4  ;;  %v6300_v12 = vsel %vm14358_vm3, %v6295_v4, %v6299_v48  ;;  %v12422_v48 = vld [vmem:[%s14333_s6 + $0x64] sm:$0xf]  ;;  %v12039_v59 = vld [vmem:[%s14333_s6 + $0x6c] sm:$0xf] }
 0x1c6   : > { %13440 = vmatprep.mubr.msk.bf16.mxu0 %vm367_vm0, %v12075_v3  ;;  %v6315_v60 = vshll.u32 %v12033_v1, 16  ;;  %v6321_v14 = vshll.u32 %v12034_v2, 16  ;;  %v6310_v23 = vsel %vm14358_vm3, %v6305_v8, %v6309_v54  ;;  %v6325_v29 = vshrl.u32 %v12034_v2, 16  ;;  %v12423_v54 = vld [vmem:[%s14333_s6 + $0x68] sm:$0x1] }
 0x1c7   : > { %13600 = vmatprep.mubr.msk.bf16.mxu1 %vm367_vm0, %v12476_v9  ;;  %v9233_v17 = vsel %vm14559_vm6, %v9231_v11, %v9232_v6  ;;  %v6331_v18 = vshll.u32 %v12035_v7, 16  ;;  %v12076_v22 = vcombine.low %v6300_v12, %v6310_v23  ;;  %v6314_v25 = vrot.slane %v6312_v13, 4  ;;  %v12040_v4 = vld [vmem:[%s14333_s6 + $0x70] sm:$0xf]  ;;  %v12042_v9 = vld [vmem:[%s14333_s6 + $0x78] sm:$0xf] }
 0x1c8   : > { %v12477_v24 = vcombine.low %v9230_v10, %v9233_v17  ;;  %v6317_v26 = vrot.slane %v6315_v60, 5  ;;  %v6323_v28 = vrot.slane %v6321_v14, 5  ;;  %v6327_v30 = vrot.slane %v6325_v29, 4  ;;  %v12043_v60 = vld [vmem:[%s14333_s6 + $0x7c] sm:$0xf] }
 0x1c9   : > { %v6333_v19 = vrot.slane %v6331_v18, 5  ;;  %v6336_v32 = vshrl.u32 %v12036_v5, 16  ;;  %13441 = vmatmul.mubr.msk.bf16.gmra.mrb[40].mxu0 %vm367_vm0, %v12076_v22  ;;  %v6339_v35 = vshll.u32 %v12036_v5, 16  ;;  %v6345_v36 = vshll.u32 %v12037_v15, 16  ;;  %v12041_v5 = vld [vmem:[%s14333_s6 + $0x74] sm:$0x1] }
 0x1ca   : > { %13601 = vmatmul.mubr.msk.bf16.gmra.mrb[40].mxu1 %vm367_vm0, %v12477_v24  ;;  %v6318_v31 = vor.u32 %v6317_v26, %v6314_v25  ;;  %v6349_v37 = vshrl.u32 %v12037_v15, 16  ;;  %v6328_v40 = vor.u32 %v6327_v30, %v6323_v28  ;;  %v6355_v42 = vshll.u32 %v12038_v20, 16  ;;  %v12044_v14 = vld [vmem:[%s14333_s6 + $0x80] sm:$0x1]  ;;  %v12424_v18 = vld [vmem:[%s14333_s6 + $0x6c] sm:$0xe] }
 0x1cb   : > { %v6338_v41 = vrot.slane %v6336_v32, 4  ;;  %v12454_v39 = vrot.slane %v12418_v21, 9  ;;  %v6341_v46 = vrot.slane %v6339_v35, 5  ;;  %v6347_v47 = vrot.slane %v6345_v36, 5  ;;  %v12425_v25 = vld [vmem:[%s14333_s6 + $0x70] sm:$0xf] }
 0x1cc   : > { %v6319_v45 = vrot.slane %v6318_v31, 4  ;;  %v6351_v27 = vrot.slane %v6349_v37, 4  ;;  %v6329_v50 = vrot.slane %v6328_v40, 4  ;;  %v6357_v51 = vrot.slane %v6355_v42, 5  ;;  %v12426_v26 = vld [vmem:[%s14333_s6 + $0x74] sm:$0x1] }
 0x1cd   : > { %v9236_v53 = vrot.slane %v12419_v33, 5  ;;  %v9239_v55 = vrot.slane %v12420_v38, 5  ;;  %v6342_v57 = vor.u32 %v6341_v46, %v6338_v41  ;;  %v12455_v58 = vrot.slane %v12421_v43, 9  ;;  %v12427_v33 = vld [vmem:[%s14333_s6 + $0x78] sm:$0xe] }
 0x1ce   : > { %v6324_v56 = vsel %vm14358_vm3, %v6319_v45, %v6323_v28  ;;  %v6352_v49 = vor.u32 %v6351_v27, %v6347_v47  ;;  %v6334_v44 = vsel %vm14358_vm3, %v6329_v50, %v6333_v19  ;;  %v9243_v63 = vrot.slane %v12422_v48, 5  ;;  %v12428_v38 = vld [vmem:[%s14333_s6 + $0x7c] sm:$0xf]  ;;  %v12429_v43 = vld [vmem:[%s14333_s6 + $0x80] sm:$0x1] }
 0x1cf   : > { %v9237_v61 = vsel %vm14559_vm6, %v12454_v39, %v9236_v53  ;;  %v9238_v62 = vrot.slane %v9236_v53, 4  ;;  %v12077_v0 = vcombine.low %v6324_v56, %v6334_v44  ;;  %v6343_v1 = vrot.slane %v6342_v57, 4 }
 0x1d0   : > { %v6353_v2 = vrot.slane %v6352_v49, 4  ;;  %v9246_v3 = vrot.slane %v12423_v54, 5  ;;  %v9244_v6 = vsel %vm14559_vm6, %v12455_v58, %v9243_v63  ;;  %v9245_v7 = vrot.slane %v9243_v63, 4  ;;  %v12046_v58 = vld [vmem:[%s14333_s6 + $0x88] sm:$0xf] }
 0x1d1   : > { %v9240_v52 = vsel %vm14559_vm6, %v9238_v62, %v9239_v55  ;;  %v6360_v8 = vshrl.u32 %v12039_v59, 16  ;;  %13444 = vmatprep.mubr.msk.bf16.mxu0 %vm367_vm0, %v12077_v0  ;;  %v6348_v10 = vsel %vm14358_vm3, %v6343_v1, %v6347_v47  ;;  %v6363_v13 = vshll.u32 %v12039_v59, 16  ;;  %v12045_v55 = vld [vmem:[%s14333_s6 + $0x84] sm:$0xf] }
 0x1d2   : > { %v6358_v11 = vsel %vm14358_vm3, %v6353_v2, %v6357_v51  ;;  %v12478_v12 = vcombine.low %v9237_v61, %v9240_v52  ;;  %v9247_v23 = vsel %vm14559_vm6, %v9245_v7, %v9246_v3  ;;  %v6369_v29 = vshll.u32 %v12040_v4, 16  ;;  %v12047_v7 = vld [vmem:[%s14333_s6 + $0x8c] sm:$0x1] }
 0x1d3   : > { %v12078_v15 = vcombine.low %v6348_v10, %v6358_v11  ;;  %v6362_v17 = vrot.slane %v6360_v8, 4  ;;  %v12479_v20 = vcombine.low %v9244_v6, %v9247_v23  ;;  %v6365_v21 = vrot.slane %v6363_v13, 5  ;;  %v12049_v8 = vld [vmem:[%s14333_s6 + $0x94] sm:$0xf]  ;;  %v12050_v13 = vld [vmem:[%s14333_s6 + $0x98] sm:$0x1] }
 0x1d4   : > { %13604 = vmatprep.mubr.msk.bf16.mxu1 %vm367_vm0, %v12478_v12  ;;  %v6373_v22 = vshrl.u32 %v12040_v4, 16  ;;  %v6379_v24 = vshll.u32 %v12041_v5, 16  ;;  %v6371_v28 = vrot.slane %v6369_v29, 5  ;;  %v6384_v30 = vshrl.u32 %v12042_v9, 16  ;;  %v12048_v5 = vld [vmem:[%s14333_s6 + $0x90] sm:$0xf] }
 0x1d5   : > { %13445 = vmatmul.mubr.msk.bf16.gmra.mrb[44].mxu0 %vm367_vm0, %v12078_v15  ;;  %v6387_v19 = vshll.u32 %v12042_v9, 16  ;;  %v6393_v32 = vshll.u32 %v12043_v60, 16  ;;  %13605 = vmatmul.mubr.msk.bf16.gmra.mrb[44].mxu1 %vm367_vm0, %v12479_v20  ;;  %v6366_v31 = vor.u32 %v6365_v21, %v6362_v17  ;;  %v6397_v37 = vshrl.u32 %v12043_v60, 16  ;;  %v12430_v17 = vld [vmem:[%s14333_s6 + $0x84] sm:$0xe] }
 0x1d6   : > { %v6375_v35 = vrot.slane %v6373_v22, 4  ;;  %v6381_v36 = vrot.slane %v6379_v24, 5  ;;  %v6386_v40 = vrot.slane %v6384_v30, 4  ;;  %v6403_v39 = vshll.u32 %v12044_v14, 16  ;;  %v12431_v30 = vld [vmem:[%s14333_s6 + $0x88] sm:$0xf] }
 0x1d7   : > { %v6389_v41 = vrot.slane %v6387_v19, 5  ;;  %v6395_v42 = vrot.slane %v6393_v32, 5  ;;  %v6367_v45 = vrot.slane %v6366_v31, 4  ;;  %v6399_v47 = vrot.slane %v6397_v37, 4 }
 0x1d8   : > { %v6376_v46 = vor.u32 %v6375_v35, %v6371_v28  ;;  %v12456_v27 = vrot.slane %v12424_v18, 9  ;;  %v6405_v50 = vrot.slane %v6403_v39, 5  ;;  %v9250_v51 = vrot.slane %v12425_v25, 5  ;;  %v12434_v39 = vld [vmem:[%s14333_s6 + $0x94] sm:$0xf] }
 0x1d9   : > { %v6390_v48 = vor.u32 %v6389_v41, %v6386_v40  ;;  %v9253_v53 = vrot.slane %v12426_v26, 5  ;;  %v6372_v54 = vsel %vm14358_vm3, %v6367_v45, %v6371_v28  ;;  %v6400_v57 = vor.u32 %v6399_v47, %v6395_v42 }
 0x1da   : > { %v6377_v56 = vrot.slane %v6376_v46, 4  ;;  %v12457_v49 = vrot.slane %v12427_v33, 9  ;;  %v9251_v44 = vsel %vm14559_vm6, %v12456_v27, %v9250_v51  ;;  %v9252_v61 = vrot.slane %v9250_v51, 4  ;;  %v12435_v27 = vld [vmem:[%s14333_s6 + $0x98] sm:$0x1] }
 0x1db   : > { %v6391_v59 = vrot.slane %v6390_v48, 4  ;;  %v9257_v62 = vrot.slane %v12428_v38, 5  ;;  %v6401_v0 = vrot.slane %v6400_v57, 4  ;;  %v9260_v1 = vrot.slane %v12429_v43, 5  ;;  %v12051_v48 = vld [vmem:[%s14333_s6 + $0x9c] sm:$0xf] }
 0x1dc   : > { %v6382_v63 = vsel %vm14358_vm3, %v6377_v56, %v6381_v36  ;;  %v6408_v2 = vshrl.u32 %v12045_v55, 16  ;;  %v9254_v52 = vsel %vm14559_vm6, %v9252_v61, %v9253_v53  ;;  %v6411_v14 = vshll.u32 %v12045_v55, 16  ;;  %v12432_v36 = vld [vmem:[%s14333_s6 + $0x8c] sm:$0x1]  ;;  %v12052_v56 = vld [vmem:[%s14333_s6 + $0xa0] sm:$0xf] }
 0x1dd   : > { %v12079_v3 = vcombine.low %v6372_v54, %v6382_v63  ;;  %v6396_v4 = vsel %vm14358_vm3, %v6391_v59, %v6395_v42  ;;  %v9258_v6 = vsel %vm14559_vm6, %v12457_v49, %v9257_v62  ;;  %v6406_v9 = vsel %vm14358_vm3, %v6401_v0, %v6405_v50  ;;  %v12433_v42 = vld [vmem:[%s14333_s6 + $0x90] sm:$0xe] }
 0x1de   : > { %v12480_v10 = vcombine.low %v9251_v44, %v9254_v52  ;;  %v9259_v11 = vrot.slane %v9257_v62, 4  ;;  %v6410_v12 = vrot.slane %v6408_v2, 4  ;;  %v12080_v60 = vcombine.low %v6396_v4, %v6406_v9  ;;  %v12053_v44 = vld [vmem:[%s14333_s6 + $0xa4] sm:$0x1] }
 0x1df   : > { %13448 = vmatprep.mubr.msk.bf16.mxu0 %vm367_vm0, %v12079_v3  ;;  %v6417_v15 = vshll.u32 %v12046_v58, 16  ;;  %v6421_v23 = vshrl.u32 %v12046_v58, 16  ;;  %v6427_v18 = vshll.u32 %v12047_v7, 16  ;;  %v6432_v20 = vshrl.u32 %v12048_v5, 16  ;;  %v12054_v7 = vld [vmem:[%s14333_s6 + $0xa8] sm:$0xf] }
 0x1e0   : > { %13608 = vmatprep.mubr.msk.bf16.mxu1 %vm367_vm0, %v12480_v10  ;;  %v9261_v29 = vsel %vm14559_vm6, %v9259_v11, %v9260_v1  ;;  %v6435_v21 = vshll.u32 %v12048_v5, 16  ;;  %v15713_v22 = vpop.f32.mrb[0].mxu0  ;;  %13449 = vmatmul.mubr.msk.bf16.gmra.mrb[48].mxu0 %vm367_vm0, %v12080_v60  ;;  %v6413_v25 = vrot.slane %v6411_v14, 5  ;;  %v6441_v35 = vshll.u32 %v12049_v8, 16 }
 0x1e1   : > { %v12481_v24 = vcombine.low %v9258_v6, %v9261_v29  ;;  %v6419_v26 = vrot.slane %v6417_v15, 5  ;;  %v6423_v28 = vrot.slane %v6421_v23, 4  ;;  %v15717_v19 = vpop.f32.mrb[1].mxu0  ;;  %v6429_v32 = vrot.slane %v6427_v18, 5 }
 0x1e2   : > { %v6434_v33 = vrot.slane %v6432_v20, 4  ;;  %v6437_v31 = vrot.slane %v6435_v21, 5  ;;  %v6414_v37 = vor.u32 %v6413_v25, %v6410_v12  ;;  %v6445_v40 = vshrl.u32 %v12049_v8, 16  ;;  %v15725_v50 = vpop.f32.mrb[0].mxu1  ;;  %v15731_v61 = vpop.f32.mrb[2].mxu0 }
 0x1e3   : > { %13609 = vmatmul.mubr.msk.bf16.gmra.mrb[48].mxu1 %vm367_vm0, %v12481_v24  ;;  %v6424_v38 = vor.u32 %v6423_v28, %v6419_v26  ;;  %v6451_v41 = vshll.u32 %v12050_v13, 16  ;;  %v6443_v45 = vrot.slane %v6441_v35, 5  ;;  %v12458_v46 = vrot.slane %v12430_v17, 9  ;;  %v15737_v2 = vpop.f32.mrb[1].mxu1  ;;  %v15744_v5 = vpop.f32.mrb[3].mxu0 }
 0x1e4   : > { %v6438_v43 = vor.u32 %v6437_v31, %v6434_v33  ;;  %v9264_v47 = vrot.slane %v12431_v30, 5  ;;  %v6415_v51 = vrot.slane %v6414_v37, 4  ;;  %v6447_v55 = vrot.slane %v6445_v40, 4  ;;  %v12055_v12 = vld [vmem:[%s14333_s6 + $0xac] sm:$0xf]  ;;  %v15747_v13 = vpop.f32.mrb[2].mxu1 }
 0x1e5   : > { %v6425_v53 = vrot.slane %v6424_v38, 4  ;;  %v6453_v54 = vrot.slane %v6451_v41, 5  ;;  %v9267_v59 = vrot.slane %v12432_v36, 5  ;;  %v12459_v1 = vrot.slane %v12433_v42, 9  ;;  %v12056_v17 = vld [vmem:[%s14333_s6 + $0xb0] sm:$0x1] }
 0x1e6   : > { %v6439_v57 = vrot.slane %v6438_v43, 4  ;;  %v9265_v49 = vsel %vm14559_vm6, %v12458_v46, %v9264_v47  ;;  %v9266_v58 = vrot.slane %v9264_v47, 4  ;;  %v6420_v62 = vsel %vm14358_vm3, %v6415_v51, %v6419_v26  ;;  %v15753_v29 = vpop.f32.mrb[3].mxu1  ;;  %v12436_v25 = vld [vmem:[%s14333_s6 + $0x9c] sm:$0xe] }
 0x1e7   : > { %v6430_v63 = vsel %vm14358_vm3, %v6425_v53, %v6429_v32  ;;  %v6448_v0 = vor.u32 %v6447_v55, %v6443_v45  ;;  %v9271_v6 = vrot.slane %v12434_v39, 5  ;;  %v9274_v10 = vrot.slane %v12435_v27, 5  ;;  %v12437_v33 = vld [vmem:[%s14333_s6 + $0xa0] sm:$0xf]  ;;  %v12438_v31 = vld [vmem:[%s14333_s6 + $0xa4] sm:$0x1] }
 0x1e8   : > { %v12081_v3 = vcombine.low %v6420_v62, %v6430_v63  ;;  %v6444_v4 = vsel %vm14358_vm3, %v6439_v57, %v6443_v45  ;;  %v9268_v52 = vsel %vm14559_vm6, %v9266_v58, %v9267_v59  ;;  %v6456_v11 = vshrl.u32 %v12051_v48, 16  ;;  %v12439_v45 = vld [vmem:[%s14333_s6 + $0xa8] sm:$0xe]  ;;  %v12440_v53 = vld [vmem:[%s14333_s6 + $0xac] sm:$0xf] }
 0x1e9   : > { %v6449_v8 = vrot.slane %v6448_v0, 4  ;;  %v12482_v9 = vcombine.low %v9265_v49, %v9268_v52  ;;  %v9272_v60 = vsel %vm14559_vm6, %v12459_v1, %v9271_v6  ;;  %v9273_v14 = vrot.slane %v9271_v6, 4  ;;  %v12441_v58 = vld [vmem:[%s14333_s6 + $0xb0] sm:$0x1]  ;;  %v12057_v0 = vld [vmem:[%s14333_s6 + $0xb4] sm:$0xf] }
 0x1ea   : > { %13452 = vmatprep.mubr.msk.bf16.mxu0 %vm367_vm0, %v12081_v3  ;;  %v6459_v15 = vshll.u32 %v12051_v48, 16  ;;  %v6465_v23 = vshll.u32 %v12052_v56, 16  ;;  %v6458_v20 = vrot.slane %v6456_v11, 4  ;;  %v6469_v21 = vshrl.u32 %v12052_v56, 16 }
 0x1eb   : > { %v6454_v18 = vsel %vm14358_vm3, %v6449_v8, %v6453_v54  ;;  %13612 = vmatprep.mubr.msk.bf16.mxu1 %vm367_vm0, %v12482_v9  ;;  %v6475_v24 = vshll.u32 %v12053_v44, 16  ;;  %v9275_v28 = vsel %vm14559_vm6, %v9273_v14, %v9274_v10  ;;  %v6480_v38 = vshrl.u32 %v12054_v7, 16 }
 0x1ec   : > { %v12082_v26 = vcombine.low %v6444_v4, %v6454_v18  ;;  %v6461_v30 = vrot.slane %v6459_v15, 5  ;;  %v6467_v32 = vrot.slane %v6465_v23, 5  ;;  %v12483_v35 = vcombine.low %v9272_v60, %v9275_v28  ;;  %v12058_v15 = vld [vmem:[%s14333_s6 + $0xb8] sm:$0xf] }
 0x1ed   : > { %v6471_v36 = vrot.slane %v6469_v21, 4  ;;  %v6477_v37 = vrot.slane %v6475_v24, 5  ;;  %v15763_v40 = vpop.f32.mrb[4].mxu0  ;;  %v6483_v42 = vshll.u32 %v12054_v7, 16  ;;  %v6489_v39 = vshll.u32 %v12055_v12, 16  ;;  %v15771_v55 = vpop.f32.mrb[4].mxu1 }
 0x1ee   : > { %13453 = vmatmul.mubr.msk.bf16.gmra.mrb[52].mxu0 %vm367_vm0, %v12082_v26  ;;  %v6462_v41 = vor.u32 %v6461_v30, %v6458_v20  ;;  %v6493_v43 = vshrl.u32 %v12055_v12, 16  ;;  %v15767_v46 = vpop.f32.mrb[5].mxu0  ;;  %13613 = vmatmul.mubr.msk.bf16.gmra.mrb[52].mxu1 %vm367_vm0, %v12483_v35  ;;  %v6482_v27 = vrot.slane %v6480_v38, 4  ;;  %v6499_v48 = vshll.u32 %v12056_v17, 16  ;;  %v15784_v23 = vpop.f32.mrb[5].mxu1 }
 0x1ef   : > { %v6472_v47 = vor.u32 %v6471_v36, %v6467_v32  ;;  %v12460_v51 = vrot.slane %v12436_v25, 9  ;;  %v6485_v56 = vrot.slane %v6483_v42, 5  ;;  %v6491_v57 = vrot.slane %v6489_v39, 5  ;;  %v15777_v6 = vpop.f32.mrb[6].mxu0  ;;  %v12059_v21 = vld [vmem:[%s14333_s6 + $0xbc] sm:$0x1] }
 0x1f0   : > { %v6463_v54 = vrot.slane %v6462_v41, 4  ;;  %v6495_v49 = vrot.slane %v6493_v43, 4  ;;  %v6501_v44 = vrot.slane %v6499_v48, 5  ;;  %v9278_v62 = vrot.slane %v12437_v33, 5  ;;  %v12060_v25 = vld [vmem:[%s14333_s6 + $0xc0] sm:$0xf] }
 0x1f1   : > { %v6473_v59 = vrot.slane %v6472_v47, 4  ;;  %v9281_v63 = vrot.slane %v12438_v31, 5  ;;  %v6486_v3 = vor.u32 %v6485_v56, %v6482_v27  ;;  %v12461_v52 = vrot.slane %v12439_v45, 9  ;;  %v12061_v33 = vld [vmem:[%s14333_s6 + $0xc4] sm:$0xf]  ;;  %v15799_v35 = vpop.f32.mrb[7].mxu0 }
 0x1f2   : > { %v6468_v1 = vsel %vm14358_vm3, %v6463_v54, %v6467_v32  ;;  %v6496_v4 = vor.u32 %v6495_v49, %v6491_v57  ;;  %v9279_v8 = vsel %vm14559_vm6, %v12460_v51, %v9278_v62  ;;  %v9280_v9 = vrot.slane %v9278_v62, 4  ;;  %v12062_v31 = vld [vmem:[%s14333_s6 + $0xc8] sm:$0x1]  ;;  %v12442_v42 = vld [vmem:[%s14333_s6 + $0xb4] sm:$0xe]  ;;  %v15804_v39 = vpop.f32.mrb[6].mxu1 }
 0x1f3   : > { %v6478_v7 = vsel %vm14358_vm3, %v6473_v59, %v6477_v37  ;;  %v9285_v10 = vrot.slane %v12440_v53, 5  ;;  %v6487_v12 = vrot.slane %v6486_v3, 4  ;;  %v9288_v14 = vrot.slane %v12441_v58, 5  ;;  %v12443_v48 = vld [vmem:[%s14333_s6 + $0xb8] sm:$0xf]  ;;  %v15809_v53 = vpop.f32.mrb[7].mxu1 }
 0x1f4   : > { %v12083_v11 = vcombine.low %v6468_v1, %v6478_v7  ;;  %v6497_v60 = vrot.slane %v6496_v4, 4  ;;  %v9282_v17 = vsel %vm14559_vm6, %v9280_v9, %v9281_v63  ;;  %v6504_v24 = vshrl.u32 %v12057_v0, 16  ;;  %v12444_v51 = vld [vmem:[%s14333_s6 + $0xbc] sm:$0x1]  ;;  %v12445_v58 = vld [vmem:[%s14333_s6 + $0xc0] sm:$0xe] }
 0x1f5   : > { %v9286_v18 = vsel %vm14559_vm6, %v12461_v52, %v9285_v10  ;;  %v9287_v20 = vrot.slane %v9285_v10, 4  ;;  %v6492_v26 = vsel %vm14358_vm3, %v6487_v12, %v6491_v57  ;;  %v12484_v30 = vcombine.low %v9279_v8, %v9282_v17  ;;  %v12447_v8 = vld [vmem:[%s14333_s6 + $0xc8] sm:$0x1]  ;;  %v12508_v9 = vld [vmem:[%s14333_s6 + $0x18] sm:$0xf] }
 0x1f6   : > { %13456 = vmatprep.mubr.msk.bf16.mxu0 %vm367_vm0, %v12083_v11  ;;  %v6502_v28 = vsel %vm14358_vm3, %v6497_v60, %v6501_v44  ;;  %v6507_v32 = vshll.u32 %v12057_v0, 16  ;;  %v6506_v38 = vrot.slane %v6504_v24, 4  ;;  %v6513_v41 = vshll.u32 %v12058_v15, 16  ;;  %v12446_v0 = vld [vmem:[%s14333_s6 + $0xc4] sm:$0xf] }
 0x1f7   : > { %v12084_v36 = vcombine.low %v6492_v26, %v6502_v28  ;;  %v9289_v37 = vsel %vm14559_vm6, %v9287_v20, %v9288_v14  ;;  %13616 = vmatprep.mubr.msk.bf16.mxu1 %vm367_vm0, %v12484_v30  ;;  %v6517_v47 = vshrl.u32 %v12058_v15, 16  ;;  %v6523_v27 = vshll.u32 %v12059_v21, 16  ;;  %v12509_v30 = vld [vmem:[%s14333_s6 + $0x1c] sm:$0xf] }
 0x1f8   : > { %v12485_v43 = vcombine.low %v9286_v18, %v9289_v37  ;;  %v6509_v45 = vrot.slane %v6507_v32, 5  ;;  %v6515_v54 = vrot.slane %v6513_v41, 5  ;;  %v6528_v56 = vshrl.u32 %v12060_v25, 16  ;;  %v15815_v1 = vpop.f32.mrb[8].mxu0  ;;  %v12510_v37 = vld [vmem:[%s14333_s6 + $0x20] sm:$0x1] }
 0x1f9   : > { %13457 = vmatmul.mubr.msk.bf16.gmra.mrb[56].mxu0 %vm367_vm0, %v12084_v36  ;;  %v6531_v57 = vshll.u32 %v12060_v25, 16  ;;  %v6537_v49 = vshll.u32 %v12061_v33, 16  ;;  %v6519_v44 = vrot.slane %v6517_v47, 4  ;;  %v6525_v62 = vrot.slane %v6523_v27, 5  ;;  %v15819_v14 = vpop.f32.mrb[9].mxu0  ;;  %v15821_v21 = vpop.f32.mrb[8].mxu1 }
 0x1fa   : > { %13617 = vmatmul.mubr.msk.bf16.gmra.mrb[56].mxu1 %vm367_vm0, %v12485_v43  ;;  %v6510_v59 = vor.u32 %v6509_v45, %v6506_v38  ;;  %v6541_v63 = vshrl.u32 %v12061_v33, 16  ;;  %v6530_v3 = vrot.slane %v6528_v56, 4  ;;  %v6547_v7 = vshll.u32 %v12062_v31, 16  ;;  %v15829_v38 = vpop.f32.mrb[10].mxu0  ;;  %v14217_v45 = vld [vmem:[%s14333_s6 + $0x18] sm:$0xff]   ;;  %v15834_v27 = vpop.f32.mrb[9].mxu1 }
 0x1fb   : > { %v6533_v4 = vrot.slane %v6531_v57, 5  ;;  %v6539_v52 = vrot.slane %v6537_v49, 5  ;;  %v6520_v11 = vor.u32 %v6519_v44, %v6515_v54  ;;  %v12462_v60 = vrot.slane %v12442_v42, 9  ;;  %v12511_v57 = vld [vmem:[%s14333_s6 + $0x24] sm:$0xf] }
 0x1fc   : > { %v6511_v10 = vrot.slane %v6510_v59, 4  ;;  %v6543_v12 = vrot.slane %v6541_v63, 4  ;;  %v6549_v17 = vrot.slane %v6547_v7, 5  ;;  %v9292_v18 = vrot.slane %v12443_v48, 5  ;;  %v12512_v49 = vld [vmem:[%s14333_s6 + $0x28] sm:$0xf] }
 0x1fd   : > { %v6534_v15 = vor.u32 %v6533_v4, %v6530_v3  ;;  %v9295_v20 = vrot.slane %v12444_v51, 5  ;;  %v6521_v25 = vrot.slane %v6520_v11, 4  ;;  %v12463_v28 = vrot.slane %v12445_v58, 9  ;;  %v12513_v63 = vld [vmem:[%s14333_s6 + $0x2c] sm:$0x1]  ;;  %v15849_v3 = vpop.f32.mrb[10].mxu1 }
 0x1fe   : > { %v6516_v24 = vsel %vm14358_vm3, %v6511_v10, %v6515_v54  ;;  %v6544_v26 = vor.u32 %v6543_v12, %v6539_v52  ;;  %v9293_v33 = vsel %vm14559_vm6, %v12462_v60, %v9292_v18  ;;  %v9294_v31 = vrot.slane %v9292_v18, 4  ;;  %v12514_v10 = vld [vmem:[%s14333_s6 + $0x30] sm:$0xf]  ;;  %v15853_v11 = vpop.f32.mrb[11].mxu1 }
 0x1ff   : > { %v6535_v32 = vrot.slane %v6534_v15, 4  ;;  %v9299_v36 = vrot.slane %v12446_v0, 5  ;;  %v6526_v41 = vsel %vm14358_vm3, %v6521_v25, %v6525_v62  ;;  %v9302_v43 = vrot.slane %v12447_v8, 5  ;;  %v15847_v0 = vpop.f32.mrb[11].mxu0 }
 0x200   : > { %v6545_v42 = vrot.slane %v6544_v26, 4  ;;  %v9739_v47 = vshrl.u32 %v12508_v9, 16  ;;  %v12085_v48 = vcombine.low %v6516_v24, %v6526_v41  ;;  %v9296_v54 = vsel %vm14559_vm6, %v9294_v31, %v9295_v20 }
 0x201   : > { %v6540_v51 = vsel %vm14358_vm3, %v6535_v32, %v6539_v52  ;;  %v9300_v56 = vsel %vm14559_vm6, %v12463_v28, %v9299_v36  ;;  %v12486_v59 = vcombine.low %v9293_v33, %v9296_v54  ;;  %v9301_v44 = vrot.slane %v9299_v36, 4 }
 0x202   : > { %v6550_v58 = vsel %vm14358_vm3, %v6545_v42, %v6549_v17  ;;  %v9741_v62 = vrot.slane %v9739_v47, 4  ;;  %13460 = vmatprep.mubr.msk.bf16.mxu0 %vm367_vm0, %v12085_v48  ;;  %v9742_v52 = vshll.u32 %v12508_v9, 16  ;;  %v9748_v7 = vshll.u32 %v12509_v30, 16  ;;  %v12515_v42 = vld [vmem:[%s14333_s6 + $0x34] sm:$0xf] }
 0x203   : > { %v12086_v4 = vcombine.low %v6540_v51, %v6550_v58  ;;  %v9752_v8 = vshrl.u32 %v12509_v30, 16  ;;  %13620 = vmatprep.mubr.msk.bf16.mxu1 %vm367_vm0, %v12486_v59  ;;  %v9303_v12 = vsel %vm14559_vm6, %v9301_v44, %v9302_v43  ;;  %v9758_v60 = vshll.u32 %v12510_v37, 16  ;;  %v14218_v43 = vld [vmem:[%s14333_s6 + $0x24] sm:$0xff]   ;;  %v14221_v44 = vld [vmem:[%s14333_s6 + $0x30] sm:$0xff]  }
 0x204   : > { %v9763_v15 = vshrl.u32 %v12511_v57, 16  ;;  %v9766_v17 = vshll.u32 %v12511_v57, 16  ;;  %v15858_v18 = vpop.f32.mrb[12].mxu0  ;;  %v12487_v20 = vcombine.low %v9300_v56, %v9303_v12  ;;  %v9744_v9 = vrot.slane %v9742_v52, 5 }
 0x205   : > { %13461 = vmatmul.mubr.msk.bf16.gmra.mrb[60].mxu0 %vm367_vm0, %v12086_v4  ;;  %v9750_v24 = vrot.slane %v9748_v7, 5  ;;  %v9754_v25 = vrot.slane %v9752_v8, 4  ;;  %v15861_v26 = vpop.f32.mrb[13].mxu0  ;;  %v9760_v28 = vrot.slane %v9758_v60, 5  ;;  %v9772_v33 = vshll.u32 %v12512_v49, 16 }
 0x206   : > { %13472 = vmatprep.mubr.msk.bf16.mxu0 %vm367_vm0, %v14217_v45  ;;  %v9765_v30 = vrot.slane %v9763_v15, 4  ;;  %v9768_v32 = vrot.slane %v9766_v17, 5  ;;  %13621 = vmatmul.mubr.msk.bf16.gmra.mrb[60].mxu1 %vm367_vm0, %v12487_v20  ;;  %v9745_v31 = vor.u32 %v9744_v9, %v9741_v62  ;;  %v9776_v37 = vshrl.u32 %v12512_v49, 16  ;;  %v15867_v45 = vpop.f32.mrb[12].mxu1  ;;  %v12516_v62 = vld [vmem:[%s14333_s6 + $0x38] sm:$0x1] }
 0x207   : > { %v9755_v36 = vor.u32 %v9754_v25, %v9750_v24  ;;  %v9782_v41 = vshll.u32 %v12513_v63, 16  ;;  %v9774_v48 = vrot.slane %v9772_v33, 5  ;;  %v9787_v51 = vshrl.u32 %v12514_v10, 16  ;;  %v12517_v7 = vld [vmem:[%s14333_s6 + $0x3c] sm:$0xf]  ;;  %v14225_v17 = vld [vmem:[%s16741_s1 + $0x168] sm:$0xff]  }
 0x208   : > { %v9769_v47 = vor.u32 %v9768_v32, %v9765_v30  ;;  %v9790_v54 = vshll.u32 %v12514_v10, 16  ;;  %v9746_v56 = vrot.slane %v9745_v31, 4  ;;  %v9778_v58 = vrot.slane %v9776_v37, 4  ;;  %v12518_v15 = vld [vmem:[%s14333_s6 + $0x40] sm:$0xf]  ;;  %v15880_v20 = vpop.f32.mrb[14].mxu0 }
 0x209   : > { %v9756_v57 = vrot.slane %v9755_v36, 4  ;;  %v9784_v59 = vrot.slane %v9782_v41, 5  ;;  %v9789_v52 = vrot.slane %v9787_v51, 4  ;;  %v9796_v63 = vshll.u32 %v12515_v42, 16  ;;  %v15882_v9 = vpop.f32.mrb[13].mxu1  ;;  %v15888_v31 = vpop.f32.mrb[15].mxu0 }
 0x20a   : > { %v9770_v4 = vrot.slane %v9769_v47, 4  ;;  %v9792_v49 = vrot.slane %v9790_v54, 5  ;;  %v9751_v8 = vsel %vm14358_vm3, %v9746_v56, %v9750_v24  ;;  %v9779_v12 = vor.u32 %v9778_v58, %v9774_v48  ;;  %v12519_v33 = vld [vmem:[%s14333_s6 + $0x44] sm:$0x1]  ;;  %v15890_v36 = vpop.f32.mrb[14].mxu1 }
 0x20b   : > { %v9761_v10 = vsel %vm14358_vm3, %v9756_v57, %v9760_v28  ;;  %v9800_v60 = vshrl.u32 %v12515_v42, 16  ;;  %v9798_v32 = vrot.slane %v9796_v63, 5  ;;  %v12520_v28 = vld [vmem:[%s14333_s6 + $0x48] sm:$0xf]  ;;  %v9806_v42 = vshll.u32 %v12516_v62, 16  ;;  %v15899_v54 = vpop.f32.mrb[15].mxu1 }
 0x20c   : > { %v12564_v25 = vcombine.low %v9751_v8, %v9761_v10  ;;  %v9775_v30 = vsel %vm14358_vm3, %v9770_v4, %v9774_v48  ;;  %v9793_v24 = vor.u32 %v9792_v49, %v9789_v52  ;;  %v9780_v37 = vrot.slane %v9779_v12, 4  ;;  %v12521_v51 = vld [vmem:[%s14333_s6 + $0x4c] sm:$0xf]  ;;  %v15897_v48 = vld [vmem:[%s16741_s1 + $0x170] sm:$0xff]   ;;  %16751 = vst [vmem:[#allocation4_spill] sm:$0xff] %v15899_v54  ;;  %v14241_v56 = vld [vmem:[%s16741_s1 + $0x160] sm:$0xff]  }
 0x20d   : > { %13473 = vmatmul.mubr.msk.bf16.vlgmr.msra.gmra.mrb[32].mxu0 %vm367_vm0, %v14218_v43  ;;  %v9802_v41 = vrot.slane %v9800_v60, 4  ;;  %v9811_v47 = vshrl.u32 %v12517_v7, 16  ;;  %v9814_v57 = vshll.u32 %v12517_v7, 16  ;;  %v9820_v58 = vshll.u32 %v12518_v15, 16  ;;  %v14226_v4 = vld [vmem:[%s16741_s1 + $0x1e8] sm:$0xff]   ;;  %v14222_v49 = vld [vmem:[%s14333_s6 + $0x3c] sm:$0xff]  }
 0x20e   : > { %13632 = vmatprep.mubr.msk.bf16.mxu1 %vm367_vm0, %v12564_v25  ;;  %13505 = vmatpush3.bf16.msra.mxu0 %v14241_v56  ;;  %v9794_v43 = vrot.slane %v9793_v24, 4  ;;  %v9824_v62 = vshrl.u32 %v12518_v15, 16  ;;  %v9785_v52 = vsel %vm14358_vm3, %v9780_v37, %v9784_v59  ;;  %v9808_v8 = vrot.slane %v9806_v42, 5  ;;  %v14223_v25 = vld [vmem:[%s14333_s6 + $0x48] sm:$0xff]   ;;  %v12522_v54 = vld [vmem:[%s14333_s6 + $0x50] sm:$0x1] }
 0x20f   : > { %13476 = vmatprep.mubr.msk.bf16.mxu0 %vm367_vm0, %v14221_v44  ;;  %v9803_v63 = vor.u32 %v9802_v41, %v9798_v32  ;;  %v9813_v10 = vrot.slane %v9811_v47, 4  ;;  %13506 = vmatprep.subr.bf16.mxu0 %v14225_v17  ;;  %v12565_v12 = vcombine.low %v9775_v30, %v9785_v52  ;;  %v9816_v60 = vrot.slane %v9814_v57, 5  ;;  %v12523_v30 = vld [vmem:[%s14333_s6 + $0x54] sm:$0xf]  ;;  %v15928_v47 = vpop.f32.mrb[16].mxu0 }
 0x210   : > { %v9799_v7 = vsel %vm14358_vm3, %v9794_v43, %v9798_v32  ;;  %v9822_v15 = vrot.slane %v9820_v58, 5  ;;  %v9826_v56 = vrot.slane %v9824_v62, 4  ;;  %v9830_v16 = vshll.u32 %v12519_v33, 16  ;;  %v15921_v32 = vld [vmem:[%s16741_s1 + $0x1f0] sm:$0xff]   ;;  %v15926_v33 = vld [vmem:[%s16741_s1 + $0x178] sm:$0xff]  }
 0x211   : > { %v9804_v24 = vrot.slane %v9803_v63, 4  ;;  %v9835_v59 = vshrl.u32 %v12520_v28, 16  ;;  %13633 = vmatmul.mubr.msk.bf16.vlgmr.msra.gmra.mrb[32].mxu1 %vm367_vm0, %v12565_v12  ;;  %v9817_v44 = vor.u32 %v9816_v60, %v9813_v10  ;;  %v9838_v37 = vshll.u32 %v12520_v28, 16  ;;  %v14242_v28 = vld [vmem:[%s16741_s1 + $0x1e0] sm:$0xff]   ;;  %v12524_v58 = vld [vmem:[%s14333_s6 + $0x58] sm:$0xf] }
 0x212   : > { %v9844_v41 = vshll.u32 %v12521_v51, 16  ;;  %v9848_v42 = vshrl.u32 %v12521_v51, 16  ;;  %13507 = vmatpush3.bf16.msra.mxu0 %v14225_v17  ;;  %13665 = vmatpush3.bf16.msra.mxu1 %v14242_v28  ;;  %v9827_v51 = vor.u32 %v9826_v56, %v9822_v15  ;;  %v9832_v43 = vrot.slane %v9830_v16, 5  ;;  %v15937_v12 = vpop.f32.mrb[17].mxu0 }
 0x213   : > { %v9809_v17 = vsel %vm14358_vm3, %v9804_v24, %v9808_v8  ;;  %v9837_v57 = vrot.slane %v9835_v59, 4  ;;  %13508 = vmatprep.subr.bf16.mxu0 %v15897_v48  ;;  %v9818_v52 = vrot.slane %v9817_v44, 4  ;;  %v9840_v63 = vrot.slane %v9838_v37, 5  ;;  %13666 = vmatprep.subr.bf16.mxu1 %v14226_v4  ;;  %v12525_v59 = vld [vmem:[%s14333_s6 + $0x5c] sm:$0x1] }
 0x214   : > { %v12566_v62 = vcombine.low %v9799_v7, %v9809_v17  ;;  %v9846_v10 = vrot.slane %v9844_v41, 5  ;;  %v9828_v60 = vrot.slane %v9827_v51, 4  ;;  %v9850_v8 = vrot.slane %v9848_v42, 4  ;;  %v14224_v41 = vld [vmem:[%s14333_s6 + $0x54] sm:$0xff]  }
 0x215   : > { %13477 = vmatmul.mubr.msk.bf16.gmra.mrb[36].mxu0 %vm367_vm0, %v14222_v49  ;;  %v9854_v24 = vshll.u32 %v12522_v54, 16  ;;  %v9859_v56 = vshrl.u32 %v12523_v30, 16  ;;  %v9823_v16 = vsel %vm14358_vm3, %v9818_v52, %v9822_v15  ;;  %v9841_v7 = vor.u32 %v9840_v63, %v9837_v57  ;;  %v15949_v49 = vld [vmem:[%s16742_s2] ss:$0 sm:$0xff]  ;;  %v15955_v15 = vpop.f32.mrb[16].mxu1 }
 0x216   : > { %13636 = vmatprep.mubr.msk.bf16.mxu1 %vm367_vm0, %v12566_v62  ;;  %13480 = vmatprep.mubr.msk.bf16.mxu0 %vm367_vm0, %v14223_v25  ;;  %v9862_v44 = vshll.u32 %v12523_v30, 16  ;;  %v9868_v37 = vshll.u32 %v12524_v58, 16  ;;  %v9833_v54 = vsel %vm14358_vm3, %v9828_v60, %v9832_v43  ;;  %v9851_v42 = vor.u32 %v9850_v8, %v9846_v10  ;;  %v15957_v25 = vpop.f32.mrb[18].mxu0 }
 0x217   : > { %v9856_v28 = vrot.slane %v9854_v24, 5  ;;  %v9861_v17 = vrot.slane %v9859_v56, 4  ;;  %13667 = vmatpush3.bf16.msra.mxu1 %v14226_v4  ;;  %13509 = vmatpush3.bf16.msra.mxu0 %v15897_v48  ;;  %v12567_v30 = vcombine.low %v9823_v16, %v9833_v54  ;;  %v9842_v51 = vrot.slane %v9841_v7, 4  ;;  %v14238_v4 = vld [vmem:[%s16741_s1 + $0x1f8] sm:$0xff]   ;;  %v15966_v48 = vpop.f32.mrb[17].mxu1  ;;  %v15968_v43 = vpop.f32.mrb[19].mxu0 }
 0x218   : > { %v9864_v57 = vrot.slane %v9862_v44, 5  ;;  %v15959_v62 = vrot.slane %v9868_v37, 5  ;;  %13668 = vmatprep.subr.bf16.mxu1 %v15921_v32  ;;  %13510 = vmatprep.subr.bf16.mxu0 %v15926_v33  ;;  %v9852_v52 = vrot.slane %v9851_v42, 4  ;;  %v9872_v63 = vshrl.u32 %v12524_v58, 16  ;;  %v15972_v24 = vpop.f32.mrb[18].mxu1  ;;  %v14227_v7 = vld [vmem:[%s14333_s6 + $0x60] sm:$0xff]  }
 0x219   : > { %v9878_v60 = vshll.u32 %v12525_v59, 16  ;;  %v2740_v8 = vadd.f32 %v15713_v22, %v15949_v49  ;;  %13637 = vmatmul.mubr.msk.bf16.gmra.mrb[36].mxu1 %vm367_vm0, %v12567_v30  ;;  %v9847_v56 = vsel %vm14358_vm3, %v9842_v51, %v9846_v10  ;;  %v2738_v58 = vadd.f32 %v15949_v49, %v15717_v19  ;;  %v15989_v59 = vpop.f32.mrb[19].mxu1  ;;  %v12526_v42 = vld [vmem:[%s14333_s6 + $0x60] sm:$0xf] }
 0x21a   : > { %v9865_v16 = vor.u32 %v9864_v57, %v9861_v17  ;;  %v5638_v22 = vadd.f32 %v15725_v50, %v15949_v49  ;;  %v9857_v10 = vsel %vm14358_vm3, %v9852_v52, %v9856_v28  ;;  %v9874_v44 = vrot.slane %v9872_v63, 4  ;;  %v12527_v57 = vld [vmem:[%s14333_s6 + $0x64] sm:$0xf]  ;;  %v12528_v52 = vld [vmem:[%s14333_s6 + $0x68] sm:$0x1] }
 0x21b   : > { %v9880_v37 = vrot.slane %v9878_v60, 5  ;;  %v2772_v54 = vmax.f32 %v2740_v8, 0.0  ;;  %13669 = vmatpush3.bf16.msra.mxu1 %v15921_v32  ;;  %13511 = vmatpush3.bf16.msra.mxu0 %v15926_v33  ;;  %v12568_v19 = vcombine.low %v9847_v56, %v9857_v10  ;;  %v2770_v17 = vmax.f32 %v2738_v58, 0.0  ;;  %v12529_v63 = vld [vmem:[%s14333_s6 + $0x6c] sm:$0xf] }
 0x21c   : > { %v9866_v50 = vrot.slane %v9865_v16, 4  ;;  %v5670_v30 = vmax.f32 %v5638_v22, 0.0  ;;  %13670 = vmatprep.subr.bf16.mxu1 %v14238_v4  ;;  %v9875_v28 = vor.u32 %v9874_v44, %v15959_v62  ;;  %v2741_v51 = vadd.f32 %v15731_v61, %v15949_v49  ;;  %v12530_v60 = vld [vmem:[%s14333_s6 + $0x70] sm:$0xf] }
 0x21d   : > { %13481 = vmatmul.mubr.msk.bf16.gmra.mrb[40].mxu0 %vm367_vm0, %v14224_v41  ;;  %2804 = vst [vmem:[%s15982_s24 + $0x10] sm:$0xff] %v2772_v54  ;;  %v5636_v32 = vadd.f32 %v15949_v49, %v15737_v2  ;;  %v2739_v33 = vadd.f32 %v15949_v49, %v15744_v5  ;;  %13640 = vmatprep.mubr.msk.bf16.mxu1 %vm367_vm0, %v12568_v19  ;;  %2802 = vst [vmem:[%s15982_s24] sm:$0xff] %v2770_v17  ;;  %v9883_v5 = vshrl.u32 %v12526_v42, 16  ;;  %v16020_v8 = vpop.f32.mrb[20].mxu0  ;;  %v16022_v56 = vpop.f32.mrb[20].mxu1 }
 0x21e   : > { %v9871_v41 = vsel %vm14358_vm3, %v9866_v50, %v15959_v62  ;;  %11909 = vst [vmem:[%s15982_s24 + $0x110] sm:$0xff] %v5670_v30  ;;  %v5639_v61 = vadd.f32 %v15747_v13, %v15949_v49  ;;  %v5637_v2 = vadd.f32 %v15949_v49, %v15753_v29  ;;  %13484 = vmatprep.mubr.msk.bf16.mxu0 %vm367_vm0, %v14227_v7  ;;  %v9876_v16 = vrot.slane %v9875_v28, 4  ;;  %v16024_v13 = vpop.f32.mrb[21].mxu0  ;;  %v16026_v29 = vpop.f32.mrb[21].mxu1 }
 0x21f   : > { %v2773_v62 = vmax.f32 %v2741_v51, 0.0  ;;  %v5668_v58 = vmax.f32 %v5636_v32, 0.0  ;;  %v2771_v22 = vmax.f32 %v2739_v33, 0.0  ;;  %13671 = vmatpush3.bf16.msra.mxu1 %v14238_v4  ;;  %16752 = vst [vmem:[#allocation5_spill] sm:$0xff] %v16026_v29  ;;  %v9885_v44 = vrot.slane %v9883_v5, 4  ;;  %v16028_v19 = vpop.f32.mrb[22].mxu0 }
 0x220   : > { %v5671_v7 = vmax.f32 %v5639_v61, 0.0  ;;  %v5669_v10 = vmax.f32 %v5637_v2, 0.0  ;;  %v9886_v54 = vshll.u32 %v12526_v42, 16  ;;  %v16030_v50 = vpop.f32.mrb[22].mxu1  ;;  %v9881_v17 = vsel %vm14358_vm3, %v9876_v16, %v9880_v37  ;;  %v14228_v4 = vld [vmem:[%s14333_s6 + $0x6c] sm:$0xff]   ;;  %v16038_v32 = vpop.f32.mrb[23].mxu0 }
 0x221   : > { %16753 = vst [vmem:[#allocation6_spill] sm:$0xff] %v16030_v50  ;;  %2805 = vst [vmem:[%s15982_s24 + $0x18] sm:$0xff] %v2773_v62  ;;  %v9892_v30 = vshll.u32 %v12527_v57, 16  ;;  %v9896_v28 = vshrl.u32 %v12527_v57, 16  ;;  %v9902_v51 = vshll.u32 %v12528_v52, 16  ;;  %v16040_v33 = vpop.f32.mrb[23].mxu1  ;;  %v12569_v42 = vcombine.low %v9871_v41, %v9881_v17 }
 0x222   : > { %11907 = vst [vmem:[%s15982_s24 + $0x100] sm:$0xff] %v5668_v58  ;;  %2803 = vst [vmem:[%s15982_s24 + $0x8] sm:$0xff] %v2771_v22  ;;  %v9888_v61 = vrot.slane %v9886_v54, 5  ;;  %v12531_v2 = vld [vmem:[%s14333_s6 + $0x74] sm:$0x1]  ;;  %v9907_v5 = vshrl.u32 %v12529_v63, 16 }
 0x223   : > { %16754 = vst [vmem:[#allocation7_spill] sm:$0xff] %v16038_v32  ;;  %11910 = vst [vmem:[%s15982_s24 + $0x118] sm:$0xff] %v5671_v7  ;;  %v9910_v50 = vshll.u32 %v12529_v63, 16  ;;  %v14229_v37 = vld [vmem:[%s14333_s6 + $0x78] sm:$0xff]   ;;  %v9894_v16 = vrot.slane %v9892_v30, 5  ;;  %v9898_v62 = vrot.slane %v9896_v28, 4  ;;  %13641 = vmatmul.mubr.msk.bf16.gmra.mrb[40].mxu1 %vm367_vm0, %v12569_v42  ;;  %v2744_v63 = vadd.f32 %v15763_v40, %v15949_v49 }
 0x224   : > { %11908 = vst [vmem:[%s15982_s24 + $0x108] sm:$0xff] %v5669_v10  ;;  %v9904_v58 = vrot.slane %v9902_v51, 5  ;;  %v9916_v22 = vshll.u32 %v12530_v60, 16  ;;  %v9889_v57 = vor.u32 %v9888_v61, %v9885_v44  ;;  %v9909_v52 = vrot.slane %v9907_v5, 4  ;;  %v14230_v42 = vld [vmem:[%s14333_s6 + $0x84] sm:$0xff]  }
 0x225   : > { %v9912_v29 = vrot.slane %v9910_v50, 5  ;;  %v9920_v32 = vshrl.u32 %v12530_v60, 16  ;;  %13485 = vmatmul.mubr.msk.bf16.gmra.mrb[44].mxu0 %vm367_vm0, %v14228_v4  ;;  %v9899_v41 = vor.u32 %v9898_v62, %v9894_v16  ;;  %v9926_v10 = vshll.u32 %v12531_v2, 16 }
 0x226   : > { %v9918_v7 = vrot.slane %v9916_v22, 5  ;;  %v9890_v54 = vrot.slane %v9889_v57, 4  ;;  %v2742_v44 = vadd.f32 %v15949_v49, %v15767_v46  ;;  %13488 = vmatprep.mubr.msk.bf16.mxu0 %vm367_vm0, %v14229_v37  ;;  %v2776_v4 = vmax.f32 %v2744_v63, 0.0  ;;  %v12532_v46 = vld [vmem:[%s14333_s6 + $0x78] sm:$0xf] }
 0x227   : > { %v9913_v17 = vor.u32 %v9912_v29, %v9909_v52  ;;  %v9922_v30 = vrot.slane %v9920_v32, 4  ;;  %v9900_v60 = vrot.slane %v9899_v41, 4  ;;  %v9928_v50 = vrot.slane %v9926_v10, 5  ;;  %v12533_v37 = vld [vmem:[%s14333_s6 + $0x7c] sm:$0xf]  ;;  %v14233_v10 = vld [vmem:[%s14333_s6 + $0x90] sm:$0xff]  }
 0x228   : > { %v5642_v28 = vadd.f32 %v15771_v55, %v15949_v49  ;;  %v9895_v40 = vsel %vm14358_vm3, %v9890_v54, %v9894_v16  ;;  %v2774_v32 = vmax.f32 %v2742_v44, 0.0  ;;  %2808 = vst [vmem:[%s15982_s24 + $0x30] sm:$0xff] %v2776_v4  ;;  %v2745_v55 = vadd.f32 %v15777_v6, %v15949_v49  ;;  %v12534_v16 = vld [vmem:[%s14333_s6 + $0x80] sm:$0x1]  ;;  %v16068_v62 = vpop.f32.mrb[24].mxu0 }
 0x229   : > { %v9914_v51 = vrot.slane %v9913_v17, 4  ;;  %v9923_v29 = vor.u32 %v9922_v30, %v9918_v7  ;;  %v9905_v61 = vsel %vm14358_vm3, %v9900_v60, %v9904_v58  ;;  %v5640_v5 = vadd.f32 %v15949_v49, %v15784_v23  ;;  %v12535_v41 = vld [vmem:[%s14333_s6 + $0x84] sm:$0xf]  ;;  %v16077_v6 = vpop.f32.mrb[25].mxu0  ;;  %v16079_v63 = vpop.f32.mrb[24].mxu1 }
 0x22a   : > { %v5674_v2 = vmax.f32 %v5642_v28, 0.0  ;;  %v12570_v22 = vcombine.low %v9895_v40, %v9905_v61  ;;  %2806 = vst [vmem:[%s15982_s24 + $0x20] sm:$0xff] %v2774_v32  ;;  %v2743_v58 = vadd.f32 %v15949_v49, %v15799_v35  ;;  %v2777_v23 = vmax.f32 %v2745_v55, 0.0  ;;  %v12536_v30 = vld [vmem:[%s14333_s6 + $0x88] sm:$0xf]  ;;  %v16087_v44 = vpop.f32.mrb[26].mxu0 }
 0x22b   : > { %v9919_v57 = vsel %vm14358_vm3, %v9914_v51, %v9918_v7  ;;  %v9924_v52 = vrot.slane %v9923_v29, 4  ;;  %v5672_v54 = vmax.f32 %v5640_v5, 0.0  ;;  %v5643_v17 = vadd.f32 %v15804_v39, %v15949_v49  ;;  %v16089_v35 = vpop.f32.mrb[25].mxu1  ;;  %v16094_v51 = vpop.f32.mrb[27].mxu0 }
 0x22c   : > { %11913 = vst [vmem:[%s15982_s24 + $0x130] sm:$0xff] %v5674_v2  ;;  %v5641_v7 = vadd.f32 %v15949_v49, %v15809_v53  ;;  %13644 = vmatprep.mubr.msk.bf16.mxu1 %vm367_vm0, %v12570_v22  ;;  %v2775_v4 = vmax.f32 %v2743_v58, 0.0  ;;  %v9931_v28 = vshrl.u32 %v12532_v46, 16  ;;  %v9934_v40 = vshll.u32 %v12532_v46, 16  ;;  %v16096_v39 = vpop.f32.mrb[26].mxu1  ;;  %2809 = vst [vmem:[%s15982_s24 + $0x38] sm:$0xff] %v2777_v23 }
 0x22d   : > { %v9929_v60 = vsel %vm14358_vm3, %v9924_v52, %v9928_v50  ;;  %11911 = vst [vmem:[%s15982_s24 + $0x120] sm:$0xff] %v5672_v54  ;;  %v5675_v29 = vmax.f32 %v5643_v17, 0.0  ;;  %13489 = vmatmul.mubr.msk.bf16.gmra.mrb[48].mxu0 %vm367_vm0, %v14230_v42  ;;  %v9940_v61 = vshll.u32 %v12533_v37, 16  ;;  %v16101_v2 = vpop.f32.mrb[27].mxu1  ;;  %v9944_v55 = vshrl.u32 %v12533_v37, 16 }
 0x22e   : > { %v12571_v53 = vcombine.low %v9919_v57, %v9929_v60  ;;  %v5673_v32 = vmax.f32 %v5641_v7, 0.0  ;;  %16755 = vst [vmem:[#allocation8_spill] sm:$0xff] %v16101_v2  ;;  %2807 = vst [vmem:[%s15982_s24 + $0x28] sm:$0xff] %v2775_v4  ;;  %v9933_v50 = vrot.slane %v9931_v28, 4  ;;  %v9936_v46 = vrot.slane %v9934_v40, 5  ;;  %13492 = vmatprep.mubr.msk.bf16.mxu0 %vm367_vm0, %v14233_v10  ;;  %v14234_v28 = vld [vmem:[%s14333_s6 + $0x9c] sm:$0xff]  }
 0x22f   : > { %v9950_v5 = vshll.u32 %v12534_v16, 16  ;;  %v12537_v22 = vld [vmem:[%s14333_s6 + $0x8c] sm:$0x1]  ;;  %11914 = vst [vmem:[%s15982_s24 + $0x138] sm:$0xff] %v5675_v29  ;;  %v9942_v57 = vrot.slane %v9940_v61, 5  ;;  %v9955_v52 = vshrl.u32 %v12535_v41, 16  ;;  %v2746_v61 = vadd.f32 %v15949_v49, %v15819_v14 }
 0x230   : > { %13645 = vmatmul.mubr.msk.bf16.gmra.mrb[44].mxu1 %vm367_vm0, %v12571_v53  ;;  %11912 = vst [vmem:[%s15982_s24 + $0x128] sm:$0xff] %v5673_v32  ;;  %v9958_v42 = vshll.u32 %v12535_v41, 16  ;;  %v9964_v58 = vshll.u32 %v12536_v30, 16  ;;  %v9937_v23 = vor.u32 %v9936_v46, %v9933_v50  ;;  %v9946_v54 = vrot.slane %v9944_v55, 4  ;;  %v14235_v29 = vld [vmem:[%s14333_s6 + $0xa8] sm:$0xff]  }
 0x231   : > { %v9952_v17 = vrot.slane %v9950_v5, 5  ;;  %v9968_v7 = vshrl.u32 %v12536_v30, 16  ;;  %v9957_v60 = vrot.slane %v9955_v52, 4  ;;  %v9974_v4 = vshll.u32 %v12537_v22, 16 }
 0x232   : > { %v9960_v37 = vrot.slane %v9958_v42, 5  ;;  %v9966_v16 = vrot.slane %v9964_v58, 5  ;;  %v9938_v10 = vrot.slane %v9937_v23, 4  ;;  %v9947_v40 = vor.u32 %v9946_v54, %v9942_v57 }
 0x233   : > { %v9970_v2 = vrot.slane %v9968_v7, 4  ;;  %v2748_v53 = vadd.f32 %v15815_v1, %v15949_v49  ;;  %v9976_v41 = vrot.slane %v9974_v4, 5  ;;  %v5646_v30 = vadd.f32 %v15821_v21, %v15949_v49  ;;  %v12538_v21 = vld [vmem:[%s14333_s6 + $0x90] sm:$0xf]  ;;  %v12539_v7 = vld [vmem:[%s14333_s6 + $0x94] sm:$0xf] }
 0x234   : > { %v9961_v32 = vor.u32 %v9960_v37, %v9957_v60  ;;  %v9943_v50 = vsel %vm14358_vm3, %v9938_v10, %v9942_v57  ;;  %v9948_v46 = vrot.slane %v9947_v40, 4  ;;  %v16119_v22 = vpop.f32.mrb[28].mxu0  ;;  %v2778_v52 = vmax.f32 %v2746_v61, 0.0  ;;  %v12540_v4 = vld [vmem:[%s14333_s6 + $0x98] sm:$0x1] }
 0x235   : > { %v9971_v55 = vor.u32 %v9970_v2, %v9966_v16  ;;  %v2780_v5 = vmax.f32 %v2748_v53, 0.0  ;;  %v5678_v42 = vmax.f32 %v5646_v30, 0.0  ;;  %v2749_v14 = vadd.f32 %v15829_v38, %v15949_v49  ;;  %13493 = vmatmul.mubr.msk.bf16.gmra.mrb[52].mxu0 %vm367_vm0, %v14234_v28  ;;  %v16125_v58 = vpop.f32.mrb[29].mxu0  ;;  %v16136_v38 = vpop.f32.mrb[28].mxu1  ;;  %v14236_v61 = vld [vmem:[%s14333_s6 + $0xb4] sm:$0xff]  }
 0x236   : > { %v9962_v1 = vrot.slane %v9961_v32, 4  ;;  %v9953_v2 = vsel %vm14358_vm3, %v9948_v46, %v9952_v17  ;;  %v5644_v23 = vadd.f32 %v15949_v49, %v15834_v27  ;;  %v2747_v54 = vadd.f32 %v15949_v49, %v15847_v0  ;;  %13496 = vmatprep.mubr.msk.bf16.mxu0 %vm367_vm0, %v14235_v29  ;;  %v16138_v60 = vpop.f32.mrb[30].mxu0  ;;  %2810 = vst [vmem:[%s15982_s24 + $0x40] sm:$0xff] %v2778_v52  ;;  %v16147_v28 = vpop.f32.mrb[29].mxu1  ;;  %v12541_v32 = vld [vmem:[%s14333_s6 + $0x9c] sm:$0xf] }
 0x237   : > { %v9972_v57 = vrot.slane %v9971_v55, 4  ;;  %2812 = vst [vmem:[%s15982_s24 + $0x50] sm:$0xff] %v2780_v5  ;;  %v12572_v37 = vcombine.low %v9943_v50, %v9953_v2  ;;  %11917 = vst [vmem:[%s15982_s24 + $0x150] sm:$0xff] %v5678_v42  ;;  %v2781_v27 = vmax.f32 %v2749_v14, 0.0  ;;  %v5647_v0 = vadd.f32 %v15849_v3, %v15949_v49  ;;  %v16149_v10 = vpop.f32.mrb[31].mxu0  ;;  %v16157_v3 = vpop.f32.mrb[30].mxu1 }
 0x238   : > { %v9967_v17 = vsel %vm14358_vm3, %v9962_v1, %v9966_v16  ;;  %v5676_v53 = vmax.f32 %v5644_v23, 0.0  ;;  %v2779_v16 = vmax.f32 %v2747_v54, 0.0  ;;  %v5645_v29 = vadd.f32 %v15949_v49, %v15853_v11  ;;  %v12542_v55 = vld [vmem:[%s14333_s6 + $0xa0] sm:$0xf]  ;;  %v16162_v5 = vpop.f32.mrb[31].mxu1 }
 0x239   : > { %v9977_v40 = vsel %vm14358_vm3, %v9972_v57, %v9976_v41  ;;  %13648 = vmatprep.mubr.msk.bf16.mxu1 %vm367_vm0, %v12572_v37  ;;  %2813 = vst [vmem:[%s15982_s24 + $0x58] sm:$0xff] %v2781_v27  ;;  %v5679_v50 = vmax.f32 %v5647_v0, 0.0  ;;  %v9979_v46 = vshrl.u32 %v12538_v21, 16  ;;  %v9982_v41 = vshll.u32 %v12538_v21, 16  ;;  %v14239_v14 = vld [vmem:[%s14333_s6 + $0xc0] sm:$0xff]  }
 0x23a   : > { %v12573_v30 = vcombine.low %v9967_v17, %v9977_v40  ;;  %11915 = vst [vmem:[%s15982_s24 + $0x140] sm:$0xff] %v5676_v53  ;;  %2811 = vst [vmem:[%s15982_s24 + $0x48] sm:$0xff] %v2779_v16  ;;  %v5677_v11 = vmax.f32 %v5645_v29, 0.0  ;;  %v9988_v1 = vshll.u32 %v12539_v7, 16  ;;  %v9992_v52 = vshrl.u32 %v12539_v7, 16 }
 0x23b   : > { %v9998_v42 = vshll.u32 %v12540_v4, 16  ;;  %11918 = vst [vmem:[%s15982_s24 + $0x158] sm:$0xff] %v5679_v50  ;;  %v9981_v2 = vrot.slane %v9979_v46, 4  ;;  %v9984_v57 = vrot.slane %v9982_v41, 5  ;;  %v12543_v23 = vld [vmem:[%s14333_s6 + $0xa4] sm:$0x1]  ;;  %v2752_v50 = vadd.f32 %v15858_v18, %v15949_v49 }
 0x23c   : > { %13649 = vmatmul.mubr.msk.bf16.gmra.mrb[48].mxu1 %vm367_vm0, %v12573_v30  ;;  %v10003_v54 = vshrl.u32 %v12541_v32, 16  ;;  %v10006_v37 = vshll.u32 %v12541_v32, 16  ;;  %11916 = vst [vmem:[%s15982_s24 + $0x148] sm:$0xff] %v5677_v11  ;;  %v9990_v21 = vrot.slane %v9988_v1, 5  ;;  %v9994_v17 = vrot.slane %v9992_v52, 4 }
 0x23d   : > { %v10000_v27 = vrot.slane %v9998_v42, 5  ;;  %v10012_v0 = vshll.u32 %v12542_v55, 16  ;;  %v9985_v40 = vor.u32 %v9984_v57, %v9981_v2  ;;  %v10016_v29 = vshrl.u32 %v12542_v55, 16  ;;  %13497 = vmatmul.mubr.msk.bf16.gmra.mrb[56].mxu0 %vm367_vm0, %v14236_v61  ;;  %v14240_v57 = vld [vmem:[%s14333_s6 + $0xcc] sm:$0xff]  }
 0x23e   : > { %v10005_v53 = vrot.slane %v10003_v54, 4  ;;  %v10008_v16 = vrot.slane %v10006_v37, 5  ;;  %v9995_v7 = vor.u32 %v9994_v17, %v9990_v21  ;;  %v10022_v30 = vshll.u32 %v12543_v23, 16  ;;  %13500 = vmatprep.mubr.msk.bf16.mxu0 %vm367_vm0, %v14239_v14  ;;  %v12544_v37 = vld [vmem:[%s14333_s6 + $0xa8] sm:$0xf] }
 0x23f   : > { %v10014_v4 = vrot.slane %v10012_v0, 5  ;;  %v9986_v32 = vrot.slane %v9985_v40, 4  ;;  %v10018_v41 = vrot.slane %v10016_v29, 4  ;;  %v2750_v11 = vadd.f32 %v15949_v49, %v15861_v26  ;;  %v12545_v40 = vld [vmem:[%s14333_s6 + $0xac] sm:$0xf] }
 0x240   : > { %v10009_v46 = vor.u32 %v10008_v16, %v10005_v53  ;;  %v9996_v55 = vrot.slane %v9995_v7, 4  ;;  %v10024_v1 = vrot.slane %v10022_v30, 5  ;;  %v2784_v61 = vmax.f32 %v2752_v50, 0.0  ;;  %v16756_v16 = vld [vmem:[#allocation4_spill] sm:$0xff]  ;;  %v12546_v7 = vld [vmem:[%s14333_s6 + $0xb0] sm:$0x1] }
 0x241   : > { %v5650_v52 = vadd.f32 %v15867_v45, %v15949_v49  ;;  %v9991_v18 = vsel %vm14358_vm3, %v9986_v32, %v9990_v21  ;;  %v10019_v14 = vor.u32 %v10018_v41, %v10014_v4  ;;  %v2782_v2 = vmax.f32 %v2750_v11, 0.0 }
 0x242   : > { %v10010_v42 = vrot.slane %v10009_v46, 4  ;;  %v10001_v23 = vsel %vm14358_vm3, %v9996_v55, %v10000_v27  ;;  %2816 = vst [vmem:[%s15982_s24 + $0x70] sm:$0xff] %v2784_v61  ;;  %v2753_v54 = vadd.f32 %v15880_v20, %v15949_v49  ;;  %v5648_v45 = vadd.f32 %v15949_v49, %v15882_v9  ;;  %v12548_v46 = vld [vmem:[%s14333_s6 + $0xb8] sm:$0xf] }
 0x243   : > { %v5682_v26 = vmax.f32 %v5650_v52, 0.0  ;;  %v12574_v21 = vcombine.low %v9991_v18, %v10001_v23  ;;  %v10020_v0 = vrot.slane %v10019_v14, 4  ;;  %2814 = vst [vmem:[%s15982_s24 + $0x60] sm:$0xff] %v2782_v2  ;;  %v2751_v27 = vadd.f32 %v15949_v49, %v15888_v31 }
 0x244   : > { %v10015_v17 = vsel %vm14358_vm3, %v10010_v42, %v10014_v4  ;;  %v2785_v53 = vmax.f32 %v2753_v54, 0.0  ;;  %v5680_v20 = vmax.f32 %v5648_v45, 0.0  ;;  %v5651_v9 = vadd.f32 %v15890_v36, %v15949_v49  ;;  %v12547_v4 = vld [vmem:[%s14333_s6 + $0xb4] sm:$0xf]  ;;  %v12549_v42 = vld [vmem:[%s14333_s6 + $0xbc] sm:$0x1] }
 0x245   : > { %11921 = vst [vmem:[%s15982_s24 + $0x170] sm:$0xff] %v5682_v26  ;;  %v5649_v29 = vadd.f32 %v15949_v49, %v16756_v16  ;;  %13652 = vmatprep.mubr.msk.bf16.mxu1 %vm367_vm0, %v12574_v21  ;;  %v10025_v31 = vsel %vm14358_vm3, %v10020_v0, %v10024_v1  ;;  %v2783_v30 = vmax.f32 %v2751_v27, 0.0  ;;  %v10027_v50 = vshrl.u32 %v12544_v37, 16  ;;  %13501 = vmatmul.mubr.msk.bf16.gmra.mrb[60].mxu0 %vm367_vm0, %v14240_v57 }
 0x246   : > { %v10030_v32 = vshll.u32 %v12544_v37, 16  ;;  %v12575_v36 = vcombine.low %v10015_v17, %v10025_v31  ;;  %2817 = vst [vmem:[%s15982_s24 + $0x78] sm:$0xff] %v2785_v53  ;;  %11919 = vst [vmem:[%s15982_s24 + $0x160] sm:$0xff] %v5680_v20  ;;  %v5683_v41 = vmax.f32 %v5651_v9, 0.0  ;;  %v10036_v55 = vshll.u32 %v12545_v40, 16 }
 0x247   : > { %v5681_v11 = vmax.f32 %v5649_v29, 0.0  ;;  %2815 = vst [vmem:[%s15982_s24 + $0x68] sm:$0xff] %v2783_v30  ;;  %v10029_v61 = vrot.slane %v10027_v50, 4  ;;  %v10040_v18 = vshrl.u32 %v12545_v40, 16  ;;  %v10046_v1 = vshll.u32 %v12546_v7, 16 }
 0x248   : > { %v10032_v52 = vrot.slane %v10030_v32, 5  ;;  %13653 = vmatmul.mubr.msk.bf16.gmra.mrb[52].mxu1 %vm367_vm0, %v12575_v36  ;;  %11922 = vst [vmem:[%s15982_s24 + $0x178] sm:$0xff] %v5683_v41  ;;  %v10038_v14 = vrot.slane %v10036_v55, 5  ;;  %v10051_v2 = vshrl.u32 %v12547_v4, 16  ;;  %v10054_v23 = vshll.u32 %v12547_v4, 16 }
 0x249   : > { %11920 = vst [vmem:[%s15982_s24 + $0x168] sm:$0xff] %v5681_v11  ;;  %v10060_v57 = vshll.u32 %v12548_v46, 16  ;;  %v10042_v54 = vrot.slane %v10040_v18, 4  ;;  %v10048_v45 = vrot.slane %v10046_v1, 5  ;;  %v10064_v37 = vshrl.u32 %v12548_v46, 16 }
 0x24a   : > { %v10033_v26 = vor.u32 %v10032_v52, %v10029_v61  ;;  %v10053_v21 = vrot.slane %v10051_v2, 4  ;;  %v10056_v17 = vrot.slane %v10054_v23, 5  ;;  %v10070_v27 = vshll.u32 %v12549_v42, 16  ;;  %v12550_v61 = vld [vmem:[%s14333_s6 + $0xc0] sm:$0xf] }
 0x24b   : > { %v10062_v0 = vrot.slane %v10060_v57, 5  ;;  %v10043_v40 = vor.u32 %v10042_v54, %v10038_v14  ;;  %v10066_v20 = vrot.slane %v10064_v37, 4  ;;  %v2756_v9 = vadd.f32 %v15928_v47, %v15949_v49  ;;  %v12551_v42 = vld [vmem:[%s14333_s6 + $0xc4] sm:$0xf]  ;;  %v12553_v57 = vld [vmem:[%s14333_s6 + $0xcc] sm:$0xf] }
 0x24c   : > { %v10034_v53 = vrot.slane %v10033_v26, 4  ;;  %v10057_v16 = vor.u32 %v10056_v17, %v10053_v21  ;;  %v10072_v29 = vrot.slane %v10070_v27, 5  ;;  %v2754_v7 = vadd.f32 %v15949_v49, %v15937_v12  ;;  %v12554_v37 = vld [vmem:[%s14333_s6 + $0xd0] sm:$0xf] }
 0x24d   : > { %v5654_v4 = vadd.f32 %v15955_v15, %v15949_v49  ;;  %v10044_v30 = vrot.slane %v10043_v40, 4  ;;  %v10067_v50 = vor.u32 %v10066_v20, %v10062_v0  ;;  %v2788_v32 = vmax.f32 %v2756_v9, 0.0  ;;  %v12555_v40 = vld [vmem:[%s14333_s6 + $0xd4] sm:$0x1] }
 0x24e   : > { %v10039_v31 = vsel %vm14358_vm3, %v10034_v53, %v10038_v14  ;;  %v10058_v46 = vrot.slane %v10057_v16, 4  ;;  %v2786_v47 = vmax.f32 %v2754_v7, 0.0  ;;  %v2757_v41 = vadd.f32 %v15957_v25, %v15949_v49 }
 0x24f   : > { %v5686_v36 = vmax.f32 %v5654_v4, 0.0  ;;  %v10049_v12 = vsel %vm14358_vm3, %v10044_v30, %v10048_v45  ;;  %v10068_v15 = vrot.slane %v10067_v50, 4  ;;  %2820 = vst [vmem:[%s15982_s24 + $0x90] sm:$0xff] %v2788_v32  ;;  %v5652_v11 = vadd.f32 %v15949_v49, %v15966_v48  ;;  %v12552_v48 = vld [vmem:[%s14333_s6 + $0xc8] sm:$0x1] }
 0x250   : > { %v2755_v55 = vadd.f32 %v15949_v49, %v15968_v43  ;;  %v12576_v52 = vcombine.low %v10039_v31, %v10049_v12  ;;  %v10063_v18 = vsel %vm14358_vm3, %v10058_v46, %v10062_v0  ;;  %2818 = vst [vmem:[%s15982_s24 + $0x80] sm:$0xff] %v2786_v47  ;;  %v2789_v25 = vmax.f32 %v2757_v41, 0.0 }
 0x251   : > { %11925 = vst [vmem:[%s15982_s24 + $0x190] sm:$0xff] %v5686_v36  ;;  %v5655_v1 = vadd.f32 %v15972_v24, %v15949_v49  ;;  %v10073_v43 = vsel %vm14358_vm3, %v10068_v15, %v10072_v29  ;;  %v5684_v14 = vmax.f32 %v5652_v11, 0.0  ;;  %v5653_v23 = vadd.f32 %v15949_v49, %v15989_v59 }
 0x252   : > { %v2787_v2 = vmax.f32 %v2755_v55, 0.0  ;;  %13656 = vmatprep.mubr.msk.bf16.mxu1 %vm367_vm0, %v12576_v52  ;;  %v12577_v26 = vcombine.low %v10063_v18, %v10073_v43  ;;  %2821 = vst [vmem:[%s15982_s24 + $0x98] sm:$0xff] %v2789_v25  ;;  %v10075_v24 = vshrl.u32 %v12550_v61, 16  ;;  %v10078_v45 = vshll.u32 %v12550_v61, 16 }
 0x253   : > { %v5687_v54 = vmax.f32 %v5655_v1, 0.0  ;;  %11923 = vst [vmem:[%s15982_s24 + $0x180] sm:$0xff] %v5684_v14  ;;  %v5685_v21 = vmax.f32 %v5653_v23, 0.0  ;;  %v10084_v17 = vshll.u32 %v12551_v42, 16  ;;  %v10088_v0 = vshrl.u32 %v12551_v42, 16 }
 0x254   : > { %2819 = vst [vmem:[%s15982_s24 + $0x88] sm:$0xff] %v2787_v2  ;;  %v10094_v27 = vshll.u32 %v12552_v48, 16  ;;  %13657 = vmatmul.mubr.msk.bf16.gmra.mrb[56].mxu1 %vm367_vm0, %v12577_v26  ;;  %v10077_v59 = vrot.slane %v10075_v24, 4  ;;  %v10080_v53 = vrot.slane %v10078_v45, 5  ;;  %v10099_v20 = vshrl.u32 %v12553_v57, 16  ;;  %v16757_v2 = vld [vmem:[#allocation5_spill] sm:$0xff] }
 0x255   : > { %11926 = vst [vmem:[%s15982_s24 + $0x198] sm:$0xff] %v5687_v54  ;;  %v10102_v9 = vshll.u32 %v12553_v57, 16  ;;  %11924 = vst [vmem:[%s15982_s24 + $0x188] sm:$0xff] %v5685_v21  ;;  %v10086_v16 = vrot.slane %v10084_v17, 5  ;;  %v10090_v29 = vrot.slane %v10088_v0, 4  ;;  %v10108_v4 = vshll.u32 %v12554_v37, 16 }
 0x256   : > { %v10096_v7 = vrot.slane %v10094_v27, 5  ;;  %v10081_v31 = vor.u32 %v10080_v53, %v10077_v59  ;;  %v10101_v30 = vrot.slane %v10099_v20, 4  ;;  %v10112_v32 = vshrl.u32 %v12554_v37, 16  ;;  %v12183_v23 = vld [vmem:[%s14333_s6 + $0x18] sm:$0xf]  ;;  %v16758_v24 = vld [vmem:[#allocation7_spill] sm:$0xff] }
 0x257   : > { %v10104_v50 = vrot.slane %v10102_v9, 5  ;;  %v10091_v46 = vor.u32 %v10090_v29, %v10086_v16  ;;  %v10110_v47 = vrot.slane %v10108_v4, 5  ;;  %v10118_v36 = vshll.u32 %v12555_v40, 16  ;;  %v12184_v37 = vld [vmem:[%s14333_s6 + $0x1c] sm:$0xf] }
 0x258   : > { %v2760_v41 = vadd.f32 %v16020_v8, %v15949_v49  ;;  %v10082_v12 = vrot.slane %v10081_v31, 4  ;;  %v10114_v11 = vrot.slane %v10112_v32, 4  ;;  %v2758_v55 = vadd.f32 %v15949_v49, %v16024_v13  ;;  %v16759_v17 = vld [vmem:[#allocation6_spill] sm:$0xff]  ;;  %v12185_v59 = vld [vmem:[%s14333_s6 + $0x20] sm:$0x1] }
 0x259   : > { %v10105_v15 = vor.u32 %v10104_v50, %v10101_v30  ;;  %v10092_v61 = vrot.slane %v10091_v46, 4  ;;  %v10120_v52 = vrot.slane %v10118_v36, 5  ;;  %v5658_v25 = vadd.f32 %v16022_v56, %v15949_v49  ;;  %v12186_v53 = vld [vmem:[%s14333_s6 + $0x24] sm:$0xf]  ;;  %v12187_v29 = vld [vmem:[%s14333_s6 + $0x28] sm:$0xf] }
 0x25a   : > { %v2792_v18 = vmax.f32 %v2760_v41, 0.0  ;;  %v10087_v1 = vsel %vm14358_vm3, %v10082_v12, %v10086_v16  ;;  %v10115_v42 = vor.u32 %v10114_v11, %v10110_v47  ;;  %v2790_v48 = vmax.f32 %v2758_v55, 0.0  ;;  %v12188_v30 = vld [vmem:[%s14333_s6 + $0x2c] sm:$0x1]  ;;  %v12600_v36 = vld [vmem:[%s14333_s6 + $0x18] sm:$0xe] }
 0x25b   : > { %v10106_v8 = vrot.slane %v10105_v15, 4  ;;  %v10097_v43 = vsel %vm14358_vm3, %v10092_v61, %v10096_v7  ;;  %v5690_v13 = vmax.f32 %v5658_v25, 0.0  ;;  %v2761_v14 = vadd.f32 %v16028_v19, %v15949_v49  ;;  %v12601_v55 = vld [vmem:[%s14333_s6 + $0x1c] sm:$0xf] }
 0x25c   : > { %2824 = vst [vmem:[%s15982_s24 + $0xb0] sm:$0xff] %v2792_v18  ;;  %v5656_v56 = vadd.f32 %v15949_v49, %v16757_v2  ;;  %v12578_v57 = vcombine.low %v10087_v1, %v10097_v43  ;;  %v10116_v54 = vrot.slane %v10115_v42, 4  ;;  %2822 = vst [vmem:[%s15982_s24 + $0xa0] sm:$0xff] %v2790_v48  ;;  %v2759_v45 = vadd.f32 %v15949_v49, %v16758_v24  ;;  %v12602_v1 = vld [vmem:[%s14333_s6 + $0x20] sm:$0x1] }
 0x25d   : > { %v10111_v26 = vsel %vm14358_vm3, %v10106_v8, %v10110_v47  ;;  %11929 = vst [vmem:[%s15982_s24 + $0x1b0] sm:$0xff] %v5690_v13  ;;  %v2793_v21 = vmax.f32 %v2761_v14, 0.0  ;;  %v5659_v0 = vadd.f32 %v16759_v17, %v15949_v49  ;;  %v5657_v27 = vadd.f32 %v15949_v49, %v16040_v33  ;;  %v12603_v13 = vld [vmem:[%s14333_s6 + $0x24] sm:$0xe] }
 0x25e   : > { %v5688_v19 = vmax.f32 %v5656_v56, 0.0  ;;  %13660 = vmatprep.mubr.msk.bf16.mxu1 %vm367_vm0, %v12578_v57  ;;  %v10121_v40 = vsel %vm14358_vm3, %v10116_v54, %v10120_v52  ;;  %v2791_v20 = vmax.f32 %v2759_v45, 0.0  ;;  %v7437_v9 = vshrl.u32 %v12183_v23, 16  ;;  %v12604_v57 = vld [vmem:[%s14333_s6 + $0x28] sm:$0xf] }
 0x25f   : > { %v7440_v16 = vshll.u32 %v12183_v23, 16  ;;  %v12579_v7 = vcombine.low %v10111_v26, %v10121_v40  ;;  %2825 = vst [vmem:[%s15982_s24 + $0xb8] sm:$0xff] %v2793_v21  ;;  %v5691_v4 = vmax.f32 %v5659_v0, 0.0  ;;  %v5689_v33 = vmax.f32 %v5657_v27, 0.0 }
 0x260   : > { %11927 = vst [vmem:[%s15982_s24 + $0x1a0] sm:$0xff] %v5688_v19  ;;  %v7446_v31 = vshll.u32 %v12184_v37, 16  ;;  %2823 = vst [vmem:[%s15982_s24 + $0xa8] sm:$0xff] %v2791_v20  ;;  %v7439_v50 = vrot.slane %v7437_v9, 4  ;;  %v7450_v46 = vshrl.u32 %v12184_v37, 16  ;;  %v7456_v47 = vshll.u32 %v12185_v59, 16 }
 0x261   : > { %v7442_v32 = vrot.slane %v7440_v16, 5  ;;  %13661 = vmatmul.mubr.msk.bf16.gmra.mrb[60].mxu1 %vm367_vm0, %v12579_v7  ;;  %11930 = vst [vmem:[%s15982_s24 + $0x1b8] sm:$0xff] %v5691_v4  ;;  %11928 = vst [vmem:[%s15982_s24 + $0x1a8] sm:$0xff] %v5689_v33  ;;  %v7461_v12 = vshrl.u32 %v12186_v53, 16  ;;  %v7464_v15 = vshll.u32 %v12186_v53, 16  ;;  %v7470_v11 = vshll.u32 %v12187_v29, 16 }
 0x262   : > { %v7448_v41 = vrot.slane %v7446_v31, 5  ;;  %v7452_v52 = vrot.slane %v7450_v46, 4  ;;  %v7458_v18 = vrot.slane %v7456_v47, 5  ;;  %v7474_v25 = vshrl.u32 %v12187_v29, 16  ;;  %v12605_v37 = vld [vmem:[%s14333_s6 + $0x2c] sm:$0x1] }
 0x263   : > { %v7443_v61 = vor.u32 %v7442_v32, %v7439_v50  ;;  %v7463_v8 = vrot.slane %v7461_v12, 4  ;;  %v7466_v42 = vrot.slane %v7464_v15, 5  ;;  %v7472_v48 = vrot.slane %v7470_v11, 5  ;;  %v16331_v11 = vld [vmem:[%s16742_s2] ss:$0 sm:$0xff] }
 0x264   : > { %v7480_v43 = vshll.u32 %v12188_v30, 16  ;;  %v7453_v2 = vor.u32 %v7452_v52, %v7448_v41  ;;  %v7476_v56 = vrot.slane %v7474_v25, 4  ;;  %v12648_v23 = vrot.slane %v12600_v36, 9 }
 0x265   : > { %v7444_v14 = vrot.slane %v7443_v61, 4  ;;  %v7467_v26 = vor.u32 %v7466_v42, %v7463_v8  ;;  %v10606_v24 = vrot.slane %v12601_v55, 5  ;;  %v10609_v45 = vrot.slane %v12602_v1, 5  ;;  %v12190_v55 = vld [vmem:[%s14333_s6 + $0x34] sm:$0xf]  ;;  %v16761_v42 = vld [vmem:[#allocation8_spill] sm:$0xff] }
 0x266   : > { %v7482_v54 = vrot.slane %v7480_v43, 5  ;;  %v7454_v19 = vrot.slane %v7453_v2, 4  ;;  %v7477_v17 = vor.u32 %v7476_v56, %v7472_v48  ;;  %v12649_v0 = vrot.slane %v12603_v13, 9  ;;  %v12191_v61 = vld [vmem:[%s14333_s6 + $0x38] sm:$0x1] }
 0x267   : > { %v7449_v21 = vsel %vm14358_vm3, %v7444_v14, %v7448_v41  ;;  %v7468_v27 = vrot.slane %v7467_v26, 4  ;;  %v10607_v53 = vsel %vm14559_vm6, %v12648_v23, %v10606_v24  ;;  %v10608_v40 = vrot.slane %v10606_v24, 4  ;;  %v12192_v1 = vld [vmem:[%s14333_s6 + $0x3c] sm:$0xf]  ;;  %v12193_v43 = vld [vmem:[%s14333_s6 + $0x40] sm:$0xf] }
 0x268   : > { %v10613_v20 = vrot.slane %v12604_v57, 5  ;;  %v7459_v9 = vsel %vm14358_vm3, %v7454_v19, %v7458_v18  ;;  %v7478_v16 = vrot.slane %v7477_v17, 4  ;;  %v10616_v29 = vrot.slane %v12605_v37, 5  ;;  %v12194_v23 = vld [vmem:[%s14333_s6 + $0x44] sm:$0x1] }
 0x269   : > { %v2764_v7 = vadd.f32 %v16068_v62, %v15949_v49  ;;  %v12239_v4 = vcombine.low %v7449_v21, %v7459_v9  ;;  %v7473_v33 = vsel %vm14358_vm3, %v7468_v27, %v7472_v48  ;;  %v10610_v31 = vsel %vm14559_vm6, %v10608_v40, %v10609_v45  ;;  %v12606_v45 = vld [vmem:[%s14333_s6 + $0x30] sm:$0xe] }
 0x26a   : > { %v10614_v30 = vsel %vm14559_vm6, %v12649_v0, %v10613_v20  ;;  %v7483_v50 = vsel %vm14358_vm3, %v7478_v16, %v7482_v54  ;;  %v12672_v32 = vcombine.low %v10607_v53, %v10610_v31  ;;  %v10615_v46 = vrot.slane %v10613_v20, 4  ;;  %v12607_v0 = vld [vmem:[%s14333_s6 + $0x34] sm:$0xf] }
 0x26b   : > { %v2796_v62 = vmax.f32 %v2764_v7, 0.0  ;;  %13512 = vmatprep.mubr.msk.bf16.mxu0 %vm367_vm0, %v12239_v4  ;;  %v12240_v47 = vcombine.low %v7473_v33, %v7483_v50  ;;  %v2762_v36 = vadd.f32 %v15949_v49, %v16077_v6  ;;  %v5662_v41 = vadd.f32 %v16079_v63, %v15949_v49  ;;  %v12608_v4 = vld [vmem:[%s14333_s6 + $0x38] sm:$0x1] }
 0x26c   : > { %v2765_v12 = vadd.f32 %v16087_v44, %v15949_v49  ;;  %13672 = vmatprep.mubr.msk.bf16.mxu1 %vm367_vm0, %v12672_v32  ;;  %v10617_v15 = vsel %vm14559_vm6, %v10615_v46, %v10616_v29  ;;  %v5660_v6 = vadd.f32 %v16331_v11, %v16089_v35  ;;  %v2763_v63 = vadd.f32 %v16331_v11, %v16094_v51  ;;  %v12189_v44 = vld [vmem:[%s14333_s6 + $0x30] sm:$0xf]  ;;  %v12609_v32 = vld [vmem:[%s14333_s6 + $0x3c] sm:$0xe] }
 0x26d   : > { %2828 = vst [vmem:[%s15982_s24 + $0xd0] sm:$0xff] %v2796_v62  ;;  %v5663_v49 = vadd.f32 %v16331_v11, %v16096_v39  ;;  %13513 = vmatmul.mubr.msk.bf16.vlgmr.msra.gmra.mrb[32].mxu0 %vm367_vm0, %v12240_v47  ;;  %v12673_v52 = vcombine.low %v10614_v30, %v10617_v15  ;;  %v2794_v18 = vmax.f32 %v2762_v36, 0.0  ;;  %v5694_v25 = vmax.f32 %v5662_v41, 0.0  ;;  %v12610_v41 = vld [vmem:[%s14333_s6 + $0x40] sm:$0xf] }
 0x26e   : > { %v2797_v35 = vmax.f32 %v2765_v12, 0.0  ;;  %v5692_v51 = vmax.f32 %v5660_v6, 0.0  ;;  %v2795_v8 = vmax.f32 %v2763_v63, 0.0  ;;  %v5661_v48 = vadd.f32 %v16331_v11, %v16761_v42 }
 0x26f   : > { %v5695_v39 = vmax.f32 %v5663_v49, 0.0  ;;  %13673 = vmatmul.mubr.msk.bf16.vlgmr.msra.gmra.mrb[32].mxu1 %vm367_vm0, %v12673_v52  ;;  %2826 = vst [vmem:[%s15982_s24 + $0xc0] sm:$0xff] %v2794_v18  ;;  %11933 = vst [vmem:[%s15982_s24 + $0x1d0] sm:$0xff] %v5694_v25  ;;  %v7485_v13 = vshrl.u32 %v12189_v44, 16  ;;  %v7488_v14 = vshll.u32 %v12189_v44, 16  ;;  %v7494_v2 = vshll.u32 %v12190_v55, 16 }
 0x270   : > { %2829 = vst [vmem:[%s15982_s24 + $0xd8] sm:$0xff] %v2797_v35  ;;  %v7498_v56 = vshrl.u32 %v12190_v55, 16  ;;  %11931 = vst [vmem:[%s15982_s24 + $0x1c0] sm:$0xff] %v5692_v51  ;;  %v5693_v57 = vmax.f32 %v5661_v48, 0.0  ;;  %v7504_v26 = vshll.u32 %v12191_v61, 16  ;;  %v7509_v54 = vshrl.u32 %v12192_v1, 16 }
 0x271   : > { %2827 = vst [vmem:[%s15982_s24 + $0xc8] sm:$0xff] %v2795_v8  ;;  %11934 = vst [vmem:[%s15982_s24 + $0x1d8] sm:$0xff] %v5695_v39  ;;  %v7512_v24 = vshll.u32 %v12192_v1, 16  ;;  %v7487_v37 = vrot.slane %v7485_v13, 4  ;;  %v7490_v21 = vrot.slane %v7488_v14, 5  ;;  %v7496_v19 = vrot.slane %v7494_v2, 5 }
 0x272   : > { %v7500_v17 = vrot.slane %v7498_v56, 4  ;;  %11932 = vst [vmem:[%s15982_s24 + $0x1c8] sm:$0xff] %v5693_v57  ;;  %v7506_v27 = vrot.slane %v7504_v26, 5  ;;  %v7511_v53 = vrot.slane %v7509_v54, 4  ;;  %v7518_v20 = vshll.u32 %v12193_v43, 16 }
 0x273   : > { %v7514_v40 = vrot.slane %v7512_v24, 5  ;;  %v7491_v9 = vor.u32 %v7490_v21, %v7487_v37  ;;  %v7522_v29 = vshrl.u32 %v12193_v43, 16  ;;  %v7528_v7 = vshll.u32 %v12194_v23, 16  ;;  %v12611_v49 = vld [vmem:[%s14333_s6 + $0x44] sm:$0x1] }
 0x274   : > { %v7501_v16 = vor.u32 %v7500_v17, %v7496_v19  ;;  %v7520_v31 = vrot.slane %v7518_v20, 5  ;;  %v12650_v30 = vrot.slane %v12606_v45, 9  ;;  %v10620_v50 = vrot.slane %v12607_v0, 5  ;;  %v12195_v57 = vld [vmem:[%s14333_s6 + $0x48] sm:$0xf] }
 0x275   : > { %v7515_v33 = vor.u32 %v7514_v40, %v7511_v53  ;;  %v7492_v46 = vrot.slane %v7491_v9, 4  ;;  %v7524_v47 = vrot.slane %v7522_v29, 4  ;;  %v7530_v36 = vrot.slane %v7528_v7, 5  ;;  %v12196_v24 = vld [vmem:[%s14333_s6 + $0x4c] sm:$0xf] }
 0x276   : > { %v7502_v62 = vrot.slane %v7501_v16, 4  ;;  %v10621_v15 = vsel %vm14559_vm6, %v12650_v30, %v10620_v50  ;;  %v10622_v6 = vrot.slane %v10620_v50, 4  ;;  %v10623_v63 = vrot.slane %v12608_v4, 5  ;;  %v12197_v45 = vld [vmem:[%s14333_s6 + $0x50] sm:$0x1] }
 0x277   : > { %v7516_v12 = vrot.slane %v7515_v33, 4  ;;  %v7497_v44 = vsel %vm14358_vm3, %v7492_v46, %v7496_v19  ;;  %v7525_v61 = vor.u32 %v7524_v47, %v7520_v31  ;;  %v12651_v52 = vrot.slane %v12609_v32, 9  ;;  %v12198_v53 = vld [vmem:[%s14333_s6 + $0x54] sm:$0xf]  ;;  %v12199_v40 = vld [vmem:[%s14333_s6 + $0x58] sm:$0xf] }
 0x278   : > { %v7507_v55 = vsel %vm14358_vm3, %v7502_v62, %v7506_v27  ;;  %v10624_v35 = vsel %vm14559_vm6, %v10622_v6, %v10623_v63  ;;  %v10627_v1 = vrot.slane %v12610_v41, 5  ;;  %v10630_v39 = vrot.slane %v12611_v49, 5  ;;  %v12200_v16 = vld [vmem:[%s14333_s6 + $0x5c] sm:$0x1]  ;;  %v12612_v4 = vld [vmem:[%s14333_s6 + $0x48] sm:$0xe] }
 0x279   : > { %v12241_v18 = vcombine.low %v7497_v44, %v7507_v55  ;;  %v7521_v25 = vsel %vm14358_vm3, %v7516_v12, %v7520_v31  ;;  %v7526_v51 = vrot.slane %v7525_v61, 4  ;;  %v12674_v8 = vcombine.low %v10621_v15, %v10624_v35  ;;  %v12613_v32 = vld [vmem:[%s14333_s6 + $0x4c] sm:$0xf]  ;;  %v12614_v41 = vld [vmem:[%s14333_s6 + $0x50] sm:$0x1] }
 0x27a   : > { %v2768_v42 = vadd.f32 %v16331_v11, %v16119_v22  ;;  %v10628_v48 = vsel %vm14559_vm6, %v12651_v52, %v10627_v1  ;;  %v10629_v43 = vrot.slane %v10627_v1, 4  ;;  %v2766_v13 = vadd.f32 %v16331_v11, %v16125_v58  ;;  %v12615_v49 = vld [vmem:[%s14333_s6 + $0x54] sm:$0xe] }
 0x27b   : > { %13516 = vmatprep.mubr.msk.bf16.mxu0 %vm367_vm0, %v12241_v18  ;;  %v5666_v14 = vadd.f32 %v16331_v11, %v16136_v38  ;;  %v7531_v2 = vsel %vm14358_vm3, %v7526_v51, %v7530_v36  ;;  %13676 = vmatprep.mubr.msk.bf16.mxu1 %vm367_vm0, %v12674_v8  ;;  %v2769_v56 = vadd.f32 %v16331_v11, %v16138_v60  ;;  %v7533_v0 = vshrl.u32 %v12195_v57, 16  ;;  %v12616_v18 = vld [vmem:[%s14333_s6 + $0x58] sm:$0xf]  ;;  %v12617_v8 = vld [vmem:[%s14333_s6 + $0x5c] sm:$0x1] }
 0x27c   : > { %v2800_v22 = vmax.f32 %v2768_v42, 0.0  ;;  %v5664_v23 = vadd.f32 %v16331_v11, %v16147_v28  ;;  %v12242_v26 = vcombine.low %v7521_v25, %v7531_v2  ;;  %v10631_v58 = vsel %vm14559_vm6, %v10629_v43, %v10630_v39 }
 0x27d   : > { %v2798_v38 = vmax.f32 %v2766_v13, 0.0  ;;  %v5698_v54 = vmax.f32 %v5666_v14, 0.0  ;;  %v12675_v37 = vcombine.low %v10628_v48, %v10631_v58  ;;  %v2801_v60 = vmax.f32 %v2769_v56, 0.0  ;;  %v12201_v13 = vld [vmem:[%s14333_s6 + $0x60] sm:$0xf] }
 0x27e   : > { %2832 = vst [vmem:[%s15982_s24 + $0xf0] sm:$0xff] %v2800_v22  ;;  %v5696_v21 = vmax.f32 %v5664_v23, 0.0  ;;  %v2767_v28 = vadd.f32 %v16331_v11, %v16149_v10  ;;  %13517 = vmatmul.mubr.msk.bf16.gmra.mrb[36].mxu0 %vm367_vm0, %v12242_v26  ;;  %v5667_v19 = vadd.f32 %v16331_v11, %v16157_v3  ;;  %v5665_v17 = vadd.f32 %v16331_v11, %v16162_v5 }
 0x27f   : > { %2830 = vst [vmem:[%s15982_s24 + $0xe0] sm:$0xff] %v2798_v38  ;;  %11937 = vst [vmem:[%s15982_s24 + $0x1f0] sm:$0xff] %v5698_v54  ;;  %v7536_v27 = vshll.u32 %v12195_v57, 16  ;;  %13677 = vmatmul.mubr.msk.bf16.gmra.mrb[36].mxu1 %vm367_vm0, %v12675_v37  ;;  %v7542_v20 = vshll.u32 %v12196_v24, 16  ;;  %v7546_v9 = vshrl.u32 %v12196_v24, 16  ;;  %v7552_v3 = vshll.u32 %v12197_v45, 16 }
 0x280   : > { %2833 = vst [vmem:[%s15982_s24 + $0xf8] sm:$0xff] %v2801_v60  ;;  %11935 = vst [vmem:[%s15982_s24 + $0x1e0] sm:$0xff] %v5696_v21  ;;  %v2799_v10 = vmax.f32 %v2767_v28, 0.0  ;;  %v5699_v29 = vmax.f32 %v5667_v19, 0.0  ;;  %v5697_v5 = vmax.f32 %v5665_v17, 0.0  ;;  %v7535_v11 = vrot.slane %v7533_v0, 4 }
 0x281   : > { %v7538_v7 = vrot.slane %v7536_v27, 5  ;;  %v7544_v33 = vrot.slane %v7542_v20, 5  ;;  %v7548_v31 = vrot.slane %v7546_v9, 4  ;;  %v7554_v30 = vrot.slane %v7552_v3, 5  ;;  %v12202_v38 = vld [vmem:[%s14333_s6 + $0x64] sm:$0xf] }
 0x282   : > { %2831 = vst [vmem:[%s15982_s24 + $0xe8] sm:$0xff] %v2799_v10  ;;  %v7557_v50 = vshrl.u32 %v12198_v53, 16  ;;  %11938 = vst [vmem:[%s15982_s24 + $0x1f8] sm:$0xff] %v5699_v29  ;;  %v7560_v62 = vshll.u32 %v12198_v53, 16  ;;  %v7566_v47 = vshll.u32 %v12199_v40, 16  ;;  %v7570_v36 = vshrl.u32 %v12199_v40, 16 }
 0x283   : > { %11936 = vst [vmem:[%s15982_s24 + $0x1e8] sm:$0xff] %v5697_v5  ;;  %v7539_v46 = vor.u32 %v7538_v7, %v7535_v11  ;;  %v7549_v12 = vor.u32 %v7548_v31, %v7544_v33  ;;  %v7576_v6 = vshll.u32 %v12200_v16, 16  ;;  %v12652_v63 = vrot.slane %v12612_v4, 9  ;;  %v12203_v37 = vld [vmem:[%s14333_s6 + $0x68] sm:$0x1] }
 0x284   : > { %v7559_v15 = vrot.slane %v7557_v50, 4  ;;  %v7562_v55 = vrot.slane %v7560_v62, 5  ;;  %v7568_v61 = vrot.slane %v7566_v47, 5  ;;  %v7572_v52 = vrot.slane %v7570_v36, 4  ;;  %v12204_v0 = vld [vmem:[%s14333_s6 + $0x6c] sm:$0xf] }
 0x285   : > { %v7540_v44 = vrot.slane %v7539_v46, 4  ;;  %v7550_v25 = vrot.slane %v7549_v12, 4  ;;  %v7578_v35 = vrot.slane %v7576_v6, 5  ;;  %v10634_v1 = vrot.slane %v12613_v32, 5  ;;  %v12205_v27 = vld [vmem:[%s14333_s6 + $0x70] sm:$0xf] }
 0x286   : > { %v10637_v51 = vrot.slane %v12614_v41, 5  ;;  %v7563_v42 = vor.u32 %v7562_v55, %v7559_v15  ;;  %v7573_v48 = vor.u32 %v7572_v52, %v7568_v61  ;;  %v12653_v43 = vrot.slane %v12615_v49, 9  ;;  %v12206_v9 = vld [vmem:[%s14333_s6 + $0x74] sm:$0x1]  ;;  %v12618_v3 = vld [vmem:[%s14333_s6 + $0x60] sm:$0xe] }
 0x287   : > { %v7545_v39 = vsel %vm14358_vm3, %v7540_v44, %v7544_v33  ;;  %v7555_v14 = vsel %vm14358_vm3, %v7550_v25, %v7554_v30  ;;  %v10635_v2 = vsel %vm14559_vm6, %v12652_v63, %v10634_v1  ;;  %v10636_v22 = vrot.slane %v10634_v1, 4  ;;  %v12619_v7 = vld [vmem:[%s14333_s6 + $0x64] sm:$0xf]  ;;  %v12620_v50 = vld [vmem:[%s14333_s6 + $0x68] sm:$0x1] }
 0x288   : > { %v10641_v56 = vrot.slane %v12616_v18, 5  ;;  %v12243_v23 = vcombine.low %v7545_v39, %v7555_v14  ;;  %v7564_v57 = vrot.slane %v7563_v42, 4  ;;  %v7574_v26 = vrot.slane %v7573_v48, 4  ;;  %v12621_v36 = vld [vmem:[%s14333_s6 + $0x6c] sm:$0xe] }
 0x289   : > { %v10644_v58 = vrot.slane %v12617_v8, 5  ;;  %v10638_v54 = vsel %vm14559_vm6, %v10636_v22, %v10637_v51  ;;  %v7581_v60 = vshrl.u32 %v12201_v13, 16  ;;  %v7584_v17 = vshll.u32 %v12201_v13, 16  ;;  %v12622_v63 = vld [vmem:[%s14333_s6 + $0x70] sm:$0xf] }
 0x28a   : > { %v10642_v24 = vsel %vm14559_vm6, %v12653_v43, %v10641_v56  ;;  %v10643_v45 = vrot.slane %v10641_v56, 4  ;;  %13520 = vmatprep.mubr.msk.bf16.mxu0 %vm367_vm0, %v12243_v23  ;;  %v7569_v21 = vsel %vm14358_vm3, %v7564_v57, %v7568_v61  ;;  %v7579_v28 = vsel %vm14358_vm3, %v7574_v26, %v7578_v35  ;;  %v12623_v52 = vld [vmem:[%s14333_s6 + $0x74] sm:$0x1]  ;;  %v12207_v51 = vld [vmem:[%s14333_s6 + $0x78] sm:$0xf] }
 0x28b   : > { %v12676_v19 = vcombine.low %v10635_v2, %v10638_v54  ;;  %v12244_v53 = vcombine.low %v7569_v21, %v7579_v28  ;;  %v7583_v10 = vrot.slane %v7581_v60, 4  ;;  %v7590_v20 = vshll.u32 %v12202_v38, 16  ;;  %v12208_v57 = vld [vmem:[%s14333_s6 + $0x7c] sm:$0xf] }
 0x28c   : > { %v10645_v40 = vsel %vm14559_vm6, %v10643_v45, %v10644_v58  ;;  %v7586_v29 = vrot.slane %v7584_v17, 5  ;;  %v7594_v5 = vshrl.u32 %v12202_v38, 16  ;;  %v7600_v11 = vshll.u32 %v12203_v37, 16  ;;  %v12209_v45 = vld [vmem:[%s14333_s6 + $0x80] sm:$0x1] }
 0x28d   : > { %13680 = vmatprep.mubr.msk.bf16.mxu1 %vm367_vm0, %v12676_v19  ;;  %v12677_v16 = vcombine.low %v10642_v24, %v10645_v40  ;;  %13521 = vmatmul.mubr.msk.bf16.gmra.mrb[40].mxu0 %vm367_vm0, %v12244_v53  ;;  %v7592_v4 = vrot.slane %v7590_v20, 5  ;;  %v7605_v33 = vshrl.u32 %v12204_v0, 16  ;;  %v7608_v31 = vshll.u32 %v12204_v0, 16  ;;  %v12210_v37 = vld [vmem:[%s14333_s6 + $0x84] sm:$0xf] }
 0x28e   : > { %v7614_v30 = vshll.u32 %v12205_v27, 16  ;;  %v7587_v32 = vor.u32 %v7586_v29, %v7583_v10  ;;  %v7596_v46 = vrot.slane %v7594_v5, 4  ;;  %v7602_v62 = vrot.slane %v7600_v11, 5  ;;  %v12211_v17 = vld [vmem:[%s14333_s6 + $0x88] sm:$0xf] }
 0x28f   : > { %13681 = vmatmul.mubr.msk.bf16.gmra.mrb[40].mxu1 %vm367_vm0, %v12677_v16  ;;  %v7618_v47 = vshrl.u32 %v12205_v27, 16  ;;  %v7607_v41 = vrot.slane %v7605_v33, 4  ;;  %v7610_v12 = vrot.slane %v7608_v31, 5  ;;  %v7624_v6 = vshll.u32 %v12206_v9, 16  ;;  %v12212_v10 = vld [vmem:[%s14333_s6 + $0x8c] sm:$0x1] }
 0x290   : > { %v7616_v15 = vrot.slane %v7614_v30, 5  ;;  %v7588_v49 = vrot.slane %v7587_v32, 4  ;;  %v7597_v44 = vor.u32 %v7596_v46, %v7592_v4  ;;  %v12654_v61 = vrot.slane %v12618_v3, 9  ;;  %v12624_v29 = vld [vmem:[%s14333_s6 + $0x78] sm:$0xe] }
 0x291   : > { %v7620_v55 = vrot.slane %v7618_v47, 4  ;;  %v7611_v18 = vor.u32 %v7610_v12, %v7607_v41  ;;  %v7626_v25 = vrot.slane %v7624_v6, 5  ;;  %v10648_v35 = vrot.slane %v12619_v7, 5  ;;  %v12625_v33 = vld [vmem:[%s14333_s6 + $0x7c] sm:$0xf] }
 0x292   : > { %v10651_v1 = vrot.slane %v12620_v50, 5  ;;  %v7593_v8 = vsel %vm14358_vm3, %v7588_v49, %v7592_v4  ;;  %v7598_v39 = vrot.slane %v7597_v44, 4  ;;  %v12655_v48 = vrot.slane %v12621_v36, 9  ;;  %v12626_v41 = vld [vmem:[%s14333_s6 + $0x80] sm:$0x1] }
 0x293   : > { %v7621_v42 = vor.u32 %v7620_v55, %v7616_v15  ;;  %v7612_v43 = vrot.slane %v7611_v18, 4  ;;  %v10649_v13 = vsel %vm14559_vm6, %v12654_v61, %v10648_v35  ;;  %v10650_v14 = vrot.slane %v10648_v35, 4  ;;  %v12627_v12 = vld [vmem:[%s14333_s6 + $0x84] sm:$0xe]  ;;  %v12628_v44 = vld [vmem:[%s14333_s6 + $0x88] sm:$0xf] }
 0x294   : > { %v10655_v2 = vrot.slane %v12622_v63, 5  ;;  %v7603_v22 = vsel %vm14358_vm3, %v7598_v39, %v7602_v62  ;;  %v10658_v23 = vrot.slane %v12623_v52, 5  ;;  %v7629_v26 = vshrl.u32 %v12207_v51, 16  ;;  %v12213_v39 = vld [vmem:[%s14333_s6 + $0x90] sm:$0xf] }
 0x295   : > { %v7622_v56 = vrot.slane %v7621_v42, 4  ;;  %v12245_v58 = vcombine.low %v7593_v8, %v7603_v22  ;;  %v7617_v38 = vsel %vm14358_vm3, %v7612_v43, %v7616_v15  ;;  %v10652_v54 = vsel %vm14559_vm6, %v10650_v14, %v10651_v1  ;;  %v12214_v14 = vld [vmem:[%s14333_s6 + $0x94] sm:$0xf] }
 0x296   : > { %v10656_v24 = vsel %vm14559_vm6, %v12655_v48, %v10655_v2  ;;  %v12678_v21 = vcombine.low %v10649_v13, %v10652_v54  ;;  %v10657_v28 = vrot.slane %v10655_v2, 4  ;;  %v7631_v19 = vrot.slane %v7629_v26, 4 }
 0x297   : > { %v7627_v60 = vsel %vm14358_vm3, %v7622_v56, %v7626_v25  ;;  %13524 = vmatprep.mubr.msk.bf16.mxu0 %vm367_vm0, %v12245_v58  ;;  %v7632_v27 = vshll.u32 %v12207_v51, 16  ;;  %v7638_v53 = vshll.u32 %v12208_v57, 16  ;;  %v7642_v40 = vshrl.u32 %v12208_v57, 16  ;;  %v12629_v25 = vld [vmem:[%s14333_s6 + $0x8c] sm:$0x1] }
 0x298   : > { %v12246_v0 = vcombine.low %v7617_v38, %v7627_v60  ;;  %13684 = vmatprep.mubr.msk.bf16.mxu1 %vm367_vm0, %v12678_v21  ;;  %v10659_v20 = vsel %vm14559_vm6, %v10657_v28, %v10658_v23  ;;  %v7648_v9 = vshll.u32 %v12209_v45, 16  ;;  %v7653_v3 = vshrl.u32 %v12210_v37, 16  ;;  %v12215_v57 = vld [vmem:[%s14333_s6 + $0x98] sm:$0x1]  ;;  %v12216_v21 = vld [vmem:[%s14333_s6 + $0x9c] sm:$0xf] }
 0x299   : > { %v7656_v16 = vshll.u32 %v12210_v37, 16  ;;  %v12679_v5 = vcombine.low %v10656_v24, %v10659_v20  ;;  %v7634_v11 = vrot.slane %v7632_v27, 5  ;;  %v7640_v7 = vrot.slane %v7638_v53, 5  ;;  %v12217_v27 = vld [vmem:[%s14333_s6 + $0xa0] sm:$0xf] }
 0x29a   : > { %13525 = vmatmul.mubr.msk.bf16.gmra.mrb[44].mxu0 %vm367_vm0, %v12246_v0  ;;  %v7644_v4 = vrot.slane %v7642_v40, 4  ;;  %v7650_v31 = vrot.slane %v7648_v9, 5  ;;  %v7655_v30 = vrot.slane %v7653_v3, 4  ;;  %v7662_v32 = vshll.u32 %v12211_v17, 16  ;;  %v12218_v9 = vld [vmem:[%s14333_s6 + $0xa4] sm:$0x1] }
 0x29b   : > { %v7658_v50 = vrot.slane %v7656_v16, 5  ;;  %13685 = vmatmul.mubr.msk.bf16.gmra.mrb[44].mxu1 %vm367_vm0, %v12679_v5  ;;  %v7635_v46 = vor.u32 %v7634_v11, %v7631_v19  ;;  %v7666_v47 = vshrl.u32 %v12211_v17, 16  ;;  %v7672_v36 = vshll.u32 %v12212_v10, 16  ;;  %v12630_v3 = vld [vmem:[%s14333_s6 + $0x90] sm:$0xe] }
 0x29c   : > { %v7645_v62 = vor.u32 %v7644_v4, %v7640_v7  ;;  %v7664_v6 = vrot.slane %v7662_v32, 5  ;;  %v12656_v63 = vrot.slane %v12624_v29, 9  ;;  %v10662_v49 = vrot.slane %v12625_v33, 5 }
 0x29d   : > { %v7659_v15 = vor.u32 %v7658_v50, %v7655_v30  ;;  %v7636_v55 = vrot.slane %v7635_v46, 4  ;;  %v7668_v52 = vrot.slane %v7666_v47, 4  ;;  %v7674_v18 = vrot.slane %v7672_v36, 5  ;;  %v12632_v50 = vld [vmem:[%s14333_s6 + $0x98] sm:$0x1] }
 0x29e   : > { %v7646_v61 = vrot.slane %v7645_v62, 4  ;;  %v10663_v1 = vsel %vm14559_vm6, %v12656_v63, %v10662_v49  ;;  %v10664_v51 = vrot.slane %v10662_v49, 4  ;;  %v10665_v8 = vrot.slane %v12626_v41, 5  ;;  %v12633_v36 = vld [vmem:[%s14333_s6 + $0x9c] sm:$0xe] }
 0x29f   : > { %v7660_v35 = vrot.slane %v7659_v15, 4  ;;  %v7641_v42 = vsel %vm14358_vm3, %v7636_v55, %v7640_v7  ;;  %v7669_v43 = vor.u32 %v7668_v52, %v7664_v6  ;;  %v12657_v13 = vrot.slane %v12627_v12, 9  ;;  %v12631_v7 = vld [vmem:[%s14333_s6 + $0x94] sm:$0xf]  ;;  %v12634_v63 = vld [vmem:[%s14333_s6 + $0xa0] sm:$0xf] }
 0x2a0   : > { %v7651_v48 = vsel %vm14358_vm3, %v7646_v61, %v7650_v31  ;;  %v10666_v56 = vsel %vm14559_vm6, %v10664_v51, %v10665_v8  ;;  %v10669_v23 = vrot.slane %v12628_v44, 5  ;;  %v10672_v38 = vrot.slane %v12629_v25, 5  ;;  %v12635_v52 = vld [vmem:[%s14333_s6 + $0xa4] sm:$0x1]  ;;  %v12219_v51 = vld [vmem:[%s14333_s6 + $0xa8] sm:$0xf] }
 0x2a1   : > { %v12247_v2 = vcombine.low %v7641_v42, %v7651_v48  ;;  %v7665_v22 = vsel %vm14358_vm3, %v7660_v35, %v7664_v6  ;;  %v7670_v26 = vrot.slane %v7669_v43, 4  ;;  %v12680_v58 = vcombine.low %v10663_v1, %v10666_v56 }
 0x2a2   : > { %v7677_v54 = vshrl.u32 %v12213_v39, 16  ;;  %v10670_v24 = vsel %vm14559_vm6, %v12657_v13, %v10669_v23  ;;  %v10671_v45 = vrot.slane %v10669_v23, 4  ;;  %v7680_v37 = vshll.u32 %v12213_v39, 16 }
 0x2a3   : > { %13528 = vmatprep.mubr.msk.bf16.mxu0 %vm367_vm0, %v12247_v2  ;;  %v7686_v60 = vshll.u32 %v12214_v14, 16  ;;  %v7675_v28 = vsel %vm14358_vm3, %v7670_v26, %v7674_v18  ;;  %13688 = vmatprep.mubr.msk.bf16.mxu1 %vm367_vm0, %v12680_v58  ;;  %v7690_v17 = vshrl.u32 %v12214_v14, 16  ;;  %v7696_v0 = vshll.u32 %v12215_v57, 16  ;;  %v12221_v26 = vld [vmem:[%s14333_s6 + $0xb0] sm:$0x1] }
 0x2a4   : > { %v7679_v19 = vrot.slane %v7677_v54, 4  ;;  %v12248_v53 = vcombine.low %v7665_v22, %v7675_v28  ;;  %v10673_v40 = vsel %vm14559_vm6, %v10671_v45, %v10672_v38  ;;  %v7682_v10 = vrot.slane %v7680_v37, 5  ;;  %v12220_v22 = vld [vmem:[%s14333_s6 + $0xac] sm:$0xf]  ;;  %v12222_v37 = vld [vmem:[%s14333_s6 + $0xb4] sm:$0xf] }
 0x2a5   : > { %v7688_v20 = vrot.slane %v7686_v60, 5  ;;  %v12681_v16 = vcombine.low %v10670_v24, %v10673_v40  ;;  %v7692_v29 = vrot.slane %v7690_v17, 4  ;;  %v7698_v5 = vrot.slane %v7696_v0, 5  ;;  %v12223_v60 = vld [vmem:[%s14333_s6 + $0xb8] sm:$0xf] }
 0x2a6   : > { %v7701_v11 = vshrl.u32 %v12216_v21, 16  ;;  %13529 = vmatmul.mubr.msk.bf16.gmra.mrb[48].mxu0 %vm367_vm0, %v12248_v53  ;;  %v7683_v4 = vor.u32 %v7682_v10, %v7679_v19  ;;  %v7704_v33 = vshll.u32 %v12216_v21, 16  ;;  %v7710_v31 = vshll.u32 %v12217_v27, 16  ;;  %v12224_v0 = vld [vmem:[%s14333_s6 + $0xbc] sm:$0x1] }
 0x2a7   : > { %v7714_v30 = vshrl.u32 %v12217_v27, 16  ;;  %13689 = vmatmul.mubr.msk.bf16.gmra.mrb[48].mxu1 %vm367_vm0, %v12681_v16  ;;  %v7693_v32 = vor.u32 %v7692_v29, %v7688_v20  ;;  %v7720_v62 = vshll.u32 %v12218_v9, 16  ;;  %v12658_v47 = vrot.slane %v12630_v3, 9  ;;  %v12636_v27 = vld [vmem:[%s14333_s6 + $0xa8] sm:$0xe] }
 0x2a8   : > { %v7703_v46 = vrot.slane %v7701_v11, 4  ;;  %v7684_v41 = vrot.slane %v7683_v4, 4  ;;  %v7706_v12 = vrot.slane %v7704_v33, 5  ;;  %v7712_v15 = vrot.slane %v7710_v31, 5  ;;  %v12637_v9 = vld [vmem:[%s14333_s6 + $0xac] sm:$0xf] }
 0x2a9   : > { %v7716_v6 = vrot.slane %v7714_v30, 4  ;;  %v7694_v49 = vrot.slane %v7693_v32, 4  ;;  %v7722_v44 = vrot.slane %v7720_v62, 5  ;;  %v10676_v55 = vrot.slane %v12631_v7, 5  ;;  %v12638_v11 = vld [vmem:[%s14333_s6 + $0xb0] sm:$0x1] }
 0x2aa   : > { %v10679_v61 = vrot.slane %v12632_v50, 5  ;;  %v7689_v18 = vsel %vm14358_vm3, %v7684_v41, %v7688_v20  ;;  %v7707_v25 = vor.u32 %v7706_v12, %v7703_v46  ;;  %v12659_v1 = vrot.slane %v12633_v36, 9  ;;  %v12639_v30 = vld [vmem:[%s14333_s6 + $0xb4] sm:$0xe] }
 0x2ab   : > { %v7717_v35 = vor.u32 %v7716_v6, %v7712_v15  ;;  %v7699_v8 = vsel %vm14358_vm3, %v7694_v49, %v7698_v5  ;;  %v10677_v39 = vsel %vm14559_vm6, %v12658_v47, %v10676_v55  ;;  %v10678_v42 = vrot.slane %v10676_v55, 4  ;;  %v12640_v47 = vld [vmem:[%s14333_s6 + $0xb8] sm:$0xf]  ;;  %v12641_v6 = vld [vmem:[%s14333_s6 + $0xbc] sm:$0x1] }
 0x2ac   : > { %v10683_v48 = vrot.slane %v12634_v63, 5  ;;  %v12249_v43 = vcombine.low %v7689_v18, %v7699_v8  ;;  %v7708_v13 = vrot.slane %v7707_v25, 4  ;;  %v10686_v2 = vrot.slane %v12635_v52, 5 }
 0x2ad   : > { %v7718_v14 = vrot.slane %v7717_v35, 4  ;;  %v10680_v56 = vsel %vm14559_vm6, %v10678_v42, %v10679_v61  ;;  %v7725_v58 = vshrl.u32 %v12219_v51, 16  ;;  %v7728_v45 = vshll.u32 %v12219_v51, 16  ;;  %v12225_v61 = vld [vmem:[%s14333_s6 + $0xc0] sm:$0xf] }
 0x2ae   : > { %v10684_v23 = vsel %vm14559_vm6, %v12659_v1, %v10683_v48  ;;  %v10685_v57 = vrot.slane %v10683_v48, 4  ;;  %13532 = vmatprep.mubr.msk.bf16.mxu0 %vm367_vm0, %v12249_v43  ;;  %v7713_v38 = vsel %vm14358_vm3, %v7708_v13, %v7712_v15  ;;  %v12682_v24 = vcombine.low %v10677_v39, %v10680_v56  ;;  %v12226_v13 = vld [vmem:[%s14333_s6 + $0xc4] sm:$0xf] }
 0x2af   : > { %v7723_v54 = vsel %vm14358_vm3, %v7718_v14, %v7722_v44  ;;  %v7727_v19 = vrot.slane %v7725_v58, 4  ;;  %v7734_v17 = vshll.u32 %v12220_v22, 16  ;;  %v7730_v40 = vrot.slane %v7728_v45, 5  ;;  %v12229_v45 = vld [vmem:[%s14333_s6 + $0xd0] sm:$0xf] }
 0x2b0   : > { %v12250_v21 = vcombine.low %v7713_v38, %v7723_v54  ;;  %v10687_v28 = vsel %vm14559_vm6, %v10685_v57, %v10686_v2  ;;  %13692 = vmatprep.mubr.msk.bf16.mxu1 %vm367_vm0, %v12682_v24  ;;  %v7738_v10 = vshrl.u32 %v12220_v22, 16  ;;  %v7744_v20 = vshll.u32 %v12221_v26, 16  ;;  %v12227_v57 = vld [vmem:[%s14333_s6 + $0xc8] sm:$0x1]  ;;  %v12228_v26 = vld [vmem:[%s14333_s6 + $0xcc] sm:$0xf] }
 0x2b1   : > { %v12683_v53 = vcombine.low %v10684_v23, %v10687_v28  ;;  %v7736_v3 = vrot.slane %v7734_v17, 5  ;;  %v7749_v16 = vshrl.u32 %v12222_v37, 16  ;;  %v7752_v29 = vshll.u32 %v12222_v37, 16 }
 0x2b2   : > { %13533 = vmatmul.mubr.msk.bf16.gmra.mrb[52].mxu0 %vm367_vm0, %v12250_v21  ;;  %v7758_v5 = vshll.u32 %v12223_v60, 16  ;;  %v7731_v7 = vor.u32 %v7730_v40, %v7727_v19  ;;  %v7740_v4 = vrot.slane %v7738_v10, 4  ;;  %v7746_v33 = vrot.slane %v7744_v20, 5  ;;  %v12230_v19 = vld [vmem:[%s14333_s6 + $0xd4] sm:$0x1] }
 0x2b3   : > { %13693 = vmatmul.mubr.msk.bf16.gmra.mrb[52].mxu1 %vm367_vm0, %v12683_v53  ;;  %v7762_v31 = vshrl.u32 %v12223_v60, 16  ;;  %v7751_v50 = vrot.slane %v7749_v16, 4  ;;  %v7754_v32 = vrot.slane %v7752_v29, 5  ;;  %v7768_v62 = vshll.u32 %v12224_v0, 16  ;;  %v12642_v40 = vld [vmem:[%s14333_s6 + $0xc0] sm:$0xe] }
 0x2b4   : > { %v7760_v46 = vrot.slane %v7758_v5, 5  ;;  %v7732_v36 = vrot.slane %v7731_v7, 4  ;;  %v7741_v41 = vor.u32 %v7740_v4, %v7736_v3  ;;  %v12660_v15 = vrot.slane %v12636_v27, 9  ;;  %v12643_v16 = vld [vmem:[%s14333_s6 + $0xc4] sm:$0xf] }
 0x2b5   : > { %v7764_v12 = vrot.slane %v7762_v31, 4  ;;  %v7755_v63 = vor.u32 %v7754_v32, %v7751_v50  ;;  %v7770_v49 = vrot.slane %v7768_v62, 5  ;;  %v10690_v44 = vrot.slane %v12637_v9, 5  ;;  %v12644_v50 = vld [vmem:[%s14333_s6 + $0xc8] sm:$0x1] }
 0x2b6   : > { %v10693_v55 = vrot.slane %v12638_v11, 5  ;;  %v7737_v52 = vsel %vm14358_vm3, %v7732_v36, %v7736_v3  ;;  %v7742_v18 = vrot.slane %v7741_v41, 4  ;;  %v12661_v35 = vrot.slane %v12639_v30, 9  ;;  %v12645_v36 = vld [vmem:[%s14333_s6 + $0xcc] sm:$0xe] }
 0x2b7   : > { %v7765_v25 = vor.u32 %v7764_v12, %v7760_v46  ;;  %v7756_v1 = vrot.slane %v7755_v63, 4  ;;  %v10691_v51 = vsel %vm14559_vm6, %v12660_v15, %v10690_v44  ;;  %v10692_v8 = vrot.slane %v10690_v44, 4  ;;  %v12646_v63 = vld [vmem:[%s14333_s6 + $0xd0] sm:$0xf] }
 0x2b8   : > { %v10697_v39 = vrot.slane %v12640_v47, 5  ;;  %v7747_v42 = vsel %vm14358_vm3, %v7742_v18, %v7746_v33  ;;  %v10700_v43 = vrot.slane %v12641_v6, 5  ;;  %v7773_v14 = vshrl.u32 %v12225_v61, 16 }
 0x2b9   : > { %v7766_v48 = vrot.slane %v7765_v25, 4  ;;  %v12251_v2 = vcombine.low %v7737_v52, %v7747_v42  ;;  %v7761_v22 = vsel %vm14358_vm3, %v7756_v1, %v7760_v46  ;;  %v10694_v56 = vsel %vm14559_vm6, %v10692_v8, %v10693_v55  ;;  %v12647_v52 = vld [vmem:[%s14333_s6 + $0xd4] sm:$0x1] }
 0x2ba   : > { %v10698_v23 = vsel %vm14559_vm6, %v12661_v35, %v10697_v39  ;;  %v12684_v38 = vcombine.low %v10691_v51, %v10694_v56  ;;  %v10699_v54 = vrot.slane %v10697_v39, 4  ;;  %v7775_v24 = vrot.slane %v7773_v14, 4 }
 0x2bb   : > { %v7771_v58 = vsel %vm14358_vm3, %v7766_v48, %v7770_v49  ;;  %13536 = vmatprep.mubr.msk.bf16.mxu0 %vm367_vm0, %v12251_v2  ;;  %v7776_v60 = vshll.u32 %v12225_v61, 16  ;;  %v7782_v21 = vshll.u32 %v12226_v13, 16  ;;  %v7786_v28 = vshrl.u32 %v12226_v13, 16 }
 0x2bc   : > { %v12252_v37 = vcombine.low %v7761_v22, %v7771_v58  ;;  %13696 = vmatprep.mubr.msk.bf16.mxu1 %vm367_vm0, %v12684_v38  ;;  %v10701_v17 = vsel %vm14559_vm6, %v10699_v54, %v10700_v43  ;;  %v7792_v0 = vshll.u32 %v12227_v57, 16  ;;  %v7797_v27 = vshrl.u32 %v12228_v26, 16 }
 0x2bd   : > { %v7800_v53 = vshll.u32 %v12228_v26, 16  ;;  %v12685_v10 = vcombine.low %v10698_v23, %v10701_v17  ;;  %v7778_v20 = vrot.slane %v7776_v60, 5  ;;  %v7784_v9 = vrot.slane %v7782_v21, 5  ;;  %v16601_v26 = vld [vmem:[%s16742_s2] ss:$0 sm:$0xff] }
 0x2be   : > { %13537 = vmatmul.mubr.msk.bf16.gmra.mrb[56].mxu0 %vm367_vm0, %v12252_v37  ;;  %v7788_v3 = vrot.slane %v7786_v28, 4  ;;  %v7794_v29 = vrot.slane %v7792_v0, 5  ;;  %v7799_v5 = vrot.slane %v7797_v27, 4  ;;  %v7806_v7 = vshll.u32 %v12229_v45, 16 }
 0x2bf   : > { %v7802_v11 = vrot.slane %v7800_v53, 5  ;;  %13697 = vmatmul.mubr.msk.bf16.gmra.mrb[56].mxu1 %vm367_vm0, %v12685_v10  ;;  %v7779_v4 = vor.u32 %v7778_v20, %v7775_v24  ;;  %v7810_v31 = vshrl.u32 %v12229_v45, 16  ;;  %v7816_v30 = vshll.u32 %v12230_v19, 16 }
 0x2c0   : > { %v7789_v33 = vor.u32 %v7788_v3, %v7784_v9  ;;  %v7808_v46 = vrot.slane %v7806_v7, 5  ;;  %v12662_v62 = vrot.slane %v12642_v40, 9  ;;  %v10704_v47 = vrot.slane %v12643_v16, 5 }
 0x2c1   : > { %v7803_v32 = vor.u32 %v7802_v11, %v7799_v5  ;;  %v7780_v41 = vrot.slane %v7779_v4, 4  ;;  %v7812_v15 = vrot.slane %v7810_v31, 4  ;;  %v7818_v6 = vrot.slane %v7816_v30, 5 }
 0x2c2   : > { %v7790_v12 = vrot.slane %v7789_v33, 4  ;;  %v10705_v44 = vsel %vm14559_vm6, %v12662_v62, %v10704_v47  ;;  %v10706_v55 = vrot.slane %v10704_v47, 4  ;;  %v10707_v61 = vrot.slane %v12644_v50, 5 }
 0x2c3   : > { %v7804_v49 = vrot.slane %v7803_v32, 4  ;;  %v7785_v18 = vsel %vm14358_vm3, %v7780_v41, %v7784_v9  ;;  %v7813_v35 = vor.u32 %v7812_v15, %v7808_v46  ;;  %v12663_v1 = vrot.slane %v12645_v36, 9 }
 0x2c4   : > { %v7795_v25 = vsel %vm14358_vm3, %v7790_v12, %v7794_v29  ;;  %v10708_v8 = vsel %vm14559_vm6, %v10706_v55, %v10707_v61  ;;  %v10711_v39 = vrot.slane %v12646_v63, 5  ;;  %v10714_v13 = vrot.slane %v12647_v52, 5 }
 0x2c5   : > { %v12253_v51 = vcombine.low %v7785_v18, %v7795_v25  ;;  %v7809_v42 = vsel %vm14358_vm3, %v7804_v49, %v7808_v46  ;;  %v7814_v48 = vrot.slane %v7813_v35, 4  ;;  %v12686_v43 = vcombine.low %v10705_v44, %v10708_v8 }
 0x2c6   : > { %v10712_v14 = vsel %vm14559_vm6, %v12663_v1, %v10711_v39  ;;  %v10713_v2 = vrot.slane %v10711_v39, 4 }
 0x2c7   : > { %13540 = vmatprep.mubr.msk.bf16.mxu0 %vm367_vm0, %v12253_v51  ;;  %v7819_v22 = vsel %vm14358_vm3, %v7814_v48, %v7818_v6  ;;  %13700 = vmatprep.mubr.msk.bf16.mxu1 %vm367_vm0, %v12686_v43 }
 0x2c8   : > { %v12254_v56 = vcombine.low %v7809_v42, %v7819_v22  ;;  %v10715_v23 = vsel %vm14559_vm6, %v10713_v2, %v10714_v13 }
 0x2c9   : > { %v12687_v57 = vcombine.low %v10712_v14, %v10715_v23 }
 0x2ca   : > { %13541 = vmatmul.mubr.msk.bf16.gmra.mrb[60].mxu0 %vm367_vm0, %v12254_v56 }
 0x2cb   : > { %13701 = vmatmul.mubr.msk.bf16.gmra.mrb[60].mxu1 %vm367_vm0, %v12687_v57 }
 0x340   : > { %v13514_v58 = vpop.f32.mrb[32].mxu0 }
 0x341   : > { %v8247_v34 = vadd.f32 %v13514_v58, %v16601_v26  ;;  %v7983_v38 = vpop.f32.mrb[33].mxu0 }
 0x342   : > { %v8245_v54 = vadd.f32 %v16601_v26, %v7983_v38  ;;  %v13674_v24 = vpop.f32.mrb[32].mxu1  ;;  %v13515_v59 = vpop.f32.mrb[34].mxu0 }
 0x343   : > { %v8279_v45 = vmax.f32 %v8247_v34, 0.0  ;;  %v11143_v37 = vadd.f32 %v13674_v24, %v16601_v26  ;;  %v8248_v60 = vadd.f32 %v13515_v59, %v16601_v26  ;;  %v10879_v21 = vpop.f32.mrb[33].mxu1  ;;  %v7986_v28 = vpop.f32.mrb[35].mxu0 }
 0x344   : > { %v8277_v19 = vmax.f32 %v8245_v54, 0.0  ;;  %v11141_v17 = vadd.f32 %v16601_v26, %v10879_v21  ;;  %v8246_v0 = vadd.f32 %v16601_v26, %v7986_v28  ;;  %v13675_v27 = vpop.f32.mrb[34].mxu1 }
 0x345   : > { %12278 = vst [vmem:[%s15982_s24 + $0x210] sm:$0xff] %v8279_v45  ;;  %v11175_v53 = vmax.f32 %v11143_v37, 0.0  ;;  %v8280_v40 = vmax.f32 %v8248_v60, 0.0  ;;  %v11144_v10 = vadd.f32 %v13675_v27, %v16601_v26  ;;  %v10882_v20 = vpop.f32.mrb[35].mxu1 }
 0x346   : > { %12276 = vst [vmem:[%s15982_s24 + $0x200] sm:$0xff] %v8277_v19  ;;  %v11173_v9 = vmax.f32 %v11141_v17, 0.0  ;;  %v8278_v3 = vmax.f32 %v8246_v0, 0.0  ;;  %v11142_v16 = vadd.f32 %v16601_v26, %v10882_v20 }
 0x347   : > { %12711 = vst [vmem:[%s15982_s24 + $0x310] sm:$0xff] %v11175_v53  ;;  %12279 = vst [vmem:[%s15982_s24 + $0x218] sm:$0xff] %v8280_v40  ;;  %v11176_v29 = vmax.f32 %v11144_v10, 0.0 }
 0x348   : > { %12709 = vst [vmem:[%s15982_s24 + $0x300] sm:$0xff] %v11173_v9  ;;  %12277 = vst [vmem:[%s15982_s24 + $0x208] sm:$0xff] %v8278_v3  ;;  %v11174_v5 = vmax.f32 %v11142_v16, 0.0 }
 0x349   : > { %12712 = vst [vmem:[%s15982_s24 + $0x318] sm:$0xff] %v11176_v29 }
 0x34a   : > { %12710 = vst [vmem:[%s15982_s24 + $0x308] sm:$0xff] %v11174_v5 }
 0x351   : > { %v13518_v11 = vpop.f32.mrb[36].mxu0 }
 0x352   : > { %v8251_v7 = vadd.f32 %v13518_v11, %v16601_v26  ;;  %v7999_v4 = vpop.f32.mrb[37].mxu0  ;;  %v13678_v33 = vpop.f32.mrb[36].mxu1 }
 0x353   : > { %v8249_v31 = vadd.f32 %v16601_v26, %v7999_v4  ;;  %v11147_v30 = vadd.f32 %v13678_v33, %v16601_v26  ;;  %v13519_v50 = vpop.f32.mrb[38].mxu0  ;;  %v10895_v32 = vpop.f32.mrb[37].mxu1 }
 0x354   : > { %v8283_v46 = vmax.f32 %v8251_v7, 0.0  ;;  %v8252_v62 = vadd.f32 %v13519_v50, %v16601_v26  ;;  %v11145_v47 = vadd.f32 %v16601_v26, %v10895_v32  ;;  %v8002_v36 = vpop.f32.mrb[39].mxu0  ;;  %v13679_v41 = vpop.f32.mrb[38].mxu1 }
 0x355   : > { %v8281_v12 = vmax.f32 %v8249_v31, 0.0  ;;  %v11179_v15 = vmax.f32 %v11147_v30, 0.0  ;;  %v8250_v6 = vadd.f32 %v16601_v26, %v8002_v36  ;;  %v11148_v63 = vadd.f32 %v13679_v41, %v16601_v26  ;;  %v10898_v49 = vpop.f32.mrb[39].mxu1 }
 0x356   : > { %12282 = vst [vmem:[%s15982_s24 + $0x230] sm:$0xff] %v8283_v46  ;;  %v8284_v44 = vmax.f32 %v8252_v62, 0.0  ;;  %v11177_v55 = vmax.f32 %v11145_v47, 0.0  ;;  %v11146_v61 = vadd.f32 %v16601_v26, %v10898_v49 }
 0x357   : > { %12280 = vst [vmem:[%s15982_s24 + $0x220] sm:$0xff] %v8281_v12  ;;  %12715 = vst [vmem:[%s15982_s24 + $0x330] sm:$0xff] %v11179_v15  ;;  %v8282_v52 = vmax.f32 %v8250_v6, 0.0  ;;  %v11180_v18 = vmax.f32 %v11148_v63, 0.0 }
 0x358   : > { %12283 = vst [vmem:[%s15982_s24 + $0x238] sm:$0xff] %v8284_v44  ;;  %12713 = vst [vmem:[%s15982_s24 + $0x320] sm:$0xff] %v11177_v55  ;;  %v11178_v25 = vmax.f32 %v11146_v61, 0.0 }
 0x359   : > { %12281 = vst [vmem:[%s15982_s24 + $0x228] sm:$0xff] %v8282_v52  ;;  %12716 = vst [vmem:[%s15982_s24 + $0x338] sm:$0xff] %v11180_v18 }
 0x35a   : > { %12714 = vst [vmem:[%s15982_s24 + $0x328] sm:$0xff] %v11178_v25 }
 0x360   : > { %v13522_v35 = vpop.f32.mrb[40].mxu0 }
 0x361   : > { %v8255_v1 = vadd.f32 %v13522_v35, %v16601_v26  ;;  %v8015_v51 = vpop.f32.mrb[41].mxu0 }
 0x362   : > { %v13682_v8 = vpop.f32.mrb[40].mxu1  ;;  %v8253_v39 = vadd.f32 %v16601_v26, %v8015_v51  ;;  %v13523_v48 = vpop.f32.mrb[42].mxu0 }
 0x363   : > { %v11151_v42 = vadd.f32 %v13682_v8, %v16601_v26  ;;  %v10911_v43 = vpop.f32.mrb[41].mxu1  ;;  %v8287_v13 = vmax.f32 %v8255_v1, 0.0  ;;  %v8256_v14 = vadd.f32 %v13523_v48, %v16601_v26  ;;  %v8018_v22 = vpop.f32.mrb[43].mxu0 }
 0x364   : > { %v11149_v2 = vadd.f32 %v16601_v26, %v10911_v43  ;;  %v13683_v56 = vpop.f32.mrb[42].mxu1  ;;  %v8285_v23 = vmax.f32 %v8253_v39, 0.0  ;;  %v8254_v58 = vadd.f32 %v16601_v26, %v8018_v22 }
 0x365   : > { %v11183_v57 = vmax.f32 %v11151_v42, 0.0  ;;  %v11152_v34 = vadd.f32 %v13683_v56, %v16601_v26  ;;  %v10914_v38 = vpop.f32.mrb[43].mxu1  ;;  %12286 = vst [vmem:[%s15982_s24 + $0x250] sm:$0xff] %v8287_v13  ;;  %v8288_v54 = vmax.f32 %v8256_v14, 0.0 }
 0x366   : > { %v11181_v24 = vmax.f32 %v11149_v2, 0.0  ;;  %v11150_v59 = vadd.f32 %v16601_v26, %v10914_v38  ;;  %12284 = vst [vmem:[%s15982_s24 + $0x240] sm:$0xff] %v8285_v23  ;;  %v8286_v45 = vmax.f32 %v8254_v58, 0.0 }
 0x367   : > { %12719 = vst [vmem:[%s15982_s24 + $0x350] sm:$0xff] %v11183_v57  ;;  %v11184_v37 = vmax.f32 %v11152_v34, 0.0  ;;  %12287 = vst [vmem:[%s15982_s24 + $0x258] sm:$0xff] %v8288_v54 }
 0x368   : > { %12717 = vst [vmem:[%s15982_s24 + $0x340] sm:$0xff] %v11181_v24  ;;  %v11182_v60 = vmax.f32 %v11150_v59, 0.0  ;;  %12285 = vst [vmem:[%s15982_s24 + $0x248] sm:$0xff] %v8286_v45 }
 0x369   : > { %12720 = vst [vmem:[%s15982_s24 + $0x358] sm:$0xff] %v11184_v37 }
 0x36a   : > { %12718 = vst [vmem:[%s15982_s24 + $0x348] sm:$0xff] %v11182_v60 }
 0x36d   : > { %v13526_v21 = vpop.f32.mrb[44].mxu0 }
 0x36e   : > { %v8259_v28 = vadd.f32 %v13526_v21, %v16601_v26  ;;  %v8031_v19 = vpop.f32.mrb[45].mxu0  ;;  %v13686_v0 = vpop.f32.mrb[44].mxu1 }
 0x36f   : > { %v8257_v17 = vadd.f32 %v16601_v26, %v8031_v19  ;;  %v13527_v27 = vpop.f32.mrb[46].mxu0  ;;  %v11155_v40 = vadd.f32 %v13686_v0, %v16601_v26  ;;  %v10927_v20 = vpop.f32.mrb[45].mxu1 }
 0x370   : > { %v8291_v53 = vmax.f32 %v8259_v28, 0.0  ;;  %v8260_v10 = vadd.f32 %v13527_v27, %v16601_v26  ;;  %v8034_v9 = vpop.f32.mrb[47].mxu0  ;;  %v11153_v16 = vadd.f32 %v16601_v26, %v10927_v20  ;;  %v13687_v5 = vpop.f32.mrb[46].mxu1 }
 0x371   : > { %v8289_v3 = vmax.f32 %v8257_v17, 0.0  ;;  %v8258_v29 = vadd.f32 %v16601_v26, %v8034_v9  ;;  %v11187_v11 = vmax.f32 %v11155_v40, 0.0  ;;  %v11156_v4 = vadd.f32 %v13687_v5, %v16601_v26  ;;  %v10930_v33 = vpop.f32.mrb[47].mxu1 }
 0x372   : > { %12290 = vst [vmem:[%s15982_s24 + $0x270] sm:$0xff] %v8291_v53  ;;  %v8292_v7 = vmax.f32 %v8260_v10, 0.0  ;;  %v11185_v31 = vmax.f32 %v11153_v16, 0.0  ;;  %v11154_v50 = vadd.f32 %v16601_v26, %v10930_v33 }
 0x373   : > { %12288 = vst [vmem:[%s15982_s24 + $0x260] sm:$0xff] %v8289_v3  ;;  %v8290_v30 = vmax.f32 %v8258_v29, 0.0  ;;  %12723 = vst [vmem:[%s15982_s24 + $0x370] sm:$0xff] %v11187_v11  ;;  %v11188_v32 = vmax.f32 %v11156_v4, 0.0 }
 0x374   : > { %12291 = vst [vmem:[%s15982_s24 + $0x278] sm:$0xff] %v8292_v7  ;;  %12721 = vst [vmem:[%s15982_s24 + $0x360] sm:$0xff] %v11185_v31  ;;  %v11186_v46 = vmax.f32 %v11154_v50, 0.0 }
 0x375   : > { %12289 = vst [vmem:[%s15982_s24 + $0x268] sm:$0xff] %v8290_v30  ;;  %12724 = vst [vmem:[%s15982_s24 + $0x378] sm:$0xff] %v11188_v32 }
 0x376   : > { %12722 = vst [vmem:[%s15982_s24 + $0x368] sm:$0xff] %v11186_v46 }
 0x379   : > { %v13530_v62 = vpop.f32.mrb[48].mxu0 }
 0x37a   : > { %v8263_v47 = vadd.f32 %v13530_v62, %v16601_v26  ;;  %v8047_v36 = vpop.f32.mrb[49].mxu0  ;;  %v13690_v41 = vpop.f32.mrb[48].mxu1 }
 0x37b   : > { %v8261_v12 = vadd.f32 %v16601_v26, %v8047_v36  ;;  %v11159_v15 = vadd.f32 %v13690_v41, %v16601_v26  ;;  %v13531_v6 = vpop.f32.mrb[50].mxu0  ;;  %v10943_v63 = vpop.f32.mrb[49].mxu1 }
 0x37c   : > { %v8295_v49 = vmax.f32 %v8263_v47, 0.0  ;;  %v8264_v44 = vadd.f32 %v13531_v6, %v16601_v26  ;;  %v11157_v55 = vadd.f32 %v16601_v26, %v10943_v63  ;;  %v8050_v61 = vpop.f32.mrb[51].mxu0  ;;  %v13691_v52 = vpop.f32.mrb[50].mxu1 }
 0x37d   : > { %v8293_v18 = vmax.f32 %v8261_v12, 0.0  ;;  %v11191_v25 = vmax.f32 %v11159_v15, 0.0  ;;  %v8262_v35 = vadd.f32 %v16601_v26, %v8050_v61  ;;  %v11160_v1 = vadd.f32 %v13691_v52, %v16601_v26  ;;  %v10946_v51 = vpop.f32.mrb[51].mxu1 }
 0x37e   : > { %12294 = vst [vmem:[%s15982_s24 + $0x290] sm:$0xff] %v8295_v49  ;;  %v8296_v8 = vmax.f32 %v8264_v44, 0.0  ;;  %v11189_v39 = vmax.f32 %v11157_v55, 0.0  ;;  %v11158_v42 = vadd.f32 %v16601_v26, %v10946_v51 }
 0x37f   : > { %12292 = vst [vmem:[%s15982_s24 + $0x280] sm:$0xff] %v8293_v18  ;;  %12727 = vst [vmem:[%s15982_s24 + $0x390] sm:$0xff] %v11191_v25  ;;  %v8294_v48 = vmax.f32 %v8262_v35, 0.0  ;;  %v11192_v43 = vmax.f32 %v11160_v1, 0.0 }
 0x380   : > { %12295 = vst [vmem:[%s15982_s24 + $0x298] sm:$0xff] %v8296_v8  ;;  %12725 = vst [vmem:[%s15982_s24 + $0x380] sm:$0xff] %v11189_v39  ;;  %v11190_v13 = vmax.f32 %v11158_v42, 0.0 }
 0x381   : > { %12293 = vst [vmem:[%s15982_s24 + $0x288] sm:$0xff] %v8294_v48  ;;  %12728 = vst [vmem:[%s15982_s24 + $0x398] sm:$0xff] %v11192_v43 }
 0x382   : > { %12726 = vst [vmem:[%s15982_s24 + $0x388] sm:$0xff] %v11190_v13 }
 0x385   : > { %v13534_v14 = vpop.f32.mrb[52].mxu0 }
 0x386   : > { %v8267_v2 = vadd.f32 %v13534_v14, %v16601_v26  ;;  %v8063_v22 = vpop.f32.mrb[53].mxu0  ;;  %v13694_v56 = vpop.f32.mrb[52].mxu1 }
 0x387   : > { %v8265_v23 = vadd.f32 %v16601_v26, %v8063_v22  ;;  %v11163_v57 = vadd.f32 %v13694_v56, %v16601_v26  ;;  %v13535_v58 = vpop.f32.mrb[54].mxu0  ;;  %v10959_v34 = vpop.f32.mrb[53].mxu1 }
 0x388   : > { %v8299_v38 = vmax.f32 %v8267_v2, 0.0  ;;  %v8268_v54 = vadd.f32 %v13535_v58, %v16601_v26  ;;  %v11161_v24 = vadd.f32 %v16601_v26, %v10959_v34  ;;  %v8066_v59 = vpop.f32.mrb[55].mxu0  ;;  %v13695_v45 = vpop.f32.mrb[54].mxu1 }
 0x389   : > { %v8297_v37 = vmax.f32 %v8265_v23, 0.0  ;;  %v11195_v60 = vmax.f32 %v11163_v57, 0.0  ;;  %v8266_v21 = vadd.f32 %v16601_v26, %v8066_v59  ;;  %v11164_v28 = vadd.f32 %v13695_v45, %v16601_v26  ;;  %v10962_v19 = vpop.f32.mrb[55].mxu1 }
 0x38a   : > { %12298 = vst [vmem:[%s15982_s24 + $0x2b0] sm:$0xff] %v8299_v38  ;;  %v8300_v17 = vmax.f32 %v8268_v54, 0.0  ;;  %v11193_v0 = vmax.f32 %v11161_v24, 0.0  ;;  %v11162_v27 = vadd.f32 %v16601_v26, %v10962_v19 }
 0x38b   : > { %12296 = vst [vmem:[%s15982_s24 + $0x2a0] sm:$0xff] %v8297_v37  ;;  %12731 = vst [vmem:[%s15982_s24 + $0x3b0] sm:$0xff] %v11195_v60  ;;  %v8298_v53 = vmax.f32 %v8266_v21, 0.0  ;;  %v11196_v40 = vmax.f32 %v11164_v28, 0.0 }
 0x38c   : > { %12299 = vst [vmem:[%s15982_s24 + $0x2b8] sm:$0xff] %v8300_v17  ;;  %12729 = vst [vmem:[%s15982_s24 + $0x3a0] sm:$0xff] %v11193_v0  ;;  %v11194_v10 = vmax.f32 %v11162_v27, 0.0 }
 0x38d   : > { %12297 = vst [vmem:[%s15982_s24 + $0x2a8] sm:$0xff] %v8298_v53  ;;  %12732 = vst [vmem:[%s15982_s24 + $0x3b8] sm:$0xff] %v11196_v40 }
 0x38e   : > { %12730 = vst [vmem:[%s15982_s24 + $0x3a8] sm:$0xff] %v11194_v10 }
 0x391   : > { %v13538_v20 = vpop.f32.mrb[56].mxu0 }
 0x392   : > { %v8271_v9 = vadd.f32 %v13538_v20, %v16601_v26  ;;  %v8079_v3 = vpop.f32.mrb[57].mxu0  ;;  %v13698_v29 = vpop.f32.mrb[56].mxu1 }
 0x393   : > { %v8269_v16 = vadd.f32 %v16601_v26, %v8079_v3  ;;  %v13539_v5 = vpop.f32.mrb[58].mxu0  ;;  %v11167_v7 = vadd.f32 %v13698_v29, %v16601_v26  ;;  %v10975_v33 = vpop.f32.mrb[57].mxu1 }
 0x394   : > { %v8303_v11 = vmax.f32 %v8271_v9, 0.0  ;;  %v8272_v4 = vadd.f32 %v13539_v5, %v16601_v26  ;;  %v8082_v31 = vpop.f32.mrb[59].mxu0  ;;  %v11165_v50 = vadd.f32 %v16601_v26, %v10975_v33  ;;  %v13699_v46 = vpop.f32.mrb[58].mxu1 }
 0x395   : > { %v8301_v30 = vmax.f32 %v8269_v16, 0.0  ;;  %v8270_v32 = vadd.f32 %v16601_v26, %v8082_v31  ;;  %v11199_v62 = vmax.f32 %v11167_v7, 0.0  ;;  %v11168_v36 = vadd.f32 %v13699_v46, %v16601_v26  ;;  %v10978_v41 = vpop.f32.mrb[59].mxu1 }
 0x396   : > { %12302 = vst [vmem:[%s15982_s24 + $0x2d0] sm:$0xff] %v8303_v11  ;;  %v8304_v47 = vmax.f32 %v8272_v4, 0.0  ;;  %v11197_v12 = vmax.f32 %v11165_v50, 0.0  ;;  %v11166_v6 = vadd.f32 %v16601_v26, %v10978_v41 }
 0x397   : > { %12300 = vst [vmem:[%s15982_s24 + $0x2c0] sm:$0xff] %v8301_v30  ;;  %v8302_v15 = vmax.f32 %v8270_v32, 0.0  ;;  %12735 = vst [vmem:[%s15982_s24 + $0x3d0] sm:$0xff] %v11199_v62  ;;  %v11200_v63 = vmax.f32 %v11168_v36, 0.0 }
 0x398   : > { %12303 = vst [vmem:[%s15982_s24 + $0x2d8] sm:$0xff] %v8304_v47  ;;  %12733 = vst [vmem:[%s15982_s24 + $0x3c0] sm:$0xff] %v11197_v12  ;;  %v11198_v49 = vmax.f32 %v11166_v6, 0.0 }
 0x399   : > { %12301 = vst [vmem:[%s15982_s24 + $0x2c8] sm:$0xff] %v8302_v15  ;;  %12736 = vst [vmem:[%s15982_s24 + $0x3d8] sm:$0xff] %v11200_v63 }
 0x39a   : > { %12734 = vst [vmem:[%s15982_s24 + $0x3c8] sm:$0xff] %v11198_v49 }
 0x39d   : > { %v13542_v44 = vpop.f32.mrb[60].mxu0 }
 0x39e   : > { %v8275_v55 = vadd.f32 %v13542_v44, %v16601_v26  ;;  %v8095_v61 = vpop.f32.mrb[61].mxu0  ;;  %v13702_v52 = vpop.f32.mrb[60].mxu1 }
 0x39f   : > { %v8273_v18 = vadd.f32 %v16601_v26, %v8095_v61  ;;  %v11171_v25 = vadd.f32 %v13702_v52, %v16601_v26  ;;  %v13543_v35 = vpop.f32.mrb[62].mxu0  ;;  %v10991_v1 = vpop.f32.mrb[61].mxu1 }
 0x3a0   : > { %v8307_v51 = vmax.f32 %v8275_v55, 0.0  ;;  %v8276_v8 = vadd.f32 %v13543_v35, %v16601_v26  ;;  %v11169_v39 = vadd.f32 %v16601_v26, %v10991_v1  ;;  %v8098_v42 = vpop.f32.mrb[63].mxu0  ;;  %v13703_v48 = vpop.f32.mrb[62].mxu1 }
 0x3a1   : > { %v8305_v43 = vmax.f32 %v8273_v18, 0.0  ;;  %v11203_v13 = vmax.f32 %v11171_v25, 0.0  ;;  %v8274_v14 = vadd.f32 %v16601_v26, %v8098_v42  ;;  %v11172_v2 = vadd.f32 %v13703_v48, %v16601_v26  ;;  %v10994_v22 = vpop.f32.mrb[63].mxu1 }
 0x3a2   : > { %12306 = vst [vmem:[%s15982_s24 + $0x2f0] sm:$0xff] %v8307_v51  ;;  %v8308_v56 = vmax.f32 %v8276_v8, 0.0  ;;  %v11201_v23 = vmax.f32 %v11169_v39, 0.0  ;;  %v11170_v57 = vadd.f32 %v16601_v26, %v10994_v22 }
 0x3a3   : > { %12304 = vst [vmem:[%s15982_s24 + $0x2e0] sm:$0xff] %v8305_v43  ;;  %12739 = vst [vmem:[%s15982_s24 + $0x3f0] sm:$0xff] %v11203_v13  ;;  %v8306_v58 = vmax.f32 %v8274_v14, 0.0  ;;  %v11204_v34 = vmax.f32 %v11172_v2, 0.0 }
 0x3a4   : > { %12307 = vst [vmem:[%s15982_s24 + $0x2f8] sm:$0xff] %v8308_v56  ;;  %12737 = vst [vmem:[%s15982_s24 + $0x3e0] sm:$0xff] %v11201_v23  ;;  %v11202_v38 = vmax.f32 %v11170_v57, 0.0 }
 0x3a5   : > { %12305 = vst [vmem:[%s15982_s24 + $0x2e8] sm:$0xff] %v8306_v58  ;;  %12740 = vst [vmem:[%s15982_s24 + $0x3f8] sm:$0xff] %v11204_v34 }
 0x3a6   : > { %12738 = vst [vmem:[%s15982_s24 + $0x3e8] sm:$0xff] %v11202_v38 }
 0x3a7 PF: > { %s13_s14 = sadd.s32 1, %s14266_s14   ;;  %s16762_s12 = smov %s14262_s13 }
 0x3a8   : > { %p10_p5 = scmp.ge.s32.totalorder %s13_s14, 4   ;;  %s16763_s13 = smov %s16765_s15 }
 0x3aa   :  { %12 = sbr.rel (!%p10_p5) target bundleno = 2 (0x2), region = 88 }

</bundles_post_ra>
